<compile_context>
chip_gen: v7x
topology: tpu7x:2x2x1
jax: 0.10.0
libtpu: 0.0.40
codegen_flags: <defaults>
</compile_context>

<pallas_src>
import functools
import math

import jax
import jax.numpy as jnp
from jax.experimental import pallas as pl
from jax.experimental.pallas import tpu as pltpu


# ----------------------------------------------------------------------------
# Hardware-aware constants
# ----------------------------------------------------------------------------
ACT_DTYPE = jnp.bfloat16        # inter-layer activation storage (HBM) dtype
MXU_DTYPE = jnp.bfloat16        # MXU operand dtype (accumulation stays f32)


def _tpu_vmem_bytes():
    try:
        return int(pltpu.get_tpu_info().vmem_capacity_bytes)
    except Exception:
        return 64 * 1024 * 1024          # conservative fallback (v7x physical VMEM)


_VMEM_CAP = _tpu_vmem_bytes()
# scoped VMEM limit handed to Mosaic (<= physical on every generation)
_VMEM_LIMIT = int(min(max(_VMEM_CAP // 2, 32 * 1024 * 1024), 100 * 1024 * 1024))
# per-grid-step working-set budget used to size the row tile
_TILE_BUDGET = int(0.7 * _VMEM_LIMIT)


def _mosaic_params(dim_sem):
    return pltpu.CompilerParams(dimension_semantics=dim_sem,
                                vmem_limit_bytes=_VMEM_LIMIT)


def _pick_row_tile(H, W, cin, cout, n_out_streams):
    """Largest divisor of H (capped at H//2 for H >= 8 so the pipeline has several
    steps) whose per-step working set fits the VMEM budget."""
    cap = H if H < 8 else max(H // 2, 1)
    best = 1
    for th in range(1, cap + 1):
        if H % th:
            continue
        stream = 2 * ((th + 2) * W * cin * 2 + n_out_streams * th * W * cout * 2)
        weights = 2 * (9 * cin * cout * 2 + cout * 4)
        scratch = (th + 2) * W * cin * 2 + cout * 4
        live = th * W * (cin * 2 + 4 * cout * 4)      # in-flight f32 partials (approx)
        if stream + weights + scratch + live <= _TILE_BUDGET:
            best = th
    return best


# ----------------------------------------------------------------------------
# Pallas kernels
# ----------------------------------------------------------------------------
def _conv3x3_kernel(x_ref, top_ref, bot_ref, w_ref, b_ref, *rest,
                    relu, has_res, has_ca, inv_hw):
    """3x3 SAME conv on one (1, TH, W, C) row tile.

    The kernel assembles a contiguous (TH+2, W, C) bf16 halo window once (halo
    rows zero-masked at the image top/bottom) and runs 9 MXU matmuls (one per
    tap, K=C) with f32 accumulation.  Horizontal (kx) shifts are applied to the
    flattened f32 partial sums with a sublane roll plus an output-column mask,
    so there is no im2col copy and no padded-W scratch.

    With has_ca=True the kernel additionally accumulates the channel-attention
    global average pool across the row-tile axis (which therefore must be the
    innermost, sequential / "arbitrary" grid axis) and emits the sigmoid gate
    as a second (1, 1, Co) output at the last tile.
    """
    idx = 0
    res_ref = None
    if has_res:
        res_ref = rest[idx]; idx += 1
    if has_ca:
        w1_ref, b1_ref, w2_ref, b2_ref = rest[idx:idx + 4]; idx += 4
    o_ref = rest[idx]; idx += 1
    gate_ref = None
    if has_ca:
        gate_ref = rest[idx]; idx += 1
    win_ref = rest[idx]; idx += 1
    csum_ref = rest[idx] if has_ca else None

    _, TH, W, C = x_ref.shape
    Co = w_ref.shape[-1]
    M = TH * W
    r = pl.program_id(1)
    nrow = pl.num_programs(1)

    # --- assemble the (TH+2, W, C) bf16 halo window (zero-masked at image edges) ---
    tmask = (r > 0).astype(jnp.float32)
    bmask = (r < nrow - 1).astype(jnp.float32)
    win_ref[0:1] = (top_ref[0].astype(jnp.float32) * tmask).astype(win_ref.dtype)
    win_ref[1:TH + 1] = x_ref[0]
    win_ref[TH + 1:TH + 2] = (bot_ref[0].astype(jnp.float32) * bmask).astype(win_ref.dtype)

    # output-column index used to mask the kx = 0 / 2 shifted contributions
    col = jax.lax.broadcasted_iota(jnp.int32, (M, Co), 0) % W

    # --- 9 taps = 9 MXU matmuls; the kx shift is one sublane roll on f32 partials ---
    acc = None
    for kx in range(3):
        p = None
        for ky in range(3):
            lhs = win_ref[ky:ky + TH].reshape(M, C)
            t = jnp.dot(lhs, w_ref[ky * 3 + kx], preferred_element_type=jnp.float32)
            p = t if p is None else p + t
        if kx == 0:
            # out[.., tx] += P[.., tx-1]   (zero at tx == 0)
            p = jnp.where(col == 0, 0.0, pltpu.roll(p, 1, axis=0))
        elif kx == 2:
            # out[.., tx] += P[.., tx+1]   (zero at tx == W-1); roll by M-1 == -1
            p = jnp.where(col == W - 1, 0.0, pltpu.roll(p, M - 1, axis=0))
        acc = p if acc is None else acc + p
    acc = acc + b_ref[...]                                            # bias (f32)

    # --- fused channel-attention pooling / gate (conv2 of each RCAB) ---
    if has_ca:
        # NOTE: relies on the row-tile grid axis being innermost & sequential
        # ("arbitrary"); do not switch it to core_parallel without restructuring.
        @pl.when(r == 0)
        def _init():
            csum_ref[...] = jnp.zeros_like(csum_ref)

        csum_ref[...] += jnp.sum(acc, axis=0, keepdims=True)

        @pl.when(r == nrow - 1)
        def _finalize():
            y = csum_ref[...] * inv_hw                                # (1, Co) mean
            h = jnp.maximum(
                jnp.dot(y, w1_ref[...], preferred_element_type=jnp.float32)
                + b1_ref[...], 0.0)
            z = (jnp.dot(h, w2_ref[...], preferred_element_type=jnp.float32)
                 + b2_ref[...])
            gate_ref[...] = (1.0 / (1.0 + jnp.exp(-z))).reshape(1, 1, Co)

    if relu:
        acc = jnp.maximum(acc, 0.0)
    out = acc.reshape(TH, W, Co)
    if has_res:
        out = out + res_ref[0].astype(jnp.float32)
    o_ref[...] = out.reshape(1, TH, W, Co).astype(o_ref.dtype)


def _ca_gate_kernel(x_ref, skip_ref, g_ref, o_ref):
    """Channel attention apply (streaming): out = x * gate + skip (RCAB skip fused)."""
    g = g_ref[...].reshape(1, 1, 1, -1)
    o_ref[...] = (x_ref[...].astype(jnp.float32) * g
                  + skip_ref[...].astype(jnp.float32)).astype(o_ref.dtype)


# ----------------------------------------------------------------------------
# Pallas wrappers
# ----------------------------------------------------------------------------
def conv3x3(x, w, b, residual=None, relu=False, ca=None):
    """x: (N,H,W,C) bf16; w: (9,C,Co) bf16; b: (1,Co) f32.

    If `ca` = (w1, b1, w2, b2) is given, also returns the channel-attention gate
    (N, 1, Co) computed from the conv output (pool -> FC -> ReLU -> FC -> sigmoid),
    fused into the same pallas_call.
    """
    N, H, W, C = x.shape
    Co = w.shape[-1]
    assert w.shape == (9, C, Co), (w.shape, C, Co)
    has_res = residual is not None
    has_ca = ca is not None
    assert not (has_ca and (relu or has_res)), "CA conv is plain conv2 in RCAB"

    TH = _pick_row_tile(H, W, C, Co, 1 + int(has_res))
    nrow = H // TH

    kernel = functools.partial(_conv3x3_kernel, relu=relu, has_res=has_res,
                               has_ca=has_ca, inv_hw=1.0 / float(H * W))

    in_specs = [
        pl.BlockSpec((1, TH, W, C), lambda n, r: (n, r, 0, 0)),
        pl.BlockSpec((1, 1, W, C),
                     lambda n, r: (n, jnp.maximum(r * TH - 1, 0), 0, 0)),       # top halo
        pl.BlockSpec((1, 1, W, C),
                     lambda n, r: (n, jnp.minimum(r * TH + TH, H - 1), 0, 0)),  # bottom halo
        pl.BlockSpec((9, C, Co), lambda n, r: (0, 0, 0)),     # weights stay resident
        pl.BlockSpec((1, Co), lambda n, r: (0, 0)),
    ]
    args = [x, x, x, w, b]
    if has_res:
        in_specs.append(pl.BlockSpec((1, TH, W, Co), lambda n, r: (n, r, 0, 0)))
        args.append(residual)

    scratch = [pltpu.VMEM((TH + 2, W, C), MXU_DTYPE)]          # halo window
    transcendentals = 0
    if has_ca:
        w1, b1, w2, b2 = ca
        Cr = w1.shape[-1]
        in_specs += [
            pl.BlockSpec((C, Cr), lambda n, r: (0, 0)),
            pl.BlockSpec((1, Cr), lambda n, r: (0, 0)),
            pl.BlockSpec((Cr, Co), lambda n, r: (0, 0)),
            pl.BlockSpec((1, Co), lambda n, r: (0, 0)),
        ]
        args += [w1, b1, w2, b2]
        scratch.append(pltpu.VMEM((1, Co), jnp.float32))       # pool accumulator
        out_shape = (jax.ShapeDtypeStruct((N, H, W, Co), ACT_DTYPE),
                     jax.ShapeDtypeStruct((N, 1, Co), jnp.float32))
        out_specs = (pl.BlockSpec((1, TH, W, Co), lambda n, r: (n, r, 0, 0)),
                     pl.BlockSpec((1, 1, Co), lambda n, r: (n, 0, 0)))
        dim_sem = ("parallel", "arbitrary")    # r accumulates the pool: sequential
        transcendentals = N * Co
    else:
        out_shape = jax.ShapeDtypeStruct((N, H, W, Co), ACT_DTYPE)
        out_specs = pl.BlockSpec((1, TH, W, Co), lambda n, r: (n, r, 0, 0))
        dim_sem = ("parallel", "parallel")

    cost = pl.CostEstimate(
        flops=2 * N * H * W * 9 * C * Co,
        transcendentals=transcendentals,
        bytes_accessed=(N * H * W * (C + (1 + int(has_res)) * Co) * 2
                        + 9 * C * Co * 2 + 4 * Co))

    return pl.pallas_call(
        kernel,
        out_shape=out_shape,
        grid=(N, nrow),
        in_specs=in_specs,
        out_specs=out_specs,
        scratch_shapes=scratch,
        compiler_params=_mosaic_params(dim_sem),
        cost_estimate=cost,
    )(*args)


def ca_apply(x, skip, gate):
    """Streaming channel-attention apply + RCAB skip: out = x * gate + skip."""
    N, H, W, C = x.shape
    TH = _pick_row_tile(H, W, C, C, 2)
    nrow = H // TH
    cost = pl.CostEstimate(flops=3 * N * H * W * C, transcendentals=0,
                           bytes_accessed=3 * N * H * W * C * 2 + N * C * 4)
    return pl.pallas_call(
        _ca_gate_kernel,
        out_shape=jax.ShapeDtypeStruct((N, H, W, C), ACT_DTYPE),
        grid=(N, nrow),
        in_specs=[
            pl.BlockSpec((1, TH, W, C), lambda n, r: (n, r, 0, 0)),
            pl.BlockSpec((1, TH, W, C), lambda n, r: (n, r, 0, 0)),
            pl.BlockSpec((1, 1, C), lambda n, r: (n, 0, 0)),
        ],
        out_specs=pl.BlockSpec((1, TH, W, C), lambda n, r: (n, r, 0, 0)),
        compiler_params=_mosaic_params(("parallel", "parallel")),
        cost_estimate=cost,
    )(x, skip, gate)


def pixel_shuffle_nhwc(x, r):
    """PyTorch nn.PixelShuffle semantics in NHWC."""
    # TODO(synk): pure reshape/transpose layout glue kept in XLA (no compute to kernelize).
    N, H, W, Crr = x.shape
    C = Crr // (r * r)
    x = x.reshape(N, H, W, C, r, r)
    x = jnp.transpose(x, (0, 1, 4, 2, 5, 3))   # (N, H, r, W, r, C)
    return x.reshape(N, H * r, W * r, C)


# ----------------------------------------------------------------------------
# Parameters (deterministic synthetic init; shapes as implied by the module)
# ----------------------------------------------------------------------------
def _init_conv(key, cin, cout):
    kw_, kb_ = jax.random.split(key)
    w = jax.random.normal(kw_, (3, 3, cin, cout), jnp.float32) / jnp.sqrt(9.0 * cin)
    b = 0.01 * jax.random.normal(kb_, (cout,), jnp.float32)
    return w.reshape(9, cin, cout).astype(MXU_DTYPE), b.reshape(1, cout).astype(jnp.float32)


def _init_dense(key, cin, cout):
    kw_, kb_ = jax.random.split(key)
    w = jax.random.normal(kw_, (cin, cout), jnp.float32) / jnp.sqrt(cin)
    b = 0.01 * jax.random.normal(kb_, (1, cout), jnp.float32)
    return w, b


def init_rcan_params(key, n_resblocks, n_resgroups, n_feats, n_channels, reduction, scale):
    n_up = int(round(math.log2(scale)))
    assert 2 ** n_up == scale, "Upsampler implemented for power-of-two scales"

    def nxt():
        nonlocal key
        key, sub = jax.random.split(key)
        return sub

    params = {"head": _init_conv(nxt(), n_channels, n_feats)}
    groups = []
    for _ in range(n_resgroups):
        blocks = []
        for _ in range(n_resblocks):
            blocks.append({
                "conv1": _init_conv(nxt(), n_feats, n_feats),
                "conv2": _init_conv(nxt(), n_feats, n_feats),
                "fc1": _init_dense(nxt(), n_feats, n_feats // reduction),
                "fc2": _init_dense(nxt(), n_feats // reduction, n_feats),
            })
        groups.append({"blocks": blocks, "conv": _init_conv(nxt(), n_feats, n_feats)})
    params["groups"] = groups
    params["body_conv"] = _init_conv(nxt(), n_feats, n_feats)
    params["up_convs"] = [_init_conv(nxt(), n_feats, 4 * n_feats) for _ in range(n_up)]
    params["tail_conv"] = _init_conv(nxt(), n_feats, n_channels)
    return params


# ----------------------------------------------------------------------------
# RCAN forward (structure mirrors the PyTorch module exactly)
# ----------------------------------------------------------------------------
def _rcan_body(params, x, conv_fn, gate_fn):
    # meta_data argument of the PyTorch forward is unused there, so omitted here.
    h = conv_fn(x, *params["head"])                           # head
    res = h
    for g in params["groups"]:                                # body: residual groups
        g_in = res
        t = g_in
        for blk in g["blocks"]:                               # RCAB
            r1 = conv_fn(t, *blk["conv1"], relu=True)
            ca = (blk["fc1"][0], blk["fc1"][1], blk["fc2"][0], blk["fc2"][1])
            r2, gate = conv_fn(r1, *blk["conv2"], ca=ca)      # conv2 + fused CA pool/gate
            t = gate_fn(r2, t, gate)                          # x*gate + RCAB skip
        t = conv_fn(t, *g["conv"], residual=g_in)             # group conv + group skip
        res = t
    res = conv_fn(res, *params["body_conv"], residual=h)      # body conv + global skip
    u = res
    for up in params["up_convs"]:                             # tail: Upsampler
        u = conv_fn(u, *up)
        u = pixel_shuffle_nhwc(u, 2)                          # PixelShuffle (glue)
    return conv_fn(u, *params["tail_conv"])                   # tail conv


def rcan_forward_pallas(params, x_nchw):
    x = jnp.transpose(x_nchw, (0, 2, 3, 1)).astype(ACT_DTYPE)     # NCHW -> NHWC, bf16
    out = _rcan_body(params, x, conv3x3, ca_apply)
    return jnp.transpose(out.astype(jnp.float32), (0, 3, 1, 2))   # NHWC -> NCHW


def rcan_forward_ref(params, x_nchw):
    x = jnp.transpose(x_nchw, (0, 2, 3, 1)).astype(ACT_DTYPE)
    out = _rcan_body(params, x, _ref_conv, _ref_gate)
    return jnp.transpose(out.astype(jnp.float32), (0, 3, 1, 2))


# ----------------------------------------------------------------------------
# Pure-JAX reference (same bf16 storage / bf16 MXU operands / f32 accumulation)
# ----------------------------------------------------------------------------
def _ref_conv(x, w, b, residual=None, relu=False, ca=None):
    C, Co = w.shape[1], w.shape[2]
    y = jax.lax.conv_general_dilated(
        x.astype(MXU_DTYPE), w.reshape(3, 3, C, Co), (1, 1), ((1, 1), (1, 1)),
        dimension_numbers=("NHWC", "HWIO", "NHWC"),
        preferred_element_type=jnp.float32) + b.reshape(1, 1, 1, Co)
    if relu:
        y = jnp.maximum(y, 0.0)
    if residual is not None:
        y = y + residual.astype(jnp.float32)
    out = y.astype(ACT_DTYPE)
    if ca is None:
        return out
    w1, b1, w2, b2 = ca
    p = jnp.mean(y, axis=(1, 2))                              # (N, Co)
    hdn = jnp.maximum(p @ w1 + b1, 0.0)
    gate = 1.0 / (1.0 + jnp.exp(-(hdn @ w2 + b2)))            # (N, Co)
    return out, gate.reshape(-1, 1, Co)


def _ref_gate(x, skip, gate):
    g = gate.reshape(gate.shape[0], 1, 1, -1)
    return (x.astype(jnp.float32) * g + skip.astype(jnp.float32)).astype(ACT_DTYPE)


# ----------------------------------------------------------------------------
if __name__ == "__main__":
    # Small but faithful config.
    n_resblocks, n_resgroups = 2, 2
    n_feats, n_channels = 16, 4
    reduction, scale = 4, 2
    N, H, W = 2, 16, 16

    key = jax.random.PRNGKey(0)
    key, pkey, xkey = jax.random.split(key, 3)
    params = init_rcan_params(pkey, n_resblocks, n_resgroups, n_feats,
                              n_channels, reduction, scale)
    x = jax.random.normal(xkey, (N, n_channels, H, W), jnp.float32)   # NCHW like PyTorch

    pallas_fwd = jax.jit(rcan_forward_pallas)
    out = jax.block_until_ready(pallas_fwd(params, x))
    assert out.shape == (N, n_channels, H * scale, W * scale), out.shape

    ref = rcan_forward_ref(params, x)
    rel_err = float(jnp.max(jnp.abs(out - ref)) / (jnp.max(jnp.abs(ref)) + 1e-6))
    assert rel_err < 3e-2, f"mismatch vs reference: rel_err={rel_err}"

    print("KERNEL_OK")
</pallas_src>

<mosaic_0001>
module attributes {stable_mosaic.version = 11 : i64} {
  func.func @_conv3x3_kernel(%arg0: i32, %arg1: i32, %arg2: memref<1x8x16x16xbf16, #tpu.memory_space<vmem>>, %arg3: memref<1x1x16x16xbf16, #tpu.memory_space<vmem>>, %arg4: memref<1x1x16x16xbf16, #tpu.memory_space<vmem>>, %arg5: memref<9x16x16xbf16, #tpu.memory_space<vmem>>, %arg6: memref<1x16xf32, #tpu.memory_space<vmem>>, %arg7: memref<1x8x16x16xbf16, #tpu.memory_space<vmem>>, %arg8: memref<10x16x16xbf16, #tpu.memory_space<vmem>>) attributes {dimension_semantics = [#tpu.dimension_semantics<parallel>, #tpu.dimension_semantics<parallel>], iteration_bounds = array<i64: 2, 2>, scalar_prefetch = 0 : i64, scratch_operands = 1 : i64, tpu.core_type = #tpu.core_type<tc>, window_params = [{transform_indices = @transform_0, window_bounds = array<i64: 1, 8, 16, 16>}, {transform_indices = @transform_1, window_bounds = array<i64: 1, 1, 16, 16>}, {transform_indices = @transform_2, window_bounds = array<i64: 1, 1, 16, 16>}, {pipeline_mode = #tpu.pipeline_mode<synchronous>, transform_indices = @transform_3, window_bounds = array<i64: 9, 16, 16>}, {pipeline_mode = #tpu.pipeline_mode<synchronous>, transform_indices = @transform_4, window_bounds = array<i64: 1, 16>}, {transform_indices = @transform_5, window_bounds = array<i64: 1, 8, 16, 16>}]} {
    %c0_i32 = arith.constant 0 : i32
    %0 = arith.cmpi sgt, %arg1, %c0_i32 : i32
    %1 = arith.extui %0 : i1 to i32
    %2 = arith.sitofp %1 : i32 to f32
    %c1_i32 = arith.constant 1 : i32
    %3 = arith.cmpi slt, %arg1, %c1_i32 : i32
    %4 = arith.extui %3 : i1 to i32
    %5 = arith.sitofp %4 : i32 to f32
    %c0 = arith.constant 0 : index
    %c0_0 = arith.constant 0 : index
    %c0_1 = arith.constant 0 : index
    %c0_2 = arith.constant 0 : index
    %6 = vector.load %arg3[%c0, %c0_0, %c0_1, %c0_2] : memref<1x1x16x16xbf16, #tpu.memory_space<vmem>>, vector<1x1x16x16xbf16>
    %7 = vector.shape_cast %6 : vector<1x1x16x16xbf16> to vector<1x16x16xbf16>
    %8 = arith.extf %7 : vector<1x16x16xbf16> to vector<1x16x16xf32>
    %9 = vector.broadcast %2 : f32 to vector<1x16x16xf32>
    %10 = arith.mulf %8, %9 : vector<1x16x16xf32>
    %11 = arith.truncf %10 : vector<1x16x16xf32> to vector<1x16x16xbf16>
    %c0_3 = arith.constant 0 : index
    %c0_4 = arith.constant 0 : index
    %c0_5 = arith.constant 0 : index
    %12 = vector.load %arg8[%c0_3, %c0_4, %c0_5] : memref<10x16x16xbf16, #tpu.memory_space<vmem>>, vector<1x16x16xbf16>
    tpu.vector_store %arg8[%c0_3, %c0_4, %c0_5], %11 {strides = array<i32>} : memref<10x16x16xbf16, #tpu.memory_space<vmem>>, vector<1x16x16xbf16>,
    %c0_6 = arith.constant 0 : index
    %c0_7 = arith.constant 0 : index
    %c0_8 = arith.constant 0 : index
    %c0_9 = arith.constant 0 : index
    %13 = vector.load %arg2[%c0_6, %c0_7, %c0_8, %c0_9] : memref<1x8x16x16xbf16, #tpu.memory_space<vmem>>, vector<1x8x16x16xbf16>
    %14 = vector.shape_cast %13 : vector<1x8x16x16xbf16> to vector<8x16x16xbf16>
    %c1 = arith.constant 1 : index
    %c0_10 = arith.constant 0 : index
    %c0_11 = arith.constant 0 : index
    %15 = vector.load %arg8[%c1, %c0_10, %c0_11] : memref<10x16x16xbf16, #tpu.memory_space<vmem>>, vector<8x16x16xbf16>
    tpu.vector_store %arg8[%c1, %c0_10, %c0_11], %14 {strides = array<i32>} : memref<10x16x16xbf16, #tpu.memory_space<vmem>>, vector<8x16x16xbf16>,
    %c0_12 = arith.constant 0 : index
    %c0_13 = arith.constant 0 : index
    %c0_14 = arith.constant 0 : index
    %c0_15 = arith.constant 0 : index
    %16 = vector.load %arg4[%c0_12, %c0_13, %c0_14, %c0_15] : memref<1x1x16x16xbf16, #tpu.memory_space<vmem>>, vector<1x1x16x16xbf16>
    %17 = vector.shape_cast %16 : vector<1x1x16x16xbf16> to vector<1x16x16xbf16>
    %18 = arith.extf %17 : vector<1x16x16xbf16> to vector<1x16x16xf32>
    %19 = vector.broadcast %5 : f32 to vector<1x16x16xf32>
    %20 = arith.mulf %18, %19 : vector<1x16x16xf32>
    %21 = arith.truncf %20 : vector<1x16x16xf32> to vector<1x16x16xbf16>
    %c9 = arith.constant 9 : index
    %c0_16 = arith.constant 0 : index
    %c0_17 = arith.constant 0 : index
    %22 = vector.load %arg8[%c9, %c0_16, %c0_17] : memref<10x16x16xbf16, #tpu.memory_space<vmem>>, vector<1x16x16xbf16>
    tpu.vector_store %arg8[%c9, %c0_16, %c0_17], %21 {strides = array<i32>} : memref<10x16x16xbf16, #tpu.memory_space<vmem>>, vector<1x16x16xbf16>,
    %23 = tpu.iota {dimensions = array<i32: 0>} : vector<128x16xi32>
    %c16_i32 = arith.constant 16 : i32
    %c0_i32_18 = arith.constant 0 : i32
    %24 = arith.cmpi eq, %c16_i32, %c0_i32_18 : i32
    %c1_i32_19 = arith.constant 1 : i32
    %25 = arith.select %24, %c1_i32_19, %c16_i32 : i32
    %26 = vector.broadcast %25 : i32 to vector<128x16xi32>
    %27 = arith.remsi %23, %26 : vector<128x16xi32>
    %c0_i32_20 = arith.constant 0 : i32
    %28 = vector.broadcast %c0_i32_20 : i32 to vector<128x16xi32>
    %29 = arith.cmpi ne, %27, %28 : vector<128x16xi32>
    %c0_i32_21 = arith.constant 0 : i32
    %30 = vector.broadcast %c0_i32_21 : i32 to vector<128x16xi32>
    %31 = arith.cmpi slt, %27, %30 : vector<128x16xi32>
    %c0_i32_22 = arith.constant 0 : i32
    %32 = arith.cmpi slt, %25, %c0_i32_22 : i32
    %33 = vector.broadcast %32 : i1 to vector<128x16xi1>
    %34 = vector.broadcast %33 : vector<128x16xi1> to vector<128x16xi1>
    %35 = arith.xori %31, %34 : vector<128x16xi1>
    %36 = arith.andi %35, %29 : vector<128x16xi1>
    %37 = vector.broadcast %25 : i32 to vector<128x16xi32>
    %38 = arith.addi %27, %37 : vector<128x16xi32>
    %39 = arith.select %36, %38, %27 : vector<128x16xi1>, vector<128x16xi32>
    %c0_23 = arith.constant 0 : index
    %c0_24 = arith.constant 0 : index
    %c0_25 = arith.constant 0 : index
    %40 = vector.load %arg8[%c0_23, %c0_24, %c0_25] : memref<10x16x16xbf16, #tpu.memory_space<vmem>>, vector<8x16x16xbf16>
    %41 = vector.shape_cast %40 : vector<8x16x16xbf16> to vector<128x16xbf16>
    %c0_26 = arith.constant 0 : index
    %c0_27 = arith.constant 0 : index
    %c0_28 = arith.constant 0 : index
    %42 = vector.load %arg5[%c0_26, %c0_27, %c0_28] : memref<9x16x16xbf16, #tpu.memory_space<vmem>>, vector<1x16x16xbf16>
    %43 = vector.shape_cast %42 : vector<1x16x16xbf16> to vector<16x16xbf16>
    %cst = arith.constant dense<0.000000e+00> : vector<128x16xf32>
    %44 = tpu.matmul %41, %43, %cst {dimension_numbers = #tpu.dot_dimension_numbers<[1], [0], [0], [1], [0, 0, 1, 1], [], []>} : vector<128x16xbf16>, vector<16x16xbf16>, vector<128x16xf32> -> vector<128x16xf32>
    %c1_29 = arith.constant 1 : index
    %c0_30 = arith.constant 0 : index
    %c0_31 = arith.constant 0 : index
    %45 = vector.load %arg8[%c1_29, %c0_30, %c0_31] : memref<10x16x16xbf16, #tpu.memory_space<vmem>>, vector<8x16x16xbf16>
    %46 = vector.shape_cast %45 : vector<8x16x16xbf16> to vector<128x16xbf16>
    %c3 = arith.constant 3 : index
    %c0_32 = arith.constant 0 : index
    %c0_33 = arith.constant 0 : index
    %47 = vector.load %arg5[%c3, %c0_32, %c0_33] : memref<9x16x16xbf16, #tpu.memory_space<vmem>>, vector<1x16x16xbf16>
    %48 = vector.shape_cast %47 : vector<1x16x16xbf16> to vector<16x16xbf16>
    %cst_34 = arith.constant dense<0.000000e+00> : vector<128x16xf32>
    %49 = tpu.matmul %46, %48, %cst_34 {dimension_numbers = #tpu.dot_dimension_numbers<[1], [0], [0], [1], [0, 0, 1, 1], [], []>} : vector<128x16xbf16>, vector<16x16xbf16>, vector<128x16xf32> -> vector<128x16xf32>
    %50 = arith.addf %44, %49 : vector<128x16xf32>
    %c2 = arith.constant 2 : index
    %c0_35 = arith.constant 0 : index
    %c0_36 = arith.constant 0 : index
    %51 = vector.load %arg8[%c2, %c0_35, %c0_36] : memref<10x16x16xbf16, #tpu.memory_space<vmem>>, vector<8x16x16xbf16>
    %52 = vector.shape_cast %51 : vector<8x16x16xbf16> to vector<128x16xbf16>
    %c6 = arith.constant 6 : index
    %c0_37 = arith.constant 0 : index
    %c0_38 = arith.constant 0 : index
    %53 = vector.load %arg5[%c6, %c0_37, %c0_38] : memref<9x16x16xbf16, #tpu.memory_space<vmem>>, vector<1x16x16xbf16>
    %54 = vector.shape_cast %53 : vector<1x16x16xbf16> to vector<16x16xbf16>
    %cst_39 = arith.constant dense<0.000000e+00> : vector<128x16xf32>
    %55 = tpu.matmul %52, %54, %cst_39 {dimension_numbers = #tpu.dot_dimension_numbers<[1], [0], [0], [1], [0, 0, 1, 1], [], []>} : vector<128x16xbf16>, vector<16x16xbf16>, vector<128x16xf32> -> vector<128x16xf32>
    %56 = arith.addf %50, %55 : vector<128x16xf32>
    %c0_i32_40 = arith.constant 0 : i32
    %57 = vector.broadcast %c0_i32_40 : i32 to vector<128x16xi32>
    %58 = arith.cmpi eq, %39, %57 : vector<128x16xi32>
    %c1_i32_41 = arith.constant 1 : i32
    %59 = tpu.dynamic_rotate %56 by %c1_i32_41 dim 0 : vector<128x16xf32>, i32 -> vector<128x16xf32>
    %cst_42 = arith.constant 0.000000e+00 : f32
    %60 = vector.broadcast %cst_42 : f32 to vector<128x16xf32>
    %61 = arith.select %58, %60, %59 : vector<128x16xi1>, vector<128x16xf32>
    %c0_43 = arith.constant 0 : index
    %c0_44 = arith.constant 0 : index
    %c0_45 = arith.constant 0 : index
    %62 = vector.load %arg8[%c0_43, %c0_44, %c0_45] : memref<10x16x16xbf16, #tpu.memory_space<vmem>>, vector<8x16x16xbf16>
    %63 = vector.shape_cast %62 : vector<8x16x16xbf16> to vector<128x16xbf16>
    %c1_46 = arith.constant 1 : index
    %c0_47 = arith.constant 0 : index
    %c0_48 = arith.constant 0 : index
    %64 = vector.load %arg5[%c1_46, %c0_47, %c0_48] : memref<9x16x16xbf16, #tpu.memory_space<vmem>>, vector<1x16x16xbf16>
    %65 = vector.shape_cast %64 : vector<1x16x16xbf16> to vector<16x16xbf16>
    %cst_49 = arith.constant dense<0.000000e+00> : vector<128x16xf32>
    %66 = tpu.matmul %63, %65, %cst_49 {dimension_numbers = #tpu.dot_dimension_numbers<[1], [0], [0], [1], [0, 0, 1, 1], [], []>} : vector<128x16xbf16>, vector<16x16xbf16>, vector<128x16xf32> -> vector<128x16xf32>
    %c1_50 = arith.constant 1 : index
    %c0_51 = arith.constant 0 : index
    %c0_52 = arith.constant 0 : index
    %67 = vector.load %arg8[%c1_50, %c0_51, %c0_52] : memref<10x16x16xbf16, #tpu.memory_space<vmem>>, vector<8x16x16xbf16>
    %68 = vector.shape_cast %67 : vector<8x16x16xbf16> to vector<128x16xbf16>
    %c4 = arith.constant 4 : index
    %c0_53 = arith.constant 0 : index
    %c0_54 = arith.constant 0 : index
    %69 = vector.load %arg5[%c4, %c0_53, %c0_54] : memref<9x16x16xbf16, #tpu.memory_space<vmem>>, vector<1x16x16xbf16>
    %70 = vector.shape_cast %69 : vector<1x16x16xbf16> to vector<16x16xbf16>
    %cst_55 = arith.constant dense<0.000000e+00> : vector<128x16xf32>
    %71 = tpu.matmul %68, %70, %cst_55 {dimension_numbers = #tpu.dot_dimension_numbers<[1], [0], [0], [1], [0, 0, 1, 1], [], []>} : vector<128x16xbf16>, vector<16x16xbf16>, vector<128x16xf32> -> vector<128x16xf32>
    %72 = arith.addf %66, %71 : vector<128x16xf32>
    %c2_56 = arith.constant 2 : index
    %c0_57 = arith.constant 0 : index
    %c0_58 = arith.constant 0 : index
    %73 = vector.load %arg8[%c2_56, %c0_57, %c0_58] : memref<10x16x16xbf16, #tpu.memory_space<vmem>>, vector<8x16x16xbf16>
    %74 = vector.shape_cast %73 : vector<8x16x16xbf16> to vector<128x16xbf16>
    %c7 = arith.constant 7 : index
    %c0_59 = arith.constant 0 : index
    %c0_60 = arith.constant 0 : index
    %75 = vector.load %arg5[%c7, %c0_59, %c0_60] : memref<9x16x16xbf16, #tpu.memory_space<vmem>>, vector<1x16x16xbf16>
    %76 = vector.shape_cast %75 : vector<1x16x16xbf16> to vector<16x16xbf16>
    %cst_61 = arith.constant dense<0.000000e+00> : vector<128x16xf32>
    %77 = tpu.matmul %74, %76, %cst_61 {dimension_numbers = #tpu.dot_dimension_numbers<[1], [0], [0], [1], [0, 0, 1, 1], [], []>} : vector<128x16xbf16>, vector<16x16xbf16>, vector<128x16xf32> -> vector<128x16xf32>
    %78 = arith.addf %72, %77 : vector<128x16xf32>
    %79 = arith.addf %61, %78 : vector<128x16xf32>
    %c0_62 = arith.constant 0 : index
    %c0_63 = arith.constant 0 : index
    %c0_64 = arith.constant 0 : index
    %80 = vector.load %arg8[%c0_62, %c0_63, %c0_64] : memref<10x16x16xbf16, #tpu.memory_space<vmem>>, vector<8x16x16xbf16>
    %81 = vector.shape_cast %80 : vector<8x16x16xbf16> to vector<128x16xbf16>
    %c2_65 = arith.constant 2 : index
    %c0_66 = arith.constant 0 : index
    %c0_67 = arith.constant 0 : index
    %82 = vector.load %arg5[%c2_65, %c0_66, %c0_67] : memref<9x16x16xbf16, #tpu.memory_space<vmem>>, vector<1x16x16xbf16>
    %83 = vector.shape_cast %82 : vector<1x16x16xbf16> to vector<16x16xbf16>
    %cst_68 = arith.constant dense<0.000000e+00> : vector<128x16xf32>
    %84 = tpu.matmul %81, %83, %cst_68 {dimension_numbers = #tpu.dot_dimension_numbers<[1], [0], [0], [1], [0, 0, 1, 1], [], []>} : vector<128x16xbf16>, vector<16x16xbf16>, vector<128x16xf32> -> vector<128x16xf32>
    %c1_69 = arith.constant 1 : index
    %c0_70 = arith.constant 0 : index
    %c0_71 = arith.constant 0 : index
    %85 = vector.load %arg8[%c1_69, %c0_70, %c0_71] : memref<10x16x16xbf16, #tpu.memory_space<vmem>>, vector<8x16x16xbf16>
    %86 = vector.shape_cast %85 : vector<8x16x16xbf16> to vector<128x16xbf16>
    %c5 = arith.constant 5 : index
    %c0_72 = arith.constant 0 : index
    %c0_73 = arith.constant 0 : index
    %87 = vector.load %arg5[%c5, %c0_72, %c0_73] : memref<9x16x16xbf16, #tpu.memory_space<vmem>>, vector<1x16x16xbf16>
    %88 = vector.shape_cast %87 : vector<1x16x16xbf16> to vector<16x16xbf16>
    %cst_74 = arith.constant dense<0.000000e+00> : vector<128x16xf32>
    %89 = tpu.matmul %86, %88, %cst_74 {dimension_numbers = #tpu.dot_dimension_numbers<[1], [0], [0], [1], [0, 0, 1, 1], [], []>} : vector<128x16xbf16>, vector<16x16xbf16>, vector<128x16xf32> -> vector<128x16xf32>
    %90 = arith.addf %84, %89 : vector<128x16xf32>
    %c2_75 = arith.constant 2 : index
    %c0_76 = arith.constant 0 : index
    %c0_77 = arith.constant 0 : index
    %91 = vector.load %arg8[%c2_75, %c0_76, %c0_77] : memref<10x16x16xbf16, #tpu.memory_space<vmem>>, vector<8x16x16xbf16>
    %92 = vector.shape_cast %91 : vector<8x16x16xbf16> to vector<128x16xbf16>
    %c8 = arith.constant 8 : index
    %c0_78 = arith.constant 0 : index
    %c0_79 = arith.constant 0 : index
    %93 = vector.load %arg5[%c8, %c0_78, %c0_79] : memref<9x16x16xbf16, #tpu.memory_space<vmem>>, vector<1x16x16xbf16>
    %94 = vector.shape_cast %93 : vector<1x16x16xbf16> to vector<16x16xbf16>
    %cst_80 = arith.constant dense<0.000000e+00> : vector<128x16xf32>
    %95 = tpu.matmul %92, %94, %cst_80 {dimension_numbers = #tpu.dot_dimension_numbers<[1], [0], [0], [1], [0, 0, 1, 1], [], []>} : vector<128x16xbf16>, vector<16x16xbf16>, vector<128x16xf32> -> vector<128x16xf32>
    %96 = arith.addf %90, %95 : vector<128x16xf32>
    %c15_i32 = arith.constant 15 : i32
    %97 = vector.broadcast %c15_i32 : i32 to vector<128x16xi32>
    %98 = arith.cmpi eq, %39, %97 : vector<128x16xi32>
    %c127_i32 = arith.constant 127 : i32
    %99 = tpu.dynamic_rotate %96 by %c127_i32 dim 0 : vector<128x16xf32>, i32 -> vector<128x16xf32>
    %cst_81 = arith.constant 0.000000e+00 : f32
    %100 = vector.broadcast %cst_81 : f32 to vector<128x16xf32>
    %101 = arith.select %98, %100, %99 : vector<128x16xi1>, vector<128x16xf32>
    %102 = arith.addf %79, %101 : vector<128x16xf32>
    %c0_82 = arith.constant 0 : index
    %c0_83 = arith.constant 0 : index
    %103 = vector.load %arg6[%c0_82, %c0_83] : memref<1x16xf32, #tpu.memory_space<vmem>>, vector<1x16xf32>
    %104 = vector.broadcast %103 : vector<1x16xf32> to vector<128x16xf32>
    %105 = arith.addf %102, %104 : vector<128x16xf32>
    %cst_84 = arith.constant 0.000000e+00 : f32
    %106 = vector.broadcast %cst_84 : f32 to vector<128x16xf32>
    %107 = arith.maximumf %105, %106 : vector<128x16xf32>
    %108 = vector.shape_cast %107 : vector<128x16xf32> to vector<8x16x16xf32>
    %109 = vector.shape_cast %108 : vector<8x16x16xf32> to vector<1x8x16x16xf32>
    %110 = arith.truncf %109 : vector<1x8x16x16xf32> to vector<1x8x16x16xbf16>
    %c0_85 = arith.constant 0 : index
    %c0_86 = arith.constant 0 : index
    %c0_87 = arith.constant 0 : index
    %c0_88 = arith.constant 0 : index
    %111 = vector.load %arg7[%c0_85, %c0_86, %c0_87, %c0_88] : memref<1x8x16x16xbf16, #tpu.memory_space<vmem>>, vector<1x8x16x16xbf16>
    tpu.vector_store %arg7[%c0_85, %c0_86, %c0_87, %c0_88], %110 {strides = array<i32>} : memref<1x8x16x16xbf16, #tpu.memory_space<vmem>>, vector<1x8x16x16xbf16>,
    return
  }
  func.func @transform_0(%arg0: i32, %arg1: i32) -> (i32, i32, i32, i32) {
    %c0_i32 = arith.constant 0 : i32
    %c0_i32_0 = arith.constant 0 : i32
    %c0_i32_1 = arith.constant 0 : i32
    return %arg0, %arg1, %c0_i32, %c0_i32_0 : i32, i32, i32, i32
  }
  func.func @transform_1(%arg0: i32, %arg1: i32) -> (i32, i32, i32, i32) {
    %c8_i32 = arith.constant 8 : i32
    %0 = arith.muli %arg1, %c8_i32 : i32
    %c1_i32 = arith.constant 1 : i32
    %1 = arith.subi %0, %c1_i32 : i32
    %c0_i32 = arith.constant 0 : i32
    %2 = arith.maxsi %1, %c0_i32 : i32
    %c0_i32_0 = arith.constant 0 : i32
    %c0_i32_1 = arith.constant 0 : i32
    %c0_i32_2 = arith.constant 0 : i32
    return %arg0, %2, %c0_i32_0, %c0_i32_1 : i32, i32, i32, i32
  }
  func.func @transform_2(%arg0: i32, %arg1: i32) -> (i32, i32, i32, i32) {
    %c8_i32 = arith.constant 8 : i32
    %0 = arith.muli %arg1, %c8_i32 : i32
    %c8_i32_0 = arith.constant 8 : i32
    %1 = arith.addi %0, %c8_i32_0 : i32
    %c15_i32 = arith.constant 15 : i32
    %2 = arith.minsi %1, %c15_i32 : i32
    %c0_i32 = arith.constant 0 : i32
    %c0_i32_1 = arith.constant 0 : i32
    %c0_i32_2 = arith.constant 0 : i32
    return %arg0, %2, %c0_i32, %c0_i32_1 : i32, i32, i32, i32
  }
  func.func @transform_3(%arg0: i32, %arg1: i32) -> (i32, i32, i32) {
    %c0_i32 = arith.constant 0 : i32
    %c0_i32_0 = arith.constant 0 : i32
    %c0_i32_1 = arith.constant 0 : i32
    %c0_i32_2 = arith.constant 0 : i32
    return %c0_i32, %c0_i32_0, %c0_i32_1 : i32, i32, i32
  }
  func.func @transform_4(%arg0: i32, %arg1: i32) -> (i32, i32) {
    %c0_i32 = arith.constant 0 : i32
    %c0_i32_0 = arith.constant 0 : i32
    %c0_i32_1 = arith.constant 0 : i32
    return %c0_i32, %c0_i32_0 : i32, i32
  }
  func.func @transform_5(%arg0: i32, %arg1: i32) -> (i32, i32, i32, i32) {
    %c0_i32 = arith.constant 0 : i32
    %c0_i32_0 = arith.constant 0 : i32
    %c0_i32_1 = arith.constant 0 : i32
    return %arg0, %arg1, %c0_i32, %c0_i32_0 : i32, i32, i32, i32
  }
}

module attributes {stable_mosaic.version = 11 : i64} {
  func.func @_ca_gate_kernel(%arg0: i32, %arg1: i32, %arg2: memref<1x8x16x16xbf16, #tpu.memory_space<vmem>>, %arg3: memref<1x8x16x16xbf16, #tpu.memory_space<vmem>>, %arg4: memref<1x1x16xf32, #tpu.memory_space<vmem>>, %arg5: memref<1x8x16x16xbf16, #tpu.memory_space<vmem>>) attributes {dimension_semantics = [#tpu.dimension_semantics<parallel>, #tpu.dimension_semantics<parallel>], iteration_bounds = array<i64: 2, 2>, scalar_prefetch = 0 : i64, scratch_operands = 0 : i64, tpu.core_type = #tpu.core_type<tc>, window_params = [{transform_indices = @transform_0, window_bounds = array<i64: 1, 8, 16, 16>}, {transform_indices = @transform_1, window_bounds = array<i64: 1, 8, 16, 16>}, {transform_indices = @transform_2, window_bounds = array<i64: 1, 1, 16>}, {transform_indices = @transform_3, window_bounds = array<i64: 1, 8, 16, 16>}]} {
    %c0 = arith.constant 0 : index
    %c0_0 = arith.constant 0 : index
    %c0_1 = arith.constant 0 : index
    %0 = vector.load %arg4[%c0, %c0_0, %c0_1] : memref<1x1x16xf32, #tpu.memory_space<vmem>>, vector<1x1x16xf32>
    %1 = vector.shape_cast %0 : vector<1x1x16xf32> to vector<1x1x1x16xf32>
    %c0_2 = arith.constant 0 : index
    %c0_3 = arith.constant 0 : index
    %c0_4 = arith.constant 0 : index
    %c0_5 = arith.constant 0 : index
    %2 = vector.load %arg2[%c0_2, %c0_3, %c0_4, %c0_5] : memref<1x8x16x16xbf16, #tpu.memory_space<vmem>>, vector<1x8x16x16xbf16>
    %3 = arith.extf %2 : vector<1x8x16x16xbf16> to vector<1x8x16x16xf32>
    %4 = vector.broadcast %1 : vector<1x1x1x16xf32> to vector<1x8x16x16xf32>
    %5 = arith.mulf %3, %4 : vector<1x8x16x16xf32>
    %c0_6 = arith.constant 0 : index
    %c0_7 = arith.constant 0 : index
    %c0_8 = arith.constant 0 : index
    %c0_9 = arith.constant 0 : index
    %6 = vector.load %arg3[%c0_6, %c0_7, %c0_8, %c0_9] : memref<1x8x16x16xbf16, #tpu.memory_space<vmem>>, vector<1x8x16x16xbf16>
    %7 = arith.extf %6 : vector<1x8x16x16xbf16> to vector<1x8x16x16xf32>
    %8 = arith.addf %5, %7 : vector<1x8x16x16xf32>
    %9 = arith.truncf %8 : vector<1x8x16x16xf32> to vector<1x8x16x16xbf16>
    %c0_10 = arith.constant 0 : index
    %c0_11 = arith.constant 0 : index
    %c0_12 = arith.constant 0 : index
    %c0_13 = arith.constant 0 : index
    %10 = vector.load %arg5[%c0_10, %c0_11, %c0_12, %c0_13] : memref<1x8x16x16xbf16, #tpu.memory_space<vmem>>, vector<1x8x16x16xbf16>
    tpu.vector_store %arg5[%c0_10, %c0_11, %c0_12, %c0_13], %9 {strides = array<i32>} : memref<1x8x16x16xbf16, #tpu.memory_space<vmem>>, vector<1x8x16x16xbf16>,
    return
  }
  func.func @transform_0(%arg0: i32, %arg1: i32) -> (i32, i32, i32, i32) {
    %c0_i32 = arith.constant 0 : i32
    %c0_i32_0 = arith.constant 0 : i32
    %c0_i32_1 = arith.constant 0 : i32
    return %arg0, %arg1, %c0_i32, %c0_i32_0 : i32, i32, i32, i32
  }
  func.func @transform_1(%arg0: i32, %arg1: i32) -> (i32, i32, i32, i32) {
    %c0_i32 = arith.constant 0 : i32
    %c0_i32_0 = arith.constant 0 : i32
    %c0_i32_1 = arith.constant 0 : i32
    return %arg0, %arg1, %c0_i32, %c0_i32_0 : i32, i32, i32, i32
  }
  func.func @transform_2(%arg0: i32, %arg1: i32) -> (i32, i32, i32) {
    %c0_i32 = arith.constant 0 : i32
    %c0_i32_0 = arith.constant 0 : i32
    %c0_i32_1 = arith.constant 0 : i32
    return %arg0, %c0_i32, %c0_i32_0 : i32, i32, i32
  }
  func.func @transform_3(%arg0: i32, %arg1: i32) -> (i32, i32, i32, i32) {
    %c0_i32 = arith.constant 0 : i32
    %c0_i32_0 = arith.constant 0 : i32
    %c0_i32_1 = arith.constant 0 : i32
    return %arg0, %arg1, %c0_i32, %c0_i32_0 : i32, i32, i32, i32
  }
}

module attributes {stable_mosaic.version = 11 : i64} {
  func.func @_conv3x3_kernel(%arg0: i32, %arg1: i32, %arg2: memref<1x8x16x4xbf16, #tpu.memory_space<vmem>>, %arg3: memref<1x1x16x4xbf16, #tpu.memory_space<vmem>>, %arg4: memref<1x1x16x4xbf16, #tpu.memory_space<vmem>>, %arg5: memref<9x4x16xbf16, #tpu.memory_space<vmem>>, %arg6: memref<1x16xf32, #tpu.memory_space<vmem>>, %arg7: memref<1x8x16x16xbf16, #tpu.memory_space<vmem>>, %arg8: memref<10x16x4xbf16, #tpu.memory_space<vmem>>) attributes {dimension_semantics = [#tpu.dimension_semantics<parallel>, #tpu.dimension_semantics<parallel>], iteration_bounds = array<i64: 2, 2>, scalar_prefetch = 0 : i64, scratch_operands = 1 : i64, tpu.core_type = #tpu.core_type<tc>, window_params = [{transform_indices = @transform_0, window_bounds = array<i64: 1, 8, 16, 4>}, {transform_indices = @transform_1, window_bounds = array<i64: 1, 1, 16, 4>}, {transform_indices = @transform_2, window_bounds = array<i64: 1, 1, 16, 4>}, {pipeline_mode = #tpu.pipeline_mode<synchronous>, transform_indices = @transform_3, window_bounds = array<i64: 9, 4, 16>}, {pipeline_mode = #tpu.pipeline_mode<synchronous>, transform_indices = @transform_4, window_bounds = array<i64: 1, 16>}, {transform_indices = @transform_5, window_bounds = array<i64: 1, 8, 16, 16>}]} {
    %c0_i32 = arith.constant 0 : i32
    %0 = arith.cmpi sgt, %arg1, %c0_i32 : i32
    %1 = arith.extui %0 : i1 to i32
    %2 = arith.sitofp %1 : i32 to f32
    %c1_i32 = arith.constant 1 : i32
    %3 = arith.cmpi slt, %arg1, %c1_i32 : i32
    %4 = arith.extui %3 : i1 to i32
    %5 = arith.sitofp %4 : i32 to f32
    %c0 = arith.constant 0 : index
    %c0_0 = arith.constant 0 : index
    %c0_1 = arith.constant 0 : index
    %c0_2 = arith.constant 0 : index
    %6 = vector.load %arg3[%c0, %c0_0, %c0_1, %c0_2] : memref<1x1x16x4xbf16, #tpu.memory_space<vmem>>, vector<1x1x16x4xbf16>
    %7 = vector.shape_cast %6 : vector<1x1x16x4xbf16> to vector<1x16x4xbf16>
    %8 = arith.extf %7 : vector<1x16x4xbf16> to vector<1x16x4xf32>
    %9 = vector.broadcast %2 : f32 to vector<1x16x4xf32>
    %10 = arith.mulf %8, %9 : vector<1x16x4xf32>
    %11 = arith.truncf %10 : vector<1x16x4xf32> to vector<1x16x4xbf16>
    %c0_3 = arith.constant 0 : index
    %c0_4 = arith.constant 0 : index
    %c0_5 = arith.constant 0 : index
    %12 = vector.load %arg8[%c0_3, %c0_4, %c0_5] : memref<10x16x4xbf16, #tpu.memory_space<vmem>>, vector<1x16x4xbf16>
    tpu.vector_store %arg8[%c0_3, %c0_4, %c0_5], %11 {strides = array<i32>} : memref<10x16x4xbf16, #tpu.memory_space<vmem>>, vector<1x16x4xbf16>,
    %c0_6 = arith.constant 0 : index
    %c0_7 = arith.constant 0 : index
    %c0_8 = arith.constant 0 : index
    %c0_9 = arith.constant 0 : index
    %13 = vector.load %arg2[%c0_6, %c0_7, %c0_8, %c0_9] : memref<1x8x16x4xbf16, #tpu.memory_space<vmem>>, vector<1x8x16x4xbf16>
    %14 = vector.shape_cast %13 : vector<1x8x16x4xbf16> to vector<8x16x4xbf16>
    %c1 = arith.constant 1 : index
    %c0_10 = arith.constant 0 : index
    %c0_11 = arith.constant 0 : index
    %15 = vector.load %arg8[%c1, %c0_10, %c0_11] : memref<10x16x4xbf16, #tpu.memory_space<vmem>>, vector<8x16x4xbf16>
    tpu.vector_store %arg8[%c1, %c0_10, %c0_11], %14 {strides = array<i32>} : memref<10x16x4xbf16, #tpu.memory_space<vmem>>, vector<8x16x4xbf16>,
    %c0_12 = arith.constant 0 : index
    %c0_13 = arith.constant 0 : index
    %c0_14 = arith.constant 0 : index
    %c0_15 = arith.constant 0 : index
    %16 = vector.load %arg4[%c0_12, %c0_13, %c0_14, %c0_15] : memref<1x1x16x4xbf16, #tpu.memory_space<vmem>>, vector<1x1x16x4xbf16>
    %17 = vector.shape_cast %16 : vector<1x1x16x4xbf16> to vector<1x16x4xbf16>
    %18 = arith.extf %17 : vector<1x16x4xbf16> to vector<1x16x4xf32>
    %19 = vector.broadcast %5 : f32 to vector<1x16x4xf32>
    %20 = arith.mulf %18, %19 : vector<1x16x4xf32>
    %21 = arith.truncf %20 : vector<1x16x4xf32> to vector<1x16x4xbf16>
    %c9 = arith.constant 9 : index
    %c0_16 = arith.constant 0 : index
    %c0_17 = arith.constant 0 : index
    %22 = vector.load %arg8[%c9, %c0_16, %c0_17] : memref<10x16x4xbf16, #tpu.memory_space<vmem>>, vector<1x16x4xbf16>
    tpu.vector_store %arg8[%c9, %c0_16, %c0_17], %21 {strides = array<i32>} : memref<10x16x4xbf16, #tpu.memory_space<vmem>>, vector<1x16x4xbf16>,
    %23 = tpu.iota {dimensions = array<i32: 0>} : vector<128x16xi32>
    %c16_i32 = arith.constant 16 : i32
    %c0_i32_18 = arith.constant 0 : i32
    %24 = arith.cmpi eq, %c16_i32, %c0_i32_18 : i32
    %c1_i32_19 = arith.constant 1 : i32
    %25 = arith.select %24, %c1_i32_19, %c16_i32 : i32
    %26 = vector.broadcast %25 : i32 to vector<128x16xi32>
    %27 = arith.remsi %23, %26 : vector<128x16xi32>
    %c0_i32_20 = arith.constant 0 : i32
    %28 = vector.broadcast %c0_i32_20 : i32 to vector<128x16xi32>
    %29 = arith.cmpi ne, %27, %28 : vector<128x16xi32>
    %c0_i32_21 = arith.constant 0 : i32
    %30 = vector.broadcast %c0_i32_21 : i32 to vector<128x16xi32>
    %31 = arith.cmpi slt, %27, %30 : vector<128x16xi32>
    %c0_i32_22 = arith.constant 0 : i32
    %32 = arith.cmpi slt, %25, %c0_i32_22 : i32
    %33 = vector.broadcast %32 : i1 to vector<128x16xi1>
    %34 = vector.broadcast %33 : vector<128x16xi1> to vector<128x16xi1>
    %35 = arith.xori %31, %34 : vector<128x16xi1>
    %36 = arith.andi %35, %29 : vector<128x16xi1>
    %37 = vector.broadcast %25 : i32 to vector<128x16xi32>
    %38 = arith.addi %27, %37 : vector<128x16xi32>
    %39 = arith.select %36, %38, %27 : vector<128x16xi1>, vector<128x16xi32>
    %c0_23 = arith.constant 0 : index
    %c0_24 = arith.constant 0 : index
    %c0_25 = arith.constant 0 : index
    %40 = vector.load %arg8[%c0_23, %c0_24, %c0_25] : memref<10x16x4xbf16, #tpu.memory_space<vmem>>, vector<8x16x4xbf16>
    %41 = vector.shape_cast %40 : vector<8x16x4xbf16> to vector<128x4xbf16>
    %c0_26 = arith.constant 0 : index
    %c0_27 = arith.constant 0 : index
    %c0_28 = arith.constant 0 : index
    %42 = vector.load %arg5[%c0_26, %c0_27, %c0_28] : memref<9x4x16xbf16, #tpu.memory_space<vmem>>, vector<1x4x16xbf16>
    %43 = vector.shape_cast %42 : vector<1x4x16xbf16> to vector<4x16xbf16>
    %cst = arith.constant dense<0.000000e+00> : vector<128x16xf32>
    %44 = tpu.matmul %41, %43, %cst {dimension_numbers = #tpu.dot_dimension_numbers<[1], [0], [0], [1], [0, 0, 1, 1], [], []>} : vector<128x4xbf16>, vector<4x16xbf16>, vector<128x16xf32> -> vector<128x16xf32>
    %c1_29 = arith.constant 1 : index
    %c0_30 = arith.constant 0 : index
    %c0_31 = arith.constant 0 : index
    %45 = vector.load %arg8[%c1_29, %c0_30, %c0_31] : memref<10x16x4xbf16, #tpu.memory_space<vmem>>, vector<8x16x4xbf16>
    %46 = vector.shape_cast %45 : vector<8x16x4xbf16> to vector<128x4xbf16>
    %c3 = arith.constant 3 : index
    %c0_32 = arith.constant 0 : index
    %c0_33 = arith.constant 0 : index
    %47 = vector.load %arg5[%c3, %c0_32, %c0_33] : memref<9x4x16xbf16, #tpu.memory_space<vmem>>, vector<1x4x16xbf16>
    %48 = vector.shape_cast %47 : vector<1x4x16xbf16> to vector<4x16xbf16>
    %cst_34 = arith.constant dense<0.000000e+00> : vector<128x16xf32>
    %49 = tpu.matmul %46, %48, %cst_34 {dimension_numbers = #tpu.dot_dimension_numbers<[1], [0], [0], [1], [0, 0, 1, 1], [], []>} : vector<128x4xbf16>, vector<4x16xbf16>, vector<128x16xf32> -> vector<128x16xf32>
    %50 = arith.addf %44, %49 : vector<128x16xf32>
    %c2 = arith.constant 2 : index
    %c0_35 = arith.constant 0 : index
    %c0_36 = arith.constant 0 : index
    %51 = vector.load %arg8[%c2, %c0_35, %c0_36] : memref<10x16x4xbf16, #tpu.memory_space<vmem>>, vector<8x16x4xbf16>
    %52 = vector.shape_cast %51 : vector<8x16x4xbf16> to vector<128x4xbf16>
    %c6 = arith.constant 6 : index
    %c0_37 = arith.constant 0 : index
    %c0_38 = arith.constant 0 : index
    %53 = vector.load %arg5[%c6, %c0_37, %c0_38] : memref<9x4x16xbf16, #tpu.memory_space<vmem>>, vector<1x4x16xbf16>
    %54 = vector.shape_cast %53 : vector<1x4x16xbf16> to vector<4x16xbf16>
    %cst_39 = arith.constant dense<0.000000e+00> : vector<128x16xf32>
    %55 = tpu.matmul %52, %54, %cst_39 {dimension_numbers = #tpu.dot_dimension_numbers<[1], [0], [0], [1], [0, 0, 1, 1], [], []>} : vector<128x4xbf16>, vector<4x16xbf16>, vector<128x16xf32> -> vector<128x16xf32>
    %56 = arith.addf %50, %55 : vector<128x16xf32>
    %c0_i32_40 = arith.constant 0 : i32
    %57 = vector.broadcast %c0_i32_40 : i32 to vector<128x16xi32>
    %58 = arith.cmpi eq, %39, %57 : vector<128x16xi32>
    %c1_i32_41 = arith.constant 1 : i32
    %59 = tpu.dynamic_rotate %56 by %c1_i32_41 dim 0 : vector<128x16xf32>, i32 -> vector<128x16xf32>
    %cst_42 = arith.constant 0.000000e+00 : f32
    %60 = vector.broadcast %cst_42 : f32 to vector<128x16xf32>
    %61 = arith.select %58, %60, %59 : vector<128x16xi1>, vector<128x16xf32>
    %c0_43 = arith.constant 0 : index
    %c0_44 = arith.constant 0 : index
    %c0_45 = arith.constant 0 : index
    %62 = vector.load %arg8[%c0_43, %c0_44, %c0_45] : memref<10x16x4xbf16, #tpu.memory_space<vmem>>, vector<8x16x4xbf16>
    %63 = vector.shape_cast %62 : vector<8x16x4xbf16> to vector<128x4xbf16>
    %c1_46 = arith.constant 1 : index
    %c0_47 = arith.constant 0 : index
    %c0_48 = arith.constant 0 : index
    %64 = vector.load %arg5[%c1_46, %c0_47, %c0_48] : memref<9x4x16xbf16, #tpu.memory_space<vmem>>, vector<1x4x16xbf16>
    %65 = vector.shape_cast %64 : vector<1x4x16xbf16> to vector<4x16xbf16>
    %cst_49 = arith.constant dense<0.000000e+00> : vector<128x16xf32>
    %66 = tpu.matmul %63, %65, %cst_49 {dimension_numbers = #tpu.dot_dimension_numbers<[1], [0], [0], [1], [0, 0, 1, 1], [], []>} : vector<128x4xbf16>, vector<4x16xbf16>, vector<128x16xf32> -> vector<128x16xf32>
    %c1_50 = arith.constant 1 : index
    %c0_51 = arith.constant 0 : index
    %c0_52 = arith.constant 0 : index
    %67 = vector.load %arg8[%c1_50, %c0_51, %c0_52] : memref<10x16x4xbf16, #tpu.memory_space<vmem>>, vector<8x16x4xbf16>
    %68 = vector.shape_cast %67 : vector<8x16x4xbf16> to vector<128x4xbf16>
    %c4 = arith.constant 4 : index
    %c0_53 = arith.constant 0 : index
    %c0_54 = arith.constant 0 : index
    %69 = vector.load %arg5[%c4, %c0_53, %c0_54] : memref<9x4x16xbf16, #tpu.memory_space<vmem>>, vector<1x4x16xbf16>
    %70 = vector.shape_cast %69 : vector<1x4x16xbf16> to vector<4x16xbf16>
    %cst_55 = arith.constant dense<0.000000e+00> : vector<128x16xf32>
    %71 = tpu.matmul %68, %70, %cst_55 {dimension_numbers = #tpu.dot_dimension_numbers<[1], [0], [0], [1], [0, 0, 1, 1], [], []>} : vector<128x4xbf16>, vector<4x16xbf16>, vector<128x16xf32> -> vector<128x16xf32>
    %72 = arith.addf %66, %71 : vector<128x16xf32>
    %c2_56 = arith.constant 2 : index
    %c0_57 = arith.constant 0 : index
    %c0_58 = arith.constant 0 : index
    %73 = vector.load %arg8[%c2_56, %c0_57, %c0_58] : memref<10x16x4xbf16, #tpu.memory_space<vmem>>, vector<8x16x4xbf16>
    %74 = vector.shape_cast %73 : vector<8x16x4xbf16> to vector<128x4xbf16>
    %c7 = arith.constant 7 : index
    %c0_59 = arith.constant 0 : index
    %c0_60 = arith.constant 0 : index
    %75 = vector.load %arg5[%c7, %c0_59, %c0_60] : memref<9x4x16xbf16, #tpu.memory_space<vmem>>, vector<1x4x16xbf16>
    %76 = vector.shape_cast %75 : vector<1x4x16xbf16> to vector<4x16xbf16>
    %cst_61 = arith.constant dense<0.000000e+00> : vector<128x16xf32>
    %77 = tpu.matmul %74, %76, %cst_61 {dimension_numbers = #tpu.dot_dimension_numbers<[1], [0], [0], [1], [0, 0, 1, 1], [], []>} : vector<128x4xbf16>, vector<4x16xbf16>, vector<128x16xf32> -> vector<128x16xf32>
    %78 = arith.addf %72, %77 : vector<128x16xf32>
    %79 = arith.addf %61, %78 : vector<128x16xf32>
    %c0_62 = arith.constant 0 : index
    %c0_63 = arith.constant 0 : index
    %c0_64 = arith.constant 0 : index
    %80 = vector.load %arg8[%c0_62, %c0_63, %c0_64] : memref<10x16x4xbf16, #tpu.memory_space<vmem>>, vector<8x16x4xbf16>
    %81 = vector.shape_cast %80 : vector<8x16x4xbf16> to vector<128x4xbf16>
    %c2_65 = arith.constant 2 : index
    %c0_66 = arith.constant 0 : index
    %c0_67 = arith.constant 0 : index
    %82 = vector.load %arg5[%c2_65, %c0_66, %c0_67] : memref<9x4x16xbf16, #tpu.memory_space<vmem>>, vector<1x4x16xbf16>
    %83 = vector.shape_cast %82 : vector<1x4x16xbf16> to vector<4x16xbf16>
    %cst_68 = arith.constant dense<0.000000e+00> : vector<128x16xf32>
    %84 = tpu.matmul %81, %83, %cst_68 {dimension_numbers = #tpu.dot_dimension_numbers<[1], [0], [0], [1], [0, 0, 1, 1], [], []>} : vector<128x4xbf16>, vector<4x16xbf16>, vector<128x16xf32> -> vector<128x16xf32>
    %c1_69 = arith.constant 1 : index
    %c0_70 = arith.constant 0 : index
    %c0_71 = arith.constant 0 : index
    %85 = vector.load %arg8[%c1_69, %c0_70, %c0_71] : memref<10x16x4xbf16, #tpu.memory_space<vmem>>, vector<8x16x4xbf16>
    %86 = vector.shape_cast %85 : vector<8x16x4xbf16> to vector<128x4xbf16>
    %c5 = arith.constant 5 : index
    %c0_72 = arith.constant 0 : index
    %c0_73 = arith.constant 0 : index
    %87 = vector.load %arg5[%c5, %c0_72, %c0_73] : memref<9x4x16xbf16, #tpu.memory_space<vmem>>, vector<1x4x16xbf16>
    %88 = vector.shape_cast %87 : vector<1x4x16xbf16> to vector<4x16xbf16>
    %cst_74 = arith.constant dense<0.000000e+00> : vector<128x16xf32>
    %89 = tpu.matmul %86, %88, %cst_74 {dimension_numbers = #tpu.dot_dimension_numbers<[1], [0], [0], [1], [0, 0, 1, 1], [], []>} : vector<128x4xbf16>, vector<4x16xbf16>, vector<128x16xf32> -> vector<128x16xf32>
    %90 = arith.addf %84, %89 : vector<128x16xf32>
    %c2_75 = arith.constant 2 : index
    %c0_76 = arith.constant 0 : index
    %c0_77 = arith.constant 0 : index
    %91 = vector.load %arg8[%c2_75, %c0_76, %c0_77] : memref<10x16x4xbf16, #tpu.memory_space<vmem>>, vector<8x16x4xbf16>
    %92 = vector.shape_cast %91 : vector<8x16x4xbf16> to vector<128x4xbf16>
    %c8 = arith.constant 8 : index
    %c0_78 = arith.constant 0 : index
    %c0_79 = arith.constant 0 : index
    %93 = vector.load %arg5[%c8, %c0_78, %c0_79] : memref<9x4x16xbf16, #tpu.memory_space<vmem>>, vector<1x4x16xbf16>
    %94 = vector.shape_cast %93 : vector<1x4x16xbf16> to vector<4x16xbf16>
    %cst_80 = arith.constant dense<0.000000e+00> : vector<128x16xf32>
    %95 = tpu.matmul %92, %94, %cst_80 {dimension_numbers = #tpu.dot_dimension_numbers<[1], [0], [0], [1], [0, 0, 1, 1], [], []>} : vector<128x4xbf16>, vector<4x16xbf16>, vector<128x16xf32> -> vector<128x16xf32>
    %96 = arith.addf %90, %95 : vector<128x16xf32>
    %c15_i32 = arith.constant 15 : i32
    %97 = vector.broadcast %c15_i32 : i32 to vector<128x16xi32>
    %98 = arith.cmpi eq, %39, %97 : vector<128x16xi32>
    %c127_i32 = arith.constant 127 : i32
    %99 = tpu.dynamic_rotate %96 by %c127_i32 dim 0 : vector<128x16xf32>, i32 -> vector<128x16xf32>
    %cst_81 = arith.constant 0.000000e+00 : f32
    %100 = vector.broadcast %cst_81 : f32 to vector<128x16xf32>
    %101 = arith.select %98, %100, %99 : vector<128x16xi1>, vector<128x16xf32>
    %102 = arith.addf %79, %101 : vector<128x16xf32>
    %c0_82 = arith.constant 0 : index
    %c0_83 = arith.constant 0 : index
    %103 = vector.load %arg6[%c0_82, %c0_83] : memref<1x16xf32, #tpu.memory_space<vmem>>, vector<1x16xf32>
    %104 = vector.broadcast %103 : vector<1x16xf32> to vector<128x16xf32>
    %105 = arith.addf %102, %104 : vector<128x16xf32>
    %106 = vector.shape_cast %105 : vector<128x16xf32> to vector<8x16x16xf32>
    %107 = vector.shape_cast %106 : vector<8x16x16xf32> to vector<1x8x16x16xf32>
    %108 = arith.truncf %107 : vector<1x8x16x16xf32> to vector<1x8x16x16xbf16>
    %c0_84 = arith.constant 0 : index
    %c0_85 = arith.constant 0 : index
    %c0_86 = arith.constant 0 : index
    %c0_87 = arith.constant 0 : index
    %109 = vector.load %arg7[%c0_84, %c0_85, %c0_86, %c0_87] : memref<1x8x16x16xbf16, #tpu.memory_space<vmem>>, vector<1x8x16x16xbf16>
    tpu.vector_store %arg7[%c0_84, %c0_85, %c0_86, %c0_87], %108 {strides = array<i32>} : memref<1x8x16x16xbf16, #tpu.memory_space<vmem>>, vector<1x8x16x16xbf16>,
    return
  }
  func.func @transform_0(%arg0: i32, %arg1: i32) -> (i32, i32, i32, i32) {
    %c0_i32 = arith.constant 0 : i32
    %c0_i32_0 = arith.constant 0 : i32
    %c0_i32_1 = arith.constant 0 : i32
    return %arg0, %arg1, %c0_i32, %c0_i32_0 : i32, i32, i32, i32
  }
  func.func @transform_1(%arg0: i32, %arg1: i32) -> (i32, i32, i32, i32) {
    %c8_i32 = arith.constant 8 : i32
    %0 = arith.muli %arg1, %c8_i32 : i32
    %c1_i32 = arith.constant 1 : i32
    %1 = arith.subi %0, %c1_i32 : i32
    %c0_i32 = arith.constant 0 : i32
    %2 = arith.maxsi %1, %c0_i32 : i32
    %c0_i32_0 = arith.constant 0 : i32
    %c0_i32_1 = arith.constant 0 : i32
    %c0_i32_2 = arith.constant 0 : i32
    return %arg0, %2, %c0_i32_0, %c0_i32_1 : i32, i32, i32, i32
  }
  func.func @transform_2(%arg0: i32, %arg1: i32) -> (i32, i32, i32, i32) {
    %c8_i32 = arith.constant 8 : i32
    %0 = arith.muli %arg1, %c8_i32 : i32
    %c8_i32_0 = arith.constant 8 : i32
    %1 = arith.addi %0, %c8_i32_0 : i32
    %c15_i32 = arith.constant 15 : i32
    %2 = arith.minsi %1, %c15_i32 : i32
    %c0_i32 = arith.constant 0 : i32
    %c0_i32_1 = arith.constant 0 : i32
    %c0_i32_2 = arith.constant 0 : i32
    return %arg0, %2, %c0_i32, %c0_i32_1 : i32, i32, i32, i32
  }
  func.func @transform_3(%arg0: i32, %arg1: i32) -> (i32, i32, i32) {
    %c0_i32 = arith.constant 0 : i32
    %c0_i32_0 = arith.constant 0 : i32
    %c0_i32_1 = arith.constant 0 : i32
    %c0_i32_2 = arith.constant 0 : i32
    return %c0_i32, %c0_i32_0, %c0_i32_1 : i32, i32, i32
  }
  func.func @transform_4(%arg0: i32, %arg1: i32) -> (i32, i32) {
    %c0_i32 = arith.constant 0 : i32
    %c0_i32_0 = arith.constant 0 : i32
    %c0_i32_1 = arith.constant 0 : i32
    return %c0_i32, %c0_i32_0 : i32, i32
  }
  func.func @transform_5(%arg0: i32, %arg1: i32) -> (i32, i32, i32, i32) {
    %c0_i32 = arith.constant 0 : i32
    %c0_i32_0 = arith.constant 0 : i32
    %c0_i32_1 = arith.constant 0 : i32
    return %arg0, %arg1, %c0_i32, %c0_i32_0 : i32, i32, i32, i32
  }
}

module attributes {stable_mosaic.version = 11 : i64} {
  func.func @_conv3x3_kernel(%arg0: i32, %arg1: i32, %arg2: memref<1x8x16x16xbf16, #tpu.memory_space<vmem>>, %arg3: memref<1x1x16x16xbf16, #tpu.memory_space<vmem>>, %arg4: memref<1x1x16x16xbf16, #tpu.memory_space<vmem>>, %arg5: memref<9x16x16xbf16, #tpu.memory_space<vmem>>, %arg6: memref<1x16xf32, #tpu.memory_space<vmem>>, %arg7: memref<16x4xf32, #tpu.memory_space<vmem>>, %arg8: memref<1x4xf32, #tpu.memory_space<vmem>>, %arg9: memref<4x16xf32, #tpu.memory_space<vmem>>, %arg10: memref<1x16xf32, #tpu.memory_space<vmem>>, %arg11: memref<1x8x16x16xbf16, #tpu.memory_space<vmem>>, %arg12: memref<1x1x16xf32, #tpu.memory_space<vmem>>, %arg13: memref<10x16x16xbf16, #tpu.memory_space<vmem>>, %arg14: memref<1x16xf32, #tpu.memory_space<vmem>>) attributes {dimension_semantics = [#tpu.dimension_semantics<parallel>, #tpu.dimension_semantics<arbitrary>], iteration_bounds = array<i64: 2, 2>, scalar_prefetch = 0 : i64, scratch_operands = 2 : i64, tpu.core_type = #tpu.core_type<tc>, window_params = [{transform_indices = @transform_0, window_bounds = array<i64: 1, 8, 16, 16>}, {transform_indices = @transform_1, window_bounds = array<i64: 1, 1, 16, 16>}, {transform_indices = @transform_2, window_bounds = array<i64: 1, 1, 16, 16>}, {pipeline_mode = #tpu.pipeline_mode<synchronous>, transform_indices = @transform_3, window_bounds = array<i64: 9, 16, 16>}, {pipeline_mode = #tpu.pipeline_mode<synchronous>, transform_indices = @transform_4, window_bounds = array<i64: 1, 16>}, {pipeline_mode = #tpu.pipeline_mode<synchronous>, transform_indices = @transform_5, window_bounds = array<i64: 16, 4>}, {pipeline_mode = #tpu.pipeline_mode<synchronous>, transform_indices = @transform_6, window_bounds = array<i64: 1, 4>}, {pipeline_mode = #tpu.pipeline_mode<synchronous>, transform_indices = @transform_7, window_bounds = array<i64: 4, 16>}, {pipeline_mode = #tpu.pipeline_mode<synchronous>, transform_indices = @transform_8, window_bounds = array<i64: 1, 16>}, {transform_indices = @transform_9, window_bounds = array<i64: 1, 8, 16, 16>}, {transform_indices = @transform_10, window_bounds = array<i64: 1, 1, 16>}]} {
    %c0_i32 = arith.constant 0 : i32
    %0 = arith.cmpi sgt, %arg1, %c0_i32 : i32
    %1 = arith.extui %0 : i1 to i32
    %2 = arith.sitofp %1 : i32 to f32
    %c1_i32 = arith.constant 1 : i32
    %3 = arith.cmpi slt, %arg1, %c1_i32 : i32
    %4 = arith.extui %3 : i1 to i32
    %5 = arith.sitofp %4 : i32 to f32
    %c0 = arith.constant 0 : index
    %c0_0 = arith.constant 0 : index
    %c0_1 = arith.constant 0 : index
    %c0_2 = arith.constant 0 : index
    %6 = vector.load %arg3[%c0, %c0_0, %c0_1, %c0_2] : memref<1x1x16x16xbf16, #tpu.memory_space<vmem>>, vector<1x1x16x16xbf16>
    %7 = vector.shape_cast %6 : vector<1x1x16x16xbf16> to vector<1x16x16xbf16>
    %8 = arith.extf %7 : vector<1x16x16xbf16> to vector<1x16x16xf32>
    %9 = vector.broadcast %2 : f32 to vector<1x16x16xf32>
    %10 = arith.mulf %8, %9 : vector<1x16x16xf32>
    %11 = arith.truncf %10 : vector<1x16x16xf32> to vector<1x16x16xbf16>
    %c0_3 = arith.constant 0 : index
    %c0_4 = arith.constant 0 : index
    %c0_5 = arith.constant 0 : index
    %12 = vector.load %arg13[%c0_3, %c0_4, %c0_5] : memref<10x16x16xbf16, #tpu.memory_space<vmem>>, vector<1x16x16xbf16>
    tpu.vector_store %arg13[%c0_3, %c0_4, %c0_5], %11 {strides = array<i32>} : memref<10x16x16xbf16, #tpu.memory_space<vmem>>, vector<1x16x16xbf16>,
    %c0_6 = arith.constant 0 : index
    %c0_7 = arith.constant 0 : index
    %c0_8 = arith.constant 0 : index
    %c0_9 = arith.constant 0 : index
    %13 = vector.load %arg2[%c0_6, %c0_7, %c0_8, %c0_9] : memref<1x8x16x16xbf16, #tpu.memory_space<vmem>>, vector<1x8x16x16xbf16>
    %14 = vector.shape_cast %13 : vector<1x8x16x16xbf16> to vector<8x16x16xbf16>
    %c1 = arith.constant 1 : index
    %c0_10 = arith.constant 0 : index
    %c0_11 = arith.constant 0 : index
    %15 = vector.load %arg13[%c1, %c0_10, %c0_11] : memref<10x16x16xbf16, #tpu.memory_space<vmem>>, vector<8x16x16xbf16>
    tpu.vector_store %arg13[%c1, %c0_10, %c0_11], %14 {strides = array<i32>} : memref<10x16x16xbf16, #tpu.memory_space<vmem>>, vector<8x16x16xbf16>,
    %c0_12 = arith.constant 0 : index
    %c0_13 = arith.constant 0 : index
    %c0_14 = arith.constant 0 : index
    %c0_15 = arith.constant 0 : index
    %16 = vector.load %arg4[%c0_12, %c0_13, %c0_14, %c0_15] : memref<1x1x16x16xbf16, #tpu.memory_space<vmem>>, vector<1x1x16x16xbf16>
    %17 = vector.shape_cast %16 : vector<1x1x16x16xbf16> to vector<1x16x16xbf16>
    %18 = arith.extf %17 : vector<1x16x16xbf16> to vector<1x16x16xf32>
    %19 = vector.broadcast %5 : f32 to vector<1x16x16xf32>
    %20 = arith.mulf %18, %19 : vector<1x16x16xf32>
    %21 = arith.truncf %20 : vector<1x16x16xf32> to vector<1x16x16xbf16>
    %c9 = arith.constant 9 : index
    %c0_16 = arith.constant 0 : index
    %c0_17 = arith.constant 0 : index
    %22 = vector.load %arg13[%c9, %c0_16, %c0_17] : memref<10x16x16xbf16, #tpu.memory_space<vmem>>, vector<1x16x16xbf16>
    tpu.vector_store %arg13[%c9, %c0_16, %c0_17], %21 {strides = array<i32>} : memref<10x16x16xbf16, #tpu.memory_space<vmem>>, vector<1x16x16xbf16>,
    %23 = tpu.iota {dimensions = array<i32: 0>} : vector<128x16xi32>
    %c16_i32 = arith.constant 16 : i32
    %c0_i32_18 = arith.constant 0 : i32
    %24 = arith.cmpi eq, %c16_i32, %c0_i32_18 : i32
    %c1_i32_19 = arith.constant 1 : i32
    %25 = arith.select %24, %c1_i32_19, %c16_i32 : i32
    %26 = vector.broadcast %25 : i32 to vector<128x16xi32>
    %27 = arith.remsi %23, %26 : vector<128x16xi32>
    %c0_i32_20 = arith.constant 0 : i32
    %28 = vector.broadcast %c0_i32_20 : i32 to vector<128x16xi32>
    %29 = arith.cmpi ne, %27, %28 : vector<128x16xi32>
    %c0_i32_21 = arith.constant 0 : i32
    %30 = vector.broadcast %c0_i32_21 : i32 to vector<128x16xi32>
    %31 = arith.cmpi slt, %27, %30 : vector<128x16xi32>
    %c0_i32_22 = arith.constant 0 : i32
    %32 = arith.cmpi slt, %25, %c0_i32_22 : i32
    %33 = vector.broadcast %32 : i1 to vector<128x16xi1>
    %34 = vector.broadcast %33 : vector<128x16xi1> to vector<128x16xi1>
    %35 = arith.xori %31, %34 : vector<128x16xi1>
    %36 = arith.andi %35, %29 : vector<128x16xi1>
    %37 = vector.broadcast %25 : i32 to vector<128x16xi32>
    %38 = arith.addi %27, %37 : vector<128x16xi32>
    %39 = arith.select %36, %38, %27 : vector<128x16xi1>, vector<128x16xi32>
    %c0_23 = arith.constant 0 : index
    %c0_24 = arith.constant 0 : index
    %c0_25 = arith.constant 0 : index
    %40 = vector.load %arg13[%c0_23, %c0_24, %c0_25] : memref<10x16x16xbf16, #tpu.memory_space<vmem>>, vector<8x16x16xbf16>
    %41 = vector.shape_cast %40 : vector<8x16x16xbf16> to vector<128x16xbf16>
    %c0_26 = arith.constant 0 : index
    %c0_27 = arith.constant 0 : index
    %c0_28 = arith.constant 0 : index
    %42 = vector.load %arg5[%c0_26, %c0_27, %c0_28] : memref<9x16x16xbf16, #tpu.memory_space<vmem>>, vector<1x16x16xbf16>
    %43 = vector.shape_cast %42 : vector<1x16x16xbf16> to vector<16x16xbf16>
    %cst = arith.constant dense<0.000000e+00> : vector<128x16xf32>
    %44 = tpu.matmul %41, %43, %cst {dimension_numbers = #tpu.dot_dimension_numbers<[1], [0], [0], [1], [0, 0, 1, 1], [], []>} : vector<128x16xbf16>, vector<16x16xbf16>, vector<128x16xf32> -> vector<128x16xf32>
    %c1_29 = arith.constant 1 : index
    %c0_30 = arith.constant 0 : index
    %c0_31 = arith.constant 0 : index
    %45 = vector.load %arg13[%c1_29, %c0_30, %c0_31] : memref<10x16x16xbf16, #tpu.memory_space<vmem>>, vector<8x16x16xbf16>
    %46 = vector.shape_cast %45 : vector<8x16x16xbf16> to vector<128x16xbf16>
    %c3 = arith.constant 3 : index
    %c0_32 = arith.constant 0 : index
    %c0_33 = arith.constant 0 : index
    %47 = vector.load %arg5[%c3, %c0_32, %c0_33] : memref<9x16x16xbf16, #tpu.memory_space<vmem>>, vector<1x16x16xbf16>
    %48 = vector.shape_cast %47 : vector<1x16x16xbf16> to vector<16x16xbf16>
    %cst_34 = arith.constant dense<0.000000e+00> : vector<128x16xf32>
    %49 = tpu.matmul %46, %48, %cst_34 {dimension_numbers = #tpu.dot_dimension_numbers<[1], [0], [0], [1], [0, 0, 1, 1], [], []>} : vector<128x16xbf16>, vector<16x16xbf16>, vector<128x16xf32> -> vector<128x16xf32>
    %50 = arith.addf %44, %49 : vector<128x16xf32>
    %c2 = arith.constant 2 : index
    %c0_35 = arith.constant 0 : index
    %c0_36 = arith.constant 0 : index
    %51 = vector.load %arg13[%c2, %c0_35, %c0_36] : memref<10x16x16xbf16, #tpu.memory_space<vmem>>, vector<8x16x16xbf16>
    %52 = vector.shape_cast %51 : vector<8x16x16xbf16> to vector<128x16xbf16>
    %c6 = arith.constant 6 : index
    %c0_37 = arith.constant 0 : index
    %c0_38 = arith.constant 0 : index
    %53 = vector.load %arg5[%c6, %c0_37, %c0_38] : memref<9x16x16xbf16, #tpu.memory_space<vmem>>, vector<1x16x16xbf16>
    %54 = vector.shape_cast %53 : vector<1x16x16xbf16> to vector<16x16xbf16>
    %cst_39 = arith.constant dense<0.000000e+00> : vector<128x16xf32>
    %55 = tpu.matmul %52, %54, %cst_39 {dimension_numbers = #tpu.dot_dimension_numbers<[1], [0], [0], [1], [0, 0, 1, 1], [], []>} : vector<128x16xbf16>, vector<16x16xbf16>, vector<128x16xf32> -> vector<128x16xf32>
    %56 = arith.addf %50, %55 : vector<128x16xf32>
    %c0_i32_40 = arith.constant 0 : i32
    %57 = vector.broadcast %c0_i32_40 : i32 to vector<128x16xi32>
    %58 = arith.cmpi eq, %39, %57 : vector<128x16xi32>
    %c1_i32_41 = arith.constant 1 : i32
    %59 = tpu.dynamic_rotate %56 by %c1_i32_41 dim 0 : vector<128x16xf32>, i32 -> vector<128x16xf32>
    %cst_42 = arith.constant 0.000000e+00 : f32
    %60 = vector.broadcast %cst_42 : f32 to vector<128x16xf32>
    %61 = arith.select %58, %60, %59 : vector<128x16xi1>, vector<128x16xf32>
    %c0_43 = arith.constant 0 : index
    %c0_44 = arith.constant 0 : index
    %c0_45 = arith.constant 0 : index
    %62 = vector.load %arg13[%c0_43, %c0_44, %c0_45] : memref<10x16x16xbf16, #tpu.memory_space<vmem>>, vector<8x16x16xbf16>
    %63 = vector.shape_cast %62 : vector<8x16x16xbf16> to vector<128x16xbf16>
    %c1_46 = arith.constant 1 : index
    %c0_47 = arith.constant 0 : index
    %c0_48 = arith.constant 0 : index
    %64 = vector.load %arg5[%c1_46, %c0_47, %c0_48] : memref<9x16x16xbf16, #tpu.memory_space<vmem>>, vector<1x16x16xbf16>
    %65 = vector.shape_cast %64 : vector<1x16x16xbf16> to vector<16x16xbf16>
    %cst_49 = arith.constant dense<0.000000e+00> : vector<128x16xf32>
    %66 = tpu.matmul %63, %65, %cst_49 {dimension_numbers = #tpu.dot_dimension_numbers<[1], [0], [0], [1], [0, 0, 1, 1], [], []>} : vector<128x16xbf16>, vector<16x16xbf16>, vector<128x16xf32> -> vector<128x16xf32>
    %c1_50 = arith.constant 1 : index
    %c0_51 = arith.constant 0 : index
    %c0_52 = arith.constant 0 : index
    %67 = vector.load %arg13[%c1_50, %c0_51, %c0_52] : memref<10x16x16xbf16, #tpu.memory_space<vmem>>, vector<8x16x16xbf16>
    %68 = vector.shape_cast %67 : vector<8x16x16xbf16> to vector<128x16xbf16>
    %c4 = arith.constant 4 : index
    %c0_53 = arith.constant 0 : index
    %c0_54 = arith.constant 0 : index
    %69 = vector.load %arg5[%c4, %c0_53, %c0_54] : memref<9x16x16xbf16, #tpu.memory_space<vmem>>, vector<1x16x16xbf16>
    %70 = vector.shape_cast %69 : vector<1x16x16xbf16> to vector<16x16xbf16>
    %cst_55 = arith.constant dense<0.000000e+00> : vector<128x16xf32>
    %71 = tpu.matmul %68, %70, %cst_55 {dimension_numbers = #tpu.dot_dimension_numbers<[1], [0], [0], [1], [0, 0, 1, 1], [], []>} : vector<128x16xbf16>, vector<16x16xbf16>, vector<128x16xf32> -> vector<128x16xf32>
    %72 = arith.addf %66, %71 : vector<128x16xf32>
    %c2_56 = arith.constant 2 : index
    %c0_57 = arith.constant 0 : index
    %c0_58 = arith.constant 0 : index
    %73 = vector.load %arg13[%c2_56, %c0_57, %c0_58] : memref<10x16x16xbf16, #tpu.memory_space<vmem>>, vector<8x16x16xbf16>
    %74 = vector.shape_cast %73 : vector<8x16x16xbf16> to vector<128x16xbf16>
    %c7 = arith.constant 7 : index
    %c0_59 = arith.constant 0 : index
    %c0_60 = arith.constant 0 : index
    %75 = vector.load %arg5[%c7, %c0_59, %c0_60] : memref<9x16x16xbf16, #tpu.memory_space<vmem>>, vector<1x16x16xbf16>
    %76 = vector.shape_cast %75 : vector<1x16x16xbf16> to vector<16x16xbf16>
    %cst_61 = arith.constant dense<0.000000e+00> : vector<128x16xf32>
    %77 = tpu.matmul %74, %76, %cst_61 {dimension_numbers = #tpu.dot_dimension_numbers<[1], [0], [0], [1], [0, 0, 1, 1], [], []>} : vector<128x16xbf16>, vector<16x16xbf16>, vector<128x16xf32> -> vector<128x16xf32>
    %78 = arith.addf %72, %77 : vector<128x16xf32>
    %79 = arith.addf %61, %78 : vector<128x16xf32>
    %c0_62 = arith.constant 0 : index
    %c0_63 = arith.constant 0 : index
    %c0_64 = arith.constant 0 : index
    %80 = vector.load %arg13[%c0_62, %c0_63, %c0_64] : memref<10x16x16xbf16, #tpu.memory_space<vmem>>, vector<8x16x16xbf16>
    %81 = vector.shape_cast %80 : vector<8x16x16xbf16> to vector<128x16xbf16>
    %c2_65 = arith.constant 2 : index
    %c0_66 = arith.constant 0 : index
    %c0_67 = arith.constant 0 : index
    %82 = vector.load %arg5[%c2_65, %c0_66, %c0_67] : memref<9x16x16xbf16, #tpu.memory_space<vmem>>, vector<1x16x16xbf16>
    %83 = vector.shape_cast %82 : vector<1x16x16xbf16> to vector<16x16xbf16>
    %cst_68 = arith.constant dense<0.000000e+00> : vector<128x16xf32>
    %84 = tpu.matmul %81, %83, %cst_68 {dimension_numbers = #tpu.dot_dimension_numbers<[1], [0], [0], [1], [0, 0, 1, 1], [], []>} : vector<128x16xbf16>, vector<16x16xbf16>, vector<128x16xf32> -> vector<128x16xf32>
    %c1_69 = arith.constant 1 : index
    %c0_70 = arith.constant 0 : index
    %c0_71 = arith.constant 0 : index
    %85 = vector.load %arg13[%c1_69, %c0_70, %c0_71] : memref<10x16x16xbf16, #tpu.memory_space<vmem>>, vector<8x16x16xbf16>
    %86 = vector.shape_cast %85 : vector<8x16x16xbf16> to vector<128x16xbf16>
    %c5 = arith.constant 5 : index
    %c0_72 = arith.constant 0 : index
    %c0_73 = arith.constant 0 : index
    %87 = vector.load %arg5[%c5, %c0_72, %c0_73] : memref<9x16x16xbf16, #tpu.memory_space<vmem>>, vector<1x16x16xbf16>
    %88 = vector.shape_cast %87 : vector<1x16x16xbf16> to vector<16x16xbf16>
    %cst_74 = arith.constant dense<0.000000e+00> : vector<128x16xf32>
    %89 = tpu.matmul %86, %88, %cst_74 {dimension_numbers = #tpu.dot_dimension_numbers<[1], [0], [0], [1], [0, 0, 1, 1], [], []>} : vector<128x16xbf16>, vector<16x16xbf16>, vector<128x16xf32> -> vector<128x16xf32>
    %90 = arith.addf %84, %89 : vector<128x16xf32>
    %c2_75 = arith.constant 2 : index
    %c0_76 = arith.constant 0 : index
    %c0_77 = arith.constant 0 : index
    %91 = vector.load %arg13[%c2_75, %c0_76, %c0_77] : memref<10x16x16xbf16, #tpu.memory_space<vmem>>, vector<8x16x16xbf16>
    %92 = vector.shape_cast %91 : vector<8x16x16xbf16> to vector<128x16xbf16>
    %c8 = arith.constant 8 : index
    %c0_78 = arith.constant 0 : index
    %c0_79 = arith.constant 0 : index
    %93 = vector.load %arg5[%c8, %c0_78, %c0_79] : memref<9x16x16xbf16, #tpu.memory_space<vmem>>, vector<1x16x16xbf16>
    %94 = vector.shape_cast %93 : vector<1x16x16xbf16> to vector<16x16xbf16>
    %cst_80 = arith.constant dense<0.000000e+00> : vector<128x16xf32>
    %95 = tpu.matmul %92, %94, %cst_80 {dimension_numbers = #tpu.dot_dimension_numbers<[1], [0], [0], [1], [0, 0, 1, 1], [], []>} : vector<128x16xbf16>, vector<16x16xbf16>, vector<128x16xf32> -> vector<128x16xf32>
    %96 = arith.addf %90, %95 : vector<128x16xf32>
    %c15_i32 = arith.constant 15 : i32
    %97 = vector.broadcast %c15_i32 : i32 to vector<128x16xi32>
    %98 = arith.cmpi eq, %39, %97 : vector<128x16xi32>
    %c127_i32 = arith.constant 127 : i32
    %99 = tpu.dynamic_rotate %96 by %c127_i32 dim 0 : vector<128x16xf32>, i32 -> vector<128x16xf32>
    %cst_81 = arith.constant 0.000000e+00 : f32
    %100 = vector.broadcast %cst_81 : f32 to vector<128x16xf32>
    %101 = arith.select %98, %100, %99 : vector<128x16xi1>, vector<128x16xf32>
    %102 = arith.addf %79, %101 : vector<128x16xf32>
    %c0_82 = arith.constant 0 : index
    %c0_83 = arith.constant 0 : index
    %103 = vector.load %arg6[%c0_82, %c0_83] : memref<1x16xf32, #tpu.memory_space<vmem>>, vector<1x16xf32>
    %104 = vector.broadcast %103 : vector<1x16xf32> to vector<128x16xf32>
    %105 = arith.addf %102, %104 : vector<128x16xf32>
    %c0_i32_84 = arith.constant 0 : i32
    %106 = arith.cmpi eq, %arg1, %c0_i32_84 : i32
    %107 = arith.extui %106 : i1 to i32
    %c0_i32_85 = arith.constant 0 : i32
    %108 = arith.cmpi ne, %107, %c0_i32_85 : i32
    scf.if %108 {
      %cst_97 = arith.constant 0.000000e+00 : f32
      %121 = vector.broadcast %cst_97 : f32 to vector<1x16xf32>
      %c0_98 = arith.constant 0 : index
      %c0_99 = arith.constant 0 : index
      %122 = vector.load %arg14[%c0_98, %c0_99] : memref<1x16xf32, #tpu.memory_space<vmem>>, vector<1x16xf32>
      tpu.vector_store %arg14[%c0_98, %c0_99], %121 {strides = array<i32>} : memref<1x16xf32, #tpu.memory_space<vmem>>, vector<1x16xf32>,
    } else {
    }
    %c0_86 = arith.constant 0 : index
    %c0_87 = arith.constant 0 : index
    %109 = vector.load %arg14[%c0_86, %c0_87] : memref<1x16xf32, #tpu.memory_space<vmem>>, vector<1x16xf32>
    %cst_88 = arith.constant dense<0.000000e+00> : vector<16xf32>
    %110 = vector.multi_reduction <add>, %105, %cst_88 [0] : vector<128x16xf32> to vector<16xf32>
    %111 = vector.shape_cast %110 : vector<16xf32> to vector<1x16xf32>
    %112 = arith.addf %109, %111 : vector<1x16xf32>
    %c0_89 = arith.constant 0 : index
    %c0_90 = arith.constant 0 : index
    %113 = vector.load %arg14[%c0_89, %c0_90] : memref<1x16xf32, #tpu.memory_space<vmem>>, vector<1x16xf32>
    tpu.vector_store %arg14[%c0_89, %c0_90], %112 {strides = array<i32>} : memref<1x16xf32, #tpu.memory_space<vmem>>, vector<1x16xf32>,
    %c1_i32_91 = arith.constant 1 : i32
    %114 = arith.cmpi eq, %arg1, %c1_i32_91 : i32
    %115 = arith.extui %114 : i1 to i32
    %c0_i32_92 = arith.constant 0 : i32
    %116 = arith.cmpi ne, %115, %c0_i32_92 : i32
    scf.if %116 {
      %c0_97 = arith.constant 0 : index
      %c0_98 = arith.constant 0 : index
      %121 = vector.load %arg14[%c0_97, %c0_98] : memref<1x16xf32, #tpu.memory_space<vmem>>, vector<1x16xf32>
      %cst_99 = arith.constant 3.906250e-03 : f32
      %122 = vector.broadcast %cst_99 : f32 to vector<1x16xf32>
      %123 = arith.mulf %121, %122 : vector<1x16xf32>
      %c0_100 = arith.constant 0 : index
      %c0_101 = arith.constant 0 : index
      %124 = vector.load %arg7[%c0_100, %c0_101] : memref<16x4xf32, #tpu.memory_space<vmem>>, vector<16x4xf32>
      %cst_102 = arith.constant dense<0.000000e+00> : vector<1x4xf32>
      %125 = tpu.matmul %123, %124, %cst_102 {dimension_numbers = #tpu.dot_dimension_numbers<[1], [0], [0], [1], [0, 0, 1, 1], [], []>} : vector<1x16xf32>, vector<16x4xf32>, vector<1x4xf32> -> vector<1x4xf32>
      %c0_103 = arith.constant 0 : index
      %c0_104 = arith.constant 0 : index
      %126 = vector.load %arg8[%c0_103, %c0_104] : memref<1x4xf32, #tpu.memory_space<vmem>>, vector<1x4xf32>
      %127 = arith.addf %125, %126 : vector<1x4xf32>
      %cst_105 = arith.constant 0.000000e+00 : f32
      %128 = vector.broadcast %cst_105 : f32 to vector<1x4xf32>
      %129 = arith.maximumf %127, %128 : vector<1x4xf32>
      %c0_106 = arith.constant 0 : index
      %c0_107 = arith.constant 0 : index
      %130 = vector.load %arg9[%c0_106, %c0_107] : memref<4x16xf32, #tpu.memory_space<vmem>>, vector<4x16xf32>
      %cst_108 = arith.constant dense<0.000000e+00> : vector<1x16xf32>
      %131 = tpu.matmul %129, %130, %cst_108 {dimension_numbers = #tpu.dot_dimension_numbers<[1], [0], [0], [1], [0, 0, 1, 1], [], []>} : vector<1x4xf32>, vector<4x16xf32>, vector<1x16xf32> -> vector<1x16xf32>
      %c0_109 = arith.constant 0 : index
      %c0_110 = arith.constant 0 : index
      %132 = vector.load %arg10[%c0_109, %c0_110] : memref<1x16xf32, #tpu.memory_space<vmem>>, vector<1x16xf32>
      %133 = arith.addf %131, %132 : vector<1x16xf32>
      %cst_111 = arith.constant 0.000000e+00 : f32
      %134 = vector.broadcast %cst_111 : f32 to vector<1x16xf32>
      %135 = arith.subf %134, %133 : vector<1x16xf32>
      %136 = math.exp %135 : vector<1x16xf32>
      %cst_112 = arith.constant 1.000000e+00 : f32
      %137 = vector.broadcast %cst_112 : f32 to vector<1x16xf32>
      %138 = arith.addf %137, %136 : vector<1x16xf32>
      %cst_113 = arith.constant 1.000000e+00 : f32
      %139 = vector.broadcast %cst_113 : f32 to vector<1x16xf32>
      %140 = arith.divf %139, %138 : vector<1x16xf32>
      %141 = vector.shape_cast %140 : vector<1x16xf32> to vector<1x1x16xf32>
      %c0_114 = arith.constant 0 : index
      %c0_115 = arith.constant 0 : index
      %c0_116 = arith.constant 0 : index
      %142 = vector.load %arg12[%c0_114, %c0_115, %c0_116] : memref<1x1x16xf32, #tpu.memory_space<vmem>>, vector<1x1x16xf32>
      tpu.vector_store %arg12[%c0_114, %c0_115, %c0_116], %141 {strides = array<i32>} : memref<1x1x16xf32, #tpu.memory_space<vmem>>, vector<1x1x16xf32>,
    } else {
    }
    %117 = vector.shape_cast %105 : vector<128x16xf32> to vector<8x16x16xf32>
    %118 = vector.shape_cast %117 : vector<8x16x16xf32> to vector<1x8x16x16xf32>
    %119 = arith.truncf %118 : vector<1x8x16x16xf32> to vector<1x8x16x16xbf16>
    %c0_93 = arith.constant 0 : index
    %c0_94 = arith.constant 0 : index
    %c0_95 = arith.constant 0 : index
    %c0_96 = arith.constant 0 : index
    %120 = vector.load %arg11[%c0_93, %c0_94, %c0_95, %c0_96] : memref<1x8x16x16xbf16, #tpu.memory_space<vmem>>, vector<1x8x16x16xbf16>
    tpu.vector_store %arg11[%c0_93, %c0_94, %c0_95, %c0_96], %119 {strides = array<i32>} : memref<1x8x16x16xbf16, #tpu.memory_space<vmem>>, vector<1x8x16x16xbf16>,
    return
  }
  func.func @transform_0(%arg0: i32, %arg1: i32) -> (i32, i32, i32, i32) {
    %c0_i32 = arith.constant 0 : i32
    %c0_i32_0 = arith.constant 0 : i32
    %c0_i32_1 = arith.constant 0 : i32
    return %arg0, %arg1, %c0_i32, %c0_i32_0 : i32, i32, i32, i32
  }
  func.func @transform_1(%arg0: i32, %arg1: i32) -> (i32, i32, i32, i32) {
    %c8_i32 = arith.constant 8 : i32
    %0 = arith.muli %arg1, %c8_i32 : i32
    %c1_i32 = arith.constant 1 : i32
    %1 = arith.subi %0, %c1_i32 : i32
    %c0_i32 = arith.constant 0 : i32
    %2 = arith.maxsi %1, %c0_i32 : i32
    %c0_i32_0 = arith.constant 0 : i32
    %c0_i32_1 = arith.constant 0 : i32
    %c0_i32_2 = arith.constant 0 : i32
    return %arg0, %2, %c0_i32_0, %c0_i32_1 : i32, i32, i32, i32
  }
  func.func @transform_2(%arg0: i32, %arg1: i32) -> (i32, i32, i32, i32) {
    %c8_i32 = arith.constant 8 : i32
    %0 = arith.muli %arg1, %c8_i32 : i32
    %c8_i32_0 = arith.constant 8 : i32
    %1 = arith.addi %0, %c8_i32_0 : i32
    %c15_i32 = arith.constant 15 : i32
    %2 = arith.minsi %1, %c15_i32 : i32
    %c0_i32 = arith.constant 0 : i32
    %c0_i32_1 = arith.constant 0 : i32
    %c0_i32_2 = arith.constant 0 : i32
    return %arg0, %2, %c0_i32, %c0_i32_1 : i32, i32, i32, i32
  }
  func.func @transform_3(%arg0: i32, %arg1: i32) -> (i32, i32, i32) {
    %c0_i32 = arith.constant 0 : i32
    %c0_i32_0 = arith.constant 0 : i32
    %c0_i32_1 = arith.constant 0 : i32
    %c0_i32_2 = arith.constant 0 : i32
    return %c0_i32, %c0_i32_0, %c0_i32_1 : i32, i32, i32
  }
  func.func @transform_4(%arg0: i32, %arg1: i32) -> (i32, i32) {
    %c0_i32 = arith.constant 0 : i32
    %c0_i32_0 = arith.constant 0 : i32
    %c0_i32_1 = arith.constant 0 : i32
    return %c0_i32, %c0_i32_0 : i32, i32
  }
  func.func @transform_5(%arg0: i32, %arg1: i32) -> (i32, i32) {
    %c0_i32 = arith.constant 0 : i32
    %c0_i32_0 = arith.constant 0 : i32
    %c0_i32_1 = arith.constant 0 : i32
    return %c0_i32, %c0_i32_0 : i32, i32
  }
  func.func @transform_6(%arg0: i32, %arg1: i32) -> (i32, i32) {
    %c0_i32 = arith.constant 0 : i32
    %c0_i32_0 = arith.constant 0 : i32
    %c0_i32_1 = arith.constant 0 : i32
    return %c0_i32, %c0_i32_0 : i32, i32
  }
  func.func @transform_7(%arg0: i32, %arg1: i32) -> (i32, i32) {
    %c0_i32 = arith.constant 0 : i32
    %c0_i32_0 = arith.constant 0 : i32
    %c0_i32_1 = arith.constant 0 : i32
    return %c0_i32, %c0_i32_0 : i32, i32
  }
  func.func @transform_8(%arg0: i32, %arg1: i32) -> (i32, i32) {
    %c0_i32 = arith.constant 0 : i32
    %c0_i32_0 = arith.constant 0 : i32
    %c0_i32_1 = arith.constant 0 : i32
    return %c0_i32, %c0_i32_0 : i32, i32
  }
  func.func @transform_9(%arg0: i32, %arg1: i32) -> (i32, i32, i32, i32) {
    %c0_i32 = arith.constant 0 : i32
    %c0_i32_0 = arith.constant 0 : i32
    %c0_i32_1 = arith.constant 0 : i32
    return %arg0, %arg1, %c0_i32, %c0_i32_0 : i32, i32, i32, i32
  }
  func.func @transform_10(%arg0: i32, %arg1: i32) -> (i32, i32, i32) {
    %c0_i32 = arith.constant 0 : i32
    %c0_i32_0 = arith.constant 0 : i32
    %c0_i32_1 = arith.constant 0 : i32
    return %arg0, %c0_i32, %c0_i32_0 : i32, i32, i32
  }
}

module attributes {stable_mosaic.version = 11 : i64} {
  func.func @_conv3x3_kernel(%arg0: i32, %arg1: i32, %arg2: memref<1x8x16x16xbf16, #tpu.memory_space<vmem>>, %arg3: memref<1x1x16x16xbf16, #tpu.memory_space<vmem>>, %arg4: memref<1x1x16x16xbf16, #tpu.memory_space<vmem>>, %arg5: memref<9x16x16xbf16, #tpu.memory_space<vmem>>, %arg6: memref<1x16xf32, #tpu.memory_space<vmem>>, %arg7: memref<1x8x16x16xbf16, #tpu.memory_space<vmem>>, %arg8: memref<1x8x16x16xbf16, #tpu.memory_space<vmem>>, %arg9: memref<10x16x16xbf16, #tpu.memory_space<vmem>>) attributes {dimension_semantics = [#tpu.dimension_semantics<parallel>, #tpu.dimension_semantics<parallel>], iteration_bounds = array<i64: 2, 2>, scalar_prefetch = 0 : i64, scratch_operands = 1 : i64, tpu.core_type = #tpu.core_type<tc>, window_params = [{transform_indices = @transform_0, window_bounds = array<i64: 1, 8, 16, 16>}, {transform_indices = @transform_1, window_bounds = array<i64: 1, 1, 16, 16>}, {transform_indices = @transform_2, window_bounds = array<i64: 1, 1, 16, 16>}, {pipeline_mode = #tpu.pipeline_mode<synchronous>, transform_indices = @transform_3, window_bounds = array<i64: 9, 16, 16>}, {pipeline_mode = #tpu.pipeline_mode<synchronous>, transform_indices = @transform_4, window_bounds = array<i64: 1, 16>}, {transform_indices = @transform_5, window_bounds = array<i64: 1, 8, 16, 16>}, {transform_indices = @transform_6, window_bounds = array<i64: 1, 8, 16, 16>}]} {
    %c0_i32 = arith.constant 0 : i32
    %0 = arith.cmpi sgt, %arg1, %c0_i32 : i32
    %1 = arith.extui %0 : i1 to i32
    %2 = arith.sitofp %1 : i32 to f32
    %c1_i32 = arith.constant 1 : i32
    %3 = arith.cmpi slt, %arg1, %c1_i32 : i32
    %4 = arith.extui %3 : i1 to i32
    %5 = arith.sitofp %4 : i32 to f32
    %c0 = arith.constant 0 : index
    %c0_0 = arith.constant 0 : index
    %c0_1 = arith.constant 0 : index
    %c0_2 = arith.constant 0 : index
    %6 = vector.load %arg3[%c0, %c0_0, %c0_1, %c0_2] : memref<1x1x16x16xbf16, #tpu.memory_space<vmem>>, vector<1x1x16x16xbf16>
    %7 = vector.shape_cast %6 : vector<1x1x16x16xbf16> to vector<1x16x16xbf16>
    %8 = arith.extf %7 : vector<1x16x16xbf16> to vector<1x16x16xf32>
    %9 = vector.broadcast %2 : f32 to vector<1x16x16xf32>
    %10 = arith.mulf %8, %9 : vector<1x16x16xf32>
    %11 = arith.truncf %10 : vector<1x16x16xf32> to vector<1x16x16xbf16>
    %c0_3 = arith.constant 0 : index
    %c0_4 = arith.constant 0 : index
    %c0_5 = arith.constant 0 : index
    %12 = vector.load %arg9[%c0_3, %c0_4, %c0_5] : memref<10x16x16xbf16, #tpu.memory_space<vmem>>, vector<1x16x16xbf16>
    tpu.vector_store %arg9[%c0_3, %c0_4, %c0_5], %11 {strides = array<i32>} : memref<10x16x16xbf16, #tpu.memory_space<vmem>>, vector<1x16x16xbf16>,
    %c0_6 = arith.constant 0 : index
    %c0_7 = arith.constant 0 : index
    %c0_8 = arith.constant 0 : index
    %c0_9 = arith.constant 0 : index
    %13 = vector.load %arg2[%c0_6, %c0_7, %c0_8, %c0_9] : memref<1x8x16x16xbf16, #tpu.memory_space<vmem>>, vector<1x8x16x16xbf16>
    %14 = vector.shape_cast %13 : vector<1x8x16x16xbf16> to vector<8x16x16xbf16>
    %c1 = arith.constant 1 : index
    %c0_10 = arith.constant 0 : index
    %c0_11 = arith.constant 0 : index
    %15 = vector.load %arg9[%c1, %c0_10, %c0_11] : memref<10x16x16xbf16, #tpu.memory_space<vmem>>, vector<8x16x16xbf16>
    tpu.vector_store %arg9[%c1, %c0_10, %c0_11], %14 {strides = array<i32>} : memref<10x16x16xbf16, #tpu.memory_space<vmem>>, vector<8x16x16xbf16>,
    %c0_12 = arith.constant 0 : index
    %c0_13 = arith.constant 0 : index
    %c0_14 = arith.constant 0 : index
    %c0_15 = arith.constant 0 : index
    %16 = vector.load %arg4[%c0_12, %c0_13, %c0_14, %c0_15] : memref<1x1x16x16xbf16, #tpu.memory_space<vmem>>, vector<1x1x16x16xbf16>
    %17 = vector.shape_cast %16 : vector<1x1x16x16xbf16> to vector<1x16x16xbf16>
    %18 = arith.extf %17 : vector<1x16x16xbf16> to vector<1x16x16xf32>
    %19 = vector.broadcast %5 : f32 to vector<1x16x16xf32>
    %20 = arith.mulf %18, %19 : vector<1x16x16xf32>
    %21 = arith.truncf %20 : vector<1x16x16xf32> to vector<1x16x16xbf16>
    %c9 = arith.constant 9 : index
    %c0_16 = arith.constant 0 : index
    %c0_17 = arith.constant 0 : index
    %22 = vector.load %arg9[%c9, %c0_16, %c0_17] : memref<10x16x16xbf16, #tpu.memory_space<vmem>>, vector<1x16x16xbf16>
    tpu.vector_store %arg9[%c9, %c0_16, %c0_17], %21 {strides = array<i32>} : memref<10x16x16xbf16, #tpu.memory_space<vmem>>, vector<1x16x16xbf16>,
    %23 = tpu.iota {dimensions = array<i32: 0>} : vector<128x16xi32>
    %c16_i32 = arith.constant 16 : i32
    %c0_i32_18 = arith.constant 0 : i32
    %24 = arith.cmpi eq, %c16_i32, %c0_i32_18 : i32
    %c1_i32_19 = arith.constant 1 : i32
    %25 = arith.select %24, %c1_i32_19, %c16_i32 : i32
    %26 = vector.broadcast %25 : i32 to vector<128x16xi32>
    %27 = arith.remsi %23, %26 : vector<128x16xi32>
    %c0_i32_20 = arith.constant 0 : i32
    %28 = vector.broadcast %c0_i32_20 : i32 to vector<128x16xi32>
    %29 = arith.cmpi ne, %27, %28 : vector<128x16xi32>
    %c0_i32_21 = arith.constant 0 : i32
    %30 = vector.broadcast %c0_i32_21 : i32 to vector<128x16xi32>
    %31 = arith.cmpi slt, %27, %30 : vector<128x16xi32>
    %c0_i32_22 = arith.constant 0 : i32
    %32 = arith.cmpi slt, %25, %c0_i32_22 : i32
    %33 = vector.broadcast %32 : i1 to vector<128x16xi1>
    %34 = vector.broadcast %33 : vector<128x16xi1> to vector<128x16xi1>
    %35 = arith.xori %31, %34 : vector<128x16xi1>
    %36 = arith.andi %35, %29 : vector<128x16xi1>
    %37 = vector.broadcast %25 : i32 to vector<128x16xi32>
    %38 = arith.addi %27, %37 : vector<128x16xi32>
    %39 = arith.select %36, %38, %27 : vector<128x16xi1>, vector<128x16xi32>
    %c0_23 = arith.constant 0 : index
    %c0_24 = arith.constant 0 : index
    %c0_25 = arith.constant 0 : index
    %40 = vector.load %arg9[%c0_23, %c0_24, %c0_25] : memref<10x16x16xbf16, #tpu.memory_space<vmem>>, vector<8x16x16xbf16>
    %41 = vector.shape_cast %40 : vector<8x16x16xbf16> to vector<128x16xbf16>
    %c0_26 = arith.constant 0 : index
    %c0_27 = arith.constant 0 : index
    %c0_28 = arith.constant 0 : index
    %42 = vector.load %arg5[%c0_26, %c0_27, %c0_28] : memref<9x16x16xbf16, #tpu.memory_space<vmem>>, vector<1x16x16xbf16>
    %43 = vector.shape_cast %42 : vector<1x16x16xbf16> to vector<16x16xbf16>
    %cst = arith.constant dense<0.000000e+00> : vector<128x16xf32>
    %44 = tpu.matmul %41, %43, %cst {dimension_numbers = #tpu.dot_dimension_numbers<[1], [0], [0], [1], [0, 0, 1, 1], [], []>} : vector<128x16xbf16>, vector<16x16xbf16>, vector<128x16xf32> -> vector<128x16xf32>
    %c1_29 = arith.constant 1 : index
    %c0_30 = arith.constant 0 : index
    %c0_31 = arith.constant 0 : index
    %45 = vector.load %arg9[%c1_29, %c0_30, %c0_31] : memref<10x16x16xbf16, #tpu.memory_space<vmem>>, vector<8x16x16xbf16>
    %46 = vector.shape_cast %45 : vector<8x16x16xbf16> to vector<128x16xbf16>
    %c3 = arith.constant 3 : index
    %c0_32 = arith.constant 0 : index
    %c0_33 = arith.constant 0 : index
    %47 = vector.load %arg5[%c3, %c0_32, %c0_33] : memref<9x16x16xbf16, #tpu.memory_space<vmem>>, vector<1x16x16xbf16>
    %48 = vector.shape_cast %47 : vector<1x16x16xbf16> to vector<16x16xbf16>
    %cst_34 = arith.constant dense<0.000000e+00> : vector<128x16xf32>
    %49 = tpu.matmul %46, %48, %cst_34 {dimension_numbers = #tpu.dot_dimension_numbers<[1], [0], [0], [1], [0, 0, 1, 1], [], []>} : vector<128x16xbf16>, vector<16x16xbf16>, vector<128x16xf32> -> vector<128x16xf32>
    %50 = arith.addf %44, %49 : vector<128x16xf32>
    %c2 = arith.constant 2 : index
    %c0_35 = arith.constant 0 : index
    %c0_36 = arith.constant 0 : index
    %51 = vector.load %arg9[%c2, %c0_35, %c0_36] : memref<10x16x16xbf16, #tpu.memory_space<vmem>>, vector<8x16x16xbf16>
    %52 = vector.shape_cast %51 : vector<8x16x16xbf16> to vector<128x16xbf16>
    %c6 = arith.constant 6 : index
    %c0_37 = arith.constant 0 : index
    %c0_38 = arith.constant 0 : index
    %53 = vector.load %arg5[%c6, %c0_37, %c0_38] : memref<9x16x16xbf16, #tpu.memory_space<vmem>>, vector<1x16x16xbf16>
    %54 = vector.shape_cast %53 : vector<1x16x16xbf16> to vector<16x16xbf16>
    %cst_39 = arith.constant dense<0.000000e+00> : vector<128x16xf32>
    %55 = tpu.matmul %52, %54, %cst_39 {dimension_numbers = #tpu.dot_dimension_numbers<[1], [0], [0], [1], [0, 0, 1, 1], [], []>} : vector<128x16xbf16>, vector<16x16xbf16>, vector<128x16xf32> -> vector<128x16xf32>
    %56 = arith.addf %50, %55 : vector<128x16xf32>
    %c0_i32_40 = arith.constant 0 : i32
    %57 = vector.broadcast %c0_i32_40 : i32 to vector<128x16xi32>
    %58 = arith.cmpi eq, %39, %57 : vector<128x16xi32>
    %c1_i32_41 = arith.constant 1 : i32
    %59 = tpu.dynamic_rotate %56 by %c1_i32_41 dim 0 : vector<128x16xf32>, i32 -> vector<128x16xf32>
    %cst_42 = arith.constant 0.000000e+00 : f32
    %60 = vector.broadcast %cst_42 : f32 to vector<128x16xf32>
    %61 = arith.select %58, %60, %59 : vector<128x16xi1>, vector<128x16xf32>
    %c0_43 = arith.constant 0 : index
    %c0_44 = arith.constant 0 : index
    %c0_45 = arith.constant 0 : index
    %62 = vector.load %arg9[%c0_43, %c0_44, %c0_45] : memref<10x16x16xbf16, #tpu.memory_space<vmem>>, vector<8x16x16xbf16>
    %63 = vector.shape_cast %62 : vector<8x16x16xbf16> to vector<128x16xbf16>
    %c1_46 = arith.constant 1 : index
    %c0_47 = arith.constant 0 : index
    %c0_48 = arith.constant 0 : index
    %64 = vector.load %arg5[%c1_46, %c0_47, %c0_48] : memref<9x16x16xbf16, #tpu.memory_space<vmem>>, vector<1x16x16xbf16>
    %65 = vector.shape_cast %64 : vector<1x16x16xbf16> to vector<16x16xbf16>
    %cst_49 = arith.constant dense<0.000000e+00> : vector<128x16xf32>
    %66 = tpu.matmul %63, %65, %cst_49 {dimension_numbers = #tpu.dot_dimension_numbers<[1], [0], [0], [1], [0, 0, 1, 1], [], []>} : vector<128x16xbf16>, vector<16x16xbf16>, vector<128x16xf32> -> vector<128x16xf32>
    %c1_50 = arith.constant 1 : index
    %c0_51 = arith.constant 0 : index
    %c0_52 = arith.constant 0 : index
    %67 = vector.load %arg9[%c1_50, %c0_51, %c0_52] : memref<10x16x16xbf16, #tpu.memory_space<vmem>>, vector<8x16x16xbf16>
    %68 = vector.shape_cast %67 : vector<8x16x16xbf16> to vector<128x16xbf16>
    %c4 = arith.constant 4 : index
    %c0_53 = arith.constant 0 : index
    %c0_54 = arith.constant 0 : index
    %69 = vector.load %arg5[%c4, %c0_53, %c0_54] : memref<9x16x16xbf16, #tpu.memory_space<vmem>>, vector<1x16x16xbf16>
    %70 = vector.shape_cast %69 : vector<1x16x16xbf16> to vector<16x16xbf16>
    %cst_55 = arith.constant dense<0.000000e+00> : vector<128x16xf32>
    %71 = tpu.matmul %68, %70, %cst_55 {dimension_numbers = #tpu.dot_dimension_numbers<[1], [0], [0], [1], [0, 0, 1, 1], [], []>} : vector<128x16xbf16>, vector<16x16xbf16>, vector<128x16xf32> -> vector<128x16xf32>
    %72 = arith.addf %66, %71 : vector<128x16xf32>
    %c2_56 = arith.constant 2 : index
    %c0_57 = arith.constant 0 : index
    %c0_58 = arith.constant 0 : index
    %73 = vector.load %arg9[%c2_56, %c0_57, %c0_58] : memref<10x16x16xbf16, #tpu.memory_space<vmem>>, vector<8x16x16xbf16>
    %74 = vector.shape_cast %73 : vector<8x16x16xbf16> to vector<128x16xbf16>
    %c7 = arith.constant 7 : index
    %c0_59 = arith.constant 0 : index
    %c0_60 = arith.constant 0 : index
    %75 = vector.load %arg5[%c7, %c0_59, %c0_60] : memref<9x16x16xbf16, #tpu.memory_space<vmem>>, vector<1x16x16xbf16>
    %76 = vector.shape_cast %75 : vector<1x16x16xbf16> to vector<16x16xbf16>
    %cst_61 = arith.constant dense<0.000000e+00> : vector<128x16xf32>
    %77 = tpu.matmul %74, %76, %cst_61 {dimension_numbers = #tpu.dot_dimension_numbers<[1], [0], [0], [1], [0, 0, 1, 1], [], []>} : vector<128x16xbf16>, vector<16x16xbf16>, vector<128x16xf32> -> vector<128x16xf32>
    %78 = arith.addf %72, %77 : vector<128x16xf32>
    %79 = arith.addf %61, %78 : vector<128x16xf32>
    %c0_62 = arith.constant 0 : index
    %c0_63 = arith.constant 0 : index
    %c0_64 = arith.constant 0 : index
    %80 = vector.load %arg9[%c0_62, %c0_63, %c0_64] : memref<10x16x16xbf16, #tpu.memory_space<vmem>>, vector<8x16x16xbf16>
    %81 = vector.shape_cast %80 : vector<8x16x16xbf16> to vector<128x16xbf16>
    %c2_65 = arith.constant 2 : index
    %c0_66 = arith.constant 0 : index
    %c0_67 = arith.constant 0 : index
    %82 = vector.load %arg5[%c2_65, %c0_66, %c0_67] : memref<9x16x16xbf16, #tpu.memory_space<vmem>>, vector<1x16x16xbf16>
    %83 = vector.shape_cast %82 : vector<1x16x16xbf16> to vector<16x16xbf16>
    %cst_68 = arith.constant dense<0.000000e+00> : vector<128x16xf32>
    %84 = tpu.matmul %81, %83, %cst_68 {dimension_numbers = #tpu.dot_dimension_numbers<[1], [0], [0], [1], [0, 0, 1, 1], [], []>} : vector<128x16xbf16>, vector<16x16xbf16>, vector<128x16xf32> -> vector<128x16xf32>
    %c1_69 = arith.constant 1 : index
    %c0_70 = arith.constant 0 : index
    %c0_71 = arith.constant 0 : index
    %85 = vector.load %arg9[%c1_69, %c0_70, %c0_71] : memref<10x16x16xbf16, #tpu.memory_space<vmem>>, vector<8x16x16xbf16>
    %86 = vector.shape_cast %85 : vector<8x16x16xbf16> to vector<128x16xbf16>
    %c5 = arith.constant 5 : index
    %c0_72 = arith.constant 0 : index
    %c0_73 = arith.constant 0 : index
    %87 = vector.load %arg5[%c5, %c0_72, %c0_73] : memref<9x16x16xbf16, #tpu.memory_space<vmem>>, vector<1x16x16xbf16>
    %88 = vector.shape_cast %87 : vector<1x16x16xbf16> to vector<16x16xbf16>
    %cst_74 = arith.constant dense<0.000000e+00> : vector<128x16xf32>
    %89 = tpu.matmul %86, %88, %cst_74 {dimension_numbers = #tpu.dot_dimension_numbers<[1], [0], [0], [1], [0, 0, 1, 1], [], []>} : vector<128x16xbf16>, vector<16x16xbf16>, vector<128x16xf32> -> vector<128x16xf32>
    %90 = arith.addf %84, %89 : vector<128x16xf32>
    %c2_75 = arith.constant 2 : index
    %c0_76 = arith.constant 0 : index
    %c0_77 = arith.constant 0 : index
    %91 = vector.load %arg9[%c2_75, %c0_76, %c0_77] : memref<10x16x16xbf16, #tpu.memory_space<vmem>>, vector<8x16x16xbf16>
    %92 = vector.shape_cast %91 : vector<8x16x16xbf16> to vector<128x16xbf16>
    %c8 = arith.constant 8 : index
    %c0_78 = arith.constant 0 : index
    %c0_79 = arith.constant 0 : index
    %93 = vector.load %arg5[%c8, %c0_78, %c0_79] : memref<9x16x16xbf16, #tpu.memory_space<vmem>>, vector<1x16x16xbf16>
    %94 = vector.shape_cast %93 : vector<1x16x16xbf16> to vector<16x16xbf16>
    %cst_80 = arith.constant dense<0.000000e+00> : vector<128x16xf32>
    %95 = tpu.matmul %92, %94, %cst_80 {dimension_numbers = #tpu.dot_dimension_numbers<[1], [0], [0], [1], [0, 0, 1, 1], [], []>} : vector<128x16xbf16>, vector<16x16xbf16>, vector<128x16xf32> -> vector<128x16xf32>
    %96 = arith.addf %90, %95 : vector<128x16xf32>
    %c15_i32 = arith.constant 15 : i32
    %97 = vector.broadcast %c15_i32 : i32 to vector<128x16xi32>
    %98 = arith.cmpi eq, %39, %97 : vector<128x16xi32>
    %c127_i32 = arith.constant 127 : i32
    %99 = tpu.dynamic_rotate %96 by %c127_i32 dim 0 : vector<128x16xf32>, i32 -> vector<128x16xf32>
    %cst_81 = arith.constant 0.000000e+00 : f32
    %100 = vector.broadcast %cst_81 : f32 to vector<128x16xf32>
    %101 = arith.select %98, %100, %99 : vector<128x16xi1>, vector<128x16xf32>
    %102 = arith.addf %79, %101 : vector<128x16xf32>
    %c0_82 = arith.constant 0 : index
    %c0_83 = arith.constant 0 : index
    %103 = vector.load %arg6[%c0_82, %c0_83] : memref<1x16xf32, #tpu.memory_space<vmem>>, vector<1x16xf32>
    %104 = vector.broadcast %103 : vector<1x16xf32> to vector<128x16xf32>
    %105 = arith.addf %102, %104 : vector<128x16xf32>
    %106 = vector.shape_cast %105 : vector<128x16xf32> to vector<8x16x16xf32>
    %c0_84 = arith.constant 0 : index
    %c0_85 = arith.constant 0 : index
    %c0_86 = arith.constant 0 : index
    %c0_87 = arith.constant 0 : index
    %107 = vector.load %arg7[%c0_84, %c0_85, %c0_86, %c0_87] : memref<1x8x16x16xbf16, #tpu.memory_space<vmem>>, vector<1x8x16x16xbf16>
    %108 = vector.shape_cast %107 : vector<1x8x16x16xbf16> to vector<8x16x16xbf16>
    %109 = arith.extf %108 : vector<8x16x16xbf16> to vector<8x16x16xf32>
    %110 = arith.addf %106, %109 : vector<8x16x16xf32>
    %111 = vector.shape_cast %110 : vector<8x16x16xf32> to vector<1x8x16x16xf32>
    %112 = arith.truncf %111 : vector<1x8x16x16xf32> to vector<1x8x16x16xbf16>
    %c0_88 = arith.constant 0 : index
    %c0_89 = arith.constant 0 : index
    %c0_90 = arith.constant 0 : index
    %c0_91 = arith.constant 0 : index
    %113 = vector.load %arg8[%c0_88, %c0_89, %c0_90, %c0_91] : memref<1x8x16x16xbf16, #tpu.memory_space<vmem>>, vector<1x8x16x16xbf16>
    tpu.vector_store %arg8[%c0_88, %c0_89, %c0_90, %c0_91], %112 {strides = array<i32>} : memref<1x8x16x16xbf16, #tpu.memory_space<vmem>>, vector<1x8x16x16xbf16>,
    return
  }
  func.func @transform_0(%arg0: i32, %arg1: i32) -> (i32, i32, i32, i32) {
    %c0_i32 = arith.constant 0 : i32
    %c0_i32_0 = arith.constant 0 : i32
    %c0_i32_1 = arith.constant 0 : i32
    return %arg0, %arg1, %c0_i32, %c0_i32_0 : i32, i32, i32, i32
  }
  func.func @transform_1(%arg0: i32, %arg1: i32) -> (i32, i32, i32, i32) {
    %c8_i32 = arith.constant 8 : i32
    %0 = arith.muli %arg1, %c8_i32 : i32
    %c1_i32 = arith.constant 1 : i32
    %1 = arith.subi %0, %c1_i32 : i32
    %c0_i32 = arith.constant 0 : i32
    %2 = arith.maxsi %1, %c0_i32 : i32
    %c0_i32_0 = arith.constant 0 : i32
    %c0_i32_1 = arith.constant 0 : i32
    %c0_i32_2 = arith.constant 0 : i32
    return %arg0, %2, %c0_i32_0, %c0_i32_1 : i32, i32, i32, i32
  }
  func.func @transform_2(%arg0: i32, %arg1: i32) -> (i32, i32, i32, i32) {
    %c8_i32 = arith.constant 8 : i32
    %0 = arith.muli %arg1, %c8_i32 : i32
    %c8_i32_0 = arith.constant 8 : i32
    %1 = arith.addi %0, %c8_i32_0 : i32
    %c15_i32 = arith.constant 15 : i32
    %2 = arith.minsi %1, %c15_i32 : i32
    %c0_i32 = arith.constant 0 : i32
    %c0_i32_1 = arith.constant 0 : i32
    %c0_i32_2 = arith.constant 0 : i32
    return %arg0, %2, %c0_i32, %c0_i32_1 : i32, i32, i32, i32
  }
  func.func @transform_3(%arg0: i32, %arg1: i32) -> (i32, i32, i32) {
    %c0_i32 = arith.constant 0 : i32
    %c0_i32_0 = arith.constant 0 : i32
    %c0_i32_1 = arith.constant 0 : i32
    %c0_i32_2 = arith.constant 0 : i32
    return %c0_i32, %c0_i32_0, %c0_i32_1 : i32, i32, i32
  }
  func.func @transform_4(%arg0: i32, %arg1: i32) -> (i32, i32) {
    %c0_i32 = arith.constant 0 : i32
    %c0_i32_0 = arith.constant 0 : i32
    %c0_i32_1 = arith.constant 0 : i32
    return %c0_i32, %c0_i32_0 : i32, i32
  }
  func.func @transform_5(%arg0: i32, %arg1: i32) -> (i32, i32, i32, i32) {
    %c0_i32 = arith.constant 0 : i32
    %c0_i32_0 = arith.constant 0 : i32
    %c0_i32_1 = arith.constant 0 : i32
    return %arg0, %arg1, %c0_i32, %c0_i32_0 : i32, i32, i32, i32
  }
  func.func @transform_6(%arg0: i32, %arg1: i32) -> (i32, i32, i32, i32) {
    %c0_i32 = arith.constant 0 : i32
    %c0_i32_0 = arith.constant 0 : i32
    %c0_i32_1 = arith.constant 0 : i32
    return %arg0, %arg1, %c0_i32, %c0_i32_0 : i32, i32, i32, i32
  }
}

module attributes {stable_mosaic.version = 11 : i64} {
  func.func @_conv3x3_kernel(%arg0: i32, %arg1: i32, %arg2: memref<1x8x16x16xbf16, #tpu.memory_space<vmem>>, %arg3: memref<1x1x16x16xbf16, #tpu.memory_space<vmem>>, %arg4: memref<1x1x16x16xbf16, #tpu.memory_space<vmem>>, %arg5: memref<9x16x64xbf16, #tpu.memory_space<vmem>>, %arg6: memref<1x64xf32, #tpu.memory_space<vmem>>, %arg7: memref<1x8x16x64xbf16, #tpu.memory_space<vmem>>, %arg8: memref<10x16x16xbf16, #tpu.memory_space<vmem>>) attributes {dimension_semantics = [#tpu.dimension_semantics<parallel>, #tpu.dimension_semantics<parallel>], iteration_bounds = array<i64: 2, 2>, scalar_prefetch = 0 : i64, scratch_operands = 1 : i64, tpu.core_type = #tpu.core_type<tc>, window_params = [{transform_indices = @transform_0, window_bounds = array<i64: 1, 8, 16, 16>}, {transform_indices = @transform_1, window_bounds = array<i64: 1, 1, 16, 16>}, {transform_indices = @transform_2, window_bounds = array<i64: 1, 1, 16, 16>}, {pipeline_mode = #tpu.pipeline_mode<synchronous>, transform_indices = @transform_3, window_bounds = array<i64: 9, 16, 64>}, {pipeline_mode = #tpu.pipeline_mode<synchronous>, transform_indices = @transform_4, window_bounds = array<i64: 1, 64>}, {transform_indices = @transform_5, window_bounds = array<i64: 1, 8, 16, 64>}]} {
    %c0_i32 = arith.constant 0 : i32
    %0 = arith.cmpi sgt, %arg1, %c0_i32 : i32
    %1 = arith.extui %0 : i1 to i32
    %2 = arith.sitofp %1 : i32 to f32
    %c1_i32 = arith.constant 1 : i32
    %3 = arith.cmpi slt, %arg1, %c1_i32 : i32
    %4 = arith.extui %3 : i1 to i32
    %5 = arith.sitofp %4 : i32 to f32
    %c0 = arith.constant 0 : index
    %c0_0 = arith.constant 0 : index
    %c0_1 = arith.constant 0 : index
    %c0_2 = arith.constant 0 : index
    %6 = vector.load %arg3[%c0, %c0_0, %c0_1, %c0_2] : memref<1x1x16x16xbf16, #tpu.memory_space<vmem>>, vector<1x1x16x16xbf16>
    %7 = vector.shape_cast %6 : vector<1x1x16x16xbf16> to vector<1x16x16xbf16>
    %8 = arith.extf %7 : vector<1x16x16xbf16> to vector<1x16x16xf32>
    %9 = vector.broadcast %2 : f32 to vector<1x16x16xf32>
    %10 = arith.mulf %8, %9 : vector<1x16x16xf32>
    %11 = arith.truncf %10 : vector<1x16x16xf32> to vector<1x16x16xbf16>
    %c0_3 = arith.constant 0 : index
    %c0_4 = arith.constant 0 : index
    %c0_5 = arith.constant 0 : index
    %12 = vector.load %arg8[%c0_3, %c0_4, %c0_5] : memref<10x16x16xbf16, #tpu.memory_space<vmem>>, vector<1x16x16xbf16>
    tpu.vector_store %arg8[%c0_3, %c0_4, %c0_5], %11 {strides = array<i32>} : memref<10x16x16xbf16, #tpu.memory_space<vmem>>, vector<1x16x16xbf16>,
    %c0_6 = arith.constant 0 : index
    %c0_7 = arith.constant 0 : index
    %c0_8 = arith.constant 0 : index
    %c0_9 = arith.constant 0 : index
    %13 = vector.load %arg2[%c0_6, %c0_7, %c0_8, %c0_9] : memref<1x8x16x16xbf16, #tpu.memory_space<vmem>>, vector<1x8x16x16xbf16>
    %14 = vector.shape_cast %13 : vector<1x8x16x16xbf16> to vector<8x16x16xbf16>
    %c1 = arith.constant 1 : index
    %c0_10 = arith.constant 0 : index
    %c0_11 = arith.constant 0 : index
    %15 = vector.load %arg8[%c1, %c0_10, %c0_11] : memref<10x16x16xbf16, #tpu.memory_space<vmem>>, vector<8x16x16xbf16>
    tpu.vector_store %arg8[%c1, %c0_10, %c0_11], %14 {strides = array<i32>} : memref<10x16x16xbf16, #tpu.memory_space<vmem>>, vector<8x16x16xbf16>,
    %c0_12 = arith.constant 0 : index
    %c0_13 = arith.constant 0 : index
    %c0_14 = arith.constant 0 : index
    %c0_15 = arith.constant 0 : index
    %16 = vector.load %arg4[%c0_12, %c0_13, %c0_14, %c0_15] : memref<1x1x16x16xbf16, #tpu.memory_space<vmem>>, vector<1x1x16x16xbf16>
    %17 = vector.shape_cast %16 : vector<1x1x16x16xbf16> to vector<1x16x16xbf16>
    %18 = arith.extf %17 : vector<1x16x16xbf16> to vector<1x16x16xf32>
    %19 = vector.broadcast %5 : f32 to vector<1x16x16xf32>
    %20 = arith.mulf %18, %19 : vector<1x16x16xf32>
    %21 = arith.truncf %20 : vector<1x16x16xf32> to vector<1x16x16xbf16>
    %c9 = arith.constant 9 : index
    %c0_16 = arith.constant 0 : index
    %c0_17 = arith.constant 0 : index
    %22 = vector.load %arg8[%c9, %c0_16, %c0_17] : memref<10x16x16xbf16, #tpu.memory_space<vmem>>, vector<1x16x16xbf16>
    tpu.vector_store %arg8[%c9, %c0_16, %c0_17], %21 {strides = array<i32>} : memref<10x16x16xbf16, #tpu.memory_space<vmem>>, vector<1x16x16xbf16>,
    %23 = tpu.iota {dimensions = array<i32: 0>} : vector<128x64xi32>
    %c16_i32 = arith.constant 16 : i32
    %c0_i32_18 = arith.constant 0 : i32
    %24 = arith.cmpi eq, %c16_i32, %c0_i32_18 : i32
    %c1_i32_19 = arith.constant 1 : i32
    %25 = arith.select %24, %c1_i32_19, %c16_i32 : i32
    %26 = vector.broadcast %25 : i32 to vector<128x64xi32>
    %27 = arith.remsi %23, %26 : vector<128x64xi32>
    %c0_i32_20 = arith.constant 0 : i32
    %28 = vector.broadcast %c0_i32_20 : i32 to vector<128x64xi32>
    %29 = arith.cmpi ne, %27, %28 : vector<128x64xi32>
    %c0_i32_21 = arith.constant 0 : i32
    %30 = vector.broadcast %c0_i32_21 : i32 to vector<128x64xi32>
    %31 = arith.cmpi slt, %27, %30 : vector<128x64xi32>
    %c0_i32_22 = arith.constant 0 : i32
    %32 = arith.cmpi slt, %25, %c0_i32_22 : i32
    %33 = vector.broadcast %32 : i1 to vector<128x64xi1>
    %34 = vector.broadcast %33 : vector<128x64xi1> to vector<128x64xi1>
    %35 = arith.xori %31, %34 : vector<128x64xi1>
    %36 = arith.andi %35, %29 : vector<128x64xi1>
    %37 = vector.broadcast %25 : i32 to vector<128x64xi32>
    %38 = arith.addi %27, %37 : vector<128x64xi32>
    %39 = arith.select %36, %38, %27 : vector<128x64xi1>, vector<128x64xi32>
    %c0_23 = arith.constant 0 : index
    %c0_24 = arith.constant 0 : index
    %c0_25 = arith.constant 0 : index
    %40 = vector.load %arg8[%c0_23, %c0_24, %c0_25] : memref<10x16x16xbf16, #tpu.memory_space<vmem>>, vector<8x16x16xbf16>
    %41 = vector.shape_cast %40 : vector<8x16x16xbf16> to vector<128x16xbf16>
    %c0_26 = arith.constant 0 : index
    %c0_27 = arith.constant 0 : index
    %c0_28 = arith.constant 0 : index
    %42 = vector.load %arg5[%c0_26, %c0_27, %c0_28] : memref<9x16x64xbf16, #tpu.memory_space<vmem>>, vector<1x16x64xbf16>
    %43 = vector.shape_cast %42 : vector<1x16x64xbf16> to vector<16x64xbf16>
    %cst = arith.constant dense<0.000000e+00> : vector<128x64xf32>
    %44 = tpu.matmul %41, %43, %cst {dimension_numbers = #tpu.dot_dimension_numbers<[1], [0], [0], [1], [0, 0, 1, 1], [], []>} : vector<128x16xbf16>, vector<16x64xbf16>, vector<128x64xf32> -> vector<128x64xf32>
    %c1_29 = arith.constant 1 : index
    %c0_30 = arith.constant 0 : index
    %c0_31 = arith.constant 0 : index
    %45 = vector.load %arg8[%c1_29, %c0_30, %c0_31] : memref<10x16x16xbf16, #tpu.memory_space<vmem>>, vector<8x16x16xbf16>
    %46 = vector.shape_cast %45 : vector<8x16x16xbf16> to vector<128x16xbf16>
    %c3 = arith.constant 3 : index
    %c0_32 = arith.constant 0 : index
    %c0_33 = arith.constant 0 : index
    %47 = vector.load %arg5[%c3, %c0_32, %c0_33] : memref<9x16x64xbf16, #tpu.memory_space<vmem>>, vector<1x16x64xbf16>
    %48 = vector.shape_cast %47 : vector<1x16x64xbf16> to vector<16x64xbf16>
    %cst_34 = arith.constant dense<0.000000e+00> : vector<128x64xf32>
    %49 = tpu.matmul %46, %48, %cst_34 {dimension_numbers = #tpu.dot_dimension_numbers<[1], [0], [0], [1], [0, 0, 1, 1], [], []>} : vector<128x16xbf16>, vector<16x64xbf16>, vector<128x64xf32> -> vector<128x64xf32>
    %50 = arith.addf %44, %49 : vector<128x64xf32>
    %c2 = arith.constant 2 : index
    %c0_35 = arith.constant 0 : index
    %c0_36 = arith.constant 0 : index
    %51 = vector.load %arg8[%c2, %c0_35, %c0_36] : memref<10x16x16xbf16, #tpu.memory_space<vmem>>, vector<8x16x16xbf16>
    %52 = vector.shape_cast %51 : vector<8x16x16xbf16> to vector<128x16xbf16>
    %c6 = arith.constant 6 : index
    %c0_37 = arith.constant 0 : index
    %c0_38 = arith.constant 0 : index
    %53 = vector.load %arg5[%c6, %c0_37, %c0_38] : memref<9x16x64xbf16, #tpu.memory_space<vmem>>, vector<1x16x64xbf16>
    %54 = vector.shape_cast %53 : vector<1x16x64xbf16> to vector<16x64xbf16>
    %cst_39 = arith.constant dense<0.000000e+00> : vector<128x64xf32>
    %55 = tpu.matmul %52, %54, %cst_39 {dimension_numbers = #tpu.dot_dimension_numbers<[1], [0], [0], [1], [0, 0, 1, 1], [], []>} : vector<128x16xbf16>, vector<16x64xbf16>, vector<128x64xf32> -> vector<128x64xf32>
    %56 = arith.addf %50, %55 : vector<128x64xf32>
    %c0_i32_40 = arith.constant 0 : i32
    %57 = vector.broadcast %c0_i32_40 : i32 to vector<128x64xi32>
    %58 = arith.cmpi eq, %39, %57 : vector<128x64xi32>
    %c1_i32_41 = arith.constant 1 : i32
    %59 = tpu.dynamic_rotate %56 by %c1_i32_41 dim 0 : vector<128x64xf32>, i32 -> vector<128x64xf32>
    %cst_42 = arith.constant 0.000000e+00 : f32
    %60 = vector.broadcast %cst_42 : f32 to vector<128x64xf32>
    %61 = arith.select %58, %60, %59 : vector<128x64xi1>, vector<128x64xf32>
    %c0_43 = arith.constant 0 : index
    %c0_44 = arith.constant 0 : index
    %c0_45 = arith.constant 0 : index
    %62 = vector.load %arg8[%c0_43, %c0_44, %c0_45] : memref<10x16x16xbf16, #tpu.memory_space<vmem>>, vector<8x16x16xbf16>
    %63 = vector.shape_cast %62 : vector<8x16x16xbf16> to vector<128x16xbf16>
    %c1_46 = arith.constant 1 : index
    %c0_47 = arith.constant 0 : index
    %c0_48 = arith.constant 0 : index
    %64 = vector.load %arg5[%c1_46, %c0_47, %c0_48] : memref<9x16x64xbf16, #tpu.memory_space<vmem>>, vector<1x16x64xbf16>
    %65 = vector.shape_cast %64 : vector<1x16x64xbf16> to vector<16x64xbf16>
    %cst_49 = arith.constant dense<0.000000e+00> : vector<128x64xf32>
    %66 = tpu.matmul %63, %65, %cst_49 {dimension_numbers = #tpu.dot_dimension_numbers<[1], [0], [0], [1], [0, 0, 1, 1], [], []>} : vector<128x16xbf16>, vector<16x64xbf16>, vector<128x64xf32> -> vector<128x64xf32>
    %c1_50 = arith.constant 1 : index
    %c0_51 = arith.constant 0 : index
    %c0_52 = arith.constant 0 : index
    %67 = vector.load %arg8[%c1_50, %c0_51, %c0_52] : memref<10x16x16xbf16, #tpu.memory_space<vmem>>, vector<8x16x16xbf16>
    %68 = vector.shape_cast %67 : vector<8x16x16xbf16> to vector<128x16xbf16>
    %c4 = arith.constant 4 : index
    %c0_53 = arith.constant 0 : index
    %c0_54 = arith.constant 0 : index
    %69 = vector.load %arg5[%c4, %c0_53, %c0_54] : memref<9x16x64xbf16, #tpu.memory_space<vmem>>, vector<1x16x64xbf16>
    %70 = vector.shape_cast %69 : vector<1x16x64xbf16> to vector<16x64xbf16>
    %cst_55 = arith.constant dense<0.000000e+00> : vector<128x64xf32>
    %71 = tpu.matmul %68, %70, %cst_55 {dimension_numbers = #tpu.dot_dimension_numbers<[1], [0], [0], [1], [0, 0, 1, 1], [], []>} : vector<128x16xbf16>, vector<16x64xbf16>, vector<128x64xf32> -> vector<128x64xf32>
    %72 = arith.addf %66, %71 : vector<128x64xf32>
    %c2_56 = arith.constant 2 : index
    %c0_57 = arith.constant 0 : index
    %c0_58 = arith.constant 0 : index
    %73 = vector.load %arg8[%c2_56, %c0_57, %c0_58] : memref<10x16x16xbf16, #tpu.memory_space<vmem>>, vector<8x16x16xbf16>
    %74 = vector.shape_cast %73 : vector<8x16x16xbf16> to vector<128x16xbf16>
    %c7 = arith.constant 7 : index
    %c0_59 = arith.constant 0 : index
    %c0_60 = arith.constant 0 : index
    %75 = vector.load %arg5[%c7, %c0_59, %c0_60] : memref<9x16x64xbf16, #tpu.memory_space<vmem>>, vector<1x16x64xbf16>
    %76 = vector.shape_cast %75 : vector<1x16x64xbf16> to vector<16x64xbf16>
    %cst_61 = arith.constant dense<0.000000e+00> : vector<128x64xf32>
    %77 = tpu.matmul %74, %76, %cst_61 {dimension_numbers = #tpu.dot_dimension_numbers<[1], [0], [0], [1], [0, 0, 1, 1], [], []>} : vector<128x16xbf16>, vector<16x64xbf16>, vector<128x64xf32> -> vector<128x64xf32>
    %78 = arith.addf %72, %77 : vector<128x64xf32>
    %79 = arith.addf %61, %78 : vector<128x64xf32>
    %c0_62 = arith.constant 0 : index
    %c0_63 = arith.constant 0 : index
    %c0_64 = arith.constant 0 : index
    %80 = vector.load %arg8[%c0_62, %c0_63, %c0_64] : memref<10x16x16xbf16, #tpu.memory_space<vmem>>, vector<8x16x16xbf16>
    %81 = vector.shape_cast %80 : vector<8x16x16xbf16> to vector<128x16xbf16>
    %c2_65 = arith.constant 2 : index
    %c0_66 = arith.constant 0 : index
    %c0_67 = arith.constant 0 : index
    %82 = vector.load %arg5[%c2_65, %c0_66, %c0_67] : memref<9x16x64xbf16, #tpu.memory_space<vmem>>, vector<1x16x64xbf16>
    %83 = vector.shape_cast %82 : vector<1x16x64xbf16> to vector<16x64xbf16>
    %cst_68 = arith.constant dense<0.000000e+00> : vector<128x64xf32>
    %84 = tpu.matmul %81, %83, %cst_68 {dimension_numbers = #tpu.dot_dimension_numbers<[1], [0], [0], [1], [0, 0, 1, 1], [], []>} : vector<128x16xbf16>, vector<16x64xbf16>, vector<128x64xf32> -> vector<128x64xf32>
    %c1_69 = arith.constant 1 : index
    %c0_70 = arith.constant 0 : index
    %c0_71 = arith.constant 0 : index
    %85 = vector.load %arg8[%c1_69, %c0_70, %c0_71] : memref<10x16x16xbf16, #tpu.memory_space<vmem>>, vector<8x16x16xbf16>
    %86 = vector.shape_cast %85 : vector<8x16x16xbf16> to vector<128x16xbf16>
    %c5 = arith.constant 5 : index
    %c0_72 = arith.constant 0 : index
    %c0_73 = arith.constant 0 : index
    %87 = vector.load %arg5[%c5, %c0_72, %c0_73] : memref<9x16x64xbf16, #tpu.memory_space<vmem>>, vector<1x16x64xbf16>
    %88 = vector.shape_cast %87 : vector<1x16x64xbf16> to vector<16x64xbf16>
    %cst_74 = arith.constant dense<0.000000e+00> : vector<128x64xf32>
    %89 = tpu.matmul %86, %88, %cst_74 {dimension_numbers = #tpu.dot_dimension_numbers<[1], [0], [0], [1], [0, 0, 1, 1], [], []>} : vector<128x16xbf16>, vector<16x64xbf16>, vector<128x64xf32> -> vector<128x64xf32>
    %90 = arith.addf %84, %89 : vector<128x64xf32>
    %c2_75 = arith.constant 2 : index
    %c0_76 = arith.constant 0 : index
    %c0_77 = arith.constant 0 : index
    %91 = vector.load %arg8[%c2_75, %c0_76, %c0_77] : memref<10x16x16xbf16, #tpu.memory_space<vmem>>, vector<8x16x16xbf16>
    %92 = vector.shape_cast %91 : vector<8x16x16xbf16> to vector<128x16xbf16>
    %c8 = arith.constant 8 : index
    %c0_78 = arith.constant 0 : index
    %c0_79 = arith.constant 0 : index
    %93 = vector.load %arg5[%c8, %c0_78, %c0_79] : memref<9x16x64xbf16, #tpu.memory_space<vmem>>, vector<1x16x64xbf16>
    %94 = vector.shape_cast %93 : vector<1x16x64xbf16> to vector<16x64xbf16>
    %cst_80 = arith.constant dense<0.000000e+00> : vector<128x64xf32>
    %95 = tpu.matmul %92, %94, %cst_80 {dimension_numbers = #tpu.dot_dimension_numbers<[1], [0], [0], [1], [0, 0, 1, 1], [], []>} : vector<128x16xbf16>, vector<16x64xbf16>, vector<128x64xf32> -> vector<128x64xf32>
    %96 = arith.addf %90, %95 : vector<128x64xf32>
    %c15_i32 = arith.constant 15 : i32
    %97 = vector.broadcast %c15_i32 : i32 to vector<128x64xi32>
    %98 = arith.cmpi eq, %39, %97 : vector<128x64xi32>
    %c127_i32 = arith.constant 127 : i32
    %99 = tpu.dynamic_rotate %96 by %c127_i32 dim 0 : vector<128x64xf32>, i32 -> vector<128x64xf32>
    %cst_81 = arith.constant 0.000000e+00 : f32
    %100 = vector.broadcast %cst_81 : f32 to vector<128x64xf32>
    %101 = arith.select %98, %100, %99 : vector<128x64xi1>, vector<128x64xf32>
    %102 = arith.addf %79, %101 : vector<128x64xf32>
    %c0_82 = arith.constant 0 : index
    %c0_83 = arith.constant 0 : index
    %103 = vector.load %arg6[%c0_82, %c0_83] : memref<1x64xf32, #tpu.memory_space<vmem>>, vector<1x64xf32>
    %104 = vector.broadcast %103 : vector<1x64xf32> to vector<128x64xf32>
    %105 = arith.addf %102, %104 : vector<128x64xf32>
    %106 = vector.shape_cast %105 : vector<128x64xf32> to vector<8x16x64xf32>
    %107 = vector.shape_cast %106 : vector<8x16x64xf32> to vector<1x8x16x64xf32>
    %108 = arith.truncf %107 : vector<1x8x16x64xf32> to vector<1x8x16x64xbf16>
    %c0_84 = arith.constant 0 : index
    %c0_85 = arith.constant 0 : index
    %c0_86 = arith.constant 0 : index
    %c0_87 = arith.constant 0 : index
    %109 = vector.load %arg7[%c0_84, %c0_85, %c0_86, %c0_87] : memref<1x8x16x64xbf16, #tpu.memory_space<vmem>>, vector<1x8x16x64xbf16>
    tpu.vector_store %arg7[%c0_84, %c0_85, %c0_86, %c0_87], %108 {strides = array<i32>} : memref<1x8x16x64xbf16, #tpu.memory_space<vmem>>, vector<1x8x16x64xbf16>,
    return
  }
  func.func @transform_0(%arg0: i32, %arg1: i32) -> (i32, i32, i32, i32) {
    %c0_i32 = arith.constant 0 : i32
    %c0_i32_0 = arith.constant 0 : i32
    %c0_i32_1 = arith.constant 0 : i32
    return %arg0, %arg1, %c0_i32, %c0_i32_0 : i32, i32, i32, i32
  }
  func.func @transform_1(%arg0: i32, %arg1: i32) -> (i32, i32, i32, i32) {
    %c8_i32 = arith.constant 8 : i32
    %0 = arith.muli %arg1, %c8_i32 : i32
    %c1_i32 = arith.constant 1 : i32
    %1 = arith.subi %0, %c1_i32 : i32
    %c0_i32 = arith.constant 0 : i32
    %2 = arith.maxsi %1, %c0_i32 : i32
    %c0_i32_0 = arith.constant 0 : i32
    %c0_i32_1 = arith.constant 0 : i32
    %c0_i32_2 = arith.constant 0 : i32
    return %arg0, %2, %c0_i32_0, %c0_i32_1 : i32, i32, i32, i32
  }
  func.func @transform_2(%arg0: i32, %arg1: i32) -> (i32, i32, i32, i32) {
    %c8_i32 = arith.constant 8 : i32
    %0 = arith.muli %arg1, %c8_i32 : i32
    %c8_i32_0 = arith.constant 8 : i32
    %1 = arith.addi %0, %c8_i32_0 : i32
    %c15_i32 = arith.constant 15 : i32
    %2 = arith.minsi %1, %c15_i32 : i32
    %c0_i32 = arith.constant 0 : i32
    %c0_i32_1 = arith.constant 0 : i32
    %c0_i32_2 = arith.constant 0 : i32
    return %arg0, %2, %c0_i32, %c0_i32_1 : i32, i32, i32, i32
  }
  func.func @transform_3(%arg0: i32, %arg1: i32) -> (i32, i32, i32) {
    %c0_i32 = arith.constant 0 : i32
    %c0_i32_0 = arith.constant 0 : i32
    %c0_i32_1 = arith.constant 0 : i32
    %c0_i32_2 = arith.constant 0 : i32
    return %c0_i32, %c0_i32_0, %c0_i32_1 : i32, i32, i32
  }
  func.func @transform_4(%arg0: i32, %arg1: i32) -> (i32, i32) {
    %c0_i32 = arith.constant 0 : i32
    %c0_i32_0 = arith.constant 0 : i32
    %c0_i32_1 = arith.constant 0 : i32
    return %c0_i32, %c0_i32_0 : i32, i32
  }
  func.func @transform_5(%arg0: i32, %arg1: i32) -> (i32, i32, i32, i32) {
    %c0_i32 = arith.constant 0 : i32
    %c0_i32_0 = arith.constant 0 : i32
    %c0_i32_1 = arith.constant 0 : i32
    return %arg0, %arg1, %c0_i32, %c0_i32_0 : i32, i32, i32, i32
  }
}

module attributes {stable_mosaic.version = 11 : i64} {
  func.func @_conv3x3_kernel(%arg0: i32, %arg1: i32, %arg2: memref<1x16x32x16xbf16, #tpu.memory_space<vmem>>, %arg3: memref<1x1x32x16xbf16, #tpu.memory_space<vmem>>, %arg4: memref<1x1x32x16xbf16, #tpu.memory_space<vmem>>, %arg5: memref<9x16x4xbf16, #tpu.memory_space<vmem>>, %arg6: memref<1x4xf32, #tpu.memory_space<vmem>>, %arg7: memref<1x16x32x4xbf16, #tpu.memory_space<vmem>>, %arg8: memref<18x32x16xbf16, #tpu.memory_space<vmem>>) attributes {dimension_semantics = [#tpu.dimension_semantics<parallel>, #tpu.dimension_semantics<parallel>], iteration_bounds = array<i64: 2, 2>, scalar_prefetch = 0 : i64, scratch_operands = 1 : i64, tpu.core_type = #tpu.core_type<tc>, window_params = [{transform_indices = @transform_0, window_bounds = array<i64: 1, 16, 32, 16>}, {transform_indices = @transform_1, window_bounds = array<i64: 1, 1, 32, 16>}, {transform_indices = @transform_2, window_bounds = array<i64: 1, 1, 32, 16>}, {pipeline_mode = #tpu.pipeline_mode<synchronous>, transform_indices = @transform_3, window_bounds = array<i64: 9, 16, 4>}, {pipeline_mode = #tpu.pipeline_mode<synchronous>, transform_indices = @transform_4, window_bounds = array<i64: 1, 4>}, {transform_indices = @transform_5, window_bounds = array<i64: 1, 16, 32, 4>}]} {
    %c0_i32 = arith.constant 0 : i32
    %0 = arith.cmpi sgt, %arg1, %c0_i32 : i32
    %1 = arith.extui %0 : i1 to i32
    %2 = arith.sitofp %1 : i32 to f32
    %c1_i32 = arith.constant 1 : i32
    %3 = arith.cmpi slt, %arg1, %c1_i32 : i32
    %4 = arith.extui %3 : i1 to i32
    %5 = arith.sitofp %4 : i32 to f32
    %c0 = arith.constant 0 : index
    %c0_0 = arith.constant 0 : index
    %c0_1 = arith.constant 0 : index
    %c0_2 = arith.constant 0 : index
    %6 = vector.load %arg3[%c0, %c0_0, %c0_1, %c0_2] : memref<1x1x32x16xbf16, #tpu.memory_space<vmem>>, vector<1x1x32x16xbf16>
    %7 = vector.shape_cast %6 : vector<1x1x32x16xbf16> to vector<1x32x16xbf16>
    %8 = arith.extf %7 : vector<1x32x16xbf16> to vector<1x32x16xf32>
    %9 = vector.broadcast %2 : f32 to vector<1x32x16xf32>
    %10 = arith.mulf %8, %9 : vector<1x32x16xf32>
    %11 = arith.truncf %10 : vector<1x32x16xf32> to vector<1x32x16xbf16>
    %c0_3 = arith.constant 0 : index
    %c0_4 = arith.constant 0 : index
    %c0_5 = arith.constant 0 : index
    %12 = vector.load %arg8[%c0_3, %c0_4, %c0_5] : memref<18x32x16xbf16, #tpu.memory_space<vmem>>, vector<1x32x16xbf16>
    tpu.vector_store %arg8[%c0_3, %c0_4, %c0_5], %11 {strides = array<i32>} : memref<18x32x16xbf16, #tpu.memory_space<vmem>>, vector<1x32x16xbf16>,
    %c0_6 = arith.constant 0 : index
    %c0_7 = arith.constant 0 : index
    %c0_8 = arith.constant 0 : index
    %c0_9 = arith.constant 0 : index
    %13 = vector.load %arg2[%c0_6, %c0_7, %c0_8, %c0_9] : memref<1x16x32x16xbf16, #tpu.memory_space<vmem>>, vector<1x16x32x16xbf16>
    %14 = vector.shape_cast %13 : vector<1x16x32x16xbf16> to vector<16x32x16xbf16>
    %c1 = arith.constant 1 : index
    %c0_10 = arith.constant 0 : index
    %c0_11 = arith.constant 0 : index
    %15 = vector.load %arg8[%c1, %c0_10, %c0_11] : memref<18x32x16xbf16, #tpu.memory_space<vmem>>, vector<16x32x16xbf16>
    tpu.vector_store %arg8[%c1, %c0_10, %c0_11], %14 {strides = array<i32>} : memref<18x32x16xbf16, #tpu.memory_space<vmem>>, vector<16x32x16xbf16>,
    %c0_12 = arith.constant 0 : index
    %c0_13 = arith.constant 0 : index
    %c0_14 = arith.constant 0 : index
    %c0_15 = arith.constant 0 : index
    %16 = vector.load %arg4[%c0_12, %c0_13, %c0_14, %c0_15] : memref<1x1x32x16xbf16, #tpu.memory_space<vmem>>, vector<1x1x32x16xbf16>
    %17 = vector.shape_cast %16 : vector<1x1x32x16xbf16> to vector<1x32x16xbf16>
    %18 = arith.extf %17 : vector<1x32x16xbf16> to vector<1x32x16xf32>
    %19 = vector.broadcast %5 : f32 to vector<1x32x16xf32>
    %20 = arith.mulf %18, %19 : vector<1x32x16xf32>
    %21 = arith.truncf %20 : vector<1x32x16xf32> to vector<1x32x16xbf16>
    %c17 = arith.constant 17 : index
    %c0_16 = arith.constant 0 : index
    %c0_17 = arith.constant 0 : index
    %22 = vector.load %arg8[%c17, %c0_16, %c0_17] : memref<18x32x16xbf16, #tpu.memory_space<vmem>>, vector<1x32x16xbf16>
    tpu.vector_store %arg8[%c17, %c0_16, %c0_17], %21 {strides = array<i32>} : memref<18x32x16xbf16, #tpu.memory_space<vmem>>, vector<1x32x16xbf16>,
    %23 = tpu.iota {dimensions = array<i32: 0>} : vector<512x4xi32>
    %c32_i32 = arith.constant 32 : i32
    %c0_i32_18 = arith.constant 0 : i32
    %24 = arith.cmpi eq, %c32_i32, %c0_i32_18 : i32
    %c1_i32_19 = arith.constant 1 : i32
    %25 = arith.select %24, %c1_i32_19, %c32_i32 : i32
    %26 = vector.broadcast %25 : i32 to vector<512x4xi32>
    %27 = arith.remsi %23, %26 : vector<512x4xi32>
    %c0_i32_20 = arith.constant 0 : i32
    %28 = vector.broadcast %c0_i32_20 : i32 to vector<512x4xi32>
    %29 = arith.cmpi ne, %27, %28 : vector<512x4xi32>
    %c0_i32_21 = arith.constant 0 : i32
    %30 = vector.broadcast %c0_i32_21 : i32 to vector<512x4xi32>
    %31 = arith.cmpi slt, %27, %30 : vector<512x4xi32>
    %c0_i32_22 = arith.constant 0 : i32
    %32 = arith.cmpi slt, %25, %c0_i32_22 : i32
    %33 = vector.broadcast %32 : i1 to vector<512x4xi1>
    %34 = vector.broadcast %33 : vector<512x4xi1> to vector<512x4xi1>
    %35 = arith.xori %31, %34 : vector<512x4xi1>
    %36 = arith.andi %35, %29 : vector<512x4xi1>
    %37 = vector.broadcast %25 : i32 to vector<512x4xi32>
    %38 = arith.addi %27, %37 : vector<512x4xi32>
    %39 = arith.select %36, %38, %27 : vector<512x4xi1>, vector<512x4xi32>
    %c0_23 = arith.constant 0 : index
    %c0_24 = arith.constant 0 : index
    %c0_25 = arith.constant 0 : index
    %40 = vector.load %arg8[%c0_23, %c0_24, %c0_25] : memref<18x32x16xbf16, #tpu.memory_space<vmem>>, vector<16x32x16xbf16>
    %41 = vector.shape_cast %40 : vector<16x32x16xbf16> to vector<512x16xbf16>
    %c0_26 = arith.constant 0 : index
    %c0_27 = arith.constant 0 : index
    %c0_28 = arith.constant 0 : index
    %42 = vector.load %arg5[%c0_26, %c0_27, %c0_28] : memref<9x16x4xbf16, #tpu.memory_space<vmem>>, vector<1x16x4xbf16>
    %43 = vector.shape_cast %42 : vector<1x16x4xbf16> to vector<16x4xbf16>
    %cst = arith.constant dense<0.000000e+00> : vector<512x4xf32>
    %44 = tpu.matmul %41, %43, %cst {dimension_numbers = #tpu.dot_dimension_numbers<[1], [0], [0], [1], [0, 0, 1, 1], [], []>} : vector<512x16xbf16>, vector<16x4xbf16>, vector<512x4xf32> -> vector<512x4xf32>
    %c1_29 = arith.constant 1 : index
    %c0_30 = arith.constant 0 : index
    %c0_31 = arith.constant 0 : index
    %45 = vector.load %arg8[%c1_29, %c0_30, %c0_31] : memref<18x32x16xbf16, #tpu.memory_space<vmem>>, vector<16x32x16xbf16>
    %46 = vector.shape_cast %45 : vector<16x32x16xbf16> to vector<512x16xbf16>
    %c3 = arith.constant 3 : index
    %c0_32 = arith.constant 0 : index
    %c0_33 = arith.constant 0 : index
    %47 = vector.load %arg5[%c3, %c0_32, %c0_33] : memref<9x16x4xbf16, #tpu.memory_space<vmem>>, vector<1x16x4xbf16>
    %48 = vector.shape_cast %47 : vector<1x16x4xbf16> to vector<16x4xbf16>
    %cst_34 = arith.constant dense<0.000000e+00> : vector<512x4xf32>
    %49 = tpu.matmul %46, %48, %cst_34 {dimension_numbers = #tpu.dot_dimension_numbers<[1], [0], [0], [1], [0, 0, 1, 1], [], []>} : vector<512x16xbf16>, vector<16x4xbf16>, vector<512x4xf32> -> vector<512x4xf32>
    %50 = arith.addf %44, %49 : vector<512x4xf32>
    %c2 = arith.constant 2 : index
    %c0_35 = arith.constant 0 : index
    %c0_36 = arith.constant 0 : index
    %51 = vector.load %arg8[%c2, %c0_35, %c0_36] : memref<18x32x16xbf16, #tpu.memory_space<vmem>>, vector<16x32x16xbf16>
    %52 = vector.shape_cast %51 : vector<16x32x16xbf16> to vector<512x16xbf16>
    %c6 = arith.constant 6 : index
    %c0_37 = arith.constant 0 : index
    %c0_38 = arith.constant 0 : index
    %53 = vector.load %arg5[%c6, %c0_37, %c0_38] : memref<9x16x4xbf16, #tpu.memory_space<vmem>>, vector<1x16x4xbf16>
    %54 = vector.shape_cast %53 : vector<1x16x4xbf16> to vector<16x4xbf16>
    %cst_39 = arith.constant dense<0.000000e+00> : vector<512x4xf32>
    %55 = tpu.matmul %52, %54, %cst_39 {dimension_numbers = #tpu.dot_dimension_numbers<[1], [0], [0], [1], [0, 0, 1, 1], [], []>} : vector<512x16xbf16>, vector<16x4xbf16>, vector<512x4xf32> -> vector<512x4xf32>
    %56 = arith.addf %50, %55 : vector<512x4xf32>
    %c0_i32_40 = arith.constant 0 : i32
    %57 = vector.broadcast %c0_i32_40 : i32 to vector<512x4xi32>
    %58 = arith.cmpi eq, %39, %57 : vector<512x4xi32>
    %c1_i32_41 = arith.constant 1 : i32
    %59 = tpu.dynamic_rotate %56 by %c1_i32_41 dim 0 : vector<512x4xf32>, i32 -> vector<512x4xf32>
    %cst_42 = arith.constant 0.000000e+00 : f32
    %60 = vector.broadcast %cst_42 : f32 to vector<512x4xf32>
    %61 = arith.select %58, %60, %59 : vector<512x4xi1>, vector<512x4xf32>
    %c0_43 = arith.constant 0 : index
    %c0_44 = arith.constant 0 : index
    %c0_45 = arith.constant 0 : index
    %62 = vector.load %arg8[%c0_43, %c0_44, %c0_45] : memref<18x32x16xbf16, #tpu.memory_space<vmem>>, vector<16x32x16xbf16>
    %63 = vector.shape_cast %62 : vector<16x32x16xbf16> to vector<512x16xbf16>
    %c1_46 = arith.constant 1 : index
    %c0_47 = arith.constant 0 : index
    %c0_48 = arith.constant 0 : index
    %64 = vector.load %arg5[%c1_46, %c0_47, %c0_48] : memref<9x16x4xbf16, #tpu.memory_space<vmem>>, vector<1x16x4xbf16>
    %65 = vector.shape_cast %64 : vector<1x16x4xbf16> to vector<16x4xbf16>
    %cst_49 = arith.constant dense<0.000000e+00> : vector<512x4xf32>
    %66 = tpu.matmul %63, %65, %cst_49 {dimension_numbers = #tpu.dot_dimension_numbers<[1], [0], [0], [1], [0, 0, 1, 1], [], []>} : vector<512x16xbf16>, vector<16x4xbf16>, vector<512x4xf32> -> vector<512x4xf32>
    %c1_50 = arith.constant 1 : index
    %c0_51 = arith.constant 0 : index
    %c0_52 = arith.constant 0 : index
    %67 = vector.load %arg8[%c1_50, %c0_51, %c0_52] : memref<18x32x16xbf16, #tpu.memory_space<vmem>>, vector<16x32x16xbf16>
    %68 = vector.shape_cast %67 : vector<16x32x16xbf16> to vector<512x16xbf16>
    %c4 = arith.constant 4 : index
    %c0_53 = arith.constant 0 : index
    %c0_54 = arith.constant 0 : index
    %69 = vector.load %arg5[%c4, %c0_53, %c0_54] : memref<9x16x4xbf16, #tpu.memory_space<vmem>>, vector<1x16x4xbf16>
    %70 = vector.shape_cast %69 : vector<1x16x4xbf16> to vector<16x4xbf16>
    %cst_55 = arith.constant dense<0.000000e+00> : vector<512x4xf32>
    %71 = tpu.matmul %68, %70, %cst_55 {dimension_numbers = #tpu.dot_dimension_numbers<[1], [0], [0], [1], [0, 0, 1, 1], [], []>} : vector<512x16xbf16>, vector<16x4xbf16>, vector<512x4xf32> -> vector<512x4xf32>
    %72 = arith.addf %66, %71 : vector<512x4xf32>
    %c2_56 = arith.constant 2 : index
    %c0_57 = arith.constant 0 : index
    %c0_58 = arith.constant 0 : index
    %73 = vector.load %arg8[%c2_56, %c0_57, %c0_58] : memref<18x32x16xbf16, #tpu.memory_space<vmem>>, vector<16x32x16xbf16>
    %74 = vector.shape_cast %73 : vector<16x32x16xbf16> to vector<512x16xbf16>
    %c7 = arith.constant 7 : index
    %c0_59 = arith.constant 0 : index
    %c0_60 = arith.constant 0 : index
    %75 = vector.load %arg5[%c7, %c0_59, %c0_60] : memref<9x16x4xbf16, #tpu.memory_space<vmem>>, vector<1x16x4xbf16>
    %76 = vector.shape_cast %75 : vector<1x16x4xbf16> to vector<16x4xbf16>
    %cst_61 = arith.constant dense<0.000000e+00> : vector<512x4xf32>
    %77 = tpu.matmul %74, %76, %cst_61 {dimension_numbers = #tpu.dot_dimension_numbers<[1], [0], [0], [1], [0, 0, 1, 1], [], []>} : vector<512x16xbf16>, vector<16x4xbf16>, vector<512x4xf32> -> vector<512x4xf32>
    %78 = arith.addf %72, %77 : vector<512x4xf32>
    %79 = arith.addf %61, %78 : vector<512x4xf32>
    %c0_62 = arith.constant 0 : index
    %c0_63 = arith.constant 0 : index
    %c0_64 = arith.constant 0 : index
    %80 = vector.load %arg8[%c0_62, %c0_63, %c0_64] : memref<18x32x16xbf16, #tpu.memory_space<vmem>>, vector<16x32x16xbf16>
    %81 = vector.shape_cast %80 : vector<16x32x16xbf16> to vector<512x16xbf16>
    %c2_65 = arith.constant 2 : index
    %c0_66 = arith.constant 0 : index
    %c0_67 = arith.constant 0 : index
    %82 = vector.load %arg5[%c2_65, %c0_66, %c0_67] : memref<9x16x4xbf16, #tpu.memory_space<vmem>>, vector<1x16x4xbf16>
    %83 = vector.shape_cast %82 : vector<1x16x4xbf16> to vector<16x4xbf16>
    %cst_68 = arith.constant dense<0.000000e+00> : vector<512x4xf32>
    %84 = tpu.matmul %81, %83, %cst_68 {dimension_numbers = #tpu.dot_dimension_numbers<[1], [0], [0], [1], [0, 0, 1, 1], [], []>} : vector<512x16xbf16>, vector<16x4xbf16>, vector<512x4xf32> -> vector<512x4xf32>
    %c1_69 = arith.constant 1 : index
    %c0_70 = arith.constant 0 : index
    %c0_71 = arith.constant 0 : index
    %85 = vector.load %arg8[%c1_69, %c0_70, %c0_71] : memref<18x32x16xbf16, #tpu.memory_space<vmem>>, vector<16x32x16xbf16>
    %86 = vector.shape_cast %85 : vector<16x32x16xbf16> to vector<512x16xbf16>
    %c5 = arith.constant 5 : index
    %c0_72 = arith.constant 0 : index
    %c0_73 = arith.constant 0 : index
    %87 = vector.load %arg5[%c5, %c0_72, %c0_73] : memref<9x16x4xbf16, #tpu.memory_space<vmem>>, vector<1x16x4xbf16>
    %88 = vector.shape_cast %87 : vector<1x16x4xbf16> to vector<16x4xbf16>
    %cst_74 = arith.constant dense<0.000000e+00> : vector<512x4xf32>
    %89 = tpu.matmul %86, %88, %cst_74 {dimension_numbers = #tpu.dot_dimension_numbers<[1], [0], [0], [1], [0, 0, 1, 1], [], []>} : vector<512x16xbf16>, vector<16x4xbf16>, vector<512x4xf32> -> vector<512x4xf32>
    %90 = arith.addf %84, %89 : vector<512x4xf32>
    %c2_75 = arith.constant 2 : index
    %c0_76 = arith.constant 0 : index
    %c0_77 = arith.constant 0 : index
    %91 = vector.load %arg8[%c2_75, %c0_76, %c0_77] : memref<18x32x16xbf16, #tpu.memory_space<vmem>>, vector<16x32x16xbf16>
    %92 = vector.shape_cast %91 : vector<16x32x16xbf16> to vector<512x16xbf16>
    %c8 = arith.constant 8 : index
    %c0_78 = arith.constant 0 : index
    %c0_79 = arith.constant 0 : index
    %93 = vector.load %arg5[%c8, %c0_78, %c0_79] : memref<9x16x4xbf16, #tpu.memory_space<vmem>>, vector<1x16x4xbf16>
    %94 = vector.shape_cast %93 : vector<1x16x4xbf16> to vector<16x4xbf16>
    %cst_80 = arith.constant dense<0.000000e+00> : vector<512x4xf32>
    %95 = tpu.matmul %92, %94, %cst_80 {dimension_numbers = #tpu.dot_dimension_numbers<[1], [0], [0], [1], [0, 0, 1, 1], [], []>} : vector<512x16xbf16>, vector<16x4xbf16>, vector<512x4xf32> -> vector<512x4xf32>
    %96 = arith.addf %90, %95 : vector<512x4xf32>
    %c31_i32 = arith.constant 31 : i32
    %97 = vector.broadcast %c31_i32 : i32 to vector<512x4xi32>
    %98 = arith.cmpi eq, %39, %97 : vector<512x4xi32>
    %c511_i32 = arith.constant 511 : i32
    %99 = tpu.dynamic_rotate %96 by %c511_i32 dim 0 : vector<512x4xf32>, i32 -> vector<512x4xf32>
    %cst_81 = arith.constant 0.000000e+00 : f32
    %100 = vector.broadcast %cst_81 : f32 to vector<512x4xf32>
    %101 = arith.select %98, %100, %99 : vector<512x4xi1>, vector<512x4xf32>
    %102 = arith.addf %79, %101 : vector<512x4xf32>
    %c0_82 = arith.constant 0 : index
    %c0_83 = arith.constant 0 : index
    %103 = vector.load %arg6[%c0_82, %c0_83] : memref<1x4xf32, #tpu.memory_space<vmem>>, vector<1x4xf32>
    %104 = vector.broadcast %103 : vector<1x4xf32> to vector<512x4xf32>
    %105 = arith.addf %102, %104 : vector<512x4xf32>
    %106 = vector.shape_cast %105 : vector<512x4xf32> to vector<16x32x4xf32>
    %107 = vector.shape_cast %106 : vector<16x32x4xf32> to vector<1x16x32x4xf32>
    %108 = arith.truncf %107 : vector<1x16x32x4xf32> to vector<1x16x32x4xbf16>
    %c0_84 = arith.constant 0 : index
    %c0_85 = arith.constant 0 : index
    %c0_86 = arith.constant 0 : index
    %c0_87 = arith.constant 0 : index
    %109 = vector.load %arg7[%c0_84, %c0_85, %c0_86, %c0_87] : memref<1x16x32x4xbf16, #tpu.memory_space<vmem>>, vector<1x16x32x4xbf16>
    tpu.vector_store %arg7[%c0_84, %c0_85, %c0_86, %c0_87], %108 {strides = array<i32>} : memref<1x16x32x4xbf16, #tpu.memory_space<vmem>>, vector<1x16x32x4xbf16>,
    return
  }
  func.func @transform_0(%arg0: i32, %arg1: i32) -> (i32, i32, i32, i32) {
    %c0_i32 = arith.constant 0 : i32
    %c0_i32_0 = arith.constant 0 : i32
    %c0_i32_1 = arith.constant 0 : i32
    return %arg0, %arg1, %c0_i32, %c0_i32_0 : i32, i32, i32, i32
  }
  func.func @transform_1(%arg0: i32, %arg1: i32) -> (i32, i32, i32, i32) {
    %c16_i32 = arith.constant 16 : i32
    %0 = arith.muli %arg1, %c16_i32 : i32
    %c1_i32 = arith.constant 1 : i32
    %1 = arith.subi %0, %c1_i32 : i32
    %c0_i32 = arith.constant 0 : i32
    %2 = arith.maxsi %1, %c0_i32 : i32
    %c0_i32_0 = arith.constant 0 : i32
    %c0_i32_1 = arith.constant 0 : i32
    %c0_i32_2 = arith.constant 0 : i32
    return %arg0, %2, %c0_i32_0, %c0_i32_1 : i32, i32, i32, i32
  }
  func.func @transform_2(%arg0: i32, %arg1: i32) -> (i32, i32, i32, i32) {
    %c16_i32 = arith.constant 16 : i32
    %0 = arith.muli %arg1, %c16_i32 : i32
    %c16_i32_0 = arith.constant 16 : i32
    %1 = arith.addi %0, %c16_i32_0 : i32
    %c31_i32 = arith.constant 31 : i32
    %2 = arith.minsi %1, %c31_i32 : i32
    %c0_i32 = arith.constant 0 : i32
    %c0_i32_1 = arith.constant 0 : i32
    %c0_i32_2 = arith.constant 0 : i32
    return %arg0, %2, %c0_i32, %c0_i32_1 : i32, i32, i32, i32
  }
  func.func @transform_3(%arg0: i32, %arg1: i32) -> (i32, i32, i32) {
    %c0_i32 = arith.constant 0 : i32
    %c0_i32_0 = arith.constant 0 : i32
    %c0_i32_1 = arith.constant 0 : i32
    %c0_i32_2 = arith.constant 0 : i32
    return %c0_i32, %c0_i32_0, %c0_i32_1 : i32, i32, i32
  }
  func.func @transform_4(%arg0: i32, %arg1: i32) -> (i32, i32) {
    %c0_i32 = arith.constant 0 : i32
    %c0_i32_0 = arith.constant 0 : i32
    %c0_i32_1 = arith.constant 0 : i32
    return %c0_i32, %c0_i32_0 : i32, i32
  }
  func.func @transform_5(%arg0: i32, %arg1: i32) -> (i32, i32, i32, i32) {
    %c0_i32 = arith.constant 0 : i32
    %c0_i32_0 = arith.constant 0 : i32
    %c0_i32_1 = arith.constant 0 : i32
    return %arg0, %arg1, %c0_i32, %c0_i32_0 : i32, i32, i32, i32
  }
}

</mosaic_0001>

<bundles_post_ra>
// kernel: rcan_forward_pallas.21
= control target key start
LH: loop header
LB: loop body
LE: loop exit
PB: predicated region body
PF: predicated region fallthrough
CT: control target
= control target key end

     0   :  { %s811_s12 = smov 0   ;;  %s813_s13 = smov 0   ;;  %s945_s0 = inlined_call_operand.vmem [shape: bf16[2,16,16,16], index: 0, kind: input, shape index: {}]   ;;  %s946_s1 = inlined_call_operand.vmem [shape: bf16[2,16,16,16], index: 1, kind: input, shape index: {}]   ;;  %s947_s2 = inlined_call_operand.vmem [shape: f32[2,1,16], index: 2, kind: input, shape index: {}]   ;;  %s948_s3 = inlined_call_operand.vmem [shape: bf16[2,16,16,16], index: 3, kind: output, shape index: {}]  }
   0x1   :  { %s815_s14 = smov 0   ;;  %s817_s15 = smov 0  }
   0x2   :  { %s819_s16 = smov 0  }
   0x3 LB: > { %s22_s17 = sadd.s32 1, %s781_s14  ;;  %s25_s18 = sadd.s32 1, %s785_s15  ;;  %s789_s16 = sphi %s819_s16, %s13_s16   ;;  %s785_s15 = sphi %s817_s15, %s952_s15   ;;  %s781_s14 = sphi %s815_s14, %s951_s14   ;;  %s777_s13 = sphi %s813_s13, %s950_s13   ;;  %s773_s12 = sphi %s811_s12, %s949_s12  }
   0x4   : > { %p23_p0 = scmp.ge.s32.totalorder %s22_s17, 2  ;;  %p585_p1 = scmp.ge.s32.totalorder %s789_s16, 1 }
   0x5   : > { %p185_p2 = scmp.lt.s32.totalorder %s789_s16, 5 }
   0x6   : > { %s954_s17 = smov (%p23_p0, %s22_s17), 0  ;;  %s956_s18 = smov (!%p23_p0, %s25_s18), %s785_s15 }
   0x7   : > { %p186_p3 = pnand %p585_p1, %p185_p2  ;;  %p27_p4 = scmp.ge.s32.totalorder %s956_s18, 2 }
   0x8   : > { %s586_s19 = sshll.u32 (!%p186_p3), %s773_s12, 3  ;;  %p233_p5 = scmp.lt.s32.totalorder (!%p186_p3), %s777_s13, 1  ;;  %vm435_vm0 = vcmask (!%p186_p3), 125952  }
   0x9   : > { %s958_s18 = smov (%p27_p4, %s956_s18), 0  ;;  %189 = sbr.rel (%p186_p3) target bundleno = 48 (0x30), region = 32 }
   0xa   : > { %p235_p6 = scmp.lt.s32.totalorder (!%p186_p3), %s586_s19, 15 }
  0x10   : > { %s960_s13 = smov (!%p233_p5, %s777_s13), 1  ;;  %s962_s19 = smov (!%p235_p6, %s586_s19), 15 }
  0x11   : > { %s588_s20 = sshll.u32 %s960_s13, 5  ;;  %s587_s21 = sshll.u32 %s962_s19, 1 }
  0x12   : > { %s256_s24 = scalar_lea.vmem %s947_s2, %s960_s13  ;;  %s239_s25 = sadd.s32 %s588_s20, %s587_s21 }
  0x13   : > { %s844_s26 = sshll.u32 %s239_s25, 2  ;;  %v858_v0 = vld [vmem:[%s256_s24] ss:$0 sm:$0xff] }
  0x14   : > { %s850_s29 = scalar_lea.vmem %s945_s0, %s844_s26  ;;  %s856_s5 = scalar_lea.vmem %s946_s1, %s844_s26 }
  0x15   : > { %v634_v1 = vld [vmem:[%s850_s29] sm:$0xff]   ;;  %v697_v3 = vld [vmem:[%s850_s29 + $0x8] sm:$0xff]   ;;  %v698_v9 = vld [vmem:[%s850_s29 + $0x10] sm:$0xff]   ;;  %s877_s8 = scalar_lea.vmem %s948_s3, %s844_s26 }
  0x16   : > { %v666_v2 = vld [vmem:[%s856_s5] sm:$0xff]   ;;  %v635_v4 = vunpack.c.l.bf16 %v634_v1  ;;  %v636_v6 = vunpack.c.h.bf16 %v634_v1  ;;  %v704_v8 = vld [vmem:[%s856_s5 + $0x8] sm:$0xff]   ;;  %v705_v10 = vld [vmem:[%s856_s5 + $0x10] sm:$0xff]   ;;  %v639_v11 = vunpack.c.l.bf16 %v697_v3  ;;  %v640_v13 = vunpack.c.h.bf16 %v697_v3 }
  0x17   : > { %v667_v5 = vunpack.c.l.bf16 %v666_v2  ;;  %v668_v7 = vunpack.c.h.bf16 %v666_v2  ;;  %v671_v12 = vunpack.c.l.bf16 %v704_v8  ;;  %v672_v14 = vunpack.c.h.bf16 %v704_v8  ;;  %v699_v15 = vld [vmem:[%s850_s29 + $0x18] sm:$0xff]   ;;  %v700_v33 = vld [vmem:[%s850_s29 + $0x20] sm:$0xff]   ;;  %v701_v43 = vld [vmem:[%s850_s29 + $0x28] sm:$0xff]  }
  0x18   : > { %v307_v16 = vmul.f32 %v635_v4, %v858_v0  ;;  %v308_v17 = vmul.f32 %v636_v6, %v858_v0  ;;  %v643_v18 = vunpack.c.l.bf16 %v698_v9  ;;  %v675_v19 = vunpack.c.l.bf16 %v705_v10  ;;  %v706_v20 = vld [vmem:[%s856_s5 + $0x18] sm:$0xff]   ;;  %v707_v38 = vld [vmem:[%s856_s5 + $0x20] sm:$0xff]   ;;  %v708_v48 = vld [vmem:[%s856_s5 + $0x28] sm:$0xff]  }
  0x19   : > { %v309_v21 = vmul.f32 %v639_v11, %v858_v0  ;;  %v310_v22 = vmul.f32 %v640_v13, %v858_v0  ;;  %v644_v23 = vunpack.c.h.bf16 %v698_v9  ;;  %v676_v24 = vunpack.c.h.bf16 %v705_v10  ;;  %v702_v53 = vld [vmem:[%s850_s29 + $0x30] sm:$0xff]   ;;  %v703_v4 = vld [vmem:[%s850_s29 + $0x38] sm:$0xff]  }
  0x1a   : > { %v355_v25 = vadd.f32 %v667_v5, %v307_v16  ;;  %v356_v26 = vadd.f32 %v668_v7, %v308_v17  ;;  %v311_v27 = vmul.f32 %v643_v18, %v858_v0  ;;  %v647_v28 = vunpack.c.l.bf16 %v699_v15  ;;  %v709_v58 = vld [vmem:[%s856_s5 + $0x30] sm:$0xff]   ;;  %v710_v9 = vld [vmem:[%s856_s5 + $0x38] sm:$0xff]  }
  0x1b   : > { %v357_v29 = vadd.f32 %v671_v12, %v309_v21  ;;  %v358_v30 = vadd.f32 %v672_v14, %v310_v22  ;;  %v312_v31 = vmul.f32 %v644_v23, %v858_v0  ;;  %v679_v32 = vunpack.c.l.bf16 %v706_v20 }
  0x1c   : > { %v617_v34 = vpack.c.bf16 %v355_v25, %v355_v25  ;;  %v618_v35 = vpack.c.bf16 %v356_v26, %v356_v26  ;;  %v359_v36 = vadd.f32 %v675_v19, %v311_v27  ;;  %v313_v37 = vmul.f32 %v647_v28, %v858_v0 }
  0x1d   : > { %v619_v39 = vpack.c.bf16 %v357_v29, %v357_v29  ;;  %v620_v40 = vpack.c.bf16 %v358_v30, %v358_v30  ;;  %v360_v41 = vadd.f32 %v676_v24, %v312_v31  ;;  %v648_v42 = vunpack.c.h.bf16 %v699_v15 }
  0x1e   : > { %436 = vst.msk [vmem:[%s877_s8] sm:$0xf] %vm435_vm0, %v617_v34  ;;  %437 = vst.msk [vmem:[%s877_s8 + $0x4] sm:$0xf] %vm435_vm0, %v618_v35  ;;  %v621_v44 = vpack.c.bf16 %v359_v36, %v359_v36  ;;  %v361_v45 = vadd.f32 %v679_v32, %v313_v37  ;;  %v680_v46 = vunpack.c.h.bf16 %v706_v20  ;;  %v651_v47 = vunpack.c.l.bf16 %v700_v33 }
  0x1f   : > { %438 = vst.msk [vmem:[%s877_s8 + $0x8] sm:$0xf] %vm435_vm0, %v619_v39  ;;  %439 = vst.msk [vmem:[%s877_s8 + $0xc] sm:$0xf] %vm435_vm0, %v620_v40  ;;  %v622_v49 = vpack.c.bf16 %v360_v41, %v360_v41  ;;  %v314_v50 = vmul.f32 %v648_v42, %v858_v0  ;;  %v683_v51 = vunpack.c.l.bf16 %v707_v38  ;;  %v652_v52 = vunpack.c.h.bf16 %v700_v33 }
  0x20   : > { %440 = vst.msk [vmem:[%s877_s8 + $0x10] sm:$0xf] %vm435_vm0, %v621_v44  ;;  %v623_v54 = vpack.c.bf16 %v361_v45, %v361_v45  ;;  %v315_v55 = vmul.f32 %v651_v47, %v858_v0  ;;  %v684_v56 = vunpack.c.h.bf16 %v707_v38  ;;  %v655_v57 = vunpack.c.l.bf16 %v701_v43 }
  0x21   : > { %441 = vst.msk [vmem:[%s877_s8 + $0x14] sm:$0xf] %vm435_vm0, %v622_v49  ;;  %v362_v59 = vadd.f32 %v680_v46, %v314_v50  ;;  %v316_v60 = vmul.f32 %v652_v52, %v858_v0  ;;  %v687_v61 = vunpack.c.l.bf16 %v708_v48  ;;  %v656_v62 = vunpack.c.h.bf16 %v701_v43 }
  0x22   : > { %442 = vst.msk [vmem:[%s877_s8 + $0x18] sm:$0xf] %vm435_vm0, %v623_v54  ;;  %v363_v63 = vadd.f32 %v683_v51, %v315_v55  ;;  %v317_v1 = vmul.f32 %v655_v57, %v858_v0  ;;  %v688_v2 = vunpack.c.h.bf16 %v708_v48  ;;  %v659_v3 = vunpack.c.l.bf16 %v702_v53 }
  0x23   : > { %v624_v5 = vpack.c.bf16 %v362_v59, %v362_v59  ;;  %v364_v6 = vadd.f32 %v684_v56, %v316_v60  ;;  %v318_v7 = vmul.f32 %v656_v62, %v858_v0  ;;  %v691_v8 = vunpack.c.l.bf16 %v709_v58 }
  0x24   : > { %v625_v10 = vpack.c.bf16 %v363_v63, %v363_v63  ;;  %v365_v11 = vadd.f32 %v687_v61, %v317_v1  ;;  %v319_v12 = vmul.f32 %v659_v3, %v858_v0  ;;  %v660_v13 = vunpack.c.h.bf16 %v702_v53 }
  0x25   : > { %443 = vst.msk [vmem:[%s877_s8 + $0x1c] sm:$0xf] %vm435_vm0, %v624_v5  ;;  %v626_v14 = vpack.c.bf16 %v364_v6, %v364_v6  ;;  %v366_v15 = vadd.f32 %v688_v2, %v318_v7  ;;  %v692_v16 = vunpack.c.h.bf16 %v709_v58  ;;  %v663_v17 = vunpack.c.l.bf16 %v703_v4 }
  0x26   : > { %444 = vst.msk [vmem:[%s877_s8 + $0x20] sm:$0xf] %vm435_vm0, %v625_v10  ;;  %v627_v18 = vpack.c.bf16 %v365_v11, %v365_v11  ;;  %v367_v19 = vadd.f32 %v691_v8, %v319_v12  ;;  %v320_v20 = vmul.f32 %v660_v13, %v858_v0  ;;  %v695_v21 = vunpack.c.l.bf16 %v710_v9 }
  0x27   : > { %445 = vst.msk [vmem:[%s877_s8 + $0x24] sm:$0xf] %vm435_vm0, %v626_v14  ;;  %v628_v22 = vpack.c.bf16 %v366_v15, %v366_v15  ;;  %v321_v23 = vmul.f32 %v663_v17, %v858_v0  ;;  %v664_v24 = vunpack.c.h.bf16 %v703_v4  ;;  %v696_v25 = vunpack.c.h.bf16 %v710_v9 }
  0x28   : > { %446 = vst.msk [vmem:[%s877_s8 + $0x28] sm:$0xf] %vm435_vm0, %v627_v18  ;;  %v629_v26 = vpack.c.bf16 %v367_v19, %v367_v19  ;;  %v368_v27 = vadd.f32 %v692_v16, %v320_v20 }
  0x29   : > { %447 = vst.msk [vmem:[%s877_s8 + $0x2c] sm:$0xf] %vm435_vm0, %v628_v22  ;;  %v369_v28 = vadd.f32 %v695_v21, %v321_v23  ;;  %v322_v29 = vmul.f32 %v664_v24, %v858_v0 }
  0x2a   : > { %448 = vst.msk [vmem:[%s877_s8 + $0x30] sm:$0xf] %vm435_vm0, %v629_v26  ;;  %v630_v30 = vpack.c.bf16 %v368_v27, %v368_v27 }
  0x2b   : > { %v631_v31 = vpack.c.bf16 %v369_v28, %v369_v28  ;;  %v370_v32 = vadd.f32 %v696_v25, %v322_v29 }
  0x2c   : > { %449 = vst.msk [vmem:[%s877_s8 + $0x34] sm:$0xf] %vm435_vm0, %v630_v30 }
  0x2d   : > { %450 = vst.msk [vmem:[%s877_s8 + $0x38] sm:$0xf] %vm435_vm0, %v631_v31  ;;  %v632_v33 = vpack.c.bf16 %v370_v32, %v370_v32 }
  0x2f   : > { %451 = vst.msk [vmem:[%s877_s8 + $0x3c] sm:$0xf] %vm435_vm0, %v632_v33 }
  0x30 PF: > { %s13_s16 = sadd.s32 1, %s789_s16   ;;  %s949_s12 = smov %s781_s14 }
  0x31   : > { %p10_p7 = scmp.ge.s32.totalorder %s13_s16, 6   ;;  %s950_s13 = smov %s785_s15 }
  0x32   : > { %s951_s14 = smov %s954_s17  ;;  %s952_s15 = smov %s958_s18 }
  0x33   :  { %12 = sbr.rel (!%p10_p7) target bundleno = 3 (0x3), region = 68 }

// kernel: rcan_forward_pallas.19
= control target key start
LH: loop header
LB: loop body
LE: loop exit
PB: predicated region body
PF: predicated region fallthrough
CT: control target
= control target key end

     0   :  { %s2877_s18 = smov 0   ;;  %s2879_s19 = smov 0   ;;  %s3490_s0 = inlined_call_operand.vmem [shape: bf16[2,16,16,16], index: 0, kind: input, shape index: {}, may-alias: {0,1,2}]   ;;  %s3491_s1 = inlined_call_operand.vmem [shape: bf16[2,16,16,16], index: 1, kind: input, shape index: {}, may-alias: {0,1,2}]   ;;  %s3492_s2 = inlined_call_operand.vmem [shape: bf16[2,16,16,16], index: 2, kind: input, shape index: {}, may-alias: {0,1,2}]   ;;  %s3493_s3 = inlined_call_operand.vmem [shape: bf16[9,16,16], index: 3, kind: input, shape index: {}]   ;;  %s3494_s4 = inlined_call_operand.vmem [shape: f32[1,16], index: 4, kind: input, shape index: {}]   ;;  %s3495_s5 = inlined_call_operand.vmem [shape: bf16[2,16,16,16], index: 5, kind: output, shape index: {}]  }
   0x1   :  { %s2881_s20 = smov 0   ;;  %s2883_s21 = smov 0  }
   0x2   :  { %s2885_s22 = smov 0  }
   0x3 LB: > { %s24_s23 = sadd.s32 1, %s2837_s20  ;;  %s27_s24 = sadd.s32 1, %s2841_s21  ;;  %s2845_s22 = sphi %s2885_s22, %s15_s22   ;;  %s2841_s21 = sphi %s2883_s21, %s3524_s21   ;;  %s2837_s20 = sphi %s2881_s20, %s3523_s20   ;;  %s2833_s19 = sphi %s2879_s19, %s3522_s19   ;;  %s2829_s18 = sphi %s2877_s18, %s3521_s18  }
   0x4   : > { %p25_p0 = scmp.ge.s32.totalorder %s24_s23, 2  ;;  %p2233_p1 = scmp.ge.s32.totalorder %s2845_s22, 1 }
   0x5   : > { %p273_p2 = scmp.lt.s32.totalorder %s2845_s22, 5 }
   0x6   : > { %s3526_s23 = smov (%p25_p0, %s24_s23), 0  ;;  %s3528_s24 = smov (!%p25_p0, %s27_s24), %s2841_s21 }
   0x7   : > { %p274_p3 = pnand %p2233_p1, %p273_p2  ;;  %p29_p4 = scmp.ge.s32.totalorder %s3528_s24, 2 }
   0x8   : > { %v2790_v0 = vld [vmem:[%s3493_s3 + $0x18] sm:$0xff] (!%p274_p3)   ;;  %s2913_s27 = sshll.u32 (!%p274_p3), %s2829_s18, 3  ;;  %p338_p5 = scmp.lt.s32.totalorder (!%p274_p3), %s2833_s19, 1  ;;  %v2919_v1 = vld [vmem:[%s3493_s3] sm:$0xff] (!%p274_p3)   ;;  %v2927_v2 = vld [vmem:[%s3493_s3 + $0x30] sm:$0xff] (!%p274_p3)   ;;  %vm408_vm0 = vcmask (!%p274_p3), 130048   ;;  %v493_v49 = vlaneseq (!%p274_p3) }
   0x9   : > { %s3530_s24 = smov (%p29_p4, %s3528_s24), 0  ;;  %277 = sbr.rel (%p274_p3) target bundleno = 408 (0x198), region = 40 }
   0xa   : > { %p340_p6 = scmp.lt.s32.totalorder (!%p274_p3), %s2913_s27, 15  ;;  %2490 = vmatprep.subr.bf16.mxu1 (!%p274_p3), %v2790_v0  ;;  %s2239_s30 = sadd.s32 (!%p274_p3), 4294967295, %s2913_s27  ;;  %2508 = vmatprep.subr.bf16.mxu0 (!%p274_p3), %v2919_v1  ;;  %v2802_v16 = vld [vmem:[%s3493_s3 + $0x20] sm:$0xff] (!%p274_p3)   ;;  %v2799_v32 = vld [vmem:[%s3493_s3 + $0x28] sm:$0xff] (!%p274_p3)   ;;  %v2803_v36 = vld [vmem:[%s3493_s3 + $0x10] sm:$0xff] (!%p274_p3)   ;;  %v3155_v55 = vshrl.u32 (!%p274_p3), %v493_v49, 7 }
   0xb   : > { %p394_p7 = scmp.gt.s32.totalorder (!%p274_p3), %s2829_s18, 0  ;;  %2491 = vmatpush3.bf16.msra.mxu1 (!%p274_p3), %v2790_v0  ;;  %2509 = vmatpush3.bf16.msra.mxu0 (!%p274_p3), %v2919_v1  ;;  %p350_p8 = scmp.gt.s32.totalorder (!%p274_p3), %s2239_s30, 0  ;;  %v2804_v37 = vld [vmem:[%s3493_s3 + $0x8] sm:$0xff] (!%p274_p3)   ;;  %v2806_v38 = vld [vmem:[%s3493_s3 + $0x38] sm:$0xff] (!%p274_p3)   ;;  %v2805_v40 = vld [vmem:[%s3493_s3 + $0x40] sm:$0xff] (!%p274_p3)   ;;  %vm2065_vm12 = vcmask (!%p274_p3), 125952  }
   0xc   : > { %2652 = vmatprep.subr.bf16.mxu1 (!%p274_p3), %v2919_v1  ;;  %2526 = vmatprep.subr.bf16.mxu0 (!%p274_p3), %v2927_v2  ;;  %p2240_p9 = scmp.lt.s32.totalorder (!%p274_p3), %s2239_s30, 15  ;;  %s366_s12 = sadd.s32 (!%p274_p3), 8, %s2913_s27  ;;  %vm1164_vm1 = vcmp.lt.s32.totalorder (!%p274_p3), %v3155_v55, 1  ;;  %vm1913_vm10 = vcmp.lt.s32.totalorder (!%p274_p3), %v3155_v55, 7 }
   0xd   : > { %p2940_p10 = scmp.lt.s32.totalorder (!%p274_p3), %s366_s12, 15  ;;  %p397_p11 = scmp.lt.s32.totalorder (!%p274_p3), %s2829_s18, 1 }
  0x10   : > { %s3532_s19 = smov (!%p338_p5, %s2833_s19), 1  ;;  %s3534_s30 = smov (!%p350_p8, %s2239_s30), 0 }
  0x11   : > { %s341_s8 = scalar_select %p340_p6, %s2913_s27, 15 }
  0x12   : > { %s2932_s9 = sshll.u32 %s3532_s19, 5  ;;  %s3536_s12 = smov (!%p2940_p10, %s366_s12), 15 }
  0x13   : > { %s2235_s10 = sshll.u32 %s341_s8, 1  ;;  %s3538_s30 = smov (!%p2240_p9, %s3534_s30), 15 }
  0x14   : > { %s2936_s11 = sadd.s32 %s2932_s9, %s2235_s10  ;;  %s2245_s25 = sshll.u32 %s3538_s30, 1 }
  0x15   : > { %s2237_s13 = sshll.u32 %s2936_s11, 2  ;;  %s358_s26 = sadd.s32 %s2245_s25, %s2932_s9 }
  0x16   : > { %s346_s17 = scalar_lea.vmem %s3490_s0, %s2237_s13  ;;  %s2247_s28 = sshll.u32 %s358_s26, 2 }
  0x17   : > { %v2791_v3 = vld [vmem:[%s346_s17] sm:$0xff]   ;;  %v2792_v4 = vld [vmem:[%s346_s17 + $0x8] sm:$0xff]   ;;  %v2795_v5 = vld [vmem:[%s346_s17 + $0x10] sm:$0xff]   ;;  %s395_s19 = scalar_select %p394_p7, 1, 0 }
  0x18   : > { %475 = vst.msk [vmem:[#allocation2 + $0x8] sm:$0xff] %vm408_vm0, %v2791_v3  ;;  %476 = vst.msk [vmem:[#allocation2 + $0x10] sm:$0xff] %vm408_vm0, %v2792_v4  ;;  %v2796_v6 = vld [vmem:[%s346_s17 + $0x18] sm:$0xff]   ;;  %v2797_v7 = vld [vmem:[%s346_s17 + $0x20] sm:$0xff]   ;;  %s360_s7 = scalar_lea.vmem %s3491_s1, %s2247_s28  ;;  %s3540_s12 = smov (!%p2940_p10, %s3536_s12), 15 }
  0x19   : > { %477 = vst.msk [vmem:[#allocation2 + $0x18] sm:$0xff] %vm408_vm0, %v2795_v5  ;;  %s396_s27 = scvt.s32.f32 %s395_s19  ;;  %478 = vst.msk [vmem:[#allocation2 + $0x20] sm:$0xff] %vm408_vm0, %v2796_v6  ;;  %v2798_v8 = vld [vmem:[%s346_s17 + $0x28] sm:$0xff]   ;;  %v2800_v9 = vld [vmem:[%s346_s17 + $0x30] sm:$0xff]   ;;  %s2252_s14 = sshll.u32 %s3540_s12, 1 }
  0x1a   : > { %479 = vst.msk [vmem:[#allocation2 + $0x28] sm:$0xff] %vm408_vm0, %v2797_v7  ;;  %v2402_v10 = vld [vmem:[%s360_s7] sm:$0xff]   ;;  %480 = vst.msk [vmem:[#allocation2 + $0x30] sm:$0xff] %vm408_vm0, %v2798_v8  ;;  %v2801_v12 = vld [vmem:[%s346_s17 + $0x38] sm:$0xff]   ;;  %s398_s10 = scalar_select %p397_p11, 1, 0 }
  0x1b   : > { %v404_v11 = vstv %s396_s27  ;;  %v2403_v14 = vunpack.c.l.bf16 %v2402_v10  ;;  %v2404_v15 = vunpack.c.h.bf16 %v2402_v10  ;;  %481 = vst.msk [vmem:[#allocation2 + $0x38] sm:$0xff] %vm408_vm0, %v2800_v9  ;;  %482 = vst.msk [vmem:[#allocation2 + $0x40] sm:$0xff] %vm408_vm0, %v2801_v12  ;;  %s375_s15 = sadd.s32 %s2252_s14, %s2932_s9 }
  0x1c   : > { %s399_s16 = scvt.s32.f32 %s398_s10  ;;  %s2254_s18 = sshll.u32 %s375_s15, 2 }
  0x1d   : > { %v405_v18 = vmul.f32 %v2403_v14, %v404_v11  ;;  %v406_v19 = vmul.f32 %v2404_v15, %v404_v11  ;;  %s377_s12 = scalar_lea.vmem %s3492_s2, %s2254_s18  ;;  %s3337_s18 = scalar_lea.vmem %s3495_s5, %s2237_s13 }
  0x1e   : > { %v2406_v22 = vld [vmem:[%s377_s12] sm:$0xff]   ;;  %v487_v23 = vstv %s399_s16 }
  0x1f   : > { %v2969_v13 = vld [vmem:[#allocation2 + $0x8] sm:$0xff]  ;;  %v2979_v17 = vld [vmem:[#allocation2 + $0x10] sm:$0xff]  ;;  %v407_v21 = vpack.c.bf16 %v406_v19, %v405_v18  ;;  %v2407_v24 = vunpack.c.l.bf16 %v2406_v22  ;;  %v2408_v25 = vunpack.c.h.bf16 %v2406_v22 }
  0x20   : > { %2492 = vmatprep.mubr.msk.bf16.mxu1 %vm408_vm0, %v2969_v13  ;;  %v2984_v20 = vld [vmem:[#allocation2 + $0x18] sm:$0xff]  ;;  %v2994_v26 = vld [vmem:[#allocation2 + $0x20] sm:$0xff] }
  0x21   : > { %2493 = vmatmul.mubr.msk.bf16.vlgmr.msra.gmra.mrb[0].mxu1 %vm408_vm0, %v2979_v17  ;;  %409 = vst.msk [vmem:[#allocation2] sm:$0xff] %vm408_vm0, %v407_v21  ;;  %v2996_v27 = vld [vmem:[#allocation2 + $0x28] sm:$0xff]  ;;  %v488_v28 = vmul.f32 %v2407_v24, %v487_v23  ;;  %v489_v29 = vmul.f32 %v2408_v25, %v487_v23  ;;  %v3009_v33 = vld [vmem:[#allocation2 + $0x30] sm:$0xff] }
  0x22   : > { %2496 = vmatprep.mubr.msk.bf16.mxu1 %vm408_vm0, %v2984_v20  ;;  %2653 = vmatpush3.bf16.msra.mxu1 %v2919_v1  ;;  %v3014_v34 = vld [vmem:[#allocation2 + $0x38] sm:$0xff]  ;;  %v3022_v35 = vld [vmem:[#allocation2 + $0x40] sm:$0xff] }
  0x23   : > { %2544 = vmatprep.subr.bf16.mxu1 %v2802_v16  ;;  %v490_v30 = vpack.c.bf16 %v489_v29, %v488_v28 }
  0x25   : > { %492 = vst.msk [vmem:[#allocation2 + $0x48] sm:$0xff] %vm408_vm0, %v490_v30 }
  0x28   : > { %v702_v31 = vld [vmem:[#allocation2] sm:$0xff] }
  0x29   : > { %2497 = vmatmul.mubr.msk.bf16.gmra.mrb[4].mxu1 %vm408_vm0, %v2994_v26  ;;  %2510 = vmatprep.mubr.msk.bf16.mxu0 %vm408_vm0, %v702_v31 }
  0x2a   : > { %2500 = vmatprep.mubr.msk.bf16.mxu1 %vm408_vm0, %v2996_v27  ;;  %2511 = vmatmul.mubr.msk.bf16.vlgmr.msra.gmra.mrb[0].mxu0 %vm408_vm0, %v2969_v13 }
  0x2b   : > { %2527 = vmatpush3.bf16.msra.mxu0 %v2927_v2  ;;  %2514 = vmatprep.mubr.msk.bf16.mxu0 %vm408_vm0, %v2979_v17 }
  0x2c   : > { %2598 = vmatprep.subr.bf16.mxu0 %v2799_v32  ;;  %v985_v39 = vld [vmem:[#allocation2 + $0x48] sm:$0xff] }
  0x31   : > { %2501 = vmatmul.mubr.msk.bf16.gmra.mrb[8].mxu1 %vm408_vm0, %v3009_v33 }
  0x32   : > { %2504 = vmatprep.mubr.msk.bf16.mxu1 %vm408_vm0, %v3014_v34  ;;  %2515 = vmatmul.mubr.msk.bf16.gmra.mrb[4].mxu0 %vm408_vm0, %v2984_v20 }
  0x33   : > { %2528 = vmatprep.mubr.msk.bf16.mxu0 %vm408_vm0, %v2979_v17 }
  0x39   : > { %2505 = vmatmul.mubr.msk.bf16.gmra.mrb[12].mxu1 %vm408_vm0, %v3022_v35 }
  0x3a   : > { %2518 = vmatprep.mubr.msk.bf16.mxu1 %vm408_vm0, %v2994_v26  ;;  %2529 = vmatmul.mubr.msk.bf16.vlgmr.msra.gmra.mrb[0].mxu0 %vm408_vm0, %v2984_v20 }
  0x3b   : > { %2599 = vmatpush3.bf16.msra.mxu0 %v2799_v32  ;;  %2532 = vmatprep.mubr.msk.bf16.mxu0 %vm408_vm0, %v2994_v26 }
  0x3c   : > { %2616 = vmatprep.subr.bf16.mxu0 %v2803_v36 }
  0x41   : > { %2519 = vmatmul.mubr.msk.bf16.vlgmr.msra.gmra.mrb[8].mxu1 %vm408_vm0, %v2996_v27 }
  0x42   : > { %2522 = vmatprep.mubr.msk.bf16.mxu1 %vm408_vm0, %v3009_v33  ;;  %2545 = vmatpush3.bf16.msra.mxu1 %v2802_v16 }
  0x43   : > { %2562 = vmatprep.subr.bf16.mxu1 %v2804_v37  ;;  %2533 = vmatmul.mubr.msk.bf16.gmra.mrb[4].mxu0 %vm408_vm0, %v2996_v27 }
  0x44   : > { %2536 = vmatprep.mubr.msk.bf16.mxu0 %vm408_vm0, %v3009_v33 }
  0x49   : > { %2523 = vmatmul.mubr.msk.bf16.gmra.mrb[12].mxu1 %vm408_vm0, %v3014_v34 }
  0x4a   : > { %2546 = vmatprep.mubr.msk.bf16.mxu1 %vm408_vm0, %v2969_v13 }
  0x4b   : > { %2537 = vmatmul.mubr.msk.bf16.gmra.mrb[8].mxu0 %vm408_vm0, %v3014_v34 }
  0x4c   : > { %2540 = vmatprep.mubr.msk.bf16.mxu0 %vm408_vm0, %v3022_v35 }
  0x51   : > { %2547 = vmatmul.mubr.msk.bf16.vlgmr.msra.gmra.mrb[16].mxu1 %vm408_vm0, %v2979_v17 }
  0x52   : > { %2550 = vmatprep.mubr.msk.bf16.mxu1 %vm408_vm0, %v2984_v20  ;;  %2563 = vmatpush3.bf16.msra.mxu1 %v2804_v37 }
  0x53   : > { %2580 = vmatprep.subr.bf16.mxu1 %v2806_v38  ;;  %2541 = vmatmul.mubr.msk.bf16.gmra.mrb[12].mxu0 %vm408_vm0, %v985_v39 }
  0x54   : > { %2600 = vmatprep.mubr.msk.bf16.mxu0 %vm408_vm0, %v2969_v13 }
  0x59   : > { %2551 = vmatmul.mubr.msk.bf16.gmra.mrb[20].mxu1 %vm408_vm0, %v2994_v26 }
  0x5a   : > { %2554 = vmatprep.mubr.msk.bf16.mxu1 %vm408_vm0, %v2996_v27 }
  0x5b   : > { %2601 = vmatmul.mubr.msk.bf16.vlgmr.msra.gmra.mrb[16].mxu0 %vm408_vm0, %v2979_v17 }
  0x5c   : > { %2617 = vmatpush3.bf16.msra.mxu0 %v2803_v36  ;;  %2604 = vmatprep.mubr.msk.bf16.mxu0 %vm408_vm0, %v2984_v20 }
  0x5d   : > { %2634 = vmatprep.subr.bf16.mxu0 %v2805_v40 }
  0x61   : > { %2555 = vmatmul.mubr.msk.bf16.gmra.mrb[24].mxu1 %vm408_vm0, %v3009_v33 }
  0x62   : > { %2558 = vmatprep.mubr.msk.bf16.mxu1 %vm408_vm0, %v3014_v34 }
  0x63   : > { %2605 = vmatmul.mubr.msk.bf16.gmra.mrb[20].mxu0 %vm408_vm0, %v2994_v26 }
  0x64   : > { %2608 = vmatprep.mubr.msk.bf16.mxu0 %vm408_vm0, %v2996_v27 }
  0x69   : > { %2559 = vmatmul.mubr.msk.bf16.gmra.mrb[28].mxu1 %vm408_vm0, %v3022_v35 }
  0x6a   : > { %2564 = vmatprep.mubr.msk.bf16.mxu1 %vm408_vm0, %v702_v31 }
  0x6b   : > { %2609 = vmatmul.mubr.msk.bf16.gmra.mrb[24].mxu0 %vm408_vm0, %v3009_v33 }
  0x6c   : > { %2612 = vmatprep.mubr.msk.bf16.mxu0 %vm408_vm0, %v3014_v34 }
  0x71   : > { %2565 = vmatmul.mubr.msk.bf16.vlgmr.msra.gmra.mrb[16].mxu1 %vm408_vm0, %v2969_v13 }
  0x72   : > { %2568 = vmatprep.mubr.msk.bf16.mxu1 %vm408_vm0, %v2979_v17  ;;  %2581 = vmatpush3.bf16.msra.mxu1 %v2806_v38 }
  0x73   : > { %2613 = vmatmul.mubr.msk.bf16.gmra.mrb[28].mxu0 %vm408_vm0, %v3022_v35 }
  0x74   : > { %2618 = vmatprep.mubr.msk.bf16.mxu0 %vm408_vm0, %v702_v31 }
  0x79   : > { %2569 = vmatmul.mubr.msk.bf16.gmra.mrb[20].mxu1 %vm408_vm0, %v2984_v20 }
  0x7a   : > { %2572 = vmatprep.mubr.msk.bf16.mxu1 %vm408_vm0, %v2994_v26 }
  0x7b   : > { %2619 = vmatmul.mubr.msk.bf16.vlgmr.msra.gmra.mrb[16].mxu0 %vm408_vm0, %v2969_v13 }
  0x7c   : > { %2635 = vmatpush3.bf16.msra.mxu0 %v2805_v40  ;;  %2622 = vmatprep.mubr.msk.bf16.mxu0 %vm408_vm0, %v2979_v17 }
  0x81   : > { %2573 = vmatmul.mubr.msk.bf16.gmra.mrb[24].mxu1 %vm408_vm0, %v2996_v27 }
  0x82   : > { %2576 = vmatprep.mubr.msk.bf16.mxu1 %vm408_vm0, %v3009_v33 }
  0x83   : > { %2623 = vmatmul.mubr.msk.bf16.gmra.mrb[20].mxu0 %vm408_vm0, %v2984_v20 }
  0x84   : > { %2626 = vmatprep.mubr.msk.bf16.mxu0 %vm408_vm0, %v2994_v26 }
  0x89   : > { %2577 = vmatmul.mubr.msk.bf16.gmra.mrb[28].mxu1 %vm408_vm0, %v3014_v34 }
  0x8a   : > { %2582 = vmatprep.mubr.msk.bf16.mxu1 %vm408_vm0, %v2979_v17 }
  0x8b   : > { %2627 = vmatmul.mubr.msk.bf16.gmra.mrb[24].mxu0 %vm408_vm0, %v2996_v27 }
  0x8c   : > { %2630 = vmatprep.mubr.msk.bf16.mxu0 %vm408_vm0, %v3009_v33 }
  0x91   : > { %2583 = vmatmul.mubr.msk.bf16.vlgmr.msra.gmra.mrb[16].mxu1 %vm408_vm0, %v2984_v20 }
  0x92   : > { %2586 = vmatprep.mubr.msk.bf16.mxu1 %vm408_vm0, %v2994_v26 }
  0x93   : > { %2631 = vmatmul.mubr.msk.bf16.gmra.mrb[28].mxu0 %vm408_vm0, %v3014_v34 }
  0x94   : > { %2636 = vmatprep.mubr.msk.bf16.mxu0 %vm408_vm0, %v2979_v17 }
  0x99   : > { %2587 = vmatmul.mubr.msk.bf16.gmra.mrb[20].mxu1 %vm408_vm0, %v2996_v27 }
  0x9a   : > { %2590 = vmatprep.mubr.msk.bf16.mxu1 %vm408_vm0, %v3009_v33 }
  0x9b   : > { %2637 = vmatmul.mubr.msk.bf16.vlgmr.msra.gmra.mrb[16].mxu0 %vm408_vm0, %v2984_v20 }
  0x9c   : > { %2640 = vmatprep.mubr.msk.bf16.mxu0 %vm408_vm0, %v2994_v26 }
  0xa1   : > { %2591 = vmatmul.mubr.msk.bf16.gmra.mrb[24].mxu1 %vm408_vm0, %v3014_v34 }
  0xa2   : > { %2594 = vmatprep.mubr.msk.bf16.mxu1 %vm408_vm0, %v3022_v35 }
  0xa3   : > { %2641 = vmatmul.mubr.msk.bf16.gmra.mrb[20].mxu0 %vm408_vm0, %v2996_v27 }
  0xa4   : > { %2644 = vmatprep.mubr.msk.bf16.mxu0 %vm408_vm0, %v3009_v33 }
  0xa9   : > { %2595 = vmatmul.mubr.msk.bf16.gmra.mrb[28].mxu1 %vm408_vm0, %v985_v39 }
  0xab   : > { %2645 = vmatmul.mubr.msk.bf16.gmra.mrb[24].mxu0 %vm408_vm0, %v3014_v34 }
  0xac   : > { %2648 = vmatprep.mubr.msk.bf16.mxu0 %vm408_vm0, %v3022_v35 }
  0xb3   : > { %2649 = vmatmul.mubr.msk.bf16.gmra.mrb[28].mxu0 %vm408_vm0, %v985_v39 }
  0xf4   : > { %v2494_v41 = vpop.f32.mrb[0].mxu1 }
  0xf5   : > { %v787_v42 = vpop.f32.mrb[1].mxu1 }
  0xf6   : > { %v2495_v43 = vpop.f32.mrb[2].mxu1 }
  0xf7   : > { %v790_v44 = vpop.f32.mrb[3].mxu1 }
  0xfc   : > { %v2498_v45 = vpop.f32.mrb[4].mxu1 }
  0xfd   : > { %v803_v46 = vpop.f32.mrb[5].mxu1 }
  0xfe   : > { %v2499_v47 = vpop.f32.mrb[6].mxu1 }
  0xff   : > { %v806_v48 = vpop.f32.mrb[7].mxu1 }
 0x10d   : > { %v2530_v50 = vpop.f32.mrb[0].mxu0 }
 0x10e   : > { %v2654_v51 = vadd.f32 %v2530_v50, %v2494_v41  ;;  %v1053_v52 = vpop.f32.mrb[1].mxu0 }
 0x10f   : > { %v3153_v53 = vadd.f32 %v1053_v52, %v787_v42  ;;  %v2531_v54 = vpop.f32.mrb[2].mxu0 }
 0x110   : > { %v2656_v56 = vadd.f32 %v2531_v54, %v2495_v43  ;;  %v1056_v57 = vpop.f32.mrb[3].mxu0  ;;  %v1150_v61 = vrot.slane %v2654_v51, 7 }
 0x111   : > { %v2657_v59 = vadd.f32 %v1056_v57, %v790_v44  ;;  %v1148_v0 = vrot.slane %v3153_v53, 7 }
 0x112   : > { %v1151_v62 = vrot.slane %v2656_v56, 7 }
 0x113   : > { %v1149_v1 = vrot.slane %v2657_v59, 7 }
 0x114   : > { %v2520_v58 = vpop.f32.mrb[8].mxu1  ;;  %v3161_v3 = vsel %vm1164_vm1, %v1150_v61, %v1151_v62 }
 0x115   : > { %v946_v60 = vpop.f32.mrb[9].mxu1  ;;  %v3165_v5 = vsel %vm1164_vm1, %v1149_v1, %v1150_v61  ;;  %v3169_v6 = vsel %vm1164_vm1, %v1148_v0, %v1149_v1 }
 0x116   : > { %v2521_v63 = vpop.f32.mrb[10].mxu1  ;;  %v2534_v4 = vpop.f32.mrb[4].mxu0 }
 0x117   : > { %v949_v2 = vpop.f32.mrb[11].mxu1  ;;  %v2658_v7 = vadd.f32 %v2534_v4, %v2498_v45  ;;  %v1069_v8 = vpop.f32.mrb[5].mxu0 }
 0x118   : > { %v2659_v9 = vadd.f32 %v1069_v8, %v803_v46  ;;  %v2535_v10 = vpop.f32.mrb[6].mxu0 }
 0x119   : > { %v2660_v11 = vadd.f32 %v2535_v10, %v2499_v47  ;;  %v1072_v12 = vpop.f32.mrb[7].mxu0  ;;  %v1154_v17 = vrot.slane %v2658_v7, 7 }
 0x11a   : > { %v1152_v14 = vrot.slane %v2659_v9, 7  ;;  %v2661_v15 = vadd.f32 %v1072_v12, %v806_v48 }
 0x11b   : > { %v1155_v18 = vrot.slane %v2660_v11, 7 }
 0x11c   : > { %v2524_v13 = vpop.f32.mrb[12].mxu1  ;;  %v1153_v20 = vrot.slane %v2661_v15, 7  ;;  %v3173_v22 = vsel %vm1164_vm1, %v1151_v62, %v1152_v14  ;;  %v514_v62 = vand.u32 15, %v3155_v55 }
 0x11d   : > { %v962_v16 = vpop.f32.mrb[13].mxu1  ;;  %v3177_v23 = vsel %vm1164_vm1, %v1154_v17, %v1155_v18 }
 0x11e   : > { %v2525_v19 = vpop.f32.mrb[14].mxu1  ;;  %v2538_v24 = vpop.f32.mrb[8].mxu0  ;;  %v3181_v25 = vsel %vm1164_vm1, %v1153_v20, %v1154_v17  ;;  %v3185_v26 = vsel %vm1164_vm1, %v1152_v14, %v1153_v20  ;;  %vm1132_vm3 = vcmp.eq.s32.totalorder %v514_v62, 0  ;;  %v508_v17 = vadd.s32 112, %v3155_v55 }
 0x11f   : > { %v965_v21 = vpop.f32.mrb[15].mxu1  ;;  %v2662_v27 = vadd.f32 %v2538_v24, %v2520_v58  ;;  %v1085_v28 = vpop.f32.mrb[9].mxu0 }
 0x120   : > { %v2663_v29 = vadd.f32 %v1085_v28, %v946_v60  ;;  %v2539_v30 = vpop.f32.mrb[10].mxu0  ;;  %v496_v60 = vadd.s32 16, %v3155_v55 }
 0x121   : > { %v2664_v31 = vadd.f32 %v2539_v30, %v2521_v63  ;;  %v1088_v32 = vpop.f32.mrb[11].mxu0  ;;  %v1158_v35 = vrot.slane %v2662_v27, 7  ;;  %v500_v63 = vadd.s32 48, %v3155_v55 }
 0x122   : > { %v1156_v33 = vrot.slane %v2663_v29, 7  ;;  %v2665_v34 = vadd.f32 %v1088_v32, %v949_v2  ;;  %v528_v61 = vand.u32 15, %v496_v60 }
 0x123   : > { %v1159_v36 = vrot.slane %v2664_v31, 7  ;;  %v556_v9 = vand.u32 15, %v500_v63  ;;  %v612_v31 = vand.u32 15, %v508_v17 }
 0x124   : > { %v1157_v37 = vrot.slane %v2665_v34, 7  ;;  %v3189_v38 = vsel %vm1164_vm1, %v1155_v18, %v1156_v33  ;;  %vm1134_vm2 = vcmp.eq.s32.totalorder %v528_v61, 0  ;;  %v506_v18 = vadd.s32 96, %v3155_v55 }
 0x125   : > { %v3193_v39 = vsel %vm1164_vm1, %v1158_v35, %v1159_v36  ;;  %v1183_v1 = vsel %vm1134_vm2, 0.0, %v3165_v5  ;;  %vm1138_vm4 = vcmp.eq.s32.totalorder %v556_v9, 0  ;;  %v502_v5 = vadd.s32 64, %v3155_v55 }
 0x126   : > { %v2542_v40 = vpop.f32.mrb[12].mxu0  ;;  %v3197_v41 = vsel %vm1164_vm1, %v1157_v37, %v1158_v35  ;;  %v3201_v42 = vsel %vm1164_vm1, %v1156_v33, %v1157_v37  ;;  %v1187_v20 = vsel %vm1138_vm4, 0.0, %v3181_v25  ;;  %v598_v32 = vand.u32 15, %v506_v18 }
 0x127   : > { %v2666_v43 = vadd.f32 %v2542_v40, %v2524_v13  ;;  %v1101_v44 = vpop.f32.mrb[13].mxu0  ;;  %v570_v30 = vand.u32 15, %v502_v5  ;;  %v497_v25 = vadd.s32 24, %v3155_v55  ;;  %vm3263_vm8 = vcmp.eq.s32.totalorder %v612_v31, 0 }
 0x128   : > { %v2667_v45 = vadd.f32 %v1101_v44, %v962_v16  ;;  %v2543_v46 = vpop.f32.mrb[14].mxu0  ;;  %v504_v16 = vadd.s32 80, %v3155_v55  ;;  %vm3267_vm9 = vcmp.eq.s32.totalorder %v598_v32, 0 }
 0x129   : > { %v2668_v47 = vadd.f32 %v2543_v46, %v2525_v19  ;;  %v1104_v48 = vpop.f32.mrb[15].mxu0  ;;  %v1162_v51 = vrot.slane %v2666_v43, 7  ;;  %v495_v19 = vadd.s32 8, %v3155_v55  ;;  %vm3259_vm7 = vcmp.eq.s32.totalorder %v570_v30, 0 }
 0x12a   : > { %v1160_v49 = vrot.slane %v2667_v45, 7  ;;  %v2669_v50 = vadd.f32 %v1104_v48, %v965_v21  ;;  %v584_v27 = vand.u32 15, %v504_v16  ;;  %v1189_v63 = vsel %vm3259_vm7, 0.0, %v3189_v38 }
 0x12b   : > { %v1163_v52 = vrot.slane %v2668_v47, 7  ;;  %v521_v34 = vand.u32 15, %v495_v19  ;;  %v535_v47 = vand.u32 15, %v497_v25 }
 0x12c   : > { %v1161_v53 = vrot.slane %v2669_v50, 7  ;;  %v3205_v54 = vsel %vm1164_vm1, %v1159_v36, %v1160_v49  ;;  %v499_v36 = vadd.s32 40, %v3155_v55  ;;  %vm3253_vm6 = vcmp.eq.s32.totalorder %v584_v27, 0 }
 0x12d   : > { %v1180_v56 = vsel %vm1164_vm1, %v1163_v52, %v1148_v0  ;;  %v3211_v57 = vsel %vm1164_vm1, %v1162_v51, %v1163_v52  ;;  %v498_v0 = vadd.s32 32, %v3155_v55  ;;  %vm3272_vm11 = vcmp.eq.s32.totalorder %v521_v34, 15 }
 0x12e   : > { %v3215_v58 = vsel %vm1164_vm1, %v1161_v53, %v1162_v51  ;;  %v3219_v59 = vsel %vm1164_vm1, %v1160_v49, %v1161_v53  ;;  %v1181_v7 = vsel %vm1132_vm3, 0.0, %v1180_v56  ;;  %v549_v48 = vand.u32 15, %v499_v36 }
 0x12f   : > { %v542_v12 = vand.u32 15, %v498_v0  ;;  %v1191_v52 = vsel %vm3253_vm6, 0.0, %v3197_v41  ;;  %v501_v56 = vadd.s32 56, %v3155_v55  ;;  %v3291_v41 = vld [vmem:[%s3494_s4] ss:$0 sm:$0xff]  ;;  %vm3313_vm13 = vcmp.eq.s32.totalorder %v535_v47, 15 }
 0x130   : > { %vm3317_vm14 = vcmp.eq.s32.totalorder %v549_v48, 15  ;;  %v3326_v27 = vadd.s32 120, %v3155_v55  ;;  %v1193_v32 = vsel %vm3267_vm9, 0.0, %v3205_v54 }
 0x131   : > { %vm1136_vm5 = vcmp.eq.s32.totalorder %v542_v12, 0 }
 0x164   : > { %v2584_v2 = vpop.f32.mrb[16].mxu1 }
 0x165   : > { %v1533_v4 = vadd.f32 %v2584_v2, %v1183_v1  ;;  %v1452_v8 = vpop.f32.mrb[17].mxu1 }
 0x166   : > { %v3226_v10 = vadd.f32 %v1452_v8, %v1181_v7  ;;  %v2585_v11 = vpop.f32.mrb[18].mxu1  ;;  %v503_v8 = vadd.s32 72, %v3155_v55 }
 0x167   : > { %v3229_v13 = vadd.f32 %v2585_v11, %v3161_v3  ;;  %v1455_v14 = vpop.f32.mrb[19].mxu1 }
 0x168   : > { %v3232_v15 = vadd.f32 %v1455_v14, %v3169_v6  ;;  %v1185_v6 = vsel %vm1136_vm5, 0.0, %v3173_v22 }
 0x16c   : > { %v2588_v3 = vpop.f32.mrb[20].mxu1 }
 0x16d   : > { %v3240_v21 = vadd.f32 %v2588_v3, %v1187_v20  ;;  %v1468_v24 = vpop.f32.mrb[21].mxu1 }
 0x16e   : > { %v3243_v28 = vadd.f32 %v1468_v24, %v1185_v6  ;;  %v2589_v29 = vpop.f32.mrb[22].mxu1  ;;  %v2638_v22 = vpop.f32.mrb[16].mxu0  ;;  %v3323_v24 = vadd.s32 88, %v3155_v55 }
 0x16f   : > { %v3246_v33 = vadd.f32 %v2589_v29, %v3177_v23  ;;  %v1471_v35 = vpop.f32.mrb[23].mxu1  ;;  %v3257_v43 = vpop.f32.mrb[17].mxu0  ;;  %v1899_v49 = vrot.slane %v2638_v22, 1  ;;  %v1195_v22 = vsel %vm3263_vm8, 0.0, %v3215_v58 }
 0x170   : > { %v3251_v37 = vadd.f32 %v1471_v35, %v3185_v26  ;;  %v2639_v26 = vpop.f32.mrb[18].mxu0  ;;  %v1897_v60 = vrot.slane %v3257_v43, 1 }
 0x171   : > { %v1900_v50 = vrot.slane %v2639_v26, 1  ;;  %v1805_v51 = vpop.f32.mrb[19].mxu0 }
 0x172   : > { %v1898_v61 = vrot.slane %v1805_v51, 1 }
 0x173   : > { %v1926_v1 = vsel %vm1913_vm10, %v1899_v49, %v1900_v50 }
 0x174   : > { %v2592_v53 = vpop.f32.mrb[24].mxu1  ;;  %v1948_v9 = vadd.f32 %v1926_v1, %v1533_v4  ;;  %v1927_v11 = vsel %vm1913_vm10, %v1898_v61, %v1899_v49  ;;  %v1928_v38 = vsel %vm1913_vm10, %v1897_v60, %v1898_v61  ;;  %v563_v4 = vand.u32 15, %v501_v56 }
 0x175   : > { %v3281_v62 = vadd.f32 %v2592_v53, %v1191_v52  ;;  %v1484_v0 = vpop.f32.mrb[25].mxu1  ;;  %v1931_v16 = vsel %vm3272_vm11, 0.0, %v1927_v11  ;;  %v1946_v5 = vadd.f32 %v1928_v38, %v3226_v10 }
 0x176   : > { %v3293_v2 = vadd.f32 %v1484_v0, %v1189_v63  ;;  %v2593_v7 = vpop.f32.mrb[26].mxu1  ;;  %v1971_v18 = vadd.f32 %v3291_v41, %v1948_v9  ;;  %v1947_v19 = vadd.f32 %v1931_v16, %v3232_v15  ;;  %v2642_v20 = vpop.f32.mrb[20].mxu0  ;;  %vm3342_vm15 = vcmp.eq.s32.totalorder %v563_v4, 15 }
 0x177   : > { %v3303_v12 = vadd.f32 %v2593_v7, %v3193_v39  ;;  %v1487_v14 = vpop.f32.mrb[27].mxu1  ;;  %v1969_v10 = vadd.f32 %v3291_v41, %v1946_v5  ;;  %v1818_v6 = vpop.f32.mrb[21].mxu0  ;;  %v1903_v35 = vrot.slane %v2642_v20, 1  ;;  %v507_v5 = vadd.s32 104, %v3155_v55 }
 0x178   : > { %v3309_v17 = vadd.f32 %v1487_v14, %v3201_v42  ;;  %v577_v42 = vand.u32 15, %v503_v8  ;;  %v1987_v15 = vmax.f32 %v1971_v18, 0.0  ;;  %v1970_v29 = vadd.f32 %v3291_v41, %v1947_v19  ;;  %v2643_v31 = vpop.f32.mrb[22].mxu0 }
 0x179   : > { %v1901_v30 = vrot.slane %v1818_v6, 1  ;;  %v1985_v34 = vmax.f32 %v1969_v10, 0.0  ;;  %v1904_v25 = vrot.slane %v2643_v31, 1  ;;  %v1821_v36 = vpop.f32.mrb[23].mxu0 }
 0x17a   : > { %v2387_v54 = vpack.c.bf16 %v1987_v15, %v1987_v15  ;;  %v1986_v45 = vmax.f32 %v1970_v29, 0.0  ;;  %v1902_v46 = vrot.slane %v1821_v36, 1  ;;  %vm3377_vm0 = vcmp.eq.s32.totalorder %v577_v42, 15 }
 0x17b   : > { %v1925_v26 = vsel %vm1913_vm10, %v1900_v50, %v1901_v30  ;;  %v2385_v48 = vpack.c.bf16 %v1985_v34, %v1985_v34  ;;  %v1922_v58 = vsel %vm1913_vm10, %v1903_v35, %v1904_v25 }
 0x17c   : > { %v2596_v40 = vpop.f32.mrb[28].mxu1  ;;  %v1933_v49 = vsel %vm3313_vm13, 0.0, %v1925_v26  ;;  %2068 = vst.msk [vmem:[%s3337_s18 + $0x8] sm:$0xf] %vm2065_vm12, %v2387_v54  ;;  %v2386_v52 = vpack.c.bf16 %v1986_v45, %v1986_v45  ;;  %v1952_v50 = vadd.f32 %v1922_v58, %v3240_v21  ;;  %v1923_v56 = vsel %vm1913_vm10, %v1902_v46, %v1903_v35 }
 0x17d   : > { %v1500_v47 = vpop.f32.mrb[29].mxu1  ;;  %v3352_v23 = vadd.f32 %v2596_v40, %v1195_v22  ;;  %v1949_v53 = vadd.f32 %v1933_v49, %v3229_v13  ;;  %2066 = vst.msk [vmem:[%s3337_s18] sm:$0xf] %vm2065_vm12, %v2385_v48  ;;  %v1924_v63 = vsel %vm1913_vm10, %v1901_v30, %v1902_v46  ;;  %v1935_v0 = vsel %vm3317_vm14, 0.0, %v1923_v56 }
 0x17e   : > { %v2597_v51 = vpop.f32.mrb[30].mxu1  ;;  %v3366_v1 = vadd.f32 %v1500_v47, %v1193_v32  ;;  %2067 = vst.msk [vmem:[%s3337_s18 + $0x4] sm:$0xf] %vm2065_vm12, %v2386_v52  ;;  %v1975_v21 = vadd.f32 %v3291_v41, %v1952_v50  ;;  %v1950_v8 = vadd.f32 %v1924_v63, %v3243_v28  ;;  %v1951_v9 = vadd.f32 %v1935_v0, %v3251_v37  ;;  %v2646_v11 = vpop.f32.mrb[24].mxu0 }
 0x17f   : > { %v1503_v61 = vpop.f32.mrb[31].mxu1  ;;  %v3369_v7 = vadd.f32 %v2597_v51, %v3211_v57  ;;  %v1972_v13 = vadd.f32 %v3291_v41, %v1949_v53  ;;  %v1834_v38 = vpop.f32.mrb[25].mxu0  ;;  %v591_v57 = vand.u32 15, %v3323_v24  ;;  %v1907_v20 = vrot.slane %v2646_v11, 1 }
 0x180   : > { %v3382_v16 = vadd.f32 %v1503_v61, %v3219_v59  ;;  %v1991_v18 = vmax.f32 %v1975_v21, 0.0  ;;  %v1973_v19 = vadd.f32 %v3291_v41, %v1950_v8  ;;  %v1974_v28 = vadd.f32 %v3291_v41, %v1951_v9  ;;  %v2647_v37 = vpop.f32.mrb[26].mxu0 }
 0x181   : > { %v1988_v4 = vmax.f32 %v1972_v13, 0.0  ;;  %v1905_v3 = vrot.slane %v1834_v38, 1  ;;  %v1908_v39 = vrot.slane %v2647_v37, 1  ;;  %v1837_v10 = vpop.f32.mrb[27].mxu0  ;;  %v619_v59 = vand.u32 15, %v3326_v27 }
 0x182   : > { %v2391_v42 = vpack.c.bf16 %v1991_v18, %v1991_v18  ;;  %v1989_v24 = vmax.f32 %v1973_v19, 0.0  ;;  %v1990_v15 = vmax.f32 %v1974_v28, 0.0  ;;  %v1906_v31 = vrot.slane %v1837_v10, 1 }
 0x183   : > { %v2388_v6 = vpack.c.bf16 %v1988_v4, %v1988_v4  ;;  %v1921_v29 = vsel %vm1913_vm10, %v1904_v25, %v1905_v3  ;;  %v1918_v30 = vsel %vm1913_vm10, %v1907_v20, %v1908_v39  ;;  %v605_v32 = vand.u32 15, %v507_v5 }
 0x184   : > { %2072 = vst.msk [vmem:[%s3337_s18 + $0x18] sm:$0xf] %vm2065_vm12, %v2391_v42  ;;  %v2389_v34 = vpack.c.bf16 %v1989_v24, %v1989_v24  ;;  %v2390_v27 = vpack.c.bf16 %v1990_v15, %v1990_v15  ;;  %v1937_v35 = vsel %vm3342_vm15, 0.0, %v1921_v29  ;;  %v1956_v36 = vadd.f32 %v1918_v30, %v3281_v62 }
 0x185   : > { %2069 = vst.msk [vmem:[%s3337_s18 + $0xc] sm:$0xf] %vm2065_vm12, %v2388_v6  ;;  %v1953_v22 = vadd.f32 %v1937_v35, %v3246_v33  ;;  %v1919_v25 = vsel %vm1913_vm10, %v1906_v31, %v1907_v20  ;;  %v1920_v40 = vsel %vm1913_vm10, %v1905_v3, %v1906_v31  ;;  %vm3415_vm1 = vcmp.eq.s32.totalorder %v591_v57, 15 }
 0x186   : > { %2070 = vst.msk [vmem:[%s3337_s18 + $0x10] sm:$0xf] %vm2065_vm12, %v2389_v34  ;;  %2071 = vst.msk [vmem:[%s3337_s18 + $0x14] sm:$0xf] %vm2065_vm12, %v2390_v27  ;;  %v1979_v54 = vadd.f32 %v3291_v41, %v1956_v36  ;;  %v1939_v44 = vsel %vm3377_vm0, 0.0, %v1919_v25  ;;  %v1954_v45 = vadd.f32 %v1920_v40, %v3293_v2  ;;  %v2650_v62 = vpop.f32.mrb[28].mxu0 }
 0x187   : > { %v1976_v33 = vadd.f32 %v3291_v41, %v1953_v22  ;;  %v1955_v26 = vadd.f32 %v1939_v44, %v3309_v17  ;;  %v1850_v46 = vpop.f32.mrb[29].mxu0  ;;  %vm3419_vm2 = vcmp.eq.s32.totalorder %v619_v59, 15  ;;  %vm3424_vm3 = vcmp.eq.s32.totalorder %v605_v32, 15 }
 0x188   : > { %v1995_v49 = vmax.f32 %v1979_v54, 0.0  ;;  %v1977_v58 = vadd.f32 %v3291_v41, %v1954_v45  ;;  %v1909_v51 = vrot.slane %v1850_v46, 1  ;;  %v2651_v2 = vpop.f32.mrb[30].mxu0  ;;  %v1911_v50 = vrot.slane %v2650_v62, 1 }
 0x189   : > { %v1992_v17 = vmax.f32 %v1976_v33, 0.0  ;;  %v1978_v53 = vadd.f32 %v3291_v41, %v1955_v26  ;;  %v1912_v56 = vrot.slane %v2651_v2, 1  ;;  %v1853_v61 = vpop.f32.mrb[31].mxu0 }
 0x18a   : > { %v2395_v63 = vpack.c.bf16 %v1995_v49, %v1995_v49  ;;  %v1993_v0 = vmax.f32 %v1977_v58, 0.0  ;;  %v1917_v13 = vsel %vm1913_vm10, %v1908_v39, %v1909_v51  ;;  %v1910_v21 = vrot.slane %v1853_v61, 1 }
 0x18b   : > { %v2392_v8 = vpack.c.bf16 %v1992_v17, %v1992_v17  ;;  %v1994_v9 = vmax.f32 %v1978_v53, 0.0  ;;  %v1941_v11 = vsel %vm3415_vm1, 0.0, %v1917_v13  ;;  %v1914_v38 = vsel %vm1913_vm10, %v1911_v50, %v1912_v56 }
 0x18c   : > { %2076 = vst.msk [vmem:[%s3337_s18 + $0x28] sm:$0xf] %vm2065_vm12, %v2395_v63  ;;  %v2393_v14 = vpack.c.bf16 %v1993_v0, %v1993_v0  ;;  %v1957_v57 = vadd.f32 %v1941_v11, %v3303_v12  ;;  %v1929_v5 = vsel %vm1913_vm10, %v1912_v56, %v1897_v60  ;;  %v1960_v4 = vadd.f32 %v1914_v38, %v3352_v23 }
 0x18d   : > { %2073 = vst.msk [vmem:[%s3337_s18 + $0x1c] sm:$0xf] %vm2065_vm12, %v2392_v8  ;;  %v2394_v18 = vpack.c.bf16 %v1994_v9, %v1994_v9  ;;  %v1945_v19 = vsel %vm3419_vm2, 0.0, %v1929_v5  ;;  %v1915_v28 = vsel %vm1913_vm10, %v1910_v21, %v1911_v50  ;;  %v1916_v37 = vsel %vm1913_vm10, %v1909_v51, %v1910_v21 }
 0x18e   : > { %2074 = vst.msk [vmem:[%s3337_s18 + $0x20] sm:$0xf] %vm2065_vm12, %v2393_v14  ;;  %v1980_v43 = vadd.f32 %v3291_v41, %v1957_v57  ;;  %v1961_v60 = vadd.f32 %v1945_v19, %v3369_v7  ;;  %v1983_v12 = vadd.f32 %v3291_v41, %v1960_v4  ;;  %v1943_v23 = vsel %vm3424_vm3, 0.0, %v1915_v28 }
 0x18f   : > { %2075 = vst.msk [vmem:[%s3337_s18 + $0x24] sm:$0xf] %vm2065_vm12, %v2394_v18  ;;  %v1958_v20 = vadd.f32 %v1916_v37, %v3366_v1  ;;  %v1959_v55 = vadd.f32 %v1943_v23, %v3382_v16 }
 0x190   : > { %v1996_v3 = vmax.f32 %v1980_v43, 0.0  ;;  %v1984_v39 = vadd.f32 %v3291_v41, %v1961_v60  ;;  %v1999_v7 = vmax.f32 %v1983_v12, 0.0 }
 0x191   : > { %v1981_v10 = vadd.f32 %v3291_v41, %v1958_v20  ;;  %v1982_v59 = vadd.f32 %v3291_v41, %v1959_v55 }
 0x192   : > { %v2396_v6 = vpack.c.bf16 %v1996_v3, %v1996_v3  ;;  %v2000_v42 = vmax.f32 %v1984_v39, 0.0  ;;  %v2399_v24 = vpack.c.bf16 %v1999_v7, %v1999_v7 }
 0x193   : > { %v1997_v15 = vmax.f32 %v1981_v10, 0.0  ;;  %v1998_v29 = vmax.f32 %v1982_v59, 0.0 }
 0x194   : > { %2077 = vst.msk [vmem:[%s3337_s18 + $0x2c] sm:$0xf] %vm2065_vm12, %v2396_v6  ;;  %v2400_v1 = vpack.c.bf16 %v2000_v42, %v2000_v42  ;;  %2080 = vst.msk [vmem:[%s3337_s18 + $0x38] sm:$0xf] %vm2065_vm12, %v2399_v24 }
 0x195   : > { %v2397_v16 = vpack.c.bf16 %v1997_v15, %v1997_v15  ;;  %v2398_v30 = vpack.c.bf16 %v1998_v29, %v1998_v29 }
 0x196   : > { %2081 = vst.msk [vmem:[%s3337_s18 + $0x3c] sm:$0xf] %vm2065_vm12, %v2400_v1 }
 0x197   : > { %2078 = vst.msk [vmem:[%s3337_s18 + $0x30] sm:$0xf] %vm2065_vm12, %v2397_v16  ;;  %2079 = vst.msk [vmem:[%s3337_s18 + $0x34] sm:$0xf] %vm2065_vm12, %v2398_v30 }
 0x198 PF: > { %s15_s22 = sadd.s32 1, %s2845_s22   ;;  %s3521_s18 = smov %s2837_s20 }
 0x199   : > { %p12_p12 = scmp.ge.s32.totalorder %s15_s22, 6   ;;  %s3522_s19 = smov %s2841_s21 }
 0x19a   : > { %s3523_s20 = smov %s3526_s23  ;;  %s3524_s21 = smov %s3530_s24 }
 0x19b   :  { %14 = sbr.rel (!%p12_p12) target bundleno = 3 (0x3), region = 87 }

// kernel: rcan_forward_pallas.18
= control target key start
LH: loop header
LB: loop body
LE: loop exit
PB: predicated region body
PF: predicated region fallthrough
CT: control target
= control target key end

     0   :  { %s2810_s18 = smov 0   ;;  %s2812_s19 = smov 0   ;;  %s3424_s0 = inlined_call_operand.vmem [shape: bf16[2,16,16,4], index: 0, kind: input, shape index: {}, may-alias: {0,1,2}]   ;;  %s3425_s1 = inlined_call_operand.vmem [shape: bf16[2,16,16,4], index: 1, kind: input, shape index: {}, may-alias: {0,1,2}]   ;;  %s3426_s2 = inlined_call_operand.vmem [shape: bf16[2,16,16,4], index: 2, kind: input, shape index: {}, may-alias: {0,1,2}]   ;;  %s3427_s3 = inlined_call_operand.vmem [shape: bf16[9,4,16], index: 3, kind: input, shape index: {}]   ;;  %s3428_s4 = inlined_call_operand.vmem [shape: f32[1,16], index: 4, kind: input, shape index: {}]   ;;  %s3429_s5 = inlined_call_operand.vmem [shape: bf16[2,16,16,16], index: 5, kind: output, shape index: {}]  }
   0x1   :  { %s2814_s20 = smov 0   ;;  %s2816_s21 = smov 0  }
   0x2   :  { %s2818_s22 = smov 0  }
   0x3 LB: > { %s24_s23 = sadd.s32 1, %s2770_s20  ;;  %s27_s24 = sadd.s32 1, %s2774_s21  ;;  %s2778_s22 = sphi %s2818_s22, %s15_s22   ;;  %s2774_s21 = sphi %s2816_s21, %s3458_s21   ;;  %s2770_s20 = sphi %s2814_s20, %s3457_s20   ;;  %s2766_s19 = sphi %s2812_s19, %s3456_s19   ;;  %s2762_s18 = sphi %s2810_s18, %s3455_s18  }
   0x4   : > { %p25_p0 = scmp.ge.s32.totalorder %s24_s23, 2  ;;  %p2182_p1 = scmp.ge.s32.totalorder %s2778_s22, 1 }
   0x5   : > { %p273_p2 = scmp.lt.s32.totalorder %s2778_s22, 5 }
   0x6   : > { %s3460_s23 = smov (%p25_p0, %s24_s23), 0  ;;  %s3462_s24 = smov (!%p25_p0, %s27_s24), %s2774_s21 }
   0x7   : > { %p274_p3 = pnand %p2182_p1, %p273_p2  ;;  %p29_p4 = scmp.ge.s32.totalorder %s3462_s24, 2 }
   0x8   : > { %v2216_v0 = vld [vmem:[%s3427_s3 + $0x6] sm:$0x3] (!%p274_p3)  ;;  %vm745_vm0 = vcmask (!%p274_p3), 1041408   ;;  %s2846_s27 = sshll.u32 (!%p274_p3), %s2762_s18, 3  ;;  %p338_p5 = scmp.lt.s32.totalorder (!%p274_p3), %s2766_s19, 1  ;;  %vm408_vm1 = vcmask (!%p274_p3), 31744   ;;  %v493_v58 = vlaneseq (!%p274_p3) }
   0x9   : > { %s3464_s24 = smov (%p29_p4, %s3462_s24), 0  ;;  %277 = sbr.rel (%p274_p3) target bundleno = 405 (0x195), region = 40 }
   0xa   : > { %2682 = vmatprep.subr.msk.bf16.mxu1 (!%p274_p3), %vm745_vm0, %v2216_v0  ;;  %v747_v1 = vsel (!%p274_p3), %vm745_vm0, %v2216_v0, 0  ;;  %p340_p6 = scmp.lt.s32.totalorder (!%p274_p3), %s2846_s27, 15  ;;  %v710_v2 = vld [vmem:[%s3427_s3] sm:$0x3] (!%p274_p3)  ;;  %s2188_s30 = sadd.s32 (!%p274_p3), 4294967295, %s2846_s27  ;;  %v3104_v0 = vshrl.u32 (!%p274_p3), %v493_v58, 7 }
   0xb   : > { %2423 = vmatpush3.bf16.msra.mxu1 (!%p274_p3), %v747_v1  ;;  %2683 = vmatprep.subr.msk.bf16.mxu0 (!%p274_p3), %vm745_vm0, %v710_v2  ;;  %v871_v3 = vsel (!%p274_p3), %vm745_vm0, %v710_v2, 0  ;;  %v2860_v4 = vld [vmem:[%s3427_s3 + $0xc] sm:$0x3] (!%p274_p3)  ;;  %p350_p7 = scmp.gt.s32.totalorder (!%p274_p3), %s2188_s30, 0  ;;  %p2189_p8 = scmp.lt.s32.totalorder (!%p274_p3), %s2188_s30, 15  ;;  %vm2014_vm13 = vcmask (!%p274_p3), 125952  }
   0xc   : > { %2441 = vmatpush3.bf16.msra.mxu0 (!%p274_p3), %v871_v3  ;;  %2684 = vmatprep.subr.msk.bf16.mxu1 (!%p274_p3), %vm745_vm0, %v710_v2  ;;  %p394_p9 = scmp.gt.s32.totalorder (!%p274_p3), %s2762_s18, 0  ;;  %s366_s13 = sadd.s32 (!%p274_p3), 8, %s2846_s27  ;;  %v2243_v19 = vld [vmem:[%s3427_s3 + $0x8] sm:$0x3] (!%p274_p3)  ;;  %v1006_v34 = vsel (!%p274_p3), %vm745_vm0, %v2860_v4, 0  ;;  %vm1153_vm2 = vcmp.lt.s32.totalorder (!%p274_p3), %v3104_v0, 1 }
   0xd   : > { %2685 = vmatprep.subr.msk.bf16.mxu0 (!%p274_p3), %vm745_vm0, %v2860_v4  ;;  %p2879_p10 = scmp.lt.s32.totalorder (!%p274_p3), %s366_s13, 15  ;;  %p397_p11 = scmp.lt.s32.totalorder (!%p274_p3), %s2762_s18, 1  ;;  %v2270_v35 = vld [vmem:[%s3427_s3 + $0xa] sm:$0x3] (!%p274_p3)  ;;  %v2269_v40 = vld [vmem:[%s3427_s3 + $0x4] sm:$0x3] (!%p274_p3) }
   0xe   : > { %v1529_v39 = vsel (!%p274_p3), %vm745_vm0, %v2270_v35, 0  ;;  %v1191_v41 = vsel (!%p274_p3), %vm745_vm0, %v2243_v19, 0  ;;  %v2242_v42 = vld [vmem:[%s3427_s3 + $0x2] sm:$0x3] (!%p274_p3)  ;;  %v2260_v44 = vld [vmem:[%s3427_s3 + $0xe] sm:$0x3] (!%p274_p3) }
   0xf   : > { %v1291_v43 = vsel (!%p274_p3), %vm745_vm0, %v2242_v42, 0  ;;  %v1629_v46 = vsel (!%p274_p3), %vm745_vm0, %v2269_v40, 0  ;;  %v2287_v47 = vld [vmem:[%s3427_s3 + $0x10] sm:$0x3] (!%p274_p3)  ;;  %v1393_v48 = vsel (!%p274_p3), %vm745_vm0, %v2260_v44, 0  ;;  %vm1878_vm9 = vcmp.lt.s32.totalorder (!%p274_p3), %v3104_v0, 7 }
  0x10   : > { %s3466_s19 = smov (!%p338_p5, %s2766_s19), 1  ;;  %s3468_s30 = smov (!%p350_p7, %s2188_s30), 0  ;;  %v1731_v49 = vsel %vm745_vm0, %v2287_v47, 0 }
  0x11   : > { %s341_s8 = scalar_select %p340_p6, %s2846_s27, 15 }
  0x12   : > { %s2864_s9 = sshll.u32 %s3466_s19, 5  ;;  %s3470_s13 = smov (!%p2879_p10, %s366_s13), 15 }
  0x13   : > { %s2184_s10 = sshll.u32 %s341_s8, 1  ;;  %s3472_s30 = smov (!%p2189_p8, %s3468_s30), 15 }
  0x14   : > { %s2869_s11 = sadd.s32 %s2864_s9, %s2184_s10  ;;  %s2194_s25 = sshll.u32 %s3472_s30, 1 }
  0x15   : > { %s2186_s12 = sshll.u32 %s2869_s11, 2  ;;  %s358_s26 = sadd.s32 %s2194_s25, %s2864_s9 }
  0x16   : > { %s346_s16 = scalar_lea.vmem %s3424_s0, %s2186_s12  ;;  %s2196_s28 = sshll.u32 %s358_s26, 2 }
  0x17   : > { %v2732_v5 = vld [vmem:[%s346_s16] sm:$0xff]   ;;  %v2733_v6 = vld [vmem:[%s346_s16 + $0x8] sm:$0xff]   ;;  %v2734_v7 = vld [vmem:[%s346_s16 + $0x10] sm:$0xff]   ;;  %s395_s19 = scalar_select %p394_p9, 1, 0 }
  0x18   : > { %475 = vst.msk [vmem:[#allocation2 + $0x8] sm:$0xff] %vm408_vm1, %v2732_v5  ;;  %476 = vst.msk [vmem:[#allocation2 + $0x10] sm:$0xff] %vm408_vm1, %v2733_v6  ;;  %v2735_v8 = vld [vmem:[%s346_s16 + $0x18] sm:$0xff]   ;;  %v2736_v9 = vld [vmem:[%s346_s16 + $0x20] sm:$0xff]   ;;  %s360_s7 = scalar_lea.vmem %s3425_s1, %s2196_s28  ;;  %s3474_s13 = smov (!%p2879_p10, %s3470_s13), 15 }
  0x19   : > { %477 = vst.msk [vmem:[#allocation2 + $0x18] sm:$0xff] %vm408_vm1, %v2734_v7  ;;  %s396_s27 = scvt.s32.f32 %s395_s19  ;;  %478 = vst.msk [vmem:[#allocation2 + $0x20] sm:$0xff] %vm408_vm1, %v2735_v8  ;;  %v2737_v10 = vld [vmem:[%s346_s16 + $0x28] sm:$0xff]   ;;  %v2738_v11 = vld [vmem:[%s346_s16 + $0x30] sm:$0xff]   ;;  %s2201_s10 = sshll.u32 %s3474_s13, 1 }
  0x1a   : > { %479 = vst.msk [vmem:[#allocation2 + $0x28] sm:$0xff] %vm408_vm1, %v2736_v9  ;;  %v2334_v12 = vld [vmem:[%s360_s7] sm:$0xff]   ;;  %480 = vst.msk [vmem:[#allocation2 + $0x30] sm:$0xff] %vm408_vm1, %v2737_v10  ;;  %v2739_v14 = vld [vmem:[%s346_s16 + $0x38] sm:$0xff]   ;;  %s398_s30 = scalar_select %p397_p11, 1, 0 }
  0x1b   : > { %v404_v13 = vstv %s396_s27  ;;  %v2335_v16 = vunpack.c.l.bf16 %v2334_v12  ;;  %v2336_v17 = vunpack.c.h.bf16 %v2334_v12  ;;  %481 = vst.msk [vmem:[#allocation2 + $0x38] sm:$0xff] %vm408_vm1, %v2738_v11  ;;  %482 = vst.msk [vmem:[#allocation2 + $0x40] sm:$0xff] %vm408_vm1, %v2739_v14  ;;  %s375_s14 = sadd.s32 %s2201_s10, %s2864_s9 }
  0x1c   : > { %s399_s15 = scvt.s32.f32 %s398_s30  ;;  %s2203_s16 = sshll.u32 %s375_s14, 2 }
  0x1d   : > { %v405_v20 = vmul.f32 %v2335_v16, %v404_v13  ;;  %v406_v21 = vmul.f32 %v2336_v17, %v404_v13  ;;  %s377_s13 = scalar_lea.vmem %s3426_s2, %s2203_s16  ;;  %s3261_s16 = scalar_lea.vmem %s3429_s5, %s2186_s12 }
  0x1e   : > { %v2338_v24 = vld [vmem:[%s377_s13] sm:$0xff]   ;;  %v487_v25 = vstv %s399_s15 }
  0x1f   : > { %v2903_v15 = vld [vmem:[#allocation2 + $0x8] sm:$0xff]  ;;  %v2908_v18 = vld [vmem:[#allocation2 + $0x10] sm:$0xff]  ;;  %v407_v23 = vpack.c.bf16 %v406_v21, %v405_v20  ;;  %v2339_v26 = vunpack.c.l.bf16 %v2338_v24  ;;  %v2340_v27 = vunpack.c.h.bf16 %v2338_v24 }
  0x20   : > { %2424 = vmatprep.mubr.msk.bf16.mxu1 %vm408_vm1, %v2903_v15  ;;  %v2916_v22 = vld [vmem:[#allocation2 + $0x18] sm:$0xff]  ;;  %v2926_v28 = vld [vmem:[#allocation2 + $0x20] sm:$0xff] }
  0x21   : > { %2425 = vmatmul.mubr.msk.bf16.vlgmr.msra.gmra.mrb[0].mxu1 %vm408_vm1, %v2908_v18  ;;  %409 = vst.msk [vmem:[#allocation2] sm:$0xff] %vm408_vm1, %v407_v23  ;;  %v2928_v29 = vld [vmem:[#allocation2 + $0x28] sm:$0xff]  ;;  %v488_v30 = vmul.f32 %v2339_v26, %v487_v25  ;;  %v489_v31 = vmul.f32 %v2340_v27, %v487_v25  ;;  %v2946_v36 = vld [vmem:[#allocation2 + $0x30] sm:$0xff] }
  0x22   : > { %2428 = vmatprep.mubr.msk.bf16.mxu1 %vm408_vm1, %v2916_v22  ;;  %2585 = vmatpush3.bf16.msra.mxu1 %v871_v3  ;;  %v2950_v37 = vld [vmem:[#allocation2 + $0x38] sm:$0xff]  ;;  %v2959_v38 = vld [vmem:[#allocation2 + $0x40] sm:$0xff] }
  0x23   : > { %2686 = vmatprep.subr.msk.bf16.mxu1 %vm745_vm0, %v2243_v19  ;;  %v490_v32 = vpack.c.bf16 %v489_v31, %v488_v30 }
  0x25   : > { %492 = vst.msk [vmem:[#allocation2 + $0x48] sm:$0xff] %vm408_vm1, %v490_v32 }
  0x28   : > { %v2935_v33 = vld [vmem:[#allocation2] sm:$0xff] }
  0x29   : > { %2429 = vmatmul.mubr.msk.bf16.gmra.mrb[4].mxu1 %vm408_vm1, %v2926_v28  ;;  %2442 = vmatprep.mubr.msk.bf16.mxu0 %vm408_vm1, %v2935_v33 }
  0x2a   : > { %2432 = vmatprep.mubr.msk.bf16.mxu1 %vm408_vm1, %v2928_v29  ;;  %2443 = vmatmul.mubr.msk.bf16.vlgmr.msra.gmra.mrb[0].mxu0 %vm408_vm1, %v2903_v15 }
  0x2b   : > { %2459 = vmatpush3.bf16.msra.mxu0 %v1006_v34  ;;  %2446 = vmatprep.mubr.msk.bf16.mxu0 %vm408_vm1, %v2908_v18 }
  0x2c   : > { %2689 = vmatprep.subr.msk.bf16.mxu0 %vm745_vm0, %v2270_v35  ;;  %v978_v45 = vld [vmem:[#allocation2 + $0x48] sm:$0xff] }
  0x31   : > { %2433 = vmatmul.mubr.msk.bf16.gmra.mrb[8].mxu1 %vm408_vm1, %v2946_v36 }
  0x32   : > { %2436 = vmatprep.mubr.msk.bf16.mxu1 %vm408_vm1, %v2950_v37  ;;  %2447 = vmatmul.mubr.msk.bf16.gmra.mrb[4].mxu0 %vm408_vm1, %v2916_v22 }
  0x33   : > { %2460 = vmatprep.mubr.msk.bf16.mxu0 %vm408_vm1, %v2908_v18 }
  0x39   : > { %2437 = vmatmul.mubr.msk.bf16.gmra.mrb[12].mxu1 %vm408_vm1, %v2959_v38 }
  0x3a   : > { %2450 = vmatprep.mubr.msk.bf16.mxu1 %vm408_vm1, %v2926_v28  ;;  %2461 = vmatmul.mubr.msk.bf16.vlgmr.msra.gmra.mrb[0].mxu0 %vm408_vm1, %v2916_v22 }
  0x3b   : > { %2531 = vmatpush3.bf16.msra.mxu0 %v1529_v39  ;;  %2464 = vmatprep.mubr.msk.bf16.mxu0 %vm408_vm1, %v2926_v28 }
  0x3c   : > { %2690 = vmatprep.subr.msk.bf16.mxu0 %vm745_vm0, %v2269_v40 }
  0x41   : > { %2451 = vmatmul.mubr.msk.bf16.vlgmr.msra.gmra.mrb[8].mxu1 %vm408_vm1, %v2928_v29 }
  0x42   : > { %2454 = vmatprep.mubr.msk.bf16.mxu1 %vm408_vm1, %v2946_v36  ;;  %2477 = vmatpush3.bf16.msra.mxu1 %v1191_v41 }
  0x43   : > { %2687 = vmatprep.subr.msk.bf16.mxu1 %vm745_vm0, %v2242_v42  ;;  %2465 = vmatmul.mubr.msk.bf16.gmra.mrb[4].mxu0 %vm408_vm1, %v2928_v29 }
  0x44   : > { %2468 = vmatprep.mubr.msk.bf16.mxu0 %vm408_vm1, %v2946_v36 }
  0x49   : > { %2455 = vmatmul.mubr.msk.bf16.gmra.mrb[12].mxu1 %vm408_vm1, %v2950_v37 }
  0x4a   : > { %2478 = vmatprep.mubr.msk.bf16.mxu1 %vm408_vm1, %v2903_v15 }
  0x4b   : > { %2469 = vmatmul.mubr.msk.bf16.gmra.mrb[8].mxu0 %vm408_vm1, %v2950_v37 }
  0x4c   : > { %2472 = vmatprep.mubr.msk.bf16.mxu0 %vm408_vm1, %v2959_v38 }
  0x51   : > { %2479 = vmatmul.mubr.msk.bf16.vlgmr.msra.gmra.mrb[16].mxu1 %vm408_vm1, %v2908_v18 }
  0x52   : > { %2482 = vmatprep.mubr.msk.bf16.mxu1 %vm408_vm1, %v2916_v22  ;;  %2495 = vmatpush3.bf16.msra.mxu1 %v1291_v43 }
  0x53   : > { %2688 = vmatprep.subr.msk.bf16.mxu1 %vm745_vm0, %v2260_v44  ;;  %2473 = vmatmul.mubr.msk.bf16.gmra.mrb[12].mxu0 %vm408_vm1, %v978_v45 }
  0x54   : > { %2532 = vmatprep.mubr.msk.bf16.mxu0 %vm408_vm1, %v2903_v15 }
  0x59   : > { %2483 = vmatmul.mubr.msk.bf16.gmra.mrb[20].mxu1 %vm408_vm1, %v2926_v28 }
  0x5a   : > { %2486 = vmatprep.mubr.msk.bf16.mxu1 %vm408_vm1, %v2928_v29 }
  0x5b   : > { %2533 = vmatmul.mubr.msk.bf16.vlgmr.msra.gmra.mrb[16].mxu0 %vm408_vm1, %v2908_v18 }
  0x5c   : > { %2549 = vmatpush3.bf16.msra.mxu0 %v1629_v46  ;;  %2536 = vmatprep.mubr.msk.bf16.mxu0 %vm408_vm1, %v2916_v22 }
  0x5d   : > { %2691 = vmatprep.subr.msk.bf16.mxu0 %vm745_vm0, %v2287_v47 }
  0x61   : > { %2487 = vmatmul.mubr.msk.bf16.gmra.mrb[24].mxu1 %vm408_vm1, %v2946_v36 }
  0x62   : > { %2490 = vmatprep.mubr.msk.bf16.mxu1 %vm408_vm1, %v2950_v37 }
  0x63   : > { %2537 = vmatmul.mubr.msk.bf16.gmra.mrb[20].mxu0 %vm408_vm1, %v2926_v28 }
  0x64   : > { %2540 = vmatprep.mubr.msk.bf16.mxu0 %vm408_vm1, %v2928_v29 }
  0x69   : > { %2491 = vmatmul.mubr.msk.bf16.gmra.mrb[28].mxu1 %vm408_vm1, %v2959_v38 }
  0x6a   : > { %2496 = vmatprep.mubr.msk.bf16.mxu1 %vm408_vm1, %v2935_v33 }
  0x6b   : > { %2541 = vmatmul.mubr.msk.bf16.gmra.mrb[24].mxu0 %vm408_vm1, %v2946_v36 }
  0x6c   : > { %2544 = vmatprep.mubr.msk.bf16.mxu0 %vm408_vm1, %v2950_v37 }
  0x71   : > { %2497 = vmatmul.mubr.msk.bf16.vlgmr.msra.gmra.mrb[16].mxu1 %vm408_vm1, %v2903_v15 }
  0x72   : > { %2500 = vmatprep.mubr.msk.bf16.mxu1 %vm408_vm1, %v2908_v18  ;;  %2513 = vmatpush3.bf16.msra.mxu1 %v1393_v48 }
  0x73   : > { %2545 = vmatmul.mubr.msk.bf16.gmra.mrb[28].mxu0 %vm408_vm1, %v2959_v38 }
  0x74   : > { %2550 = vmatprep.mubr.msk.bf16.mxu0 %vm408_vm1, %v2935_v33 }
  0x79   : > { %2501 = vmatmul.mubr.msk.bf16.gmra.mrb[20].mxu1 %vm408_vm1, %v2916_v22 }
  0x7a   : > { %2504 = vmatprep.mubr.msk.bf16.mxu1 %vm408_vm1, %v2926_v28 }
  0x7b   : > { %2551 = vmatmul.mubr.msk.bf16.vlgmr.msra.gmra.mrb[16].mxu0 %vm408_vm1, %v2903_v15 }
  0x7c   : > { %2567 = vmatpush3.bf16.msra.mxu0 %v1731_v49  ;;  %2554 = vmatprep.mubr.msk.bf16.mxu0 %vm408_vm1, %v2908_v18 }
  0x81   : > { %2505 = vmatmul.mubr.msk.bf16.gmra.mrb[24].mxu1 %vm408_vm1, %v2928_v29 }
  0x82   : > { %2508 = vmatprep.mubr.msk.bf16.mxu1 %vm408_vm1, %v2946_v36 }
  0x83   : > { %2555 = vmatmul.mubr.msk.bf16.gmra.mrb[20].mxu0 %vm408_vm1, %v2916_v22 }
  0x84   : > { %2558 = vmatprep.mubr.msk.bf16.mxu0 %vm408_vm1, %v2926_v28 }
  0x89   : > { %2509 = vmatmul.mubr.msk.bf16.gmra.mrb[28].mxu1 %vm408_vm1, %v2950_v37 }
  0x8a   : > { %2514 = vmatprep.mubr.msk.bf16.mxu1 %vm408_vm1, %v2908_v18 }
  0x8b   : > { %2559 = vmatmul.mubr.msk.bf16.gmra.mrb[24].mxu0 %vm408_vm1, %v2928_v29 }
  0x8c   : > { %2562 = vmatprep.mubr.msk.bf16.mxu0 %vm408_vm1, %v2946_v36 }
  0x91   : > { %2515 = vmatmul.mubr.msk.bf16.vlgmr.msra.gmra.mrb[16].mxu1 %vm408_vm1, %v2916_v22 }
  0x92   : > { %2518 = vmatprep.mubr.msk.bf16.mxu1 %vm408_vm1, %v2926_v28 }
  0x93   : > { %2563 = vmatmul.mubr.msk.bf16.gmra.mrb[28].mxu0 %vm408_vm1, %v2950_v37 }
  0x94   : > { %2568 = vmatprep.mubr.msk.bf16.mxu0 %vm408_vm1, %v2908_v18 }
  0x99   : > { %2519 = vmatmul.mubr.msk.bf16.gmra.mrb[20].mxu1 %vm408_vm1, %v2928_v29 }
  0x9a   : > { %2522 = vmatprep.mubr.msk.bf16.mxu1 %vm408_vm1, %v2946_v36 }
  0x9b   : > { %2569 = vmatmul.mubr.msk.bf16.vlgmr.msra.gmra.mrb[16].mxu0 %vm408_vm1, %v2916_v22 }
  0x9c   : > { %2572 = vmatprep.mubr.msk.bf16.mxu0 %vm408_vm1, %v2926_v28 }
  0xa1   : > { %2523 = vmatmul.mubr.msk.bf16.gmra.mrb[24].mxu1 %vm408_vm1, %v2950_v37 }
  0xa2   : > { %2526 = vmatprep.mubr.msk.bf16.mxu1 %vm408_vm1, %v2959_v38 }
  0xa3   : > { %2573 = vmatmul.mubr.msk.bf16.gmra.mrb[20].mxu0 %vm408_vm1, %v2928_v29 }
  0xa4   : > { %2576 = vmatprep.mubr.msk.bf16.mxu0 %vm408_vm1, %v2946_v36 }
  0xa9   : > { %2527 = vmatmul.mubr.msk.bf16.gmra.mrb[28].mxu1 %vm408_vm1, %v978_v45 }
  0xab   : > { %2577 = vmatmul.mubr.msk.bf16.gmra.mrb[24].mxu0 %vm408_vm1, %v2950_v37 }
  0xac   : > { %2580 = vmatprep.mubr.msk.bf16.mxu0 %vm408_vm1, %v2959_v38 }
  0xb3   : > { %2581 = vmatmul.mubr.msk.bf16.gmra.mrb[28].mxu0 %vm408_vm1, %v978_v45 }
  0xf4   : > { %v2426_v50 = vpop.f32.mrb[0].mxu1 }
  0xf5   : > { %v783_v51 = vpop.f32.mrb[1].mxu1 }
  0xf6   : > { %v2427_v52 = vpop.f32.mrb[2].mxu1 }
  0xf7   : > { %v786_v53 = vpop.f32.mrb[3].mxu1 }
  0xfc   : > { %v2430_v54 = vpop.f32.mrb[4].mxu1 }
  0xfd   : > { %v799_v55 = vpop.f32.mrb[5].mxu1 }
  0xfe   : > { %v2431_v56 = vpop.f32.mrb[6].mxu1 }
  0xff   : > { %v802_v57 = vpop.f32.mrb[7].mxu1 }
 0x10d   : > { %v2462_v59 = vpop.f32.mrb[0].mxu0 }
 0x10e   : > { %v2586_v60 = vadd.f32 %v2462_v59, %v2426_v50  ;;  %v1042_v61 = vpop.f32.mrb[1].mxu0 }
 0x10f   : > { %v3102_v62 = vadd.f32 %v1042_v61, %v783_v51  ;;  %v2463_v63 = vpop.f32.mrb[2].mxu0 }
 0x110   : > { %v2588_v1 = vadd.f32 %v2463_v63, %v2427_v52  ;;  %v1045_v2 = vpop.f32.mrb[3].mxu0  ;;  %v1139_v6 = vrot.slane %v2586_v60, 7 }
 0x111   : > { %v2589_v4 = vadd.f32 %v1045_v2, %v786_v53  ;;  %v1137_v9 = vrot.slane %v3102_v62, 7 }
 0x112   : > { %v1140_v7 = vrot.slane %v2588_v1, 7 }
 0x113   : > { %v1138_v10 = vrot.slane %v2589_v4, 7 }
 0x114   : > { %v2452_v3 = vpop.f32.mrb[8].mxu1  ;;  %v3110_v12 = vsel %vm1153_vm2, %v1139_v6, %v1140_v7 }
 0x115   : > { %v939_v5 = vpop.f32.mrb[9].mxu1  ;;  %v3114_v14 = vsel %vm1153_vm2, %v1138_v10, %v1139_v6  ;;  %v3118_v15 = vsel %vm1153_vm2, %v1137_v9, %v1138_v10 }
 0x116   : > { %v2453_v8 = vpop.f32.mrb[10].mxu1  ;;  %v2466_v13 = vpop.f32.mrb[4].mxu0 }
 0x117   : > { %v942_v11 = vpop.f32.mrb[11].mxu1  ;;  %v2590_v16 = vadd.f32 %v2466_v13, %v2430_v54  ;;  %v1058_v17 = vpop.f32.mrb[5].mxu0 }
 0x118   : > { %v2591_v18 = vadd.f32 %v1058_v17, %v799_v55  ;;  %v2467_v19 = vpop.f32.mrb[6].mxu0 }
 0x119   : > { %v2592_v20 = vadd.f32 %v2467_v19, %v2431_v56  ;;  %v1061_v21 = vpop.f32.mrb[7].mxu0  ;;  %v1143_v26 = vrot.slane %v2590_v16, 7 }
 0x11a   : > { %v1141_v23 = vrot.slane %v2591_v18, 7  ;;  %v2593_v24 = vadd.f32 %v1061_v21, %v802_v57 }
 0x11b   : > { %v1144_v27 = vrot.slane %v2592_v20, 7 }
 0x11c   : > { %v2456_v22 = vpop.f32.mrb[12].mxu1  ;;  %v1142_v29 = vrot.slane %v2593_v24, 7  ;;  %v3122_v31 = vsel %vm1153_vm2, %v1140_v7, %v1141_v23  ;;  %v514_v7 = vand.u32 15, %v3104_v0 }
 0x11d   : > { %v955_v25 = vpop.f32.mrb[13].mxu1  ;;  %v3126_v32 = vsel %vm1153_vm2, %v1143_v26, %v1144_v27 }
 0x11e   : > { %v2457_v28 = vpop.f32.mrb[14].mxu1  ;;  %v2470_v33 = vpop.f32.mrb[8].mxu0  ;;  %v1163_v34 = vsel %vm1153_vm2, %v1142_v29, %v1143_v26  ;;  %v3132_v35 = vsel %vm1153_vm2, %v1141_v23, %v1142_v29  ;;  %vm1121_vm4 = vcmp.eq.s32.totalorder %v514_v7, 0  ;;  %v495_v26 = vadd.s32 8, %v3104_v0 }
 0x11f   : > { %v958_v30 = vpop.f32.mrb[15].mxu1  ;;  %v2594_v36 = vadd.f32 %v2470_v33, %v2452_v3  ;;  %v1074_v37 = vpop.f32.mrb[9].mxu0 }
 0x120   : > { %v2595_v38 = vadd.f32 %v1074_v37, %v939_v5  ;;  %v2471_v39 = vpop.f32.mrb[10].mxu0  ;;  %v496_v5 = vadd.s32 16, %v3104_v0 }
 0x121   : > { %v2596_v40 = vadd.f32 %v2471_v39, %v2453_v8  ;;  %v1077_v41 = vpop.f32.mrb[11].mxu0  ;;  %v1147_v44 = vrot.slane %v2594_v36, 7  ;;  %v500_v8 = vadd.s32 48, %v3104_v0 }
 0x122   : > { %v1145_v42 = vrot.slane %v2595_v38, 7  ;;  %v2597_v43 = vadd.f32 %v1077_v41, %v942_v11  ;;  %v528_v6 = vand.u32 15, %v496_v5 }
 0x123   : > { %v1148_v45 = vrot.slane %v2596_v40, 7  ;;  %v556_v18 = vand.u32 15, %v500_v8  ;;  %v521_v40 = vand.u32 15, %v495_v26  ;;  %v3228_v8 = vld [vmem:[%s3428_s4] ss:$0 sm:$0xff] }
 0x124   : > { %v1146_v46 = vrot.slane %v2597_v43, 7  ;;  %v3136_v47 = vsel %vm1153_vm2, %v1144_v27, %v1145_v42  ;;  %vm1123_vm3 = vcmp.eq.s32.totalorder %v528_v6, 0  ;;  %v506_v27 = vadd.s32 96, %v3104_v0 }
 0x125   : > { %v3140_v48 = vsel %vm1153_vm2, %v1147_v44, %v1148_v45  ;;  %v1172_v10 = vsel %vm1123_vm3, 0.0, %v3114_v14  ;;  %vm1127_vm5 = vcmp.eq.s32.totalorder %v556_v18, 0  ;;  %v502_v14 = vadd.s32 64, %v3104_v0 }
 0x126   : > { %v2474_v49 = vpop.f32.mrb[12].mxu0  ;;  %v3144_v50 = vsel %vm1153_vm2, %v1146_v46, %v1147_v44  ;;  %v3148_v51 = vsel %vm1153_vm2, %v1145_v42, %v1146_v46  ;;  %v508_v42 = vadd.s32 112, %v3104_v0  ;;  %v598_v43 = vand.u32 15, %v506_v27 }
 0x127   : > { %v2598_v52 = vadd.f32 %v2474_v49, %v2456_v22  ;;  %v1090_v53 = vpop.f32.mrb[13].mxu0  ;;  %v570_v38 = vand.u32 15, %v502_v14  ;;  %v497_v44 = vadd.s32 24, %v3104_v0  ;;  %v499_v49 = vadd.s32 40, %v3104_v0 }
 0x128   : > { %v2599_v54 = vadd.f32 %v1090_v53, %v955_v25  ;;  %v2475_v55 = vpop.f32.mrb[14].mxu0  ;;  %v504_v25 = vadd.s32 80, %v3104_v0  ;;  %vm3206_vm10 = vcmp.eq.s32.totalorder %v521_v40, 15  ;;  %v612_v53 = vand.u32 15, %v508_v42 }
 0x129   : > { %v2600_v56 = vadd.f32 %v2475_v55, %v2457_v28  ;;  %v1093_v57 = vpop.f32.mrb[15].mxu0  ;;  %v1151_v60 = vrot.slane %v2598_v52, 7  ;;  %v1176_v28 = vsel %vm1127_vm5, 0.0, %v1163_v34  ;;  %vm3200_vm8 = vcmp.eq.s32.totalorder %v570_v38, 0 }
 0x12a   : > { %v1149_v58 = vrot.slane %v2599_v54, 7  ;;  %v2601_v59 = vadd.f32 %v1093_v57, %v958_v30  ;;  %v584_v36 = vand.u32 15, %v504_v25  ;;  %vm3210_vm11 = vcmp.eq.s32.totalorder %v598_v43, 0 }
 0x12b   : > { %v1152_v61 = vrot.slane %v2600_v56, 7  ;;  %v1178_v5 = vsel %vm3200_vm8, 0.0, %v3136_v47  ;;  %vm3247_vm12 = vcmp.eq.s32.totalorder %v612_v53, 0 }
 0x12c   : > { %v1150_v62 = vrot.slane %v2601_v59, 7  ;;  %v3152_v63 = vsel %vm1153_vm2, %v1148_v45, %v1149_v58  ;;  %vm3194_vm7 = vcmp.eq.s32.totalorder %v584_v36, 0 }
 0x12d   : > { %v1169_v1 = vsel %vm1153_vm2, %v1152_v61, %v1137_v9  ;;  %v3158_v2 = vsel %vm1153_vm2, %v1151_v60, %v1152_v61  ;;  %v498_v9 = vadd.s32 32, %v3104_v0  ;;  %v1182_v38 = vsel %vm3210_vm11, 0.0, %v3152_v63 }
 0x12e   : > { %v3162_v3 = vsel %vm1153_vm2, %v1150_v62, %v1151_v60  ;;  %v3166_v4 = vsel %vm1153_vm2, %v1149_v58, %v1150_v62  ;;  %v1170_v16 = vsel %vm1121_vm4, 0.0, %v1169_v1  ;;  %v1180_v58 = vsel %vm3194_vm7, 0.0, %v3144_v50 }
 0x12f   : > { %v542_v21 = vand.u32 15, %v498_v9  ;;  %v535_v60 = vand.u32 15, %v497_v44  ;;  %v1184_v44 = vsel %vm3247_vm12, 0.0, %v3162_v3 }
 0x131   : > { %vm1125_vm6 = vcmp.eq.s32.totalorder %v542_v21, 0  ;;  %vm3252_vm14 = vcmp.eq.s32.totalorder %v535_v60, 15 }
 0x164   : > { %v2516_v11 = vpop.f32.mrb[16].mxu1 }
 0x165   : > { %v1510_v13 = vadd.f32 %v2516_v11, %v1172_v10  ;;  %v1429_v17 = vpop.f32.mrb[17].mxu1  ;;  %v549_v10 = vand.u32 15, %v499_v49  ;;  %v501_v11 = vadd.s32 56, %v3104_v0 }
 0x166   : > { %v1508_v19 = vadd.f32 %v1429_v17, %v1170_v16  ;;  %v2517_v20 = vpop.f32.mrb[18].mxu1 }
 0x167   : > { %v3174_v22 = vadd.f32 %v2517_v20, %v3110_v12  ;;  %v1432_v23 = vpop.f32.mrb[19].mxu1  ;;  %v1174_v12 = vsel %vm1125_vm6, 0.0, %v3122_v31  ;;  %vm3264_vm15 = vcmp.eq.s32.totalorder %v549_v10, 15 }
 0x168   : > { %v1509_v24 = vadd.f32 %v1432_v23, %v3118_v15 }
 0x16c   : > { %v2520_v29 = vpop.f32.mrb[20].mxu1 }
 0x16d   : > { %v3181_v30 = vadd.f32 %v2520_v29, %v1176_v28  ;;  %v1445_v33 = vpop.f32.mrb[21].mxu1  ;;  %v503_v29 = vadd.s32 72, %v3104_v0  ;;  %v507_v28 = vadd.s32 104, %v3104_v0 }
 0x16e   : > { %v3184_v37 = vadd.f32 %v1445_v33, %v1174_v12  ;;  %v2521_v15 = vpop.f32.mrb[22].mxu1  ;;  %v2570_v31 = vpop.f32.mrb[16].mxu0 }
 0x16f   : > { %v3187_v39 = vadd.f32 %v2521_v15, %v3126_v32  ;;  %v1448_v41 = vpop.f32.mrb[23].mxu1  ;;  %v3198_v46 = vpop.f32.mrb[17].mxu0  ;;  %v1864_v55 = vrot.slane %v2570_v31, 1 }
 0x170   : > { %v3191_v34 = vadd.f32 %v1448_v41, %v3132_v35  ;;  %v2571_v52 = vpop.f32.mrb[18].mxu0  ;;  %v1862_v61 = vrot.slane %v3198_v46, 1 }
 0x171   : > { %v1865_v56 = vrot.slane %v2571_v52, 1  ;;  %v1770_v57 = vpop.f32.mrb[19].mxu0 }
 0x172   : > { %v1863_v62 = vrot.slane %v1770_v57, 1 }
 0x173   : > { %v1891_v7 = vsel %vm1878_vm9, %v1864_v55, %v1865_v56 }
 0x174   : > { %v2524_v59 = vpop.f32.mrb[24].mxu1  ;;  %v1913_v16 = vadd.f32 %v1891_v7, %v1510_v13  ;;  %v1892_v47 = vsel %vm1878_vm9, %v1863_v62, %v1864_v55  ;;  %v1893_v17 = vsel %vm1878_vm9, %v1862_v61, %v1863_v62  ;;  %v577_v55 = vand.u32 15, %v503_v29 }
 0x175   : > { %v3218_v1 = vadd.f32 %v2524_v59, %v1180_v58  ;;  %v1461_v6 = vpop.f32.mrb[25].mxu1  ;;  %v1896_v21 = vsel %vm3206_vm10, 0.0, %v1892_v47  ;;  %v1911_v23 = vadd.f32 %v1893_v17, %v1508_v19 }
 0x176   : > { %v3230_v50 = vadd.f32 %v1461_v6, %v1178_v5  ;;  %v2525_v9 = vpop.f32.mrb[26].mxu1  ;;  %v1936_v14 = vadd.f32 %v3228_v8, %v1913_v16  ;;  %v1912_v26 = vadd.f32 %v1896_v21, %v1509_v24  ;;  %v2574_v27 = vpop.f32.mrb[20].mxu0  ;;  %v563_v24 = vand.u32 15, %v501_v11 }
 0x177   : > { %v3240_v18 = vadd.f32 %v2525_v9, %v3140_v48  ;;  %v1464_v20 = vpop.f32.mrb[27].mxu1  ;;  %v1783_v19 = vpop.f32.mrb[21].mxu0  ;;  %v1868_v41 = vrot.slane %v2574_v27, 1  ;;  %vm3315_vm1 = vcmp.eq.s32.totalorder %v577_v55, 15  ;;  %v509_v27 = vadd.s32 120, %v3104_v0 }
 0x178   : > { %v3245_v25 = vadd.f32 %v1464_v20, %v3148_v51  ;;  %v1934_v51 = vadd.f32 %v3228_v8, %v1911_v23  ;;  %v2319_v12 = vpack.c.bf16 %v1936_v14, %v1936_v14  ;;  %v1935_v33 = vadd.f32 %v3228_v8, %v1912_v26  ;;  %v2575_v15 = vpop.f32.mrb[22].mxu0 }
 0x179   : > { %v1866_v36 = vrot.slane %v1783_v19, 1  ;;  %v1869_v42 = vrot.slane %v2575_v15, 1  ;;  %v1786_v43 = vpop.f32.mrb[23].mxu0  ;;  %vm3311_vm0 = vcmp.eq.s32.totalorder %v563_v24, 15 }
 0x17a   : > { %v2317_v40 = vpack.c.bf16 %v1934_v51, %v1934_v51  ;;  %2017 = vst.msk [vmem:[%s3261_s16 + $0x8] sm:$0xf] %vm2014_vm13, %v2319_v12  ;;  %v2318_v45 = vpack.c.bf16 %v1935_v33, %v1935_v33  ;;  %v1867_v49 = vrot.slane %v1786_v43, 1 }
 0x17b   : > { %v1890_v32 = vsel %vm1878_vm9, %v1865_v56, %v1866_v36  ;;  %v1887_v53 = vsel %vm1878_vm9, %v1868_v41, %v1869_v42 }
 0x17c   : > { %v2528_v31 = vpop.f32.mrb[28].mxu1  ;;  %2015 = vst.msk [vmem:[%s3261_s16] sm:$0xf] %vm2014_vm13, %v2317_v40  ;;  %v1898_v35 = vsel %vm3252_vm14, 0.0, %v1890_v32  ;;  %2016 = vst.msk [vmem:[%s3261_s16 + $0x4] sm:$0xf] %vm2014_vm13, %v2318_v45  ;;  %v1917_v57 = vadd.f32 %v1887_v53, %v3181_v30  ;;  %v1888_v58 = vsel %vm1878_vm9, %v1867_v49, %v1868_v41  ;;  %v1889_v59 = vsel %vm1878_vm9, %v1866_v36, %v1867_v49 }
 0x17d   : > { %v3280_v52 = vadd.f32 %v2528_v31, %v1184_v44  ;;  %v1477_v63 = vpop.f32.mrb[29].mxu1  ;;  %v1914_v56 = vadd.f32 %v1898_v35, %v3174_v22  ;;  %v1900_v62 = vsel %vm3264_vm15, 0.0, %v1888_v58  ;;  %v1915_v5 = vadd.f32 %v1889_v59, %v3184_v37 }
 0x17e   : > { %v3288_v3 = vadd.f32 %v1477_v63, %v1182_v38  ;;  %v2529_v54 = vpop.f32.mrb[30].mxu1  ;;  %v1940_v30 = vadd.f32 %v3228_v8, %v1917_v57  ;;  %v1916_v9 = vadd.f32 %v1900_v62, %v3191_v34  ;;  %v2578_v10 = vpop.f32.mrb[24].mxu0  ;;  %v605_v31 = vand.u32 15, %v507_v28 }
 0x17f   : > { %v1480_v60 = vpop.f32.mrb[31].mxu1  ;;  %v3302_v6 = vadd.f32 %v2529_v54, %v3158_v2  ;;  %v1937_v22 = vadd.f32 %v3228_v8, %v1914_v56  ;;  %v1938_v11 = vadd.f32 %v3228_v8, %v1915_v5  ;;  %v1799_v16 = vpop.f32.mrb[25].mxu0  ;;  %v1872_v13 = vrot.slane %v2578_v10, 1 }
 0x180   : > { %v3305_v7 = vadd.f32 %v1480_v60, %v3166_v4  ;;  %v505_v4 = vadd.s32 88, %v3104_v0  ;;  %v2323_v17 = vpack.c.bf16 %v1940_v30, %v1940_v30  ;;  %v1939_v34 = vadd.f32 %v3228_v8, %v1916_v9  ;;  %v2579_v21 = vpop.f32.mrb[26].mxu0 }
 0x181   : > { %v2320_v47 = vpack.c.bf16 %v1937_v22, %v1937_v22  ;;  %v1870_v20 = vrot.slane %v1799_v16, 1  ;;  %v2321_v23 = vpack.c.bf16 %v1938_v11, %v1938_v11  ;;  %v1873_v14 = vrot.slane %v2579_v21, 1  ;;  %v1802_v26 = vpop.f32.mrb[27].mxu0 }
 0x182   : > { %2021 = vst.msk [vmem:[%s3261_s16 + $0x18] sm:$0xf] %vm2014_vm13, %v2323_v17  ;;  %v2322_v48 = vpack.c.bf16 %v1939_v34, %v1939_v34  ;;  %v1871_v19 = vrot.slane %v1802_v26, 1  ;;  %v591_v12 = vand.u32 15, %v505_v4  ;;  %vm3365_vm4 = vcmp.eq.s32.totalorder %v605_v31, 15 }
 0x183   : > { %2018 = vst.msk [vmem:[%s3261_s16 + $0xc] sm:$0xf] %vm2014_vm13, %v2320_v47  ;;  %v1886_v51 = vsel %vm1878_vm9, %v1869_v42, %v1870_v20  ;;  %2019 = vst.msk [vmem:[%s3261_s16 + $0x10] sm:$0xf] %vm2014_vm13, %v2321_v23  ;;  %v1883_v29 = vsel %vm1878_vm9, %v1872_v13, %v1873_v14  ;;  %v619_v42 = vand.u32 15, %v509_v27 }
 0x184   : > { %v1902_v24 = vsel %vm3311_vm0, 0.0, %v1886_v51  ;;  %2020 = vst.msk [vmem:[%s3261_s16 + $0x14] sm:$0xf] %vm2014_vm13, %v2322_v48  ;;  %v1921_v36 = vadd.f32 %v1883_v29, %v3218_v1  ;;  %v1884_v15 = vsel %vm1878_vm9, %v1871_v19, %v1872_v13  ;;  %v1885_v38 = vsel %vm1878_vm9, %v1870_v20, %v1871_v19 }
 0x185   : > { %v1918_v33 = vadd.f32 %v1902_v24, %v3187_v39  ;;  %v1904_v40 = vsel %vm3315_vm1, 0.0, %v1884_v15  ;;  %v1919_v41 = vadd.f32 %v1885_v38, %v3230_v50  ;;  %vm3350_vm2 = vcmp.eq.s32.totalorder %v591_v12, 15 }
 0x186   : > { %v1944_v44 = vadd.f32 %v3228_v8, %v1921_v36  ;;  %v1920_v39 = vadd.f32 %v1904_v40, %v3245_v25  ;;  %v2582_v1 = vpop.f32.mrb[28].mxu0  ;;  %vm3355_vm3 = vcmp.eq.s32.totalorder %v619_v42, 15 }
 0x187   : > { %v1941_v43 = vadd.f32 %v3228_v8, %v1918_v33  ;;  %v1942_v45 = vadd.f32 %v3228_v8, %v1919_v41  ;;  %v1815_v32 = vpop.f32.mrb[29].mxu0  ;;  %v1876_v55 = vrot.slane %v2582_v1, 1 }
 0x188   : > { %v2327_v50 = vpack.c.bf16 %v1944_v44, %v1944_v44  ;;  %v1943_v35 = vadd.f32 %v3228_v8, %v1920_v39  ;;  %v1874_v53 = vrot.slane %v1815_v32, 1  ;;  %v2583_v54 = vpop.f32.mrb[30].mxu0 }
 0x189   : > { %v2324_v63 = vpack.c.bf16 %v1941_v43, %v1941_v43  ;;  %v2325_v25 = vpack.c.bf16 %v1942_v45, %v1942_v45  ;;  %v1877_v57 = vrot.slane %v2583_v54, 1  ;;  %v1818_v58 = vpop.f32.mrb[31].mxu0 }
 0x18a   : > { %2025 = vst.msk [vmem:[%s3261_s16 + $0x28] sm:$0xf] %vm2014_vm13, %v2327_v50  ;;  %v2326_v59 = vpack.c.bf16 %v1943_v35, %v1943_v35  ;;  %v1882_v60 = vsel %vm1878_vm9, %v1873_v14, %v1874_v53  ;;  %v1875_v5 = vrot.slane %v1818_v58, 1 }
 0x18b   : > { %2022 = vst.msk [vmem:[%s3261_s16 + $0x1c] sm:$0xf] %vm2014_vm13, %v2324_v63  ;;  %2023 = vst.msk [vmem:[%s3261_s16 + $0x20] sm:$0xf] %vm2014_vm13, %v2325_v25  ;;  %v1906_v22 = vsel %vm3350_vm2, 0.0, %v1882_v60  ;;  %v1879_v30 = vsel %vm1878_vm9, %v1876_v55, %v1877_v57  ;;  %v1894_v9 = vsel %vm1878_vm9, %v1877_v57, %v1862_v61 }
 0x18c   : > { %2024 = vst.msk [vmem:[%s3261_s16 + $0x24] sm:$0xf] %vm2014_vm13, %v2326_v59  ;;  %v1922_v10 = vadd.f32 %v1906_v22, %v3240_v18  ;;  %v1910_v11 = vsel %vm3355_vm3, 0.0, %v1894_v9  ;;  %v1925_v16 = vadd.f32 %v1879_v30, %v3280_v52  ;;  %v1880_v37 = vsel %vm1878_vm9, %v1875_v5, %v1876_v55 }
 0x18d   : > { %v1926_v2 = vadd.f32 %v1910_v11, %v3302_v6  ;;  %v1881_v46 = vsel %vm1878_vm9, %v1874_v53, %v1875_v5  ;;  %v1908_v61 = vsel %vm3365_vm4, 0.0, %v1880_v37 }
 0x18e   : > { %v1945_v18 = vadd.f32 %v3228_v8, %v1922_v10  ;;  %v1948_v4 = vadd.f32 %v3228_v8, %v1925_v16  ;;  %v1923_v52 = vadd.f32 %v1881_v46, %v3288_v3  ;;  %v1924_v47 = vadd.f32 %v1908_v61, %v3305_v7 }
 0x18f   : > { %v1949_v17 = vadd.f32 %v3228_v8, %v1926_v2 }
 0x190   : > { %v2328_v6 = vpack.c.bf16 %v1945_v18, %v1945_v18  ;;  %v2331_v34 = vpack.c.bf16 %v1948_v4, %v1948_v4  ;;  %v1946_v0 = vadd.f32 %v3228_v8, %v1923_v52  ;;  %v1947_v20 = vadd.f32 %v3228_v8, %v1924_v47 }
 0x191   : > { %v2332_v21 = vpack.c.bf16 %v1949_v17, %v1949_v17 }
 0x192   : > { %2026 = vst.msk [vmem:[%s3261_s16 + $0x2c] sm:$0xf] %vm2014_vm13, %v2328_v6  ;;  %2029 = vst.msk [vmem:[%s3261_s16 + $0x38] sm:$0xf] %vm2014_vm13, %v2331_v34  ;;  %v2329_v23 = vpack.c.bf16 %v1946_v0, %v1946_v0  ;;  %v2330_v13 = vpack.c.bf16 %v1947_v20, %v1947_v20 }
 0x193   : > { %2030 = vst.msk [vmem:[%s3261_s16 + $0x3c] sm:$0xf] %vm2014_vm13, %v2332_v21 }
 0x194   : > { %2027 = vst.msk [vmem:[%s3261_s16 + $0x30] sm:$0xf] %vm2014_vm13, %v2329_v23  ;;  %2028 = vst.msk [vmem:[%s3261_s16 + $0x34] sm:$0xf] %vm2014_vm13, %v2330_v13 }
 0x195 PF: > { %s15_s22 = sadd.s32 1, %s2778_s22   ;;  %s3455_s18 = smov %s2770_s20 }
 0x196   : > { %p12_p12 = scmp.ge.s32.totalorder %s15_s22, 6   ;;  %s3456_s19 = smov %s2774_s21 }
 0x197   : > { %s3457_s20 = smov %s3460_s23  ;;  %s3458_s21 = smov %s3464_s24 }
 0x198   :  { %14 = sbr.rel (!%p12_p12) target bundleno = 3 (0x3), region = 87 }

// kernel: rcan_forward_pallas.20
= control target key start
LH: loop header
LB: loop body
LE: loop exit
PB: predicated region body
PF: predicated region fallthrough
CT: control target
= control target key end

     0   :  { %s3309_s13 = smov 0   ;;  %s3311_s14 = smov 0   ;;  %s3991_s0 = inlined_call_operand.vmem [shape: bf16[2,16,16,16], index: 0, kind: input, shape index: {}, may-alias: {0,1,2}]   ;;  %s3992_s1 = inlined_call_operand.vmem [shape: bf16[2,16,16,16], index: 1, kind: input, shape index: {}, may-alias: {0,1,2}]   ;;  %s3993_s2 = inlined_call_operand.vmem [shape: bf16[2,16,16,16], index: 2, kind: input, shape index: {}, may-alias: {0,1,2}]   ;;  %s3994_s3 = inlined_call_operand.vmem [shape: bf16[9,16,16], index: 3, kind: input, shape index: {}]   ;;  %s3995_s4 = inlined_call_operand.vmem [shape: f32[1,16], index: 4, kind: input, shape index: {}]   ;;  %s3996_s5 = inlined_call_operand.vmem [shape: f32[16,4], index: 5, kind: input, shape index: {}]   ;;  %s3997_s6 = inlined_call_operand.vmem [shape: f32[1,4], index: 6, kind: input, shape index: {}]   ;;  %s3998_s7 = inlined_call_operand.vmem [shape: f32[4,16], index: 7, kind: input, shape index: {}]   ;;  %s3999_s8 = inlined_call_operand.vmem [shape: f32[1,16], index: 8, kind: input, shape index: {}]   ;;  %s4000_s9 = inlined_call_operand.vmem [shape: bf16[2,16,16,16], index: 9, kind: output, shape index: {0}]   ;;  %s4001_s10 = inlined_call_operand.vmem [shape: f32[2,1,16], index: 10, kind: output, shape index: {1}]  }
   0x1   :  { %s3313_s15 = smov 0   ;;  %s3315_s16 = smov 0  }
   0x2   :  { %s3317_s17 = smov 0  }
   0x3 LB: > { %4003 = sst [smem:[#allocation4_spill]] %s3244_s16  ;;  %s30_s18 = sadd.s32 1, %s3240_s15  ;;  %s3248_s17 = sphi %s3317_s17, %s21_s17   ;;  %s3244_s16 = sphi %s3315_s16, %s4023_s16   ;;  %s3240_s15 = sphi %s3313_s15, %s4025_s15   ;;  %s3236_s14 = sphi %s3311_s14, %s4021_s14   ;;  %s3232_s13 = sphi %s3309_s13, %s4024_s13  }
   0x4   : > { %s33_s19 = sadd.s32 1, %s3244_s16  ;;  %p31_p0 = scmp.ge.s32.totalorder %s30_s18, 2 }
   0x5   : > { %p2603_p1 = scmp.ge.s32.totalorder %s3248_s17, 1  ;;  %p401_p2 = scmp.lt.s32.totalorder %s3248_s17, 5 }
   0x6   : > { %s4027_s18 = smov (%p31_p0, %s30_s18), 0  ;;  %s4029_s19 = smov (!%p31_p0, %s33_s19), %s3244_s16 }
   0x7   : > { %4004 = sst [smem:[#allocation5_spill]] %s4027_s18  ;;  %p402_p3 = pnand %p2603_p1, %p401_p2 }
   0x8   : > { %p35_p4 = scmp.ge.s32.totalorder %s4029_s19, 2  ;;  %v3189_v0 = vld [vmem:[%s3994_s3 + $0x18] sm:$0xff] (!%p402_p3)   ;;  %s3345_s22 = sshll.u32 (!%p402_p3), %s3232_s13, 3  ;;  %v3351_v1 = vld [vmem:[%s3994_s3] sm:$0xff] (!%p402_p3)   ;;  %v3361_v2 = vld [vmem:[%s3994_s3 + $0x30] sm:$0xff] (!%p402_p3)   ;;  %vm552_vm0 = vcmask (!%p402_p3), 130048   ;;  %v637_v49 = vlaneseq (!%p402_p3) }
   0x9   : > { %405 = sbr.rel (%p402_p3) target bundleno = 925 (0x39d), region = 56  ;;  %p479_p5 = scmp.lt.s32.totalorder (!%p402_p3), %s3236_s14, 1  ;;  %2870 = vmatprep.subr.bf16.mxu1 (!%p402_p3), %v3189_v0  ;;  %2888 = vmatprep.subr.bf16.mxu0 (!%p402_p3), %v3351_v1  ;;  %v3201_v16 = vld [vmem:[%s3994_s3 + $0x20] sm:$0xff] (!%p402_p3)   ;;  %v3198_v32 = vld [vmem:[%s3994_s3 + $0x28] sm:$0xff] (!%p402_p3)   ;;  %v3202_v36 = vld [vmem:[%s3994_s3 + $0x10] sm:$0xff] (!%p402_p3)  }
   0xa   : > { %s4031_s19 = smov (%p35_p4, %s4029_s19), 0  ;;  %p481_p6 = scmp.lt.s32.totalorder (!%p402_p3), %s3345_s22, 15  ;;  %2871 = vmatpush3.bf16.msra.mxu1 (!%p402_p3), %v3189_v0  ;;  %2889 = vmatpush3.bf16.msra.mxu0 (!%p402_p3), %v3351_v1  ;;  %v3203_v37 = vld [vmem:[%s3994_s3 + $0x8] sm:$0xff] (!%p402_p3)   ;;  %v3205_v38 = vld [vmem:[%s3994_s3 + $0x38] sm:$0xff] (!%p402_p3)   ;;  %v3204_v40 = vld [vmem:[%s3994_s3 + $0x40] sm:$0xff] (!%p402_p3)   ;;  %v3593_v55 = vshrl.u32 (!%p402_p3), %v637_v49, 7 }
   0xb   : > { %4005 = sst [smem:[#allocation6_spill]] %s4031_s19  ;;  %s2609_s25 = sadd.s32 (!%p402_p3), 4294967295, %s3345_s22  ;;  %3047 = vmatprep.subr.bf16.mxu1 (!%p402_p3), %v3351_v1  ;;  %2906 = vmatprep.subr.bf16.mxu0 (!%p402_p3), %v3361_v2 }
   0xc   : > { %p538_p7 = scmp.gt.s32.totalorder (!%p402_p3), %s3232_s13, 0  ;;  %p491_p8 = scmp.gt.s32.totalorder (!%p402_p3), %s2609_s25, 0  ;;  %vm1308_vm1 = vcmp.lt.s32.totalorder (!%p402_p3), %v3593_v55, 1  ;;  %vm2057_vm8 = vcmp.lt.s32.totalorder (!%p402_p3), %v3593_v55, 7 }
   0xd   : > { %p2610_p9 = scmp.lt.s32.totalorder (!%p402_p3), %s2609_s25, 15  ;;  %s507_s24 = sadd.s32 (!%p402_p3), 8, %s3345_s22 }
   0xe   : > { %p3386_p10 = scmp.lt.s32.totalorder (!%p402_p3), %s507_s24, 15  ;;  %p541_p11 = scmp.lt.s32.totalorder (!%p402_p3), %s3232_s13, 1 }
   0xf   : > { %p2735_p12 = scmp.ne.s32.totalorder (!%p402_p3), %s3232_s13, 0 }
  0x10   : > { %s4033_s14 = smov (!%p479_p5, %s3236_s14), 1  ;;  %s4035_s25 = smov (!%p491_p8, %s2609_s25), 0 }
  0x11   : > { %s482_s28 = scalar_select %p481_p6, %s3345_s22, 15 }
  0x12   : > { %s3367_s29 = sshll.u32 %s4033_s14, 5  ;;  %s536_s12 = scalar_lea.vmem %s4001_s10, %s4033_s14 }
  0x13   : > { %s2605_s20 = sshll.u32 %s482_s28, 1  ;;  %s4037_s25 = smov (!%p2610_p9, %s4035_s25), 15 }
  0x14   : > { %s485_s21 = sadd.s32 %s3367_s29, %s2605_s20  ;;  %s2615_s18 = sshll.u32 %s4037_s25, 1 }
  0x15   : > { %s2607_s23 = sshll.u32 %s485_s21, 2  ;;  %s499_s11 = sadd.s32 %s2615_s18, %s3367_s29 }
  0x16   : > { %s487_s19 = scalar_lea.vmem %s3991_s0, %s2607_s23  ;;  %s3382_s30 = scalar_lea.vmem %s4000_s9, %s2607_s23 }
  0x17   : > { %v3190_v3 = vld [vmem:[%s487_s19] sm:$0xff]   ;;  %v3191_v4 = vld [vmem:[%s487_s19 + $0x8] sm:$0xff]   ;;  %v3194_v5 = vld [vmem:[%s487_s19 + $0x10] sm:$0xff]   ;;  %s539_s16 = scalar_select %p538_p7, 1, 0 }
  0x18   : > { %619 = vst.msk [vmem:[#allocation2 + $0x8] sm:$0xff] %vm552_vm0, %v3190_v3  ;;  %620 = vst.msk [vmem:[#allocation2 + $0x10] sm:$0xff] %vm552_vm0, %v3191_v4  ;;  %v3195_v6 = vld [vmem:[%s487_s19 + $0x18] sm:$0xff]   ;;  %v3196_v7 = vld [vmem:[%s487_s19 + $0x20] sm:$0xff]   ;;  %s2617_s21 = sshll.u32 %s499_s11, 2  ;;  %s4039_s24 = smov (!%p3386_p10, %s507_s24), 15 }
  0x19   : > { %621 = vst.msk [vmem:[#allocation2 + $0x18] sm:$0xff] %vm552_vm0, %v3194_v5  ;;  %s540_s20 = scvt.s32.f32 %s539_s16  ;;  %622 = vst.msk [vmem:[#allocation2 + $0x20] sm:$0xff] %vm552_vm0, %v3195_v6  ;;  %v3197_v8 = vld [vmem:[%s487_s19 + $0x28] sm:$0xff]   ;;  %s501_s27 = scalar_lea.vmem %s3992_s1, %s2617_s21  ;;  %v3199_v9 = vld [vmem:[%s487_s19 + $0x30] sm:$0xff]  }
  0x1a   : > { %623 = vst.msk [vmem:[#allocation2 + $0x28] sm:$0xff] %vm552_vm0, %v3196_v7  ;;  %v2777_v10 = vld [vmem:[%s501_s27] sm:$0xff]   ;;  %624 = vst.msk [vmem:[#allocation2 + $0x30] sm:$0xff] %vm552_vm0, %v3197_v8  ;;  %v3200_v12 = vld [vmem:[%s487_s19 + $0x38] sm:$0xff]   ;;  %s542_s18 = scalar_select %p541_p11, 1, 0 }
  0x1b   : > { %v548_v11 = vstv %s540_s20  ;;  %v2778_v14 = vunpack.c.l.bf16 %v2777_v10  ;;  %v2779_v15 = vunpack.c.h.bf16 %v2777_v10  ;;  %625 = vst.msk [vmem:[#allocation2 + $0x38] sm:$0xff] %vm552_vm0, %v3199_v9  ;;  %626 = vst.msk [vmem:[#allocation2 + $0x40] sm:$0xff] %vm552_vm0, %v3200_v12  ;;  %s4041_s24 = smov (!%p3386_p10, %s4039_s24), 15 }
  0x1c   : > { %s2622_s19 = sshll.u32 %s4041_s24, 1  ;;  %s543_s22 = scvt.s32.f32 %s542_s18 }
  0x1d   : > { %v549_v18 = vmul.f32 %v2778_v14, %v548_v11  ;;  %v550_v19 = vmul.f32 %v2779_v15, %v548_v11  ;;  %s516_s11 = sadd.s32 %s2622_s19, %s3367_s29 }
  0x1e   : > { %s2624_s20 = sshll.u32 %s516_s11, 2  ;;  %v631_v24 = vstv %s543_s22 }
  0x1f   : > { %v3407_v13 = vld [vmem:[#allocation2 + $0x8] sm:$0xff]  ;;  %v3415_v17 = vld [vmem:[#allocation2 + $0x10] sm:$0xff]  ;;  %v551_v21 = vpack.c.bf16 %v550_v19, %v549_v18  ;;  %s518_s23 = scalar_lea.vmem %s3993_s2, %s2624_s20 }
  0x20   : > { %2872 = vmatprep.mubr.msk.bf16.mxu1 %vm552_vm0, %v3407_v13  ;;  %v3422_v20 = vld [vmem:[#allocation2 + $0x18] sm:$0xff]  ;;  %v3432_v22 = vld [vmem:[#allocation2 + $0x20] sm:$0xff] }
  0x21   : > { %2873 = vmatmul.mubr.msk.bf16.vlgmr.msra.gmra.mrb[0].mxu1 %vm552_vm0, %v3415_v17  ;;  %553 = vst.msk [vmem:[#allocation2] sm:$0xff] %vm552_vm0, %v551_v21  ;;  %v2781_v23 = vld [vmem:[%s518_s23] sm:$0xff]   ;;  %v3434_v25 = vld [vmem:[#allocation2 + $0x28] sm:$0xff]  ;;  %v3447_v33 = vld [vmem:[#allocation2 + $0x30] sm:$0xff] }
  0x22   : > { %2876 = vmatprep.mubr.msk.bf16.mxu1 %vm552_vm0, %v3422_v20  ;;  %3048 = vmatpush3.bf16.msra.mxu1 %v3351_v1  ;;  %v2782_v26 = vunpack.c.l.bf16 %v2781_v23  ;;  %v2783_v27 = vunpack.c.h.bf16 %v2781_v23  ;;  %v3452_v34 = vld [vmem:[#allocation2 + $0x38] sm:$0xff]  ;;  %v3460_v35 = vld [vmem:[#allocation2 + $0x40] sm:$0xff] }
  0x23   : > { %2924 = vmatprep.subr.bf16.mxu1 %v3201_v16 }
  0x24   : > { %v632_v28 = vmul.f32 %v2782_v26, %v631_v24  ;;  %v633_v29 = vmul.f32 %v2783_v27, %v631_v24 }
  0x26   : > { %v634_v30 = vpack.c.bf16 %v633_v29, %v632_v28 }
  0x28   : > { %v846_v31 = vld [vmem:[#allocation2] sm:$0xff]  ;;  %636 = vst.msk [vmem:[#allocation2 + $0x48] sm:$0xff] %vm552_vm0, %v634_v30 }
  0x29   : > { %2877 = vmatmul.mubr.msk.bf16.gmra.mrb[4].mxu1 %vm552_vm0, %v3432_v22  ;;  %2890 = vmatprep.mubr.msk.bf16.mxu0 %vm552_vm0, %v846_v31 }
  0x2a   : > { %2880 = vmatprep.mubr.msk.bf16.mxu1 %vm552_vm0, %v3434_v25  ;;  %2891 = vmatmul.mubr.msk.bf16.vlgmr.msra.gmra.mrb[0].mxu0 %vm552_vm0, %v3407_v13 }
  0x2b   : > { %2907 = vmatpush3.bf16.msra.mxu0 %v3361_v2  ;;  %2894 = vmatprep.mubr.msk.bf16.mxu0 %vm552_vm0, %v3415_v17 }
  0x2c   : > { %2978 = vmatprep.subr.bf16.mxu0 %v3198_v32 }
  0x2f   : > { %v1129_v39 = vld [vmem:[#allocation2 + $0x48] sm:$0xff] }
  0x31   : > { %2881 = vmatmul.mubr.msk.bf16.gmra.mrb[8].mxu1 %vm552_vm0, %v3447_v33 }
  0x32   : > { %2884 = vmatprep.mubr.msk.bf16.mxu1 %vm552_vm0, %v3452_v34  ;;  %2895 = vmatmul.mubr.msk.bf16.gmra.mrb[4].mxu0 %vm552_vm0, %v3422_v20 }
  0x33   : > { %2908 = vmatprep.mubr.msk.bf16.mxu0 %vm552_vm0, %v3415_v17 }
  0x39   : > { %2885 = vmatmul.mubr.msk.bf16.gmra.mrb[12].mxu1 %vm552_vm0, %v3460_v35 }
  0x3a   : > { %2898 = vmatprep.mubr.msk.bf16.mxu1 %vm552_vm0, %v3432_v22  ;;  %2909 = vmatmul.mubr.msk.bf16.vlgmr.msra.gmra.mrb[0].mxu0 %vm552_vm0, %v3422_v20 }
  0x3b   : > { %2979 = vmatpush3.bf16.msra.mxu0 %v3198_v32  ;;  %2912 = vmatprep.mubr.msk.bf16.mxu0 %vm552_vm0, %v3432_v22 }
  0x3c   : > { %2996 = vmatprep.subr.bf16.mxu0 %v3202_v36 }
  0x41   : > { %2899 = vmatmul.mubr.msk.bf16.vlgmr.msra.gmra.mrb[8].mxu1 %vm552_vm0, %v3434_v25 }
  0x42   : > { %2902 = vmatprep.mubr.msk.bf16.mxu1 %vm552_vm0, %v3447_v33  ;;  %2925 = vmatpush3.bf16.msra.mxu1 %v3201_v16 }
  0x43   : > { %2942 = vmatprep.subr.bf16.mxu1 %v3203_v37  ;;  %2913 = vmatmul.mubr.msk.bf16.gmra.mrb[4].mxu0 %vm552_vm0, %v3434_v25 }
  0x44   : > { %2916 = vmatprep.mubr.msk.bf16.mxu0 %vm552_vm0, %v3447_v33 }
  0x49   : > { %2903 = vmatmul.mubr.msk.bf16.gmra.mrb[12].mxu1 %vm552_vm0, %v3452_v34 }
  0x4a   : > { %2926 = vmatprep.mubr.msk.bf16.mxu1 %vm552_vm0, %v3407_v13 }
  0x4b   : > { %2917 = vmatmul.mubr.msk.bf16.gmra.mrb[8].mxu0 %vm552_vm0, %v3452_v34 }
  0x4c   : > { %2920 = vmatprep.mubr.msk.bf16.mxu0 %vm552_vm0, %v3460_v35 }
  0x51   : > { %2927 = vmatmul.mubr.msk.bf16.vlgmr.msra.gmra.mrb[16].mxu1 %vm552_vm0, %v3415_v17 }
  0x52   : > { %2930 = vmatprep.mubr.msk.bf16.mxu1 %vm552_vm0, %v3422_v20  ;;  %2943 = vmatpush3.bf16.msra.mxu1 %v3203_v37 }
  0x53   : > { %2960 = vmatprep.subr.bf16.mxu1 %v3205_v38  ;;  %2921 = vmatmul.mubr.msk.bf16.gmra.mrb[12].mxu0 %vm552_vm0, %v1129_v39 }
  0x54   : > { %2980 = vmatprep.mubr.msk.bf16.mxu0 %vm552_vm0, %v3407_v13 }
  0x59   : > { %2931 = vmatmul.mubr.msk.bf16.gmra.mrb[20].mxu1 %vm552_vm0, %v3432_v22 }
  0x5a   : > { %2934 = vmatprep.mubr.msk.bf16.mxu1 %vm552_vm0, %v3434_v25 }
  0x5b   : > { %2981 = vmatmul.mubr.msk.bf16.vlgmr.msra.gmra.mrb[16].mxu0 %vm552_vm0, %v3415_v17 }
  0x5c   : > { %2997 = vmatpush3.bf16.msra.mxu0 %v3202_v36  ;;  %2984 = vmatprep.mubr.msk.bf16.mxu0 %vm552_vm0, %v3422_v20 }
  0x5d   : > { %3014 = vmatprep.subr.bf16.mxu0 %v3204_v40 }
  0x61   : > { %2935 = vmatmul.mubr.msk.bf16.gmra.mrb[24].mxu1 %vm552_vm0, %v3447_v33 }
  0x62   : > { %2938 = vmatprep.mubr.msk.bf16.mxu1 %vm552_vm0, %v3452_v34 }
  0x63   : > { %2985 = vmatmul.mubr.msk.bf16.gmra.mrb[20].mxu0 %vm552_vm0, %v3432_v22 }
  0x64   : > { %2988 = vmatprep.mubr.msk.bf16.mxu0 %vm552_vm0, %v3434_v25 }
  0x69   : > { %2939 = vmatmul.mubr.msk.bf16.gmra.mrb[28].mxu1 %vm552_vm0, %v3460_v35 }
  0x6a   : > { %2944 = vmatprep.mubr.msk.bf16.mxu1 %vm552_vm0, %v846_v31 }
  0x6b   : > { %2989 = vmatmul.mubr.msk.bf16.gmra.mrb[24].mxu0 %vm552_vm0, %v3447_v33 }
  0x6c   : > { %2992 = vmatprep.mubr.msk.bf16.mxu0 %vm552_vm0, %v3452_v34 }
  0x71   : > { %2945 = vmatmul.mubr.msk.bf16.vlgmr.msra.gmra.mrb[16].mxu1 %vm552_vm0, %v3407_v13 }
  0x72   : > { %2948 = vmatprep.mubr.msk.bf16.mxu1 %vm552_vm0, %v3415_v17  ;;  %2961 = vmatpush3.bf16.msra.mxu1 %v3205_v38 }
  0x73   : > { %2993 = vmatmul.mubr.msk.bf16.gmra.mrb[28].mxu0 %vm552_vm0, %v3460_v35 }
  0x74   : > { %2998 = vmatprep.mubr.msk.bf16.mxu0 %vm552_vm0, %v846_v31 }
  0x79   : > { %2949 = vmatmul.mubr.msk.bf16.gmra.mrb[20].mxu1 %vm552_vm0, %v3422_v20 }
  0x7a   : > { %2952 = vmatprep.mubr.msk.bf16.mxu1 %vm552_vm0, %v3432_v22 }
  0x7b   : > { %2999 = vmatmul.mubr.msk.bf16.vlgmr.msra.gmra.mrb[16].mxu0 %vm552_vm0, %v3407_v13 }
  0x7c   : > { %3015 = vmatpush3.bf16.msra.mxu0 %v3204_v40  ;;  %3002 = vmatprep.mubr.msk.bf16.mxu0 %vm552_vm0, %v3415_v17 }
  0x81   : > { %2953 = vmatmul.mubr.msk.bf16.gmra.mrb[24].mxu1 %vm552_vm0, %v3434_v25 }
  0x82   : > { %2956 = vmatprep.mubr.msk.bf16.mxu1 %vm552_vm0, %v3447_v33 }
  0x83   : > { %3003 = vmatmul.mubr.msk.bf16.gmra.mrb[20].mxu0 %vm552_vm0, %v3422_v20 }
  0x84   : > { %3006 = vmatprep.mubr.msk.bf16.mxu0 %vm552_vm0, %v3432_v22 }
  0x89   : > { %2957 = vmatmul.mubr.msk.bf16.gmra.mrb[28].mxu1 %vm552_vm0, %v3452_v34 }
  0x8a   : > { %2962 = vmatprep.mubr.msk.bf16.mxu1 %vm552_vm0, %v3415_v17 }
  0x8b   : > { %3007 = vmatmul.mubr.msk.bf16.gmra.mrb[24].mxu0 %vm552_vm0, %v3434_v25 }
  0x8c   : > { %3010 = vmatprep.mubr.msk.bf16.mxu0 %vm552_vm0, %v3447_v33 }
  0x91   : > { %2963 = vmatmul.mubr.msk.bf16.vlgmr.msra.gmra.mrb[16].mxu1 %vm552_vm0, %v3422_v20 }
  0x92   : > { %2966 = vmatprep.mubr.msk.bf16.mxu1 %vm552_vm0, %v3432_v22 }
  0x93   : > { %3011 = vmatmul.mubr.msk.bf16.gmra.mrb[28].mxu0 %vm552_vm0, %v3452_v34 }
  0x94   : > { %3016 = vmatprep.mubr.msk.bf16.mxu0 %vm552_vm0, %v3415_v17 }
  0x99   : > { %2967 = vmatmul.mubr.msk.bf16.gmra.mrb[20].mxu1 %vm552_vm0, %v3434_v25 }
  0x9a   : > { %2970 = vmatprep.mubr.msk.bf16.mxu1 %vm552_vm0, %v3447_v33 }
  0x9b   : > { %3017 = vmatmul.mubr.msk.bf16.vlgmr.msra.gmra.mrb[16].mxu0 %vm552_vm0, %v3422_v20 }
  0x9c   : > { %3020 = vmatprep.mubr.msk.bf16.mxu0 %vm552_vm0, %v3432_v22 }
  0xa1   : > { %2971 = vmatmul.mubr.msk.bf16.gmra.mrb[24].mxu1 %vm552_vm0, %v3452_v34 }
  0xa2   : > { %2974 = vmatprep.mubr.msk.bf16.mxu1 %vm552_vm0, %v3460_v35 }
  0xa3   : > { %3021 = vmatmul.mubr.msk.bf16.gmra.mrb[20].mxu0 %vm552_vm0, %v3434_v25 }
  0xa4   : > { %3024 = vmatprep.mubr.msk.bf16.mxu0 %vm552_vm0, %v3447_v33 }
  0xa9   : > { %2975 = vmatmul.mubr.msk.bf16.gmra.mrb[28].mxu1 %vm552_vm0, %v1129_v39 }
  0xab   : > { %3025 = vmatmul.mubr.msk.bf16.gmra.mrb[24].mxu0 %vm552_vm0, %v3452_v34 }
  0xac   : > { %3028 = vmatprep.mubr.msk.bf16.mxu0 %vm552_vm0, %v3460_v35 }
  0xb3   : > { %3029 = vmatmul.mubr.msk.bf16.gmra.mrb[28].mxu0 %vm552_vm0, %v1129_v39 }
  0xf4   : > { %v2874_v41 = vpop.f32.mrb[0].mxu1 }
  0xf5   : > { %v931_v42 = vpop.f32.mrb[1].mxu1 }
  0xf6   : > { %v2875_v43 = vpop.f32.mrb[2].mxu1 }
  0xf7   : > { %v934_v44 = vpop.f32.mrb[3].mxu1 }
  0xfc   : > { %v2878_v45 = vpop.f32.mrb[4].mxu1 }
  0xfd   : > { %v947_v46 = vpop.f32.mrb[5].mxu1 }
  0xfe   : > { %v2879_v47 = vpop.f32.mrb[6].mxu1 }
  0xff   : > { %v950_v48 = vpop.f32.mrb[7].mxu1 }
 0x10d   : > { %v2910_v50 = vpop.f32.mrb[0].mxu0 }
 0x10e   : > { %v3049_v51 = vadd.f32 %v2910_v50, %v2874_v41  ;;  %v1197_v52 = vpop.f32.mrb[1].mxu0 }
 0x10f   : > { %v3591_v53 = vadd.f32 %v1197_v52, %v931_v42  ;;  %v2911_v54 = vpop.f32.mrb[2].mxu0 }
 0x110   : > { %v3051_v56 = vadd.f32 %v2911_v54, %v2875_v43  ;;  %v1200_v57 = vpop.f32.mrb[3].mxu0  ;;  %v1294_v61 = vrot.slane %v3049_v51, 7 }
 0x111   : > { %v3052_v59 = vadd.f32 %v1200_v57, %v934_v44  ;;  %v1292_v0 = vrot.slane %v3591_v53, 7 }
 0x112   : > { %v1295_v62 = vrot.slane %v3051_v56, 7 }
 0x113   : > { %v1293_v1 = vrot.slane %v3052_v59, 7 }
 0x114   : > { %v2900_v58 = vpop.f32.mrb[8].mxu1  ;;  %v3599_v3 = vsel %vm1308_vm1, %v1294_v61, %v1295_v62 }
 0x115   : > { %v1090_v60 = vpop.f32.mrb[9].mxu1  ;;  %v3603_v5 = vsel %vm1308_vm1, %v1293_v1, %v1294_v61  ;;  %v3607_v6 = vsel %vm1308_vm1, %v1292_v0, %v1293_v1 }
 0x116   : > { %v2901_v63 = vpop.f32.mrb[10].mxu1  ;;  %v2914_v4 = vpop.f32.mrb[4].mxu0 }
 0x117   : > { %v1093_v2 = vpop.f32.mrb[11].mxu1  ;;  %v3053_v7 = vadd.f32 %v2914_v4, %v2878_v45  ;;  %v1213_v8 = vpop.f32.mrb[5].mxu0 }
 0x118   : > { %v3054_v9 = vadd.f32 %v1213_v8, %v947_v46  ;;  %v2915_v10 = vpop.f32.mrb[6].mxu0 }
 0x119   : > { %v3055_v11 = vadd.f32 %v2915_v10, %v2879_v47  ;;  %v1216_v12 = vpop.f32.mrb[7].mxu0  ;;  %v1298_v17 = vrot.slane %v3053_v7, 7 }
 0x11a   : > { %v1296_v14 = vrot.slane %v3054_v9, 7  ;;  %v3056_v15 = vadd.f32 %v1216_v12, %v950_v48 }
 0x11b   : > { %v1299_v18 = vrot.slane %v3055_v11, 7 }
 0x11c   : > { %v2904_v13 = vpop.f32.mrb[12].mxu1  ;;  %v1297_v20 = vrot.slane %v3056_v15, 7  ;;  %v3611_v22 = vsel %vm1308_vm1, %v1295_v62, %v1296_v14  ;;  %v658_v62 = vand.u32 15, %v3593_v55 }
 0x11d   : > { %v1106_v16 = vpop.f32.mrb[13].mxu1  ;;  %v3615_v23 = vsel %vm1308_vm1, %v1298_v17, %v1299_v18 }
 0x11e   : > { %v2905_v19 = vpop.f32.mrb[14].mxu1  ;;  %v2918_v24 = vpop.f32.mrb[8].mxu0  ;;  %v1318_v25 = vsel %vm1308_vm1, %v1297_v20, %v1298_v17  ;;  %v3621_v26 = vsel %vm1308_vm1, %v1296_v14, %v1297_v20  ;;  %vm1276_vm3 = vcmp.eq.s32.totalorder %v658_v62, 0 }
 0x11f   : > { %v1109_v21 = vpop.f32.mrb[15].mxu1  ;;  %v3057_v27 = vadd.f32 %v2918_v24, %v2900_v58  ;;  %v1229_v28 = vpop.f32.mrb[9].mxu0 }
 0x120   : > { %v3058_v29 = vadd.f32 %v1229_v28, %v1090_v60  ;;  %v2919_v30 = vpop.f32.mrb[10].mxu0  ;;  %v640_v60 = vadd.s32 16, %v3593_v55 }
 0x121   : > { %v3059_v31 = vadd.f32 %v2919_v30, %v2901_v63  ;;  %v1232_v32 = vpop.f32.mrb[11].mxu0  ;;  %v1302_v35 = vrot.slane %v3057_v27, 7  ;;  %v644_v63 = vadd.s32 48, %v3593_v55 }
 0x122   : > { %v1300_v33 = vrot.slane %v3058_v29, 7  ;;  %v3060_v34 = vadd.f32 %v1232_v32, %v1093_v2  ;;  %v672_v61 = vand.u32 15, %v640_v60 }
 0x123   : > { %v1303_v36 = vrot.slane %v3059_v31, 7  ;;  %v700_v9 = vand.u32 15, %v644_v63  ;;  %v652_v31 = vadd.s32 112, %v3593_v55 }
 0x124   : > { %v1301_v37 = vrot.slane %v3060_v34, 7  ;;  %v3625_v38 = vsel %vm1308_vm1, %v1299_v18, %v1300_v33  ;;  %vm1278_vm2 = vcmp.eq.s32.totalorder %v672_v61, 0  ;;  %v3713_v61 = vld [vmem:[%s3995_s4] ss:$0 sm:$0xff] }
 0x125   : > { %v3629_v39 = vsel %vm1308_vm1, %v1302_v35, %v1303_v36  ;;  %v1327_v1 = vsel %vm1278_vm2, 0.0, %v3603_v5  ;;  %vm1282_vm4 = vcmp.eq.s32.totalorder %v700_v9, 0  ;;  %v646_v5 = vadd.s32 64, %v3593_v55 }
 0x126   : > { %v2922_v40 = vpop.f32.mrb[12].mxu0  ;;  %v3633_v41 = vsel %vm1308_vm1, %v1301_v37, %v1302_v35  ;;  %v3637_v42 = vsel %vm1308_vm1, %v1300_v33, %v1301_v37  ;;  %v1331_v17 = vsel %vm1282_vm4, 0.0, %v1318_v25  ;;  %v650_v25 = vadd.s32 96, %v3593_v55 }
 0x127   : > { %v3061_v43 = vadd.f32 %v2922_v40, %v2904_v13  ;;  %v1245_v44 = vpop.f32.mrb[13].mxu0  ;;  %v643_v37 = vadd.s32 40, %v3593_v55  ;;  %vm2133_vm4 = vcmask (!%p2735_p12), 122880  }
 0x128   : > { %v3062_v45 = vadd.f32 %v1245_v44, %v1106_v16  ;;  %v2923_v46 = vpop.f32.mrb[14].mxu0  ;;  %v648_v16 = vadd.s32 80, %v3593_v55 }
 0x129   : > { %v3063_v47 = vadd.f32 %v2923_v46, %v2905_v19  ;;  %v1248_v48 = vpop.f32.mrb[15].mxu0  ;;  %v1306_v51 = vrot.slane %v3061_v43, 7  ;;  %v639_v19 = vadd.s32 8, %v3593_v55  ;;  %v742_v43 = vand.u32 15, %v650_v25 }
 0x12a   : > { %v1304_v49 = vrot.slane %v3062_v45, 7  ;;  %v3064_v50 = vadd.f32 %v1248_v48, %v1109_v21  ;;  %v647_v25 = vadd.s32 72, %v3593_v55 }
 0x12b   : > { %v1307_v52 = vrot.slane %v3063_v47, 7  ;;  %v665_v32 = vand.u32 15, %v639_v19  ;;  %vm3742_vm11 = vcmp.eq.s32.totalorder %v742_v43, 0 }
 0x12c   : > { %v1305_v53 = vrot.slane %v3064_v50, 7  ;;  %v3641_v54 = vsel %vm1308_vm1, %v1303_v36, %v1304_v49  ;;  %v641_v36 = vadd.s32 24, %v3593_v55 }
 0x12d   : > { %v1324_v56 = vsel %vm1308_vm1, %v1307_v52, %v1292_v0  ;;  %v3647_v57 = vsel %vm1308_vm1, %v1306_v51, %v1307_v52  ;;  %v642_v0 = vadd.s32 32, %v3593_v55  ;;  %vm3695_vm9 = vcmp.eq.s32.totalorder %v665_v32, 15 }
 0x12e   : > { %v3651_v58 = vsel %vm1308_vm1, %v1305_v53, %v1306_v51  ;;  %v3655_v59 = vsel %vm1308_vm1, %v1304_v49, %v1305_v53  ;;  %v1325_v7 = vsel %vm1276_vm3, 0.0, %v1324_v56 }
 0x12f   : > { %v686_v12 = vand.u32 15, %v642_v0  ;;  %v693_v0 = vand.u32 15, %v643_v37 }
 0x131   : > { %vm1280_vm5 = vcmp.eq.s32.totalorder %v686_v12, 0  ;;  %vm3753_vm13 = vcmp.eq.s32.totalorder %v693_v0, 15 }
 0x132   : > { %v1329_v21 = vsel %vm1280_vm5, 0.0, %v3611_v22 }
 0x164   : > { %v2964_v2 = vpop.f32.mrb[16].mxu1 }
 0x165   : > { %v1677_v4 = vadd.f32 %v2964_v2, %v1327_v1  ;;  %v1596_v8 = vpop.f32.mrb[17].mxu1 }
 0x166   : > { %v1675_v10 = vadd.f32 %v1596_v8, %v1325_v7  ;;  %v2965_v11 = vpop.f32.mrb[18].mxu1 }
 0x167   : > { %v3663_v13 = vadd.f32 %v2965_v11, %v3599_v3  ;;  %v1599_v14 = vpop.f32.mrb[19].mxu1  ;;  %v728_v3 = vand.u32 15, %v648_v16 }
 0x168   : > { %v1676_v15 = vadd.f32 %v1599_v14, %v3607_v6  ;;  %v714_v6 = vand.u32 15, %v646_v5 }
 0x169   : > { %vm3682_vm6 = vcmp.eq.s32.totalorder %v728_v3, 0 }
 0x16a   : > { %vm3689_vm7 = vcmp.eq.s32.totalorder %v714_v6, 0  ;;  %v1335_v48 = vsel %vm3682_vm6, 0.0, %v3633_v41  ;;  %v679_v41 = vand.u32 15, %v641_v36  ;;  %v1337_v36 = vsel %vm3742_vm11, 0.0, %v3641_v54 }
 0x16b   : > { %v1333_v53 = vsel %vm3689_vm7, 0.0, %v3625_v38 }
 0x16c   : > { %v2968_v18 = vpop.f32.mrb[20].mxu1  ;;  %vm3749_vm12 = vcmp.eq.s32.totalorder %v679_v41, 15  ;;  %v721_v41 = vand.u32 15, %v647_v25 }
 0x16d   : > { %v3669_v20 = vadd.f32 %v2968_v18, %v1331_v17  ;;  %v1612_v24 = vpop.f32.mrb[21].mxu1  ;;  %v645_v18 = vadd.s32 56, %v3593_v55 }
 0x16e   : > { %v3672_v27 = vadd.f32 %v1612_v24, %v1329_v21  ;;  %v2969_v28 = vpop.f32.mrb[22].mxu1  ;;  %v3018_v34 = vpop.f32.mrb[16].mxu0  ;;  %vm2034_vm15 = vcmp.eq.s32.totalorder %v721_v41, 15 }
 0x16f   : > { %v3675_v29 = vadd.f32 %v2969_v28, %v3615_v23  ;;  %v1615_v30 = vpop.f32.mrb[23].mxu1  ;;  %v3686_v35 = vpop.f32.mrb[17].mxu0  ;;  %v2043_v44 = vrot.slane %v3018_v34, 1 }
 0x170   : > { %v3680_v33 = vadd.f32 %v1615_v30, %v3621_v26  ;;  %v3019_v40 = vpop.f32.mrb[18].mxu0  ;;  %v756_v26 = vand.u32 15, %v652_v31  ;;  %v2041_v50 = vrot.slane %v3686_v35, 1 }
 0x171   : > { %v2044_v45 = vrot.slane %v3019_v40, 1  ;;  %v1949_v46 = vpop.f32.mrb[19].mxu0  ;;  %v707_v40 = vand.u32 15, %v645_v18 }
 0x172   : > { %v2042_v51 = vrot.slane %v1949_v46, 1  ;;  %vm3734_vm10 = vcmp.eq.s32.totalorder %v756_v26, 0 }
 0x173   : > { %v2070_v60 = vsel %vm2057_vm8, %v2043_v44, %v2044_v45  ;;  %v1339_v30 = vsel %vm3734_vm10, 0.0, %v3651_v58  ;;  %vm2032_vm14 = vcmp.eq.s32.totalorder %v707_v40, 15 }
 0x174   : > { %v2972_v49 = vpop.f32.mrb[24].mxu1  ;;  %v2092_v1 = vadd.f32 %v2070_v60, %v1677_v4  ;;  %v2071_v2 = vsel %vm2057_vm8, %v2042_v51, %v2043_v44  ;;  %v2072_v38 = vsel %vm2057_vm8, %v2041_v50, %v2042_v51 }
 0x175   : > { %v3703_v52 = vadd.f32 %v2972_v49, %v1335_v48  ;;  %v1628_v56 = vpop.f32.mrb[25].mxu1  ;;  %v2075_v9 = vsel %vm3695_vm9, 0.0, %v2071_v2  ;;  %v2090_v11 = vadd.f32 %v2072_v38, %v1675_v10 }
 0x176   : > { %v3715_v62 = vadd.f32 %v1628_v56, %v1333_v53  ;;  %v2973_v63 = vpop.f32.mrb[26].mxu1  ;;  %v3732_v4 = vadd.f32 %v3713_v61, %v2092_v1  ;;  %v2091_v14 = vadd.f32 %v2075_v9, %v1676_v15  ;;  %v3022_v16 = vpop.f32.mrb[20].mxu0  ;;  %v653_v9 = vadd.s32 120, %v3593_v55 }
 0x177   : > { %v3724_v7 = vadd.f32 %v2973_v63, %v3629_v39  ;;  %v1631_v8 = vpop.f32.mrb[27].mxu1  ;;  %v3739_v39 = vadd.f32 %v3713_v61, %v2090_v11  ;;  %v1962_v17 = vpop.f32.mrb[21].mxu0  ;;  %v2047_v3 = vrot.slane %v3022_v16, 1 }
 0x178   : > { %v3729_v12 = vadd.f32 %v1631_v8, %v3637_v42  ;;  %v3747_v42 = vadd.f32 %v3713_v61, %v2091_v14  ;;  %v2045_v19 = vrot.slane %v1962_v17, 1  ;;  %v3023_v21 = vpop.f32.mrb[22].mxu0  ;;  %v651_v14 = vadd.s32 104, %v3593_v55 }
 0x179   : > { %v2048_v28 = vrot.slane %v3023_v21, 1  ;;  %v1965_v6 = vpop.f32.mrb[23].mxu0 }
 0x17a   : > { %v2069_v32 = vsel %vm2057_vm8, %v2044_v45, %v2045_v19  ;;  %v2046_v34 = vrot.slane %v1965_v6, 1 }
 0x17b   : > { %v2077_v37 = vsel %vm3749_vm12, 0.0, %v2069_v32  ;;  %v2066_v58 = vsel %vm2057_vm8, %v2047_v3, %v2048_v28 }
 0x17c   : > { %v2976_v31 = vpop.f32.mrb[28].mxu1  ;;  %v2093_v44 = vadd.f32 %v2077_v37, %v3663_v13  ;;  %v2096_v45 = vadd.f32 %v2066_v58, %v3669_v20  ;;  %v2067_v46 = vsel %vm2057_vm8, %v2046_v34, %v2047_v3  ;;  %v2068_v54 = vsel %vm2057_vm8, %v2045_v19, %v2046_v34 }
 0x17d   : > { %v3763_v22 = vadd.f32 %v2976_v31, %v1339_v30  ;;  %v1644_v23 = vpop.f32.mrb[29].mxu1  ;;  %v2079_v48 = vsel %vm3753_vm13, 0.0, %v2067_v46  ;;  %v2094_v49 = vadd.f32 %v2068_v54, %v3672_v27  ;;  %v649_v27 = vadd.s32 88, %v3593_v55 }
 0x17e   : > { %v3772_v26 = vadd.f32 %v1644_v23, %v1337_v36  ;;  %v2977_v43 = vpop.f32.mrb[30].mxu1  ;;  %v3786_v13 = vadd.f32 %v3713_v61, %v2093_v44  ;;  %v3789_v20 = vadd.f32 %v3713_v61, %v2096_v45  ;;  %v2095_v56 = vadd.f32 %v2079_v48, %v3680_v33  ;;  %v3026_v60 = vpop.f32.mrb[24].mxu0 }
 0x17f   : > { %v1647_v47 = vpop.f32.mrb[31].mxu1  ;;  %v1690_v51 = vadd.f32 %v2977_v43, %v3647_v57  ;;  %v3793_v63 = vadd.f32 %v3713_v61, %v2094_v49  ;;  %v1978_v0 = vpop.f32.mrb[25].mxu0  ;;  %v2051_v2 = vrot.slane %v3026_v60, 1  ;;  %v735_v17 = vand.u32 15, %v649_v27 }
 0x180   : > { %v1688_v53 = vadd.f32 %v1647_v47, %v3655_v59  ;;  %v3797_v57 = vadd.f32 %v3713_v61, %v2095_v56  ;;  %v2049_v59 = vrot.slane %v1978_v0, 1  ;;  %v3027_v1 = vpop.f32.mrb[26].mxu0  ;;  %v763_v3 = vand.u32 15, %v653_v9 }
 0x181   : > { %v2052_v38 = vrot.slane %v3027_v1, 1  ;;  %v1981_v8 = vpop.f32.mrb[27].mxu0  ;;  %vm2036_vm1 = vcmp.eq.s32.totalorder %v735_v17, 15  ;;  %v3250_v55 = vmov (!%p2735_p12), 0.0  }
 0x182   : > { %v2065_v33 = vsel %vm2057_vm8, %v2048_v28, %v2049_v59  ;;  %v2050_v11 = vrot.slane %v1981_v8, 1  ;;  %vm2040_vm2 = vcmp.eq.s32.totalorder %v763_v3, 15  ;;  %2134 = vst.msk [vmem:[#allocation3] sm:$0x1] (!%p2735_p12), %vm2133_vm4, %v3250_v55 }
 0x183   : > { %v2081_v16 = vsel %vm2032_vm14, 0.0, %v2065_v33  ;;  %v2062_v5 = vsel %vm2057_vm8, %v2051_v2, %v2052_v38 }
 0x184   : > { %v2097_v18 = vadd.f32 %v2081_v16, %v3675_v29  ;;  %v2100_v10 = vadd.f32 %v2062_v5, %v3703_v52  ;;  %v2063_v15 = vsel %vm2057_vm8, %v2050_v11, %v2051_v2  ;;  %v2064_v19 = vsel %vm2057_vm8, %v2049_v59, %v2050_v11 }
 0x185   : > { %v2083_v21 = vsel %vm2034_vm15, 0.0, %v2063_v15  ;;  %v2098_v24 = vadd.f32 %v2064_v19, %v3715_v62  ;;  %v749_v52 = vand.u32 15, %v651_v14 }
 0x186   : > { %v3813_v28 = vadd.f32 %v3713_v61, %v2097_v18  ;;  %v3816_v6 = vadd.f32 %v3713_v61, %v2100_v10  ;;  %v2099_v29 = vadd.f32 %v2083_v21, %v3729_v12  ;;  %v3030_v30 = vpop.f32.mrb[28].mxu0 }
 0x187   : > { %v3820_v31 = vadd.f32 %v3713_v61, %v2098_v24  ;;  %v1994_v25 = vpop.f32.mrb[29].mxu0  ;;  %v2055_v36 = vrot.slane %v3030_v30, 1  ;;  %vm2038_vm3 = vcmp.eq.s32.totalorder %v749_v52, 15 }
 0x188   : > { %v3823_v32 = vadd.f32 %v3713_v61, %v2099_v29  ;;  %v2053_v62 = vrot.slane %v1994_v25, 1  ;;  %v3031_v34 = vpop.f32.mrb[30].mxu0 }
 0x189   : > { %v2056_v23 = vrot.slane %v3031_v34, 1  ;;  %v1997_v37 = vpop.f32.mrb[31].mxu0 }
 0x18a   : > { %v2061_v58 = vsel %vm2057_vm8, %v2052_v38, %v2053_v62  ;;  %v2054_v12 = vrot.slane %v1997_v37, 1  ;;  %2132 = sbr.rel (%p2735_p12) target bundleno = 401 (0x191), region = 60 }
 0x18b   : > { %v2085_v40 = vsel %vm2036_vm1, 0.0, %v2061_v58  ;;  %v2058_v43 = vsel %vm2057_vm8, %v2055_v36, %v2056_v23  ;;  %v2073_v44 = vsel %vm2057_vm8, %v2056_v23, %v2041_v50 }
 0x18c   : > { %v2101_v45 = vadd.f32 %v2085_v40, %v3724_v7  ;;  %v2089_v46 = vsel %vm2040_vm2, 0.0, %v2073_v44  ;;  %v2104_v54 = vadd.f32 %v2058_v43, %v3763_v22  ;;  %v2059_v47 = vsel %vm2057_vm8, %v2054_v12, %v2055_v36 }
 0x18d   : > { %v2105_v48 = vadd.f32 %v2089_v46, %v1690_v51  ;;  %v2060_v49 = vsel %vm2057_vm8, %v2053_v62, %v2054_v12  ;;  %v2087_v56 = vsel %vm2038_vm3, 0.0, %v2059_v47 }
 0x18e   : > { %v3840_v60 = vadd.f32 %v3713_v61, %v2101_v45  ;;  %v3843_v35 = vadd.f32 %v3713_v61, %v2104_v54  ;;  %v2102_v50 = vadd.f32 %v2060_v49, %v3772_v26  ;;  %v2103_v7 = vadd.f32 %v2087_v56, %v1688_v53 }
 0x18f   : > { %v3847_v41 = vadd.f32 %v3713_v61, %v2105_v48 }
 0x190   : > { %v3850_v22 = vadd.f32 %v3713_v61, %v2102_v50  ;;  %v3853_v51 = vadd.f32 %v3713_v61, %v2103_v7 }
 0x191 PF: > { %v2136_v26 = vsel %vm552_vm0, %v3739_v39, 0.0  ;;  %v2137_v53 = vsel %vm552_vm0, %v3747_v42, 0.0  ;;  %v2139_v0 = vsel %vm552_vm0, %v3732_v4, 0.0  ;;  %v2141_v61 = vsel %vm552_vm0, %v3786_v13, 0.0  ;;  %v2135_v43 = vld [vmem:[#allocation3] sm:$0x1] }
 0x192   : > { %v2138_v27 = vadd.f32 %v2137_v53, %v2136_v26  ;;  %v2143_v1 = vsel %vm552_vm0, %v3793_v63, 0.0  ;;  %v2145_v38 = vsel %vm552_vm0, %v3797_v57, 0.0  ;;  %v2147_v9 = vsel %vm552_vm0, %v3789_v20, 0.0  ;;  %p2736_p13 = scmp.ne.s32.totalorder %s3232_s13, 1 }
 0x193   : > { %v2149_v11 = vsel %vm552_vm0, %v3813_v28, 0.0  ;;  %v2151_v16 = vsel %vm552_vm0, %v3820_v31, 0.0  ;;  %v2153_v17 = vsel %vm552_vm0, %v3823_v32, 0.0  ;;  %v2155_v10 = vsel %vm552_vm0, %v3816_v6, 0.0  ;;  %v2182_v46 = vld [vmem:[%s3996_s5] sm:$0xff] (!%p2736_p13)  ;;  %v2183_v54 = vld [vmem:[%s3996_s5 + $0x8] sm:$0xff] (!%p2736_p13) }
 0x194   : > { %v2140_v59 = vadd.f32 %v2139_v0, %v2138_v27  ;;  %v2157_v19 = vsel %vm552_vm0, %v3840_v60, 0.0  ;;  %v2159_v24 = vsel %vm552_vm0, %v3850_v22, 0.0  ;;  %v2161_v29 = vsel %vm552_vm0, %v3853_v51, 0.0  ;;  %v2259_v7 = vld [vmem:[%s3998_s7] sm:$0xf] (!%p2736_p13) }
 0x195   : > { %v2163_v52 = vsel %vm552_vm0, %v3843_v35, 0.0  ;;  %v2165_v62 = vsel %vm552_vm0, %v3847_v41, 0.0  ;;  %vm2174_vm5 = vcmask 122880   ;;  %v3251_v47 = vmov (!%p2736_p13), 0.0|0.0   ;;  %v2184_v55 = vld [vmem:[%s3997_s6] sm:$0x1] (!%p2736_p13) }
 0x196   : > { %v2142_v2 = vadd.f32 %v2141_v61, %v2140_v59  ;;  %3044 = vmatprep.subr.bf16.mxu0 (!%p2736_p13), %v3251_v47  ;;  %v3045_v48 = vpack.c.bf16 (!%p2736_p13), %v2183_v54, %v2182_v46  ;;  %vm3252_vm6 = vmmov (!%p2736_p13), 0   ;;  %v3253_v49 = vmov (!%p2736_p13), 0.0   ;;  %v2260_v61 = vld [vmem:[%s3999_s8] sm:$0x1] (!%p2736_p13) }
 0x197   : > { %3036 = vmatprep.mubr.msk.f32.mxu0 (!%p2736_p13), %vm3252_vm6, %v3253_v49  ;;  %3039 = vmatprep.subr.mxu1 (!%p2736_p13), %v3253_v49  ;;  %vm2265_vm7 = vcmask (!%p2736_p13), 1043456   ;;  %vm2261_vm8 = vcmask (!%p2736_p13), 31744  }
 0x198   : > { %v2144_v8 = vadd.f32 %v2143_v1, %v2142_v2  ;;  %3041 = vmatprep.mubr.msk.f32.mxu1 (!%p2736_p13), %vm3252_vm6, %v3253_v49  ;;  %3046 = vmatpush3.bf16.msra.mxu0 (!%p2736_p13), %v3045_v48 }
 0x199   : > { %3040 = vmatpush3.msk.msra.mxu1 (!%p2736_p13), %vm2265_vm7, %v2259_v7 }
 0x19a   : > { %v2146_v33 = vadd.f32 %v2145_v38, %v2144_v8 }
 0x19c   : > { %v2148_v14 = vadd.f32 %v2147_v9, %v2146_v33 }
 0x19e   : > { %v2150_v5 = vadd.f32 %v2149_v11, %v2148_v14 }
 0x1a0   : > { %v2152_v18 = vadd.f32 %v2151_v16, %v2150_v5 }
 0x1a2   : > { %v2154_v15 = vadd.f32 %v2153_v17, %v2152_v18 }
 0x1a4   : > { %v2156_v21 = vadd.f32 %v2155_v10, %v2154_v15 }
 0x1a6   : > { %v2158_v3 = vadd.f32 %v2157_v19, %v2156_v21 }
 0x1a8   : > { %v2160_v30 = vadd.f32 %v2159_v24, %v2158_v3 }
 0x1aa   : > { %v2162_v25 = vadd.f32 %v2161_v29, %v2160_v30 }
 0x1ac   : > { %v2164_v34 = vadd.f32 %v2163_v52, %v2162_v25 }
 0x1ae   : > { %v2166_v36 = vadd.f32 %v2165_v62, %v2164_v34 }
 0x1b0   : > { %v2167_v23 = vrot.slane %v2166_v36, 4 }
 0x1b2   : > { %v2168_v37 = vadd.f32 %v2167_v23, %v2166_v36 }
 0x1b4   : > { %v2169_v58 = vrot.slane %v2168_v37, 2 }
 0x1b6   : > { %v2170_v12 = vadd.f32 %v2169_v58, %v2168_v37 }
 0x1b8   : > { %v2171_v40 = vrot.slane %v2170_v12, 1  ;;  %2179 = sbr.rel (%p2736_p13) target bundleno = 915 (0x393), region = 64 }
 0x1ba   : > { %v2172_v44 = vadd.f32 %v2171_v40, %v2170_v12 }
 0x1bc   : > { %v2173_v45 = vadd.f32 %v2172_v44, %v2135_v43 }
 0x1be   : > { %2175 = vst.msk [vmem:[#allocation3] sm:$0x1] %vm2174_vm5, %v2173_v45 }
 0x1c5   : > { %v2180_v56 = vld [vmem:[#allocation3] sm:$0x1] }
 0x1c6   : > { %v2181_v50 = vmul.f32 0.00390625, %v2180_v56 }
 0x1c8   : > { %3037 = vmatmul.mubr.msk.f32.vlgmr.msra.gmra.mrb[0].mxu0 %vm552_vm0, %v2181_v50 }
 0x29b   : > { %v2254_v26 = vpop.f32.mrb[0].mxu0 }
 0x29c   : > { %v2255_v53 = vadd.f32 %v2254_v26, %v2184_v55  ;;  %v3038_v0 = vpop.f32.mrb[1].mxu0 }
 0x29e   : > { %v2258_v27 = vmax.f32 %v2255_v53, 0.0 }
 0x2a0   : > { %3042 = vmatmul.mubr.msk.f32.vlgmr.msra.gmra.mrb[0].mxu1 %vm2261_vm8, %v2258_v27 }
 0x373   : > { %v2335_v59 = vpop.f32.mrb[0].mxu1 }
 0x374   : > { %v2336_v1 = vadd.f32 %v2335_v59, %v2260_v61  ;;  %v3043_v2 = vpop.f32.mrb[1].mxu1 }
 0x376   : > { %v2339_v38 = vsub.f32 0.0, %v2336_v1 }
 0x378   : > { %v2340_v8 = vmul.f32 1.442695, %v2339_v38 }
 0x37a   : > { %3206 = vpow2.f32 %v2340_v8 }
 0x384   : > { %v3207_v9 = vpop.eup %3206 }
 0x385   : > { %v2342_v33 = vadd.f32 1.0, %v3207_v9 }
 0x387   : > { %3208 = vrcp.f32 %v2342_v33 }
 0x391   : > { %v3209_v11 = vpop.eup %3208 }
 0x392   : > { %2345 = vst.msk [vmem:[%s536_s12] sm:$0x1] %vm2174_vm5, %v3209_v11 }
 0x393 PF: > { %v2760_v14 = vpack.c.bf16 %v3739_v39, %v3739_v39  ;;  %vm2410_vm0 = vcmask 125952   ;;  %v2761_v16 = vpack.c.bf16 %v3747_v42, %v3747_v42  ;;  %v2762_v5 = vpack.c.bf16 %v3732_v4, %v3732_v4 }
 0x394   : > { %v2763_v17 = vpack.c.bf16 %v3786_v13, %v3786_v13  ;;  %v2764_v18 = vpack.c.bf16 %v3793_v63, %v3793_v63  ;;  %v2765_v10 = vpack.c.bf16 %v3797_v57, %v3797_v57  ;;  %v2766_v39 = vpack.c.bf16 %v3789_v20, %v3789_v20 }
 0x395   : > { %2411 = vst.msk [vmem:[%s3382_s30] sm:$0xf] %vm2410_vm0, %v2760_v14  ;;  %2412 = vst.msk [vmem:[%s3382_s30 + $0x4] sm:$0xf] %vm2410_vm0, %v2761_v16  ;;  %v2767_v4 = vpack.c.bf16 %v3813_v28, %v3813_v28  ;;  %v2768_v42 = vpack.c.bf16 %v3820_v31, %v3820_v31  ;;  %v2769_v13 = vpack.c.bf16 %v3823_v32, %v3823_v32 }
 0x396   : > { %2413 = vst.msk [vmem:[%s3382_s30 + $0x8] sm:$0xf] %vm2410_vm0, %v2762_v5  ;;  %v2770_v20 = vpack.c.bf16 %v3816_v6, %v3816_v6  ;;  %2414 = vst.msk [vmem:[%s3382_s30 + $0xc] sm:$0xf] %vm2410_vm0, %v2763_v17  ;;  %v2771_v63 = vpack.c.bf16 %v3840_v60, %v3840_v60  ;;  %v2772_v57 = vpack.c.bf16 %v3850_v22, %v3850_v22 }
 0x397   : > { %2415 = vst.msk [vmem:[%s3382_s30 + $0x10] sm:$0xf] %vm2410_vm0, %v2764_v18  ;;  %2416 = vst.msk [vmem:[%s3382_s30 + $0x14] sm:$0xf] %vm2410_vm0, %v2765_v10  ;;  %v2773_v28 = vpack.c.bf16 %v3853_v51, %v3853_v51  ;;  %v2774_v6 = vpack.c.bf16 %v3843_v35, %v3843_v35  ;;  %v2775_v31 = vpack.c.bf16 %v3847_v41, %v3847_v41 }
 0x398   : > { %2417 = vst.msk [vmem:[%s3382_s30 + $0x18] sm:$0xf] %vm2410_vm0, %v2766_v39  ;;  %2418 = vst.msk [vmem:[%s3382_s30 + $0x1c] sm:$0xf] %vm2410_vm0, %v2767_v4 }
 0x399   : > { %2419 = vst.msk [vmem:[%s3382_s30 + $0x20] sm:$0xf] %vm2410_vm0, %v2768_v42  ;;  %2420 = vst.msk [vmem:[%s3382_s30 + $0x24] sm:$0xf] %vm2410_vm0, %v2769_v13 }
 0x39a   : > { %2421 = vst.msk [vmem:[%s3382_s30 + $0x28] sm:$0xf] %vm2410_vm0, %v2770_v20  ;;  %2422 = vst.msk [vmem:[%s3382_s30 + $0x2c] sm:$0xf] %vm2410_vm0, %v2771_v63 }
 0x39b   : > { %2423 = vst.msk [vmem:[%s3382_s30 + $0x30] sm:$0xf] %vm2410_vm0, %v2772_v57  ;;  %2424 = vst.msk [vmem:[%s3382_s30 + $0x34] sm:$0xf] %vm2410_vm0, %v2773_v28 }
 0x39c   : > { %2425 = vst.msk [vmem:[%s3382_s30 + $0x38] sm:$0xf] %vm2410_vm0, %v2774_v6  ;;  %2426 = vst.msk [vmem:[%s3382_s30 + $0x3c] sm:$0xf] %vm2410_vm0, %v2775_v31 }
 0x39d PF: > { %s21_s17 = sadd.s32 1, %s3248_s17   ;;  %s4021_s14 = sld [smem:[#allocation4_spill]] }
 0x39e   : > { %p18_p0 = scmp.ge.s32.totalorder %s21_s17, 6   ;;  %s4022_s12 = sld [smem:[#allocation5_spill]] }
 0x39f   : > { %s4023_s16 = sld [smem:[#allocation6_spill]]  ;;  %s4024_s13 = smov %s3240_s15 }
 0x3a0   :  { %20 = sbr.rel (!%p18_p0) target bundleno = 3 (0x3), region = 123 }
 0x3a4   : > { %s4025_s15 = smov %s4022_s12 }

// kernel: rcan_forward_pallas.25
= control target key start
LH: loop header
LB: loop body
LE: loop exit
PB: predicated region body
PF: predicated region fallthrough
CT: control target
= control target key end

     0   :  { %s3044_s21 = smov 0   ;;  %s3046_s22 = smov 0   ;;  %s3719_s0 = inlined_call_operand.vmem [shape: bf16[2,16,16,16], index: 0, kind: input, shape index: {}, may-alias: {0,1,2}]   ;;  %s3720_s1 = inlined_call_operand.vmem [shape: bf16[2,16,16,16], index: 1, kind: input, shape index: {}, may-alias: {0,1,2}]   ;;  %s3721_s2 = inlined_call_operand.vmem [shape: bf16[2,16,16,16], index: 2, kind: input, shape index: {}, may-alias: {0,1,2}]   ;;  %s3722_s3 = inlined_call_operand.vmem [shape: bf16[9,16,16], index: 3, kind: input, shape index: {}]   ;;  %s3723_s4 = inlined_call_operand.vmem [shape: f32[1,16], index: 4, kind: input, shape index: {}]   ;;  %s3724_s5 = inlined_call_operand.vmem [shape: bf16[2,16,16,16], index: 5, kind: input, shape index: {}]   ;;  %s3725_s6 = inlined_call_operand.vmem [shape: bf16[2,16,16,16], index: 6, kind: output, shape index: {}]  }
   0x1   :  { %s3048_s23 = smov 0   ;;  %s3050_s24 = smov 0  }
   0x2   :  { %s3052_s25 = smov 0  }
   0x3 LB: > { %s25_s26 = sadd.s32 1, %s2999_s23  ;;  %s28_s27 = sadd.s32 1, %s3003_s24  ;;  %s3007_s25 = sphi %s3052_s25, %s16_s25   ;;  %s3003_s24 = sphi %s3050_s24, %s3754_s24   ;;  %s2999_s23 = sphi %s3048_s23, %s3753_s23   ;;  %s2995_s22 = sphi %s3046_s22, %s3752_s22   ;;  %s2991_s21 = sphi %s3044_s21, %s3751_s21  }
   0x4   : > { %p26_p0 = scmp.ge.s32.totalorder %s25_s26, 2  ;;  %p2352_p1 = scmp.ge.s32.totalorder %s3007_s25, 1 }
   0x5   : > { %p316_p2 = scmp.lt.s32.totalorder %s3007_s25, 5 }
   0x6   : > { %s3756_s26 = smov (%p26_p0, %s25_s26), 0  ;;  %s3758_s27 = smov (!%p26_p0, %s28_s27), %s3003_s24 }
   0x7   : > { %p317_p3 = pnand %p2352_p1, %p316_p2  ;;  %p30_p4 = scmp.ge.s32.totalorder %s3758_s27, 2 }
   0x8   : > { %v2952_v0 = vld [vmem:[%s3722_s3 + $0x18] sm:$0xff] (!%p317_p3)   ;;  %s3080_s30 = sshll.u32 (!%p317_p3), %s2991_s21, 3  ;;  %p393_p5 = scmp.lt.s32.totalorder (!%p317_p3), %s2995_s22, 1  ;;  %v3086_v1 = vld [vmem:[%s3722_s3] sm:$0xff] (!%p317_p3)   ;;  %v3094_v2 = vld [vmem:[%s3722_s3 + $0x30] sm:$0xff] (!%p317_p3)   ;;  %vm474_vm0 = vcmask (!%p317_p3), 130048   ;;  %v559_v49 = vlaneseq (!%p317_p3) }
   0x9   : > { %s3760_s27 = smov (%p30_p4, %s3758_s27), 0  ;;  %320 = sbr.rel (%p317_p3) target bundleno = 409 (0x199), region = 44 }
   0xa   : > { %p395_p6 = scmp.lt.s32.totalorder (!%p317_p3), %s3080_s30, 15  ;;  %2652 = vmatprep.subr.bf16.mxu1 (!%p317_p3), %v2952_v0  ;;  %s2358_s9 = sadd.s32 (!%p317_p3), 4294967295, %s3080_s30  ;;  %2670 = vmatprep.subr.bf16.mxu0 (!%p317_p3), %v3086_v1  ;;  %v2964_v16 = vld [vmem:[%s3722_s3 + $0x20] sm:$0xff] (!%p317_p3)   ;;  %v2961_v32 = vld [vmem:[%s3722_s3 + $0x28] sm:$0xff] (!%p317_p3)   ;;  %v2965_v36 = vld [vmem:[%s3722_s3 + $0x10] sm:$0xff] (!%p317_p3)   ;;  %v3320_v55 = vshrl.u32 (!%p317_p3), %v559_v49, 7 }
   0xb   : > { %p460_p7 = scmp.gt.s32.totalorder (!%p317_p3), %s2991_s21, 0  ;;  %2653 = vmatpush3.bf16.msra.mxu1 (!%p317_p3), %v2952_v0  ;;  %2671 = vmatpush3.bf16.msra.mxu0 (!%p317_p3), %v3086_v1  ;;  %p405_p8 = scmp.gt.s32.totalorder (!%p317_p3), %s2358_s9, 0  ;;  %v2966_v37 = vld [vmem:[%s3722_s3 + $0x8] sm:$0xff] (!%p317_p3)   ;;  %v2968_v38 = vld [vmem:[%s3722_s3 + $0x38] sm:$0xff] (!%p317_p3)   ;;  %v2967_v40 = vld [vmem:[%s3722_s3 + $0x40] sm:$0xff] (!%p317_p3)   ;;  %vm2163_vm13 = vcmask (!%p317_p3), 125952  }
   0xc   : > { %2814 = vmatprep.subr.bf16.mxu1 (!%p317_p3), %v3086_v1  ;;  %2688 = vmatprep.subr.bf16.mxu0 (!%p317_p3), %v3094_v2  ;;  %p2359_p9 = scmp.lt.s32.totalorder (!%p317_p3), %s2358_s9, 15  ;;  %s421_s16 = sadd.s32 (!%p317_p3), 8, %s3080_s30  ;;  %vm1230_vm1 = vcmp.lt.s32.totalorder (!%p317_p3), %v3320_v55, 1  ;;  %vm1979_vm9 = vcmp.lt.s32.totalorder (!%p317_p3), %v3320_v55, 7 }
   0xd   : > { %p3106_p10 = scmp.lt.s32.totalorder (!%p317_p3), %s421_s16, 15  ;;  %p463_p11 = scmp.lt.s32.totalorder (!%p317_p3), %s2991_s21, 1 }
  0x10   : > { %s3762_s22 = smov (!%p393_p5, %s2995_s22), 1  ;;  %s3764_s9 = smov (!%p405_p8, %s2358_s9), 0 }
  0x11   : > { %s396_s12 = scalar_select %p395_p6, %s3080_s30, 15 }
  0x12   : > { %s3099_s13 = sshll.u32 %s3762_s22, 5  ;;  %s3766_s16 = smov (!%p3106_p10, %s421_s16), 15 }
  0x13   : > { %s2354_s14 = sshll.u32 %s396_s12, 1  ;;  %s3768_s9 = smov (!%p2359_p9, %s3764_s9), 15 }
  0x14   : > { %s399_s15 = sadd.s32 %s3099_s13, %s2354_s14  ;;  %s2364_s29 = sshll.u32 %s3768_s9, 1 }
  0x15   : > { %s3104_s17 = sshll.u32 %s399_s15, 2  ;;  %s413_s30 = sadd.s32 %s2364_s29, %s3099_s13 }
  0x16   : > { %s401_s22 = scalar_lea.vmem %s3719_s0, %s3104_s17  ;;  %s2366_s8 = sshll.u32 %s413_s30, 2 }
  0x17   : > { %v2953_v3 = vld [vmem:[%s401_s22] sm:$0xff]   ;;  %v2954_v4 = vld [vmem:[%s401_s22 + $0x8] sm:$0xff]   ;;  %v2957_v5 = vld [vmem:[%s401_s22 + $0x10] sm:$0xff]   ;;  %s461_s28 = scalar_select %p460_p7, 1, 0 }
  0x18   : > { %541 = vst.msk [vmem:[#allocation2 + $0x8] sm:$0xff] %vm474_vm0, %v2953_v3  ;;  %542 = vst.msk [vmem:[#allocation2 + $0x10] sm:$0xff] %vm474_vm0, %v2954_v4  ;;  %v2958_v6 = vld [vmem:[%s401_s22 + $0x18] sm:$0xff]   ;;  %v2959_v7 = vld [vmem:[%s401_s22 + $0x20] sm:$0xff]   ;;  %s415_s12 = scalar_lea.vmem %s3720_s1, %s2366_s8  ;;  %s3770_s16 = smov (!%p3106_p10, %s3766_s16), 15 }
  0x19   : > { %543 = vst.msk [vmem:[#allocation2 + $0x18] sm:$0xff] %vm474_vm0, %v2957_v5  ;;  %s462_s7 = scvt.s32.f32 %s461_s28  ;;  %544 = vst.msk [vmem:[#allocation2 + $0x20] sm:$0xff] %vm474_vm0, %v2958_v6  ;;  %v2960_v8 = vld [vmem:[%s401_s22 + $0x28] sm:$0xff]   ;;  %v2962_v9 = vld [vmem:[%s401_s22 + $0x30] sm:$0xff]   ;;  %s2371_s18 = sshll.u32 %s3770_s16, 1 }
  0x1a   : > { %545 = vst.msk [vmem:[#allocation2 + $0x28] sm:$0xff] %vm474_vm0, %v2959_v7  ;;  %v2525_v10 = vld [vmem:[%s415_s12] sm:$0xff]   ;;  %546 = vst.msk [vmem:[#allocation2 + $0x30] sm:$0xff] %vm474_vm0, %v2960_v8  ;;  %v2963_v12 = vld [vmem:[%s401_s22 + $0x38] sm:$0xff]   ;;  %s464_s15 = scalar_select %p463_p11, 1, 0 }
  0x1b   : > { %v470_v11 = vstv %s462_s7  ;;  %v2526_v14 = vunpack.c.l.bf16 %v2525_v10  ;;  %v2527_v15 = vunpack.c.h.bf16 %v2525_v10  ;;  %547 = vst.msk [vmem:[#allocation2 + $0x38] sm:$0xff] %vm474_vm0, %v2962_v9  ;;  %548 = vst.msk [vmem:[#allocation2 + $0x40] sm:$0xff] %vm474_vm0, %v2963_v12  ;;  %s430_s19 = sadd.s32 %s2371_s18, %s3099_s13 }
  0x1c   : > { %s465_s20 = scvt.s32.f32 %s464_s15  ;;  %s2373_s21 = sshll.u32 %s430_s19, 2 }
  0x1d   : > { %v471_v18 = vmul.f32 %v2526_v14, %v470_v11  ;;  %v472_v19 = vmul.f32 %v2527_v15, %v470_v11  ;;  %s432_s16 = scalar_lea.vmem %s3721_s2, %s2373_s21  ;;  %s3410_s19 = scalar_lea.vmem %s3724_s5, %s3104_s17 }
  0x1e   : > { %v2529_v22 = vld [vmem:[%s432_s16] sm:$0xff]   ;;  %v553_v23 = vstv %s465_s20  ;;  %s3544_s16 = scalar_lea.vmem %s3725_s6, %s3104_s17 }
  0x1f   : > { %v3134_v13 = vld [vmem:[#allocation2 + $0x8] sm:$0xff]  ;;  %v3144_v17 = vld [vmem:[#allocation2 + $0x10] sm:$0xff]  ;;  %v473_v21 = vpack.c.bf16 %v472_v19, %v471_v18  ;;  %v2530_v24 = vunpack.c.l.bf16 %v2529_v22  ;;  %v2531_v25 = vunpack.c.h.bf16 %v2529_v22 }
  0x20   : > { %2654 = vmatprep.mubr.msk.bf16.mxu1 %vm474_vm0, %v3134_v13  ;;  %v3149_v20 = vld [vmem:[#allocation2 + $0x18] sm:$0xff]  ;;  %v3159_v26 = vld [vmem:[#allocation2 + $0x20] sm:$0xff] }
  0x21   : > { %2655 = vmatmul.mubr.msk.bf16.vlgmr.msra.gmra.mrb[0].mxu1 %vm474_vm0, %v3144_v17  ;;  %475 = vst.msk [vmem:[#allocation2] sm:$0xff] %vm474_vm0, %v473_v21  ;;  %v3161_v27 = vld [vmem:[#allocation2 + $0x28] sm:$0xff]  ;;  %v554_v28 = vmul.f32 %v2530_v24, %v553_v23  ;;  %v555_v29 = vmul.f32 %v2531_v25, %v553_v23  ;;  %v3174_v33 = vld [vmem:[#allocation2 + $0x30] sm:$0xff] }
  0x22   : > { %2658 = vmatprep.mubr.msk.bf16.mxu1 %vm474_vm0, %v3149_v20  ;;  %2815 = vmatpush3.bf16.msra.mxu1 %v3086_v1  ;;  %v3179_v34 = vld [vmem:[#allocation2 + $0x38] sm:$0xff]  ;;  %v3187_v35 = vld [vmem:[#allocation2 + $0x40] sm:$0xff] }
  0x23   : > { %2706 = vmatprep.subr.bf16.mxu1 %v2964_v16  ;;  %v556_v30 = vpack.c.bf16 %v555_v29, %v554_v28 }
  0x25   : > { %558 = vst.msk [vmem:[#allocation2 + $0x48] sm:$0xff] %vm474_vm0, %v556_v30 }
  0x28   : > { %v768_v31 = vld [vmem:[#allocation2] sm:$0xff] }
  0x29   : > { %2659 = vmatmul.mubr.msk.bf16.gmra.mrb[4].mxu1 %vm474_vm0, %v3159_v26  ;;  %2672 = vmatprep.mubr.msk.bf16.mxu0 %vm474_vm0, %v768_v31 }
  0x2a   : > { %2662 = vmatprep.mubr.msk.bf16.mxu1 %vm474_vm0, %v3161_v27  ;;  %2673 = vmatmul.mubr.msk.bf16.vlgmr.msra.gmra.mrb[0].mxu0 %vm474_vm0, %v3134_v13 }
  0x2b   : > { %2689 = vmatpush3.bf16.msra.mxu0 %v3094_v2  ;;  %2676 = vmatprep.mubr.msk.bf16.mxu0 %vm474_vm0, %v3144_v17 }
  0x2c   : > { %2760 = vmatprep.subr.bf16.mxu0 %v2961_v32  ;;  %v1051_v39 = vld [vmem:[#allocation2 + $0x48] sm:$0xff] }
  0x31   : > { %2663 = vmatmul.mubr.msk.bf16.gmra.mrb[8].mxu1 %vm474_vm0, %v3174_v33 }
  0x32   : > { %2666 = vmatprep.mubr.msk.bf16.mxu1 %vm474_vm0, %v3179_v34  ;;  %2677 = vmatmul.mubr.msk.bf16.gmra.mrb[4].mxu0 %vm474_vm0, %v3149_v20 }
  0x33   : > { %2690 = vmatprep.mubr.msk.bf16.mxu0 %vm474_vm0, %v3144_v17 }
  0x39   : > { %2667 = vmatmul.mubr.msk.bf16.gmra.mrb[12].mxu1 %vm474_vm0, %v3187_v35 }
  0x3a   : > { %2680 = vmatprep.mubr.msk.bf16.mxu1 %vm474_vm0, %v3159_v26  ;;  %2691 = vmatmul.mubr.msk.bf16.vlgmr.msra.gmra.mrb[0].mxu0 %vm474_vm0, %v3149_v20 }
  0x3b   : > { %2761 = vmatpush3.bf16.msra.mxu0 %v2961_v32  ;;  %2694 = vmatprep.mubr.msk.bf16.mxu0 %vm474_vm0, %v3159_v26 }
  0x3c   : > { %2778 = vmatprep.subr.bf16.mxu0 %v2965_v36 }
  0x41   : > { %2681 = vmatmul.mubr.msk.bf16.vlgmr.msra.gmra.mrb[8].mxu1 %vm474_vm0, %v3161_v27 }
  0x42   : > { %2684 = vmatprep.mubr.msk.bf16.mxu1 %vm474_vm0, %v3174_v33  ;;  %2707 = vmatpush3.bf16.msra.mxu1 %v2964_v16 }
  0x43   : > { %2724 = vmatprep.subr.bf16.mxu1 %v2966_v37  ;;  %2695 = vmatmul.mubr.msk.bf16.gmra.mrb[4].mxu0 %vm474_vm0, %v3161_v27 }
  0x44   : > { %2698 = vmatprep.mubr.msk.bf16.mxu0 %vm474_vm0, %v3174_v33 }
  0x49   : > { %2685 = vmatmul.mubr.msk.bf16.gmra.mrb[12].mxu1 %vm474_vm0, %v3179_v34 }
  0x4a   : > { %2708 = vmatprep.mubr.msk.bf16.mxu1 %vm474_vm0, %v3134_v13 }
  0x4b   : > { %2699 = vmatmul.mubr.msk.bf16.gmra.mrb[8].mxu0 %vm474_vm0, %v3179_v34 }
  0x4c   : > { %2702 = vmatprep.mubr.msk.bf16.mxu0 %vm474_vm0, %v3187_v35 }
  0x51   : > { %2709 = vmatmul.mubr.msk.bf16.vlgmr.msra.gmra.mrb[16].mxu1 %vm474_vm0, %v3144_v17 }
  0x52   : > { %2712 = vmatprep.mubr.msk.bf16.mxu1 %vm474_vm0, %v3149_v20  ;;  %2725 = vmatpush3.bf16.msra.mxu1 %v2966_v37 }
  0x53   : > { %2742 = vmatprep.subr.bf16.mxu1 %v2968_v38  ;;  %2703 = vmatmul.mubr.msk.bf16.gmra.mrb[12].mxu0 %vm474_vm0, %v1051_v39 }
  0x54   : > { %2762 = vmatprep.mubr.msk.bf16.mxu0 %vm474_vm0, %v3134_v13 }
  0x59   : > { %2713 = vmatmul.mubr.msk.bf16.gmra.mrb[20].mxu1 %vm474_vm0, %v3159_v26 }
  0x5a   : > { %2716 = vmatprep.mubr.msk.bf16.mxu1 %vm474_vm0, %v3161_v27 }
  0x5b   : > { %2763 = vmatmul.mubr.msk.bf16.vlgmr.msra.gmra.mrb[16].mxu0 %vm474_vm0, %v3144_v17 }
  0x5c   : > { %2779 = vmatpush3.bf16.msra.mxu0 %v2965_v36  ;;  %2766 = vmatprep.mubr.msk.bf16.mxu0 %vm474_vm0, %v3149_v20 }
  0x5d   : > { %2796 = vmatprep.subr.bf16.mxu0 %v2967_v40 }
  0x61   : > { %2717 = vmatmul.mubr.msk.bf16.gmra.mrb[24].mxu1 %vm474_vm0, %v3174_v33 }
  0x62   : > { %2720 = vmatprep.mubr.msk.bf16.mxu1 %vm474_vm0, %v3179_v34 }
  0x63   : > { %2767 = vmatmul.mubr.msk.bf16.gmra.mrb[20].mxu0 %vm474_vm0, %v3159_v26 }
  0x64   : > { %2770 = vmatprep.mubr.msk.bf16.mxu0 %vm474_vm0, %v3161_v27 }
  0x69   : > { %2721 = vmatmul.mubr.msk.bf16.gmra.mrb[28].mxu1 %vm474_vm0, %v3187_v35 }
  0x6a   : > { %2726 = vmatprep.mubr.msk.bf16.mxu1 %vm474_vm0, %v768_v31 }
  0x6b   : > { %2771 = vmatmul.mubr.msk.bf16.gmra.mrb[24].mxu0 %vm474_vm0, %v3174_v33 }
  0x6c   : > { %2774 = vmatprep.mubr.msk.bf16.mxu0 %vm474_vm0, %v3179_v34 }
  0x71   : > { %2727 = vmatmul.mubr.msk.bf16.vlgmr.msra.gmra.mrb[16].mxu1 %vm474_vm0, %v3134_v13 }
  0x72   : > { %2730 = vmatprep.mubr.msk.bf16.mxu1 %vm474_vm0, %v3144_v17  ;;  %2743 = vmatpush3.bf16.msra.mxu1 %v2968_v38 }
  0x73   : > { %2775 = vmatmul.mubr.msk.bf16.gmra.mrb[28].mxu0 %vm474_vm0, %v3187_v35 }
  0x74   : > { %2780 = vmatprep.mubr.msk.bf16.mxu0 %vm474_vm0, %v768_v31 }
  0x79   : > { %2731 = vmatmul.mubr.msk.bf16.gmra.mrb[20].mxu1 %vm474_vm0, %v3149_v20 }
  0x7a   : > { %2734 = vmatprep.mubr.msk.bf16.mxu1 %vm474_vm0, %v3159_v26 }
  0x7b   : > { %2781 = vmatmul.mubr.msk.bf16.vlgmr.msra.gmra.mrb[16].mxu0 %vm474_vm0, %v3134_v13 }
  0x7c   : > { %2797 = vmatpush3.bf16.msra.mxu0 %v2967_v40  ;;  %2784 = vmatprep.mubr.msk.bf16.mxu0 %vm474_vm0, %v3144_v17 }
  0x81   : > { %2735 = vmatmul.mubr.msk.bf16.gmra.mrb[24].mxu1 %vm474_vm0, %v3161_v27 }
  0x82   : > { %2738 = vmatprep.mubr.msk.bf16.mxu1 %vm474_vm0, %v3174_v33 }
  0x83   : > { %2785 = vmatmul.mubr.msk.bf16.gmra.mrb[20].mxu0 %vm474_vm0, %v3149_v20 }
  0x84   : > { %2788 = vmatprep.mubr.msk.bf16.mxu0 %vm474_vm0, %v3159_v26 }
  0x89   : > { %2739 = vmatmul.mubr.msk.bf16.gmra.mrb[28].mxu1 %vm474_vm0, %v3179_v34 }
  0x8a   : > { %2744 = vmatprep.mubr.msk.bf16.mxu1 %vm474_vm0, %v3144_v17 }
  0x8b   : > { %2789 = vmatmul.mubr.msk.bf16.gmra.mrb[24].mxu0 %vm474_vm0, %v3161_v27 }
  0x8c   : > { %2792 = vmatprep.mubr.msk.bf16.mxu0 %vm474_vm0, %v3174_v33 }
  0x91   : > { %2745 = vmatmul.mubr.msk.bf16.vlgmr.msra.gmra.mrb[16].mxu1 %vm474_vm0, %v3149_v20 }
  0x92   : > { %2748 = vmatprep.mubr.msk.bf16.mxu1 %vm474_vm0, %v3159_v26 }
  0x93   : > { %2793 = vmatmul.mubr.msk.bf16.gmra.mrb[28].mxu0 %vm474_vm0, %v3179_v34 }
  0x94   : > { %2798 = vmatprep.mubr.msk.bf16.mxu0 %vm474_vm0, %v3144_v17 }
  0x99   : > { %2749 = vmatmul.mubr.msk.bf16.gmra.mrb[20].mxu1 %vm474_vm0, %v3161_v27 }
  0x9a   : > { %2752 = vmatprep.mubr.msk.bf16.mxu1 %vm474_vm0, %v3174_v33 }
  0x9b   : > { %2799 = vmatmul.mubr.msk.bf16.vlgmr.msra.gmra.mrb[16].mxu0 %vm474_vm0, %v3149_v20 }
  0x9c   : > { %2802 = vmatprep.mubr.msk.bf16.mxu0 %vm474_vm0, %v3159_v26 }
  0xa1   : > { %2753 = vmatmul.mubr.msk.bf16.gmra.mrb[24].mxu1 %vm474_vm0, %v3179_v34 }
  0xa2   : > { %2756 = vmatprep.mubr.msk.bf16.mxu1 %vm474_vm0, %v3187_v35 }
  0xa3   : > { %2803 = vmatmul.mubr.msk.bf16.gmra.mrb[20].mxu0 %vm474_vm0, %v3161_v27 }
  0xa4   : > { %2806 = vmatprep.mubr.msk.bf16.mxu0 %vm474_vm0, %v3174_v33 }
  0xa9   : > { %2757 = vmatmul.mubr.msk.bf16.gmra.mrb[28].mxu1 %vm474_vm0, %v1051_v39 }
  0xab   : > { %2807 = vmatmul.mubr.msk.bf16.gmra.mrb[24].mxu0 %vm474_vm0, %v3179_v34 }
  0xac   : > { %2810 = vmatprep.mubr.msk.bf16.mxu0 %vm474_vm0, %v3187_v35 }
  0xb3   : > { %2811 = vmatmul.mubr.msk.bf16.gmra.mrb[28].mxu0 %vm474_vm0, %v1051_v39 }
  0xf4   : > { %v2656_v41 = vpop.f32.mrb[0].mxu1 }
  0xf5   : > { %v853_v42 = vpop.f32.mrb[1].mxu1 }
  0xf6   : > { %v2657_v43 = vpop.f32.mrb[2].mxu1 }
  0xf7   : > { %v856_v44 = vpop.f32.mrb[3].mxu1 }
  0xfc   : > { %v2660_v45 = vpop.f32.mrb[4].mxu1 }
  0xfd   : > { %v869_v46 = vpop.f32.mrb[5].mxu1 }
  0xfe   : > { %v2661_v47 = vpop.f32.mrb[6].mxu1 }
  0xff   : > { %v872_v48 = vpop.f32.mrb[7].mxu1 }
 0x10d   : > { %v2692_v50 = vpop.f32.mrb[0].mxu0 }
 0x10e   : > { %v2816_v51 = vadd.f32 %v2692_v50, %v2656_v41  ;;  %v1119_v52 = vpop.f32.mrb[1].mxu0 }
 0x10f   : > { %v3318_v53 = vadd.f32 %v1119_v52, %v853_v42  ;;  %v2693_v54 = vpop.f32.mrb[2].mxu0 }
 0x110   : > { %v2818_v56 = vadd.f32 %v2693_v54, %v2657_v43  ;;  %v1122_v57 = vpop.f32.mrb[3].mxu0  ;;  %v1216_v61 = vrot.slane %v2816_v51, 7 }
 0x111   : > { %v2819_v59 = vadd.f32 %v1122_v57, %v856_v44  ;;  %v1214_v0 = vrot.slane %v3318_v53, 7 }
 0x112   : > { %v1217_v62 = vrot.slane %v2818_v56, 7 }
 0x113   : > { %v1215_v1 = vrot.slane %v2819_v59, 7 }
 0x114   : > { %v2682_v58 = vpop.f32.mrb[8].mxu1  ;;  %v3326_v3 = vsel %vm1230_vm1, %v1216_v61, %v1217_v62 }
 0x115   : > { %v1012_v60 = vpop.f32.mrb[9].mxu1  ;;  %v3330_v5 = vsel %vm1230_vm1, %v1215_v1, %v1216_v61  ;;  %v3334_v6 = vsel %vm1230_vm1, %v1214_v0, %v1215_v1 }
 0x116   : > { %v2683_v63 = vpop.f32.mrb[10].mxu1  ;;  %v2696_v4 = vpop.f32.mrb[4].mxu0 }
 0x117   : > { %v1015_v2 = vpop.f32.mrb[11].mxu1  ;;  %v2820_v7 = vadd.f32 %v2696_v4, %v2660_v45  ;;  %v1135_v8 = vpop.f32.mrb[5].mxu0 }
 0x118   : > { %v2821_v9 = vadd.f32 %v1135_v8, %v869_v46  ;;  %v2697_v10 = vpop.f32.mrb[6].mxu0 }
 0x119   : > { %v2822_v11 = vadd.f32 %v2697_v10, %v2661_v47  ;;  %v1138_v12 = vpop.f32.mrb[7].mxu0  ;;  %v1220_v17 = vrot.slane %v2820_v7, 7 }
 0x11a   : > { %v1218_v14 = vrot.slane %v2821_v9, 7  ;;  %v2823_v15 = vadd.f32 %v1138_v12, %v872_v48 }
 0x11b   : > { %v1221_v18 = vrot.slane %v2822_v11, 7 }
 0x11c   : > { %v2686_v13 = vpop.f32.mrb[12].mxu1  ;;  %v1219_v20 = vrot.slane %v2823_v15, 7  ;;  %v3338_v22 = vsel %vm1230_vm1, %v1217_v62, %v1218_v14  ;;  %v580_v62 = vand.u32 15, %v3320_v55  ;;  %v568_v15 = vadd.s32 64, %v3320_v55 }
 0x11d   : > { %v1028_v16 = vpop.f32.mrb[13].mxu1  ;;  %v3342_v23 = vsel %vm1230_vm1, %v1220_v17, %v1221_v18 }
 0x11e   : > { %v2687_v19 = vpop.f32.mrb[14].mxu1  ;;  %v2700_v24 = vpop.f32.mrb[8].mxu0  ;;  %v3346_v25 = vsel %vm1230_vm1, %v1219_v20, %v1220_v17  ;;  %v3350_v26 = vsel %vm1230_vm1, %v1218_v14, %v1219_v20  ;;  %vm1198_vm3 = vcmp.eq.s32.totalorder %v580_v62, 0  ;;  %v574_v17 = vadd.s32 112, %v3320_v55 }
 0x11f   : > { %v1031_v21 = vpop.f32.mrb[15].mxu1  ;;  %v2824_v27 = vadd.f32 %v2700_v24, %v2682_v58  ;;  %v1151_v28 = vpop.f32.mrb[9].mxu0 }
 0x120   : > { %v2825_v29 = vadd.f32 %v1151_v28, %v1012_v60  ;;  %v2701_v30 = vpop.f32.mrb[10].mxu0  ;;  %v562_v60 = vadd.s32 16, %v3320_v55 }
 0x121   : > { %v2826_v31 = vadd.f32 %v2701_v30, %v2683_v63  ;;  %v1154_v32 = vpop.f32.mrb[11].mxu0  ;;  %v1224_v35 = vrot.slane %v2824_v27, 7  ;;  %v566_v63 = vadd.s32 48, %v3320_v55  ;;  %v678_v27 = vand.u32 15, %v574_v17 }
 0x122   : > { %v1222_v33 = vrot.slane %v2825_v29, 7  ;;  %v2827_v34 = vadd.f32 %v1154_v32, %v1015_v2  ;;  %v594_v61 = vand.u32 15, %v562_v60  ;;  %v567_v60 = vadd.s32 56, %v3320_v55 }
 0x123   : > { %v1225_v36 = vrot.slane %v2826_v31, 7  ;;  %v622_v9 = vand.u32 15, %v566_v63  ;;  %vm3456_vm11 = vcmp.eq.s32.totalorder %v678_v27, 0  ;;  %v3499_v27 = vld [vmem:[%s3410_s19 + $0x28] sm:$0xff]  }
 0x124   : > { %v1223_v37 = vrot.slane %v2827_v34, 7  ;;  %v3354_v38 = vsel %vm1230_vm1, %v1221_v18, %v1222_v33  ;;  %vm1200_vm2 = vcmp.eq.s32.totalorder %v594_v61, 0  ;;  %v572_v18 = vadd.s32 96, %v3320_v55 }
 0x125   : > { %v3358_v39 = vsel %vm1230_vm1, %v1224_v35, %v1225_v36  ;;  %v1249_v1 = vsel %vm1200_vm2, 0.0, %v3330_v5  ;;  %v570_v5 = vadd.s32 80, %v3320_v55  ;;  %vm1204_vm4 = vcmp.eq.s32.totalorder %v622_v9, 0 }
 0x126   : > { %v2704_v40 = vpop.f32.mrb[12].mxu0  ;;  %v3362_v41 = vsel %vm1230_vm1, %v1223_v37, %v1224_v35  ;;  %v3366_v42 = vsel %vm1230_vm1, %v1222_v33, %v1223_v37  ;;  %v1253_v20 = vsel %vm1204_vm4, 0.0, %v3346_v25  ;;  %v664_v28 = vand.u32 15, %v572_v18  ;;  %v3421_v35 = vld [vmem:[%s3410_s19 + $0x8] sm:$0xff]   ;;  %v3427_v37 = vld [vmem:[%s3410_s19] sm:$0xff]  }
 0x127   : > { %v2828_v43 = vadd.f32 %v2704_v40, %v2686_v13  ;;  %v1167_v44 = vpop.f32.mrb[13].mxu0  ;;  %v650_v24 = vand.u32 15, %v570_v5  ;;  %v565_v33 = vadd.s32 40, %v3320_v55  ;;  %v3466_v61 = vadd.s32 72, %v3320_v55 }
 0x128   : > { %v2829_v45 = vadd.f32 %v1167_v44, %v1028_v16  ;;  %v2705_v46 = vpop.f32.mrb[14].mxu0  ;;  %vm3446_vm8 = vcmp.eq.s32.totalorder %v664_v28, 0 }
 0x129   : > { %v2830_v47 = vadd.f32 %v2705_v46, %v2687_v19  ;;  %v1170_v48 = vpop.f32.mrb[15].mxu0  ;;  %v1228_v51 = vrot.slane %v2828_v43, 7  ;;  %v561_v19 = vadd.s32 8, %v3320_v55  ;;  %vm3432_vm6 = vcmp.eq.s32.totalorder %v650_v24, 0  ;;  %v3441_v46 = vld [vmem:[%s3410_s19 + $0x18] sm:$0xff]  }
 0x12a   : > { %v1226_v49 = vrot.slane %v2829_v45, 7  ;;  %v2831_v50 = vadd.f32 %v1170_v48, %v1031_v21  ;;  %v629_v24 = vand.u32 15, %v567_v60 }
 0x12b   : > { %v1229_v52 = vrot.slane %v2830_v47, 7  ;;  %v587_v32 = vand.u32 15, %v561_v19  ;;  %v3444_v47 = vld [vmem:[%s3410_s19 + $0x10] sm:$0xff]  }
 0x12c   : > { %v1227_v53 = vrot.slane %v2831_v50, 7  ;;  %v3370_v54 = vsel %vm1230_vm1, %v1225_v36, %v1226_v49  ;;  %v615_v50 = vand.u32 15, %v565_v33  ;;  %vm3549_vm15 = vcmp.eq.s32.totalorder %v629_v24, 15 }
 0x12d   : > { %v1246_v56 = vsel %vm1230_vm1, %v1229_v52, %v1214_v0  ;;  %v3376_v57 = vsel %vm1230_vm1, %v1228_v51, %v1229_v52  ;;  %v564_v0 = vadd.s32 32, %v3320_v55  ;;  %vm3452_vm10 = vcmp.eq.s32.totalorder %v587_v32, 15 }
 0x12e   : > { %v3380_v58 = vsel %vm1230_vm1, %v1227_v53, %v1228_v51  ;;  %v3384_v59 = vsel %vm1230_vm1, %v1226_v49, %v1227_v53  ;;  %v1247_v7 = vsel %vm1198_vm3, 0.0, %v1246_v56  ;;  %v2534_v53 = vunpack.c.l.bf16 %v3427_v37 }
 0x12f   : > { %v608_v12 = vand.u32 15, %v564_v0  ;;  %v2535_v56 = vunpack.c.h.bf16 %v3427_v37  ;;  %v2539_v0 = vunpack.c.h.bf16 %v3421_v35  ;;  %vm3485_vm14 = vcmp.eq.s32.totalorder %v615_v50, 15 }
 0x130   : > { %v3526_v50 = vadd.s32 88, %v3320_v55 }
 0x131   : > { %vm1202_vm5 = vcmp.eq.s32.totalorder %v608_v12, 0 }
 0x132   : > { %v1251_v30 = vsel %vm1202_vm5, 0.0, %v3338_v22 }
 0x164   : > { %v2746_v2 = vpop.f32.mrb[16].mxu1 }
 0x165   : > { %v3391_v4 = vadd.f32 %v2746_v2, %v1249_v1  ;;  %v1518_v8 = vpop.f32.mrb[17].mxu1  ;;  %v2546_v1 = vunpack.c.l.bf16 %v3441_v46  ;;  %v2542_v2 = vunpack.c.l.bf16 %v3444_v47 }
 0x166   : > { %v3393_v10 = vadd.f32 %v1518_v8, %v1247_v7  ;;  %v2747_v11 = vpop.f32.mrb[18].mxu1 }
 0x167   : > { %v3396_v13 = vadd.f32 %v2747_v11, %v3326_v3  ;;  %v1521_v14 = vpop.f32.mrb[19].mxu1  ;;  %v563_v3 = vadd.s32 24, %v3320_v55  ;;  %v1257_v11 = vsel %vm3432_vm6, 0.0, %v3362_v41 }
 0x168   : > { %v3400_v16 = vadd.f32 %v1521_v14, %v3334_v6  ;;  %v636_v6 = vand.u32 15, %v568_v15  ;;  %v2543_v14 = vunpack.c.h.bf16 %v3444_v47 }
 0x169   : > { %v601_v43 = vand.u32 15, %v563_v3 }
 0x16a   : > { %vm3436_vm7 = vcmp.eq.s32.totalorder %v636_v6, 0  ;;  %v3494_v6 = vld [vmem:[%s3723_s4] ss:$0 sm:$0xff] }
 0x16b   : > { %vm3468_vm12 = vcmp.eq.s32.totalorder %v601_v43, 15  ;;  %v1255_v18 = vsel %vm3436_vm7, 0.0, %v3354_v38  ;;  %v643_v38 = vand.u32 15, %v3466_v61  ;;  %v2547_v43 = vunpack.c.h.bf16 %v3441_v46 }
 0x16c   : > { %v2750_v21 = vpop.f32.mrb[20].mxu1  ;;  %v3534_v61 = vadd.s32 104, %v3320_v55 }
 0x16d   : > { %v3414_v29 = vadd.f32 %v2750_v21, %v1253_v20  ;;  %v1534_v31 = vpop.f32.mrb[21].mxu1  ;;  %vm3561_vm0 = vcmp.eq.s32.totalorder %v643_v38, 15 }
 0x16e   : > { %v3418_v34 = vadd.f32 %v1534_v31, %v1251_v30  ;;  %v2751_v36 = vpop.f32.mrb[22].mxu1  ;;  %v2800_v48 = vpop.f32.mrb[16].mxu0 }
 0x16f   : > { %v3424_v25 = vadd.f32 %v2751_v36, %v3342_v23  ;;  %v1537_v40 = vpop.f32.mrb[23].mxu1  ;;  %v3460_v52 = vpop.f32.mrb[17].mxu0  ;;  %v1965_v7 = vrot.slane %v2800_v48, 1  ;;  %v3513_v36 = vld [vmem:[%s3410_s19 + $0x20] sm:$0xff]   ;;  %v2554_v48 = vunpack.c.l.bf16 %v3499_v27 }
 0x170   : > { %v3430_v44 = vadd.f32 %v1537_v40, %v3350_v26  ;;  %v2538_v26 = vunpack.c.l.bf16 %v3421_v35  ;;  %v2801_v62 = vpop.f32.mrb[18].mxu0  ;;  %v1963_v15 = vrot.slane %v3460_v52, 1  ;;  %v2551_v3 = vunpack.c.h.bf16 %v3513_v36 }
 0x171   : > { %v1966_v8 = vrot.slane %v2801_v62, 1  ;;  %v1871_v9 = vpop.f32.mrb[19].mxu0 }
 0x172   : > { %v1964_v5 = vrot.slane %v1871_v9, 1 }
 0x173   : > { %v1992_v41 = vsel %vm1979_vm9, %v1965_v7, %v1966_v8 }
 0x174   : > { %v2754_v12 = vpop.f32.mrb[24].mxu1  ;;  %v2014_v28 = vadd.f32 %v1992_v41, %v3391_v4  ;;  %v1993_v30 = vsel %vm1979_vm9, %v1964_v5, %v1965_v7  ;;  %v1994_v31 = vsel %vm1979_vm9, %v1963_v15, %v1964_v5 }
 0x175   : > { %v3480_v17 = vadd.f32 %v2754_v12, %v1257_v11  ;;  %v1550_v19 = vpop.f32.mrb[25].mxu1  ;;  %v1997_v37 = vsel %vm3452_vm10, 0.0, %v1993_v30  ;;  %v2012_v40 = vadd.f32 %v1994_v31, %v3393_v10  ;;  %v2550_v10 = vunpack.c.l.bf16 %v3513_v36 }
 0x176   : > { %v3496_v20 = vadd.f32 %v1550_v19, %v1255_v18  ;;  %v2755_v21 = vpop.f32.mrb[26].mxu1  ;;  %v2037_v22 = vadd.f32 %v3494_v6, %v2014_v28  ;;  %v2013_v45 = vadd.f32 %v1997_v37, %v3400_v16  ;;  %v1259_v11 = vsel %vm3446_vm8, 0.0, %v3370_v54 }
 0x177   : > { %v3510_v32 = vadd.f32 %v2755_v21, %v3358_v39  ;;  %v1553_v33 = vpop.f32.mrb[27].mxu1  ;;  %v2804_v39 = vpop.f32.mrb[20].mxu0  ;;  %v2035_v49 = vadd.f32 %v3494_v6, %v2012_v40 }
 0x178   : > { %v3519_v4 = vadd.f32 %v1553_v33, %v3366_v42  ;;  %v1884_v60 = vpop.f32.mrb[21].mxu0  ;;  %v3531_v42 = vadd.s32 120, %v3320_v55  ;;  %v2085_v62 = vadd.f32 %v2538_v26, %v2037_v22  ;;  %v2036_v16 = vadd.f32 %v3494_v6, %v2013_v45 }
 0x179   : > { %v1967_v7 = vrot.slane %v1884_v60, 1  ;;  %v2805_v9 = vpop.f32.mrb[22].mxu0  ;;  %v2083_v12 = vadd.f32 %v2534_v53, %v2035_v49  ;;  %v1969_v5 = vrot.slane %v2804_v39, 1  ;;  %v1261_v26 = vsel %vm3456_vm11, 0.0, %v3380_v58 }
 0x17a   : > { %v1970_v18 = vrot.slane %v2805_v9, 1  ;;  %v1887_v19 = vpop.f32.mrb[23].mxu0  ;;  %v2510_v54 = vpack.c.bf16 %v2085_v62, %v2085_v62  ;;  %v2084_v23 = vadd.f32 %v2535_v56, %v2036_v16 }
 0x17b   : > { %v1991_v28 = vsel %vm1979_vm9, %v1966_v8, %v1967_v7  ;;  %v1968_v53 = vrot.slane %v1887_v19, 1  ;;  %v2508_v31 = vpack.c.bf16 %v2083_v12, %v2083_v12 }
 0x17c   : > { %v2758_v41 = vpop.f32.mrb[28].mxu1  ;;  %v1999_v33 = vsel %vm3468_vm12, 0.0, %v1991_v28  ;;  %v1988_v58 = vsel %vm1979_vm9, %v1969_v5, %v1970_v18  ;;  %2166 = vst.msk [vmem:[%s3544_s16 + $0x8] sm:$0xf] %vm2163_vm13, %v2510_v54  ;;  %v2509_v56 = vpack.c.bf16 %v2084_v23, %v2084_v23 }
 0x17d   : > { %v1566_v30 = vpop.f32.mrb[29].mxu1  ;;  %v3559_v51 = vadd.f32 %v2758_v41, %v1261_v26  ;;  %v2015_v8 = vadd.f32 %v1999_v33, %v3396_v13  ;;  %v2018_v40 = vadd.f32 %v1988_v58, %v3414_v29  ;;  %v1989_v63 = vsel %vm1979_vm9, %v1968_v53, %v1969_v5  ;;  %2164 = vst.msk [vmem:[%s3544_s16] sm:$0xf] %vm2163_vm13, %v2508_v31 }
 0x17e   : > { %v2759_v24 = vpop.f32.mrb[30].mxu1  ;;  %v1990_v45 = vsel %vm1979_vm9, %v1967_v7, %v1968_v53  ;;  %v2001_v38 = vsel %vm3485_vm14, 0.0, %v1989_v63  ;;  %v3577_v39 = vadd.f32 %v1566_v30, %v1259_v11  ;;  %2165 = vst.msk [vmem:[%s3544_s16 + $0x4] sm:$0xf] %vm2163_vm13, %v2509_v56  ;;  %v2808_v16 = vpop.f32.mrb[24].mxu0  ;;  %v685_v11 = vand.u32 15, %v3531_v42 }
 0x17f   : > { %v1569_v22 = vpop.f32.mrb[31].mxu1  ;;  %v3580_v49 = vadd.f32 %v2759_v24, %v3376_v57  ;;  %v2038_v13 = vadd.f32 %v3494_v6, %v2015_v8  ;;  %v2041_v29 = vadd.f32 %v3494_v6, %v2018_v40  ;;  %v2016_v60 = vadd.f32 %v1990_v45, %v3418_v34  ;;  %v1900_v7 = vpop.f32.mrb[25].mxu0 }
 0x180   : > { %v2017_v62 = vadd.f32 %v2001_v38, %v3430_v44  ;;  %v3590_v9 = vadd.f32 %v1569_v22, %v3384_v59  ;;  %v657_v57 = vand.u32 15, %v3526_v50  ;;  %v2809_v19 = vpop.f32.mrb[26].mxu0  ;;  %v1973_v26 = vrot.slane %v2808_v16, 1 }
 0x181   : > { %v2086_v12 = vadd.f32 %v2539_v0, %v2038_v13  ;;  %v2089_v5 = vadd.f32 %v2546_v1, %v2041_v29  ;;  %v2039_v34 = vadd.f32 %v3494_v6, %v2016_v60  ;;  %v1971_v59 = vrot.slane %v1900_v7, 1  ;;  %v1903_v54 = vpop.f32.mrb[27].mxu0 }
 0x182   : > { %v2040_v44 = vadd.f32 %v3494_v6, %v2017_v62  ;;  %v1974_v41 = vrot.slane %v2809_v19, 1  ;;  %v671_v50 = vand.u32 15, %v3534_v61  ;;  %v1972_v53 = vrot.slane %v1903_v54, 1 }
 0x183   : > { %v2511_v42 = vpack.c.bf16 %v2086_v12, %v2086_v12  ;;  %v2514_v35 = vpack.c.bf16 %v2089_v5, %v2089_v5  ;;  %v2087_v0 = vadd.f32 %v2542_v2, %v2039_v34  ;;  %v1987_v23 = vsel %vm1979_vm9, %v1970_v18, %v1971_v59  ;;  %v3621_v18 = vld [vmem:[%s3410_s19 + $0x38] sm:$0xff]  }
 0x184   : > { %v2088_v1 = vadd.f32 %v2543_v14, %v2040_v44  ;;  %v1984_v28 = vsel %vm1979_vm9, %v1973_v26, %v1974_v41  ;;  %vm3609_vm1 = vcmp.eq.s32.totalorder %v657_v57, 15  ;;  %v2003_v14 = vsel %vm3549_vm15, 0.0, %v1987_v23 }
 0x185   : > { %2167 = vst.msk [vmem:[%s3544_s16 + $0xc] sm:$0xf] %vm2163_vm13, %v2511_v42  ;;  %2170 = vst.msk [vmem:[%s3544_s16 + $0x18] sm:$0xf] %vm2163_vm13, %v2514_v35  ;;  %v2512_v2 = vpack.c.bf16 %v2087_v0, %v2087_v0  ;;  %v2022_v61 = vadd.f32 %v1984_v28, %v3480_v17  ;;  %v2019_v31 = vadd.f32 %v2003_v14, %v3424_v25  ;;  %vm3628_vm2 = vcmp.eq.s32.totalorder %v685_v11, 15 }
 0x186   : > { %v2513_v47 = vpack.c.bf16 %v2088_v1, %v2088_v1  ;;  %v1985_v33 = vsel %vm1979_vm9, %v1972_v53, %v1973_v26  ;;  %v1986_v58 = vsel %vm1979_vm9, %v1971_v59, %v1972_v53  ;;  %v2812_v56 = vpop.f32.mrb[28].mxu0  ;;  %vm3640_vm3 = vcmp.eq.s32.totalorder %v671_v50, 15 }
 0x187   : > { %2168 = vst.msk [vmem:[%s3544_s16 + $0x10] sm:$0xf] %vm2163_vm13, %v2512_v2  ;;  %v2045_v17 = vadd.f32 %v3494_v6, %v2022_v61  ;;  %v2005_v21 = vsel %vm3561_vm0, 0.0, %v1985_v33  ;;  %v2020_v25 = vadd.f32 %v1986_v58, %v3496_v20  ;;  %v2042_v40 = vadd.f32 %v3494_v6, %v2019_v31  ;;  %v1916_v22 = vpop.f32.mrb[29].mxu0 }
 0x188   : > { %2169 = vst.msk [vmem:[%s3544_s16 + $0x14] sm:$0xf] %vm2163_vm13, %v2513_v47  ;;  %v2021_v63 = vadd.f32 %v2005_v21, %v3519_v4  ;;  %v2555_v45 = vunpack.c.h.bf16 %v3499_v27  ;;  %v2562_v38 = vunpack.c.l.bf16 %v3621_v18  ;;  %v1975_v20 = vrot.slane %v1916_v22, 1  ;;  %v2813_v29 = vpop.f32.mrb[30].mxu0 }
 0x189   : > { %v2093_v37 = vadd.f32 %v2554_v48, %v2045_v17  ;;  %v2043_v13 = vadd.f32 %v3494_v6, %v2020_v25  ;;  %v2563_v60 = vunpack.c.h.bf16 %v3621_v18  ;;  %v2090_v62 = vadd.f32 %v2547_v43, %v2042_v40  ;;  %v1919_v57 = vpop.f32.mrb[31].mxu0 }
 0x18a   : > { %v2044_v4 = vadd.f32 %v3494_v6, %v2021_v63  ;;  %v1977_v16 = vrot.slane %v2812_v56, 1  ;;  %v1978_v7 = vrot.slane %v2813_v29, 1  ;;  %v1983_v48 = vsel %vm1979_vm9, %v1974_v41, %v1975_v20 }
 0x18b   : > { %v2518_v11 = vpack.c.bf16 %v2093_v37, %v2093_v37  ;;  %v2091_v27 = vadd.f32 %v2550_v10, %v2043_v13  ;;  %v1976_v12 = vrot.slane %v1919_v57, 1  ;;  %v2515_v5 = vpack.c.bf16 %v2090_v62, %v2090_v62 }
 0x18c   : > { %v2092_v34 = vadd.f32 %v2551_v3, %v2044_v4  ;;  %v2007_v46 = vsel %vm3609_vm1, 0.0, %v1983_v48  ;;  %v1980_v43 = vsel %vm1979_vm9, %v1977_v16, %v1978_v7  ;;  %v1995_v10 = vsel %vm1979_vm9, %v1978_v7, %v1963_v15  ;;  %v2569_v3 = vld [vmem:[%s3410_s19 + $0x30] sm:$0xff]  }
 0x18d   : > { %2174 = vst.msk [vmem:[%s3544_s16 + $0x28] sm:$0xf] %vm2163_vm13, %v2518_v11  ;;  %v2516_v44 = vpack.c.bf16 %v2091_v27, %v2091_v27  ;;  %v2023_v36 = vadd.f32 %v2007_v46, %v3510_v32  ;;  %v2026_v19 = vadd.f32 %v1980_v43, %v3559_v51  ;;  %2171 = vst.msk [vmem:[%s3544_s16 + $0x1c] sm:$0xf] %vm2163_vm13, %v2515_v5  ;;  %v2011_v59 = vsel %vm3628_vm2, 0.0, %v1995_v10 }
 0x18e   : > { %v2517_v26 = vpack.c.bf16 %v2092_v34, %v2092_v34  ;;  %v1981_v41 = vsel %vm1979_vm9, %v1976_v12, %v1977_v16  ;;  %v1982_v32 = vsel %vm1979_vm9, %v1975_v20, %v1976_v12  ;;  %v2027_v15 = vadd.f32 %v2011_v59, %v3580_v49 }
 0x18f   : > { %2172 = vst.msk [vmem:[%s3544_s16 + $0x20] sm:$0xf] %vm2163_vm13, %v2516_v44  ;;  %v2046_v52 = vadd.f32 %v3494_v6, %v2023_v36  ;;  %v2049_v51 = vadd.f32 %v3494_v6, %v2026_v19  ;;  %v2009_v54 = vsel %vm3640_vm3, 0.0, %v1981_v41  ;;  %v2024_v50 = vadd.f32 %v1982_v32, %v3577_v39 }
 0x190   : > { %2173 = vst.msk [vmem:[%s3544_s16 + $0x24] sm:$0xf] %vm2163_vm13, %v2517_v26  ;;  %v2025_v55 = vadd.f32 %v2009_v54, %v3590_v9  ;;  %v2558_v42 = vunpack.c.l.bf16 %v2569_v3  ;;  %v2559_v35 = vunpack.c.h.bf16 %v2569_v3  ;;  %v2050_v49 = vadd.f32 %v3494_v6, %v2027_v15 }
 0x191   : > { %v2094_v0 = vadd.f32 %v2555_v45, %v2046_v52  ;;  %v2097_v1 = vadd.f32 %v2562_v38, %v2049_v51  ;;  %v2047_v23 = vadd.f32 %v3494_v6, %v2024_v50 }
 0x192   : > { %v2048_v28 = vadd.f32 %v3494_v6, %v2025_v55  ;;  %v2098_v30 = vadd.f32 %v2563_v60, %v2050_v49 }
 0x193   : > { %v2519_v53 = vpack.c.bf16 %v2094_v0, %v2094_v0  ;;  %v2522_v2 = vpack.c.bf16 %v2097_v1, %v2097_v1  ;;  %v2095_v39 = vadd.f32 %v2558_v42, %v2047_v23 }
 0x194   : > { %v2096_v47 = vadd.f32 %v2559_v35, %v2048_v28  ;;  %v2523_v9 = vpack.c.bf16 %v2098_v30, %v2098_v30 }
 0x195   : > { %2175 = vst.msk [vmem:[%s3544_s16 + $0x2c] sm:$0xf] %vm2163_vm13, %v2519_v53  ;;  %2178 = vst.msk [vmem:[%s3544_s16 + $0x38] sm:$0xf] %vm2163_vm13, %v2522_v2  ;;  %v2520_v14 = vpack.c.bf16 %v2095_v39, %v2095_v39 }
 0x196   : > { %v2521_v61 = vpack.c.bf16 %v2096_v47, %v2096_v47  ;;  %2179 = vst.msk [vmem:[%s3544_s16 + $0x3c] sm:$0xf] %vm2163_vm13, %v2523_v9 }
 0x197   : > { %2176 = vst.msk [vmem:[%s3544_s16 + $0x30] sm:$0xf] %vm2163_vm13, %v2520_v14 }
 0x198   : > { %2177 = vst.msk [vmem:[%s3544_s16 + $0x34] sm:$0xf] %vm2163_vm13, %v2521_v61 }
 0x199 PF: > { %s16_s25 = sadd.s32 1, %s3007_s25   ;;  %s3751_s21 = smov %s2999_s23 }
 0x19a   : > { %p13_p12 = scmp.ge.s32.totalorder %s16_s25, 6   ;;  %s3752_s22 = smov %s3003_s24 }
 0x19b   : > { %s3753_s23 = smov %s3756_s26  ;;  %s3754_s24 = smov %s3760_s27 }
 0x19c   :  { %15 = sbr.rel (!%p13_p12) target bundleno = 3 (0x3), region = 94 }

// kernel: rcan_forward_pallas.34
= control target key start
LH: loop header
LB: loop body
LE: loop exit
PB: predicated region body
PF: predicated region fallthrough
CT: control target
= control target key end

     0   :  { %s2861_s18 = smov 0   ;;  %s2863_s19 = smov 0   ;;  %s3459_s0 = inlined_call_operand.vmem [shape: bf16[2,16,16,16], index: 0, kind: input, shape index: {}, may-alias: {0,1,2}]   ;;  %s3460_s1 = inlined_call_operand.vmem [shape: bf16[2,16,16,16], index: 1, kind: input, shape index: {}, may-alias: {0,1,2}]   ;;  %s3461_s2 = inlined_call_operand.vmem [shape: bf16[2,16,16,16], index: 2, kind: input, shape index: {}, may-alias: {0,1,2}]   ;;  %s3462_s3 = inlined_call_operand.vmem [shape: bf16[9,16,64], index: 3, kind: input, shape index: {}]   ;;  %s3463_s4 = inlined_call_operand.vmem [shape: f32[1,64], index: 4, kind: input, shape index: {}]   ;;  %s3464_s5 = inlined_call_operand.vmem [shape: bf16[2,16,16,64], index: 5, kind: output, shape index: {}]  }
   0x1   :  { %s2865_s20 = smov 0   ;;  %s2867_s21 = smov 0  }
   0x2   :  { %s2869_s22 = smov 0  }
   0x3 LB: > { %s24_s23 = sadd.s32 1, %s2821_s20  ;;  %s27_s24 = sadd.s32 1, %s2825_s21  ;;  %s2829_s22 = sphi %s2869_s22, %s15_s22   ;;  %s2825_s21 = sphi %s2867_s21, %s3493_s21   ;;  %s2821_s20 = sphi %s2865_s20, %s3492_s20   ;;  %s2817_s19 = sphi %s2863_s19, %s3491_s19   ;;  %s2813_s18 = sphi %s2861_s18, %s3490_s18  }
   0x4   : > { %p25_p0 = scmp.ge.s32.totalorder %s24_s23, 2  ;;  %p2217_p1 = scmp.ge.s32.totalorder %s2829_s22, 1 }
   0x5   : > { %p273_p2 = scmp.lt.s32.totalorder %s2829_s22, 5 }
   0x6   : > { %s3495_s23 = smov (%p25_p0, %s24_s23), 0  ;;  %s3497_s24 = smov (!%p25_p0, %s27_s24), %s2825_s21 }
   0x7   : > { %p274_p3 = pnand %p2217_p1, %p273_p2  ;;  %p29_p4 = scmp.ge.s32.totalorder %s3497_s24, 2 }
   0x8   : > { %v2774_v0 = vld [vmem:[%s3462_s3 + $0x18] sm:$0xff] (!%p274_p3)   ;;  %s2897_s27 = sshll.u32 (!%p274_p3), %s2813_s18, 3  ;;  %p338_p5 = scmp.lt.s32.totalorder (!%p274_p3), %s2817_s19, 1  ;;  %v2903_v1 = vld [vmem:[%s3462_s3] sm:$0xff] (!%p274_p3)   ;;  %v2911_v2 = vld [vmem:[%s3462_s3 + $0x30] sm:$0xff] (!%p274_p3)   ;;  %vm408_vm0 = vcmask (!%p274_p3), 130048   ;;  %v493_v49 = vlaneseq (!%p274_p3) }
   0x9   : > { %s3499_s24 = smov (%p29_p4, %s3497_s24), 0  ;;  %277 = sbr.rel (%p274_p3) target bundleno = 405 (0x195), region = 40 }
   0xa   : > { %p340_p6 = scmp.lt.s32.totalorder (!%p274_p3), %s2897_s27, 15  ;;  %2474 = vmatprep.subr.bf16.mxu1 (!%p274_p3), %v2774_v0  ;;  %s2223_s30 = sadd.s32 (!%p274_p3), 4294967295, %s2897_s27  ;;  %2492 = vmatprep.subr.bf16.mxu0 (!%p274_p3), %v2903_v1  ;;  %v2786_v16 = vld [vmem:[%s3462_s3 + $0x20] sm:$0xff] (!%p274_p3)   ;;  %v2783_v32 = vld [vmem:[%s3462_s3 + $0x28] sm:$0xff] (!%p274_p3)   ;;  %v2787_v36 = vld [vmem:[%s3462_s3 + $0x10] sm:$0xff] (!%p274_p3)   ;;  %v3139_v55 = vshrl.u32 (!%p274_p3), %v493_v49, 7 }
   0xb   : > { %p394_p7 = scmp.gt.s32.totalorder (!%p274_p3), %s2813_s18, 0  ;;  %2475 = vmatpush3.bf16.msra.mxu1 (!%p274_p3), %v2774_v0  ;;  %2493 = vmatpush3.bf16.msra.mxu0 (!%p274_p3), %v2903_v1  ;;  %p350_p8 = scmp.gt.s32.totalorder (!%p274_p3), %s2223_s30, 0  ;;  %v2788_v37 = vld [vmem:[%s3462_s3 + $0x8] sm:$0xff] (!%p274_p3)   ;;  %v2790_v38 = vld [vmem:[%s3462_s3 + $0x38] sm:$0xff] (!%p274_p3)   ;;  %v2789_v40 = vld [vmem:[%s3462_s3 + $0x40] sm:$0xff] (!%p274_p3)   ;;  %vm2049_vm12 = vcmask (!%p274_p3), 519168  }
   0xc   : > { %2636 = vmatprep.subr.bf16.mxu1 (!%p274_p3), %v2903_v1  ;;  %2510 = vmatprep.subr.bf16.mxu0 (!%p274_p3), %v2911_v2  ;;  %p2224_p9 = scmp.lt.s32.totalorder (!%p274_p3), %s2223_s30, 15  ;;  %s366_s12 = sadd.s32 (!%p274_p3), 8, %s2897_s27  ;;  %vm1164_vm1 = vcmp.lt.s32.totalorder (!%p274_p3), %v3139_v55, 1  ;;  %vm1913_vm8 = vcmp.lt.s32.totalorder (!%p274_p3), %v3139_v55, 7 }
   0xd   : > { %p2924_p10 = scmp.lt.s32.totalorder (!%p274_p3), %s366_s12, 15  ;;  %p397_p11 = scmp.lt.s32.totalorder (!%p274_p3), %s2813_s18, 1 }
  0x10   : > { %s3501_s19 = smov (!%p338_p5, %s2817_s19), 1  ;;  %s3503_s30 = smov (!%p350_p8, %s2223_s30), 0 }
  0x11   : > { %s341_s8 = scalar_select %p340_p6, %s2897_s27, 15 }
  0x12   : > { %s2916_s9 = sshll.u32 %s3501_s19, 5  ;;  %s3505_s12 = smov (!%p2924_p10, %s366_s12), 15 }
  0x13   : > { %s2219_s10 = sshll.u32 %s341_s8, 1  ;;  %s3507_s30 = smov (!%p2224_p9, %s3503_s30), 15 }
  0x14   : > { %s2920_s11 = sadd.s32 %s2916_s9, %s2219_s10  ;;  %s2229_s25 = sshll.u32 %s3507_s30, 1 }
  0x15   : > { %s2221_s13 = sshll.u32 %s2920_s11, 2  ;;  %s358_s26 = sadd.s32 %s2229_s25, %s2916_s9 }
  0x16   : > { %s346_s17 = scalar_lea.vmem %s3459_s0, %s2221_s13  ;;  %s2231_s28 = sshll.u32 %s358_s26, 2 }
  0x17   : > { %v2775_v3 = vld [vmem:[%s346_s17] sm:$0xff]   ;;  %v2776_v4 = vld [vmem:[%s346_s17 + $0x8] sm:$0xff]   ;;  %v2779_v5 = vld [vmem:[%s346_s17 + $0x10] sm:$0xff]   ;;  %s395_s19 = scalar_select %p394_p7, 1, 0 }
  0x18   : > { %475 = vst.msk [vmem:[#allocation2 + $0x8] sm:$0xff] %vm408_vm0, %v2775_v3  ;;  %476 = vst.msk [vmem:[#allocation2 + $0x10] sm:$0xff] %vm408_vm0, %v2776_v4  ;;  %v2780_v6 = vld [vmem:[%s346_s17 + $0x18] sm:$0xff]   ;;  %v2781_v7 = vld [vmem:[%s346_s17 + $0x20] sm:$0xff]   ;;  %s360_s7 = scalar_lea.vmem %s3460_s1, %s2231_s28  ;;  %s3509_s12 = smov (!%p2924_p10, %s3505_s12), 15 }
  0x19   : > { %477 = vst.msk [vmem:[#allocation2 + $0x18] sm:$0xff] %vm408_vm0, %v2779_v5  ;;  %s396_s27 = scvt.s32.f32 %s395_s19  ;;  %478 = vst.msk [vmem:[#allocation2 + $0x20] sm:$0xff] %vm408_vm0, %v2780_v6  ;;  %v2782_v8 = vld [vmem:[%s346_s17 + $0x28] sm:$0xff]   ;;  %v2784_v9 = vld [vmem:[%s346_s17 + $0x30] sm:$0xff]   ;;  %s2236_s14 = sshll.u32 %s3509_s12, 1 }
  0x1a   : > { %479 = vst.msk [vmem:[#allocation2 + $0x28] sm:$0xff] %vm408_vm0, %v2781_v7  ;;  %v2386_v10 = vld [vmem:[%s360_s7] sm:$0xff]   ;;  %480 = vst.msk [vmem:[#allocation2 + $0x30] sm:$0xff] %vm408_vm0, %v2782_v8  ;;  %v2785_v12 = vld [vmem:[%s346_s17 + $0x38] sm:$0xff]   ;;  %s398_s10 = scalar_select %p397_p11, 1, 0 }
  0x1b   : > { %v404_v11 = vstv %s396_s27  ;;  %v2387_v14 = vunpack.c.l.bf16 %v2386_v10  ;;  %v2388_v15 = vunpack.c.h.bf16 %v2386_v10  ;;  %481 = vst.msk [vmem:[#allocation2 + $0x38] sm:$0xff] %vm408_vm0, %v2784_v9  ;;  %482 = vst.msk [vmem:[#allocation2 + $0x40] sm:$0xff] %vm408_vm0, %v2785_v12  ;;  %s375_s15 = sadd.s32 %s2236_s14, %s2916_s9 }
  0x1c   : > { %s399_s16 = scvt.s32.f32 %s398_s10  ;;  %s2238_s18 = sshll.u32 %s375_s15, 2 }
  0x1d   : > { %v405_v18 = vmul.f32 %v2387_v14, %v404_v11  ;;  %v406_v19 = vmul.f32 %v2388_v15, %v404_v11  ;;  %s377_s12 = scalar_lea.vmem %s3461_s2, %s2238_s18  ;;  %s3296_s18 = scalar_lea.vmem %s3464_s5, %s2221_s13 }
  0x1e   : > { %v2390_v22 = vld [vmem:[%s377_s12] sm:$0xff]   ;;  %v487_v23 = vstv %s399_s16 }
  0x1f   : > { %v2953_v13 = vld [vmem:[#allocation2 + $0x8] sm:$0xff]  ;;  %v2963_v17 = vld [vmem:[#allocation2 + $0x10] sm:$0xff]  ;;  %v407_v21 = vpack.c.bf16 %v406_v19, %v405_v18  ;;  %v2391_v24 = vunpack.c.l.bf16 %v2390_v22  ;;  %v2392_v25 = vunpack.c.h.bf16 %v2390_v22 }
  0x20   : > { %2476 = vmatprep.mubr.msk.bf16.mxu1 %vm408_vm0, %v2953_v13  ;;  %v2968_v20 = vld [vmem:[#allocation2 + $0x18] sm:$0xff]  ;;  %v2978_v26 = vld [vmem:[#allocation2 + $0x20] sm:$0xff] }
  0x21   : > { %2477 = vmatmul.mubr.msk.bf16.vlgmr.msra.gmra.mrb[0].mxu1 %vm408_vm0, %v2963_v17  ;;  %409 = vst.msk [vmem:[#allocation2] sm:$0xff] %vm408_vm0, %v407_v21  ;;  %v2980_v27 = vld [vmem:[#allocation2 + $0x28] sm:$0xff]  ;;  %v488_v28 = vmul.f32 %v2391_v24, %v487_v23  ;;  %v489_v29 = vmul.f32 %v2392_v25, %v487_v23  ;;  %v2993_v33 = vld [vmem:[#allocation2 + $0x30] sm:$0xff] }
  0x22   : > { %2480 = vmatprep.mubr.msk.bf16.mxu1 %vm408_vm0, %v2968_v20  ;;  %2637 = vmatpush3.bf16.msra.mxu1 %v2903_v1  ;;  %v2998_v34 = vld [vmem:[#allocation2 + $0x38] sm:$0xff]  ;;  %v3006_v35 = vld [vmem:[#allocation2 + $0x40] sm:$0xff] }
  0x23   : > { %2528 = vmatprep.subr.bf16.mxu1 %v2786_v16  ;;  %v490_v30 = vpack.c.bf16 %v489_v29, %v488_v28 }
  0x25   : > { %492 = vst.msk [vmem:[#allocation2 + $0x48] sm:$0xff] %vm408_vm0, %v490_v30 }
  0x28   : > { %v702_v31 = vld [vmem:[#allocation2] sm:$0xff] }
  0x29   : > { %2481 = vmatmul.mubr.msk.bf16.gmra.mrb[4].mxu1 %vm408_vm0, %v2978_v26  ;;  %2494 = vmatprep.mubr.msk.bf16.mxu0 %vm408_vm0, %v702_v31 }
  0x2a   : > { %2484 = vmatprep.mubr.msk.bf16.mxu1 %vm408_vm0, %v2980_v27  ;;  %2495 = vmatmul.mubr.msk.bf16.vlgmr.msra.gmra.mrb[0].mxu0 %vm408_vm0, %v2953_v13 }
  0x2b   : > { %2511 = vmatpush3.bf16.msra.mxu0 %v2911_v2  ;;  %2498 = vmatprep.mubr.msk.bf16.mxu0 %vm408_vm0, %v2963_v17 }
  0x2c   : > { %2582 = vmatprep.subr.bf16.mxu0 %v2783_v32  ;;  %v985_v39 = vld [vmem:[#allocation2 + $0x48] sm:$0xff] }
  0x31   : > { %2485 = vmatmul.mubr.msk.bf16.gmra.mrb[8].mxu1 %vm408_vm0, %v2993_v33 }
  0x32   : > { %2488 = vmatprep.mubr.msk.bf16.mxu1 %vm408_vm0, %v2998_v34  ;;  %2499 = vmatmul.mubr.msk.bf16.gmra.mrb[4].mxu0 %vm408_vm0, %v2968_v20 }
  0x33   : > { %2512 = vmatprep.mubr.msk.bf16.mxu0 %vm408_vm0, %v2963_v17 }
  0x39   : > { %2489 = vmatmul.mubr.msk.bf16.gmra.mrb[12].mxu1 %vm408_vm0, %v3006_v35 }
  0x3a   : > { %2502 = vmatprep.mubr.msk.bf16.mxu1 %vm408_vm0, %v2978_v26  ;;  %2513 = vmatmul.mubr.msk.bf16.vlgmr.msra.gmra.mrb[0].mxu0 %vm408_vm0, %v2968_v20 }
  0x3b   : > { %2583 = vmatpush3.bf16.msra.mxu0 %v2783_v32  ;;  %2516 = vmatprep.mubr.msk.bf16.mxu0 %vm408_vm0, %v2978_v26 }
  0x3c   : > { %2600 = vmatprep.subr.bf16.mxu0 %v2787_v36 }
  0x41   : > { %2503 = vmatmul.mubr.msk.bf16.vlgmr.msra.gmra.mrb[8].mxu1 %vm408_vm0, %v2980_v27 }
  0x42   : > { %2506 = vmatprep.mubr.msk.bf16.mxu1 %vm408_vm0, %v2993_v33  ;;  %2529 = vmatpush3.bf16.msra.mxu1 %v2786_v16 }
  0x43   : > { %2546 = vmatprep.subr.bf16.mxu1 %v2788_v37  ;;  %2517 = vmatmul.mubr.msk.bf16.gmra.mrb[4].mxu0 %vm408_vm0, %v2980_v27 }
  0x44   : > { %2520 = vmatprep.mubr.msk.bf16.mxu0 %vm408_vm0, %v2993_v33 }
  0x49   : > { %2507 = vmatmul.mubr.msk.bf16.gmra.mrb[12].mxu1 %vm408_vm0, %v2998_v34 }
  0x4a   : > { %2530 = vmatprep.mubr.msk.bf16.mxu1 %vm408_vm0, %v2953_v13 }
  0x4b   : > { %2521 = vmatmul.mubr.msk.bf16.gmra.mrb[8].mxu0 %vm408_vm0, %v2998_v34 }
  0x4c   : > { %2524 = vmatprep.mubr.msk.bf16.mxu0 %vm408_vm0, %v3006_v35 }
  0x51   : > { %2531 = vmatmul.mubr.msk.bf16.vlgmr.msra.gmra.mrb[16].mxu1 %vm408_vm0, %v2963_v17 }
  0x52   : > { %2534 = vmatprep.mubr.msk.bf16.mxu1 %vm408_vm0, %v2968_v20  ;;  %2547 = vmatpush3.bf16.msra.mxu1 %v2788_v37 }
  0x53   : > { %2564 = vmatprep.subr.bf16.mxu1 %v2790_v38  ;;  %2525 = vmatmul.mubr.msk.bf16.gmra.mrb[12].mxu0 %vm408_vm0, %v985_v39 }
  0x54   : > { %2584 = vmatprep.mubr.msk.bf16.mxu0 %vm408_vm0, %v2953_v13 }
  0x59   : > { %2535 = vmatmul.mubr.msk.bf16.gmra.mrb[20].mxu1 %vm408_vm0, %v2978_v26 }
  0x5a   : > { %2538 = vmatprep.mubr.msk.bf16.mxu1 %vm408_vm0, %v2980_v27 }
  0x5b   : > { %2585 = vmatmul.mubr.msk.bf16.vlgmr.msra.gmra.mrb[16].mxu0 %vm408_vm0, %v2963_v17 }
  0x5c   : > { %2601 = vmatpush3.bf16.msra.mxu0 %v2787_v36  ;;  %2588 = vmatprep.mubr.msk.bf16.mxu0 %vm408_vm0, %v2968_v20 }
  0x5d   : > { %2618 = vmatprep.subr.bf16.mxu0 %v2789_v40 }
  0x61   : > { %2539 = vmatmul.mubr.msk.bf16.gmra.mrb[24].mxu1 %vm408_vm0, %v2993_v33 }
  0x62   : > { %2542 = vmatprep.mubr.msk.bf16.mxu1 %vm408_vm0, %v2998_v34 }
  0x63   : > { %2589 = vmatmul.mubr.msk.bf16.gmra.mrb[20].mxu0 %vm408_vm0, %v2978_v26 }
  0x64   : > { %2592 = vmatprep.mubr.msk.bf16.mxu0 %vm408_vm0, %v2980_v27 }
  0x69   : > { %2543 = vmatmul.mubr.msk.bf16.gmra.mrb[28].mxu1 %vm408_vm0, %v3006_v35 }
  0x6a   : > { %2548 = vmatprep.mubr.msk.bf16.mxu1 %vm408_vm0, %v702_v31 }
  0x6b   : > { %2593 = vmatmul.mubr.msk.bf16.gmra.mrb[24].mxu0 %vm408_vm0, %v2993_v33 }
  0x6c   : > { %2596 = vmatprep.mubr.msk.bf16.mxu0 %vm408_vm0, %v2998_v34 }
  0x71   : > { %2549 = vmatmul.mubr.msk.bf16.vlgmr.msra.gmra.mrb[16].mxu1 %vm408_vm0, %v2953_v13 }
  0x72   : > { %2552 = vmatprep.mubr.msk.bf16.mxu1 %vm408_vm0, %v2963_v17  ;;  %2565 = vmatpush3.bf16.msra.mxu1 %v2790_v38 }
  0x73   : > { %2597 = vmatmul.mubr.msk.bf16.gmra.mrb[28].mxu0 %vm408_vm0, %v3006_v35 }
  0x74   : > { %2602 = vmatprep.mubr.msk.bf16.mxu0 %vm408_vm0, %v702_v31 }
  0x79   : > { %2553 = vmatmul.mubr.msk.bf16.gmra.mrb[20].mxu1 %vm408_vm0, %v2968_v20 }
  0x7a   : > { %2556 = vmatprep.mubr.msk.bf16.mxu1 %vm408_vm0, %v2978_v26 }
  0x7b   : > { %2603 = vmatmul.mubr.msk.bf16.vlgmr.msra.gmra.mrb[16].mxu0 %vm408_vm0, %v2953_v13 }
  0x7c   : > { %2619 = vmatpush3.bf16.msra.mxu0 %v2789_v40  ;;  %2606 = vmatprep.mubr.msk.bf16.mxu0 %vm408_vm0, %v2963_v17 }
  0x81   : > { %2557 = vmatmul.mubr.msk.bf16.gmra.mrb[24].mxu1 %vm408_vm0, %v2980_v27 }
  0x82   : > { %2560 = vmatprep.mubr.msk.bf16.mxu1 %vm408_vm0, %v2993_v33 }
  0x83   : > { %2607 = vmatmul.mubr.msk.bf16.gmra.mrb[20].mxu0 %vm408_vm0, %v2968_v20 }
  0x84   : > { %2610 = vmatprep.mubr.msk.bf16.mxu0 %vm408_vm0, %v2978_v26 }
  0x89   : > { %2561 = vmatmul.mubr.msk.bf16.gmra.mrb[28].mxu1 %vm408_vm0, %v2998_v34 }
  0x8a   : > { %2566 = vmatprep.mubr.msk.bf16.mxu1 %vm408_vm0, %v2963_v17 }
  0x8b   : > { %2611 = vmatmul.mubr.msk.bf16.gmra.mrb[24].mxu0 %vm408_vm0, %v2980_v27 }
  0x8c   : > { %2614 = vmatprep.mubr.msk.bf16.mxu0 %vm408_vm0, %v2993_v33 }
  0x91   : > { %2567 = vmatmul.mubr.msk.bf16.vlgmr.msra.gmra.mrb[16].mxu1 %vm408_vm0, %v2968_v20 }
  0x92   : > { %2570 = vmatprep.mubr.msk.bf16.mxu1 %vm408_vm0, %v2978_v26 }
  0x93   : > { %2615 = vmatmul.mubr.msk.bf16.gmra.mrb[28].mxu0 %vm408_vm0, %v2998_v34 }
  0x94   : > { %2620 = vmatprep.mubr.msk.bf16.mxu0 %vm408_vm0, %v2963_v17 }
  0x99   : > { %2571 = vmatmul.mubr.msk.bf16.gmra.mrb[20].mxu1 %vm408_vm0, %v2980_v27 }
  0x9a   : > { %2574 = vmatprep.mubr.msk.bf16.mxu1 %vm408_vm0, %v2993_v33 }
  0x9b   : > { %2621 = vmatmul.mubr.msk.bf16.vlgmr.msra.gmra.mrb[16].mxu0 %vm408_vm0, %v2968_v20 }
  0x9c   : > { %2624 = vmatprep.mubr.msk.bf16.mxu0 %vm408_vm0, %v2978_v26 }
  0xa1   : > { %2575 = vmatmul.mubr.msk.bf16.gmra.mrb[24].mxu1 %vm408_vm0, %v2998_v34 }
  0xa2   : > { %2578 = vmatprep.mubr.msk.bf16.mxu1 %vm408_vm0, %v3006_v35 }
  0xa3   : > { %2625 = vmatmul.mubr.msk.bf16.gmra.mrb[20].mxu0 %vm408_vm0, %v2980_v27 }
  0xa4   : > { %2628 = vmatprep.mubr.msk.bf16.mxu0 %vm408_vm0, %v2993_v33 }
  0xa9   : > { %2579 = vmatmul.mubr.msk.bf16.gmra.mrb[28].mxu1 %vm408_vm0, %v985_v39 }
  0xab   : > { %2629 = vmatmul.mubr.msk.bf16.gmra.mrb[24].mxu0 %vm408_vm0, %v2998_v34 }
  0xac   : > { %2632 = vmatprep.mubr.msk.bf16.mxu0 %vm408_vm0, %v3006_v35 }
  0xb3   : > { %2633 = vmatmul.mubr.msk.bf16.gmra.mrb[28].mxu0 %vm408_vm0, %v985_v39 }
  0xf4   : > { %v2478_v41 = vpop.f32.mrb[0].mxu1 }
  0xf5   : > { %v787_v42 = vpop.f32.mrb[1].mxu1 }
  0xf6   : > { %v2479_v43 = vpop.f32.mrb[2].mxu1 }
  0xf7   : > { %v790_v44 = vpop.f32.mrb[3].mxu1 }
  0xfc   : > { %v2482_v45 = vpop.f32.mrb[4].mxu1 }
  0xfd   : > { %v803_v46 = vpop.f32.mrb[5].mxu1 }
  0xfe   : > { %v2483_v47 = vpop.f32.mrb[6].mxu1 }
  0xff   : > { %v806_v48 = vpop.f32.mrb[7].mxu1 }
 0x10d   : > { %v2514_v50 = vpop.f32.mrb[0].mxu0 }
 0x10e   : > { %v2638_v51 = vadd.f32 %v2514_v50, %v2478_v41  ;;  %v1053_v52 = vpop.f32.mrb[1].mxu0 }
 0x10f   : > { %v3137_v53 = vadd.f32 %v1053_v52, %v787_v42  ;;  %v2515_v54 = vpop.f32.mrb[2].mxu0 }
 0x110   : > { %v2640_v56 = vadd.f32 %v2515_v54, %v2479_v43  ;;  %v1056_v57 = vpop.f32.mrb[3].mxu0  ;;  %v1150_v61 = vrot.slane %v2638_v51, 7 }
 0x111   : > { %v2641_v59 = vadd.f32 %v1056_v57, %v790_v44  ;;  %v1148_v0 = vrot.slane %v3137_v53, 7 }
 0x112   : > { %v1151_v62 = vrot.slane %v2640_v56, 7 }
 0x113   : > { %v1149_v1 = vrot.slane %v2641_v59, 7 }
 0x114   : > { %v2504_v58 = vpop.f32.mrb[8].mxu1  ;;  %v3145_v3 = vsel %vm1164_vm1, %v1150_v61, %v1151_v62 }
 0x115   : > { %v946_v60 = vpop.f32.mrb[9].mxu1  ;;  %v3149_v5 = vsel %vm1164_vm1, %v1149_v1, %v1150_v61  ;;  %v3153_v6 = vsel %vm1164_vm1, %v1148_v0, %v1149_v1 }
 0x116   : > { %v2505_v63 = vpop.f32.mrb[10].mxu1  ;;  %v2518_v4 = vpop.f32.mrb[4].mxu0 }
 0x117   : > { %v949_v2 = vpop.f32.mrb[11].mxu1  ;;  %v2642_v7 = vadd.f32 %v2518_v4, %v2482_v45  ;;  %v1069_v8 = vpop.f32.mrb[5].mxu0 }
 0x118   : > { %v2643_v9 = vadd.f32 %v1069_v8, %v803_v46  ;;  %v2519_v10 = vpop.f32.mrb[6].mxu0 }
 0x119   : > { %v2644_v11 = vadd.f32 %v2519_v10, %v2483_v47  ;;  %v1072_v12 = vpop.f32.mrb[7].mxu0  ;;  %v1154_v17 = vrot.slane %v2642_v7, 7 }
 0x11a   : > { %v1152_v14 = vrot.slane %v2643_v9, 7  ;;  %v2645_v15 = vadd.f32 %v1072_v12, %v806_v48 }
 0x11b   : > { %v1155_v18 = vrot.slane %v2644_v11, 7 }
 0x11c   : > { %v2508_v13 = vpop.f32.mrb[12].mxu1  ;;  %v1153_v20 = vrot.slane %v2645_v15, 7  ;;  %v3157_v22 = vsel %vm1164_vm1, %v1151_v62, %v1152_v14  ;;  %v514_v62 = vand.u32 15, %v3139_v55 }
 0x11d   : > { %v962_v16 = vpop.f32.mrb[13].mxu1  ;;  %v3161_v23 = vsel %vm1164_vm1, %v1154_v17, %v1155_v18 }
 0x11e   : > { %v2509_v19 = vpop.f32.mrb[14].mxu1  ;;  %v2522_v24 = vpop.f32.mrb[8].mxu0  ;;  %v1174_v25 = vsel %vm1164_vm1, %v1153_v20, %v1154_v17  ;;  %v3167_v26 = vsel %vm1164_vm1, %v1152_v14, %v1153_v20  ;;  %vm1132_vm3 = vcmp.eq.s32.totalorder %v514_v62, 0  ;;  %v495_v17 = vadd.s32 8, %v3139_v55 }
 0x11f   : > { %v965_v21 = vpop.f32.mrb[15].mxu1  ;;  %v2646_v27 = vadd.f32 %v2522_v24, %v2504_v58  ;;  %v1085_v28 = vpop.f32.mrb[9].mxu0 }
 0x120   : > { %v2647_v29 = vadd.f32 %v1085_v28, %v946_v60  ;;  %v2523_v30 = vpop.f32.mrb[10].mxu0  ;;  %v496_v60 = vadd.s32 16, %v3139_v55 }
 0x121   : > { %v2648_v31 = vadd.f32 %v2523_v30, %v2505_v63  ;;  %v1088_v32 = vpop.f32.mrb[11].mxu0  ;;  %v1158_v35 = vrot.slane %v2646_v27, 7  ;;  %v500_v63 = vadd.s32 48, %v3139_v55 }
 0x122   : > { %v1156_v33 = vrot.slane %v2647_v29, 7  ;;  %v2649_v34 = vadd.f32 %v1088_v32, %v949_v2  ;;  %v528_v61 = vand.u32 15, %v496_v60 }
 0x123   : > { %v1159_v36 = vrot.slane %v2648_v31, 7  ;;  %v556_v9 = vand.u32 15, %v500_v63  ;;  %v521_v31 = vand.u32 15, %v495_v17  ;;  %v3263_v63 = vld [vmem:[%s3463_s4] ss:$0 sm:$0xff] }
 0x124   : > { %v1157_v37 = vrot.slane %v2649_v34, 7  ;;  %v3171_v38 = vsel %vm1164_vm1, %v1155_v18, %v1156_v33  ;;  %vm1134_vm2 = vcmp.eq.s32.totalorder %v528_v61, 0  ;;  %v506_v18 = vadd.s32 96, %v3139_v55 }
 0x125   : > { %v3175_v39 = vsel %vm1164_vm1, %v1158_v35, %v1159_v36  ;;  %v1183_v1 = vsel %vm1134_vm2, 0.0, %v3149_v5  ;;  %vm1138_vm4 = vcmp.eq.s32.totalorder %v556_v9, 0  ;;  %v502_v5 = vadd.s32 64, %v3139_v55 }
 0x126   : > { %v2526_v40 = vpop.f32.mrb[12].mxu0  ;;  %v3179_v41 = vsel %vm1164_vm1, %v1157_v37, %v1158_v35  ;;  %v3183_v42 = vsel %vm1164_vm1, %v1156_v33, %v1157_v37  ;;  %v508_v33 = vadd.s32 112, %v3139_v55  ;;  %v598_v34 = vand.u32 15, %v506_v18 }
 0x127   : > { %v2650_v43 = vadd.f32 %v2526_v40, %v2508_v13  ;;  %v1101_v44 = vpop.f32.mrb[13].mxu0  ;;  %v570_v29 = vand.u32 15, %v502_v5  ;;  %v497_v35 = vadd.s32 24, %v3139_v55  ;;  %v499_v40 = vadd.s32 40, %v3139_v55 }
 0x128   : > { %v2651_v45 = vadd.f32 %v1101_v44, %v962_v16  ;;  %v2527_v46 = vpop.f32.mrb[14].mxu0  ;;  %v504_v16 = vadd.s32 80, %v3139_v55  ;;  %vm3241_vm9 = vcmp.eq.s32.totalorder %v521_v31, 15  ;;  %v612_v44 = vand.u32 15, %v508_v33 }
 0x129   : > { %v2652_v47 = vadd.f32 %v2527_v46, %v2509_v19  ;;  %v1104_v48 = vpop.f32.mrb[15].mxu0  ;;  %v1162_v51 = vrot.slane %v2650_v43, 7  ;;  %v1187_v19 = vsel %vm1138_vm4, 0.0, %v1174_v25  ;;  %vm3235_vm7 = vcmp.eq.s32.totalorder %v570_v29, 0 }
 0x12a   : > { %v1160_v49 = vrot.slane %v2651_v45, 7  ;;  %v2653_v50 = vadd.f32 %v1104_v48, %v965_v21  ;;  %v584_v27 = vand.u32 15, %v504_v16  ;;  %vm3245_vm10 = vcmp.eq.s32.totalorder %v598_v34, 0 }
 0x12b   : > { %v1163_v52 = vrot.slane %v2652_v47, 7  ;;  %v1189_v60 = vsel %vm3235_vm7, 0.0, %v3171_v38  ;;  %vm3282_vm11 = vcmp.eq.s32.totalorder %v612_v44, 0 }
 0x12c   : > { %v1161_v53 = vrot.slane %v2653_v50, 7  ;;  %v3187_v54 = vsel %vm1164_vm1, %v1159_v36, %v1160_v49  ;;  %vm3229_vm6 = vcmp.eq.s32.totalorder %v584_v27, 0 }
 0x12d   : > { %v1180_v56 = vsel %vm1164_vm1, %v1163_v52, %v1148_v0  ;;  %v3193_v57 = vsel %vm1164_vm1, %v1162_v51, %v1163_v52  ;;  %v498_v0 = vadd.s32 32, %v3139_v55  ;;  %v1193_v29 = vsel %vm3245_vm10, 0.0, %v3187_v54 }
 0x12e   : > { %v3197_v58 = vsel %vm1164_vm1, %v1161_v53, %v1162_v51  ;;  %v3201_v59 = vsel %vm1164_vm1, %v1160_v49, %v1161_v53  ;;  %v1181_v7 = vsel %vm1132_vm3, 0.0, %v1180_v56  ;;  %v1191_v49 = vsel %vm3229_vm6, 0.0, %v3179_v41 }
 0x12f   : > { %v542_v12 = vand.u32 15, %v498_v0  ;;  %v535_v51 = vand.u32 15, %v497_v35  ;;  %v1195_v35 = vsel %vm3282_vm11, 0.0, %v3197_v58 }
 0x131   : > { %vm1136_vm5 = vcmp.eq.s32.totalorder %v542_v12, 0  ;;  %vm3287_vm13 = vcmp.eq.s32.totalorder %v535_v51, 15 }
 0x164   : > { %v2568_v2 = vpop.f32.mrb[16].mxu1 }
 0x165   : > { %v1533_v4 = vadd.f32 %v2568_v2, %v1183_v1  ;;  %v1452_v8 = vpop.f32.mrb[17].mxu1  ;;  %v549_v1 = vand.u32 15, %v499_v40  ;;  %v501_v2 = vadd.s32 56, %v3139_v55 }
 0x166   : > { %v1531_v10 = vadd.f32 %v1452_v8, %v1181_v7  ;;  %v2569_v11 = vpop.f32.mrb[18].mxu1 }
 0x167   : > { %v3209_v13 = vadd.f32 %v2569_v11, %v3145_v3  ;;  %v1455_v14 = vpop.f32.mrb[19].mxu1  ;;  %v1185_v3 = vsel %vm1136_vm5, 0.0, %v3157_v22  ;;  %vm3299_vm14 = vcmp.eq.s32.totalorder %v549_v1, 15 }
 0x168   : > { %v1532_v15 = vadd.f32 %v1455_v14, %v3153_v6 }
 0x16c   : > { %v2572_v20 = vpop.f32.mrb[20].mxu1 }
 0x16d   : > { %v3216_v21 = vadd.f32 %v2572_v20, %v1187_v19  ;;  %v1468_v24 = vpop.f32.mrb[21].mxu1  ;;  %v503_v20 = vadd.s32 72, %v3139_v55  ;;  %v507_v19 = vadd.s32 104, %v3139_v55 }
 0x16e   : > { %v3219_v28 = vadd.f32 %v1468_v24, %v1185_v3  ;;  %v2573_v6 = vpop.f32.mrb[22].mxu1  ;;  %v2622_v22 = vpop.f32.mrb[16].mxu0 }
 0x16f   : > { %v3222_v30 = vadd.f32 %v2573_v6, %v3161_v23  ;;  %v1471_v32 = vpop.f32.mrb[23].mxu1  ;;  %v3233_v37 = vpop.f32.mrb[17].mxu0  ;;  %v1899_v46 = vrot.slane %v2622_v22, 1 }
 0x170   : > { %v3226_v25 = vadd.f32 %v1471_v32, %v3167_v26  ;;  %v2623_v43 = vpop.f32.mrb[18].mxu0  ;;  %v1897_v52 = vrot.slane %v3233_v37, 1 }
 0x171   : > { %v1900_v47 = vrot.slane %v2623_v43, 1  ;;  %v1805_v48 = vpop.f32.mrb[19].mxu0 }
 0x172   : > { %v1898_v53 = vrot.slane %v1805_v48, 1 }
 0x173   : > { %v1926_v62 = vsel %vm1913_vm8, %v1899_v46, %v1900_v47 }
 0x174   : > { %v2576_v50 = vpop.f32.mrb[24].mxu1  ;;  %v1948_v7 = vadd.f32 %v1926_v62, %v1533_v4  ;;  %v1927_v38 = vsel %vm1913_vm8, %v1898_v53, %v1899_v46  ;;  %v1928_v8 = vsel %vm1913_vm8, %v1897_v52, %v1898_v53  ;;  %v577_v46 = vand.u32 15, %v503_v20 }
 0x175   : > { %v3253_v56 = vadd.f32 %v2576_v50, %v1191_v49  ;;  %v1484_v61 = vpop.f32.mrb[25].mxu1  ;;  %v1931_v12 = vsel %vm3241_vm9, 0.0, %v1927_v38  ;;  %v1946_v14 = vadd.f32 %v1928_v8, %v1531_v10 }
 0x176   : > { %v3265_v41 = vadd.f32 %v1484_v61, %v1189_v60  ;;  %v2577_v0 = vpop.f32.mrb[26].mxu1  ;;  %v1971_v5 = vadd.f32 %v3263_v63, %v1948_v7  ;;  %v1947_v17 = vadd.f32 %v1931_v12, %v1532_v15  ;;  %v2626_v18 = vpop.f32.mrb[20].mxu0  ;;  %v563_v15 = vand.u32 15, %v501_v2 }
 0x177   : > { %v3275_v9 = vadd.f32 %v2577_v0, %v3175_v39  ;;  %v1487_v11 = vpop.f32.mrb[27].mxu1  ;;  %v1818_v10 = vpop.f32.mrb[21].mxu0  ;;  %v1903_v32 = vrot.slane %v2626_v18, 1  ;;  %vm3350_vm0 = vcmp.eq.s32.totalorder %v577_v46, 15  ;;  %v509_v18 = vadd.s32 120, %v3139_v55 }
 0x178   : > { %v3280_v16 = vadd.f32 %v1487_v11, %v3183_v42  ;;  %v1969_v42 = vadd.f32 %v3263_v63, %v1946_v14  ;;  %v2371_v3 = vpack.c.bf16 %v1971_v5, %v1971_v5  ;;  %v1970_v24 = vadd.f32 %v3263_v63, %v1947_v17  ;;  %v2627_v6 = vpop.f32.mrb[22].mxu0 }
 0x179   : > { %v1901_v27 = vrot.slane %v1818_v10, 1  ;;  %v1904_v33 = vrot.slane %v2627_v6, 1  ;;  %v1821_v34 = vpop.f32.mrb[23].mxu0  ;;  %vm3346_vm15 = vcmp.eq.s32.totalorder %v563_v15, 15 }
 0x17a   : > { %v2369_v31 = vpack.c.bf16 %v1969_v42, %v1969_v42  ;;  %2052 = vst.msk [vmem:[%s3296_s18 + $0x8] sm:$0xf] %vm2049_vm12, %v2371_v3  ;;  %v2370_v36 = vpack.c.bf16 %v1970_v24, %v1970_v24  ;;  %v1902_v40 = vrot.slane %v1821_v34, 1 }
 0x17b   : > { %v1925_v23 = vsel %vm1913_vm8, %v1900_v47, %v1901_v27  ;;  %v1922_v44 = vsel %vm1913_vm8, %v1903_v32, %v1904_v33 }
 0x17c   : > { %v2580_v22 = vpop.f32.mrb[28].mxu1  ;;  %2050 = vst.msk [vmem:[%s3296_s18] sm:$0xf] %vm2049_vm12, %v2369_v31  ;;  %v1933_v26 = vsel %vm3287_vm13, 0.0, %v1925_v23  ;;  %2051 = vst.msk [vmem:[%s3296_s18 + $0x4] sm:$0xf] %vm2049_vm12, %v2370_v36  ;;  %v1952_v48 = vadd.f32 %v1922_v44, %v3216_v21  ;;  %v1923_v49 = vsel %vm1913_vm8, %v1902_v40, %v1903_v32  ;;  %v1924_v50 = vsel %vm1913_vm8, %v1901_v27, %v1902_v40 }
 0x17d   : > { %v3315_v43 = vadd.f32 %v2580_v22, %v1195_v35  ;;  %v1500_v54 = vpop.f32.mrb[29].mxu1  ;;  %v1949_v47 = vadd.f32 %v1933_v26, %v3209_v13  ;;  %v1935_v53 = vsel %vm3299_vm14, 0.0, %v1923_v49  ;;  %v1950_v60 = vadd.f32 %v1924_v50, %v3219_v28 }
 0x17e   : > { %v3323_v58 = vadd.f32 %v1500_v54, %v1193_v29  ;;  %v2581_v45 = vpop.f32.mrb[30].mxu1  ;;  %v1975_v21 = vadd.f32 %v3263_v63, %v1952_v48  ;;  %v1951_v0 = vadd.f32 %v1935_v53, %v3226_v25  ;;  %v2630_v1 = vpop.f32.mrb[24].mxu0  ;;  %v605_v22 = vand.u32 15, %v507_v19 }
 0x17f   : > { %v1503_v51 = vpop.f32.mrb[31].mxu1  ;;  %v3337_v61 = vadd.f32 %v2581_v45, %v3193_v57  ;;  %v1972_v13 = vadd.f32 %v3263_v63, %v1949_v47  ;;  %v1973_v2 = vadd.f32 %v3263_v63, %v1950_v60  ;;  %v1834_v7 = vpop.f32.mrb[25].mxu0  ;;  %v1907_v4 = vrot.slane %v2630_v1, 1 }
 0x180   : > { %v3340_v62 = vadd.f32 %v1503_v51, %v3201_v59  ;;  %v505_v59 = vadd.s32 88, %v3139_v55  ;;  %v2375_v8 = vpack.c.bf16 %v1975_v21, %v1975_v21  ;;  %v1974_v25 = vadd.f32 %v3263_v63, %v1951_v0  ;;  %v2631_v12 = vpop.f32.mrb[26].mxu0 }
 0x181   : > { %v2372_v38 = vpack.c.bf16 %v1972_v13, %v1972_v13  ;;  %v1905_v11 = vrot.slane %v1834_v7, 1  ;;  %v2373_v14 = vpack.c.bf16 %v1973_v2, %v1973_v2  ;;  %v1908_v5 = vrot.slane %v2631_v12, 1  ;;  %v1837_v17 = vpop.f32.mrb[27].mxu0 }
 0x182   : > { %2056 = vst.msk [vmem:[%s3296_s18 + $0x18] sm:$0xf] %vm2049_vm12, %v2375_v8  ;;  %v2374_v39 = vpack.c.bf16 %v1974_v25, %v1974_v25  ;;  %v1906_v10 = vrot.slane %v1837_v17, 1  ;;  %v591_v3 = vand.u32 15, %v505_v59  ;;  %vm3400_vm3 = vcmp.eq.s32.totalorder %v605_v22, 15 }
 0x183   : > { %2053 = vst.msk [vmem:[%s3296_s18 + $0xc] sm:$0xf] %vm2049_vm12, %v2372_v38  ;;  %v1921_v42 = vsel %vm1913_vm8, %v1904_v33, %v1905_v11  ;;  %2054 = vst.msk [vmem:[%s3296_s18 + $0x10] sm:$0xf] %vm2049_vm12, %v2373_v14  ;;  %v1918_v20 = vsel %vm1913_vm8, %v1907_v4, %v1908_v5  ;;  %v619_v33 = vand.u32 15, %v509_v18 }
 0x184   : > { %v1937_v15 = vsel %vm3346_vm15, 0.0, %v1921_v42  ;;  %2055 = vst.msk [vmem:[%s3296_s18 + $0x14] sm:$0xf] %vm2049_vm12, %v2374_v39  ;;  %v1956_v27 = vadd.f32 %v1918_v20, %v3253_v56  ;;  %v1919_v6 = vsel %vm1913_vm8, %v1906_v10, %v1907_v4  ;;  %v1920_v29 = vsel %vm1913_vm8, %v1905_v11, %v1906_v10 }
 0x185   : > { %v1953_v24 = vadd.f32 %v1937_v15, %v3222_v30  ;;  %v1939_v31 = vsel %vm3350_vm0, 0.0, %v1919_v6  ;;  %v1954_v32 = vadd.f32 %v1920_v29, %v3265_v41  ;;  %vm3385_vm1 = vcmp.eq.s32.totalorder %v591_v3, 15 }
 0x186   : > { %v1979_v35 = vadd.f32 %v3263_v63, %v1956_v27  ;;  %v1955_v30 = vadd.f32 %v1939_v31, %v3280_v16  ;;  %v2634_v56 = vpop.f32.mrb[28].mxu0  ;;  %vm3390_vm2 = vcmp.eq.s32.totalorder %v619_v33, 15 }
 0x187   : > { %v1976_v34 = vadd.f32 %v3263_v63, %v1953_v24  ;;  %v1977_v36 = vadd.f32 %v3263_v63, %v1954_v32  ;;  %v1850_v23 = vpop.f32.mrb[29].mxu0  ;;  %v1911_v46 = vrot.slane %v2634_v56, 1 }
 0x188   : > { %v2379_v41 = vpack.c.bf16 %v1979_v35, %v1979_v35  ;;  %v1978_v26 = vadd.f32 %v3263_v63, %v1955_v30  ;;  %v1909_v44 = vrot.slane %v1850_v23, 1  ;;  %v2635_v45 = vpop.f32.mrb[30].mxu0 }
 0x189   : > { %v2376_v54 = vpack.c.bf16 %v1976_v34, %v1976_v34  ;;  %v2377_v16 = vpack.c.bf16 %v1977_v36, %v1977_v36  ;;  %v1912_v48 = vrot.slane %v2635_v45, 1  ;;  %v1853_v49 = vpop.f32.mrb[31].mxu0 }
 0x18a   : > { %2060 = vst.msk [vmem:[%s3296_s18 + $0x28] sm:$0xf] %vm2049_vm12, %v2379_v41  ;;  %v2378_v50 = vpack.c.bf16 %v1978_v26, %v1978_v26  ;;  %v1917_v51 = vsel %vm1913_vm8, %v1908_v5, %v1909_v44  ;;  %v1910_v60 = vrot.slane %v1853_v49, 1 }
 0x18b   : > { %2057 = vst.msk [vmem:[%s3296_s18 + $0x1c] sm:$0xf] %vm2049_vm12, %v2376_v54  ;;  %2058 = vst.msk [vmem:[%s3296_s18 + $0x20] sm:$0xf] %vm2049_vm12, %v2377_v16  ;;  %v1941_v13 = vsel %vm3385_vm1, 0.0, %v1917_v51  ;;  %v1914_v21 = vsel %vm1913_vm8, %v1911_v46, %v1912_v48  ;;  %v1929_v0 = vsel %vm1913_vm8, %v1912_v48, %v1897_v52 }
 0x18c   : > { %2059 = vst.msk [vmem:[%s3296_s18 + $0x24] sm:$0xf] %vm2049_vm12, %v2378_v50  ;;  %v1957_v1 = vadd.f32 %v1941_v13, %v3275_v9  ;;  %v1945_v2 = vsel %vm3390_vm2, 0.0, %v1929_v0  ;;  %v1960_v7 = vadd.f32 %v1914_v21, %v3315_v43  ;;  %v1915_v28 = vsel %vm1913_vm8, %v1910_v60, %v1911_v46 }
 0x18d   : > { %v1961_v57 = vadd.f32 %v1945_v2, %v3337_v61  ;;  %v1916_v37 = vsel %vm1913_vm8, %v1909_v44, %v1910_v60  ;;  %v1943_v52 = vsel %vm3400_vm3, 0.0, %v1915_v28 }
 0x18e   : > { %v1980_v9 = vadd.f32 %v3263_v63, %v1957_v1  ;;  %v1983_v59 = vadd.f32 %v3263_v63, %v1960_v7  ;;  %v1958_v43 = vadd.f32 %v1916_v37, %v3323_v58  ;;  %v1959_v38 = vadd.f32 %v1943_v52, %v3340_v62 }
 0x18f   : > { %v1984_v8 = vadd.f32 %v3263_v63, %v1961_v57 }
 0x190   : > { %v2380_v61 = vpack.c.bf16 %v1980_v9, %v1980_v9  ;;  %v2383_v25 = vpack.c.bf16 %v1983_v59, %v1983_v59  ;;  %v1981_v55 = vadd.f32 %v3263_v63, %v1958_v43  ;;  %v1982_v11 = vadd.f32 %v3263_v63, %v1959_v38 }
 0x191   : > { %v2384_v12 = vpack.c.bf16 %v1984_v8, %v1984_v8 }
 0x192   : > { %2061 = vst.msk [vmem:[%s3296_s18 + $0x2c] sm:$0xf] %vm2049_vm12, %v2380_v61  ;;  %2064 = vst.msk [vmem:[%s3296_s18 + $0x38] sm:$0xf] %vm2049_vm12, %v2383_v25  ;;  %v2381_v14 = vpack.c.bf16 %v1981_v55, %v1981_v55  ;;  %v2382_v4 = vpack.c.bf16 %v1982_v11, %v1982_v11 }
 0x193   : > { %2065 = vst.msk [vmem:[%s3296_s18 + $0x3c] sm:$0xf] %vm2049_vm12, %v2384_v12 }
 0x194   : > { %2062 = vst.msk [vmem:[%s3296_s18 + $0x30] sm:$0xf] %vm2049_vm12, %v2381_v14  ;;  %2063 = vst.msk [vmem:[%s3296_s18 + $0x34] sm:$0xf] %vm2049_vm12, %v2382_v4 }
 0x195 PF: > { %s15_s22 = sadd.s32 1, %s2829_s22   ;;  %s3490_s18 = smov %s2821_s20 }
 0x196   : > { %p12_p12 = scmp.ge.s32.totalorder %s15_s22, 6   ;;  %s3491_s19 = smov %s2825_s21 }
 0x197   : > { %s3492_s20 = smov %s3495_s23  ;;  %s3493_s21 = smov %s3499_s24 }
 0x198   :  { %14 = sbr.rel (!%p12_p12) target bundleno = 3 (0x3), region = 87 }

// kernel: rcan_forward_pallas.35
= control target key start
LH: loop header
LB: loop body
LE: loop exit
PB: predicated region body
PF: predicated region fallthrough
CT: control target
= control target key end

     0   :  { %s7984_s18 = smov 0   ;;  %s7986_s19 = smov 0   ;;  %s10002_s0 = inlined_call_operand.vmem [shape: bf16[2,32,32,16], index: 0, kind: input, shape index: {}, may-alias: {0,1,2}]   ;;  %s10003_s1 = inlined_call_operand.vmem [shape: bf16[2,32,32,16], index: 1, kind: input, shape index: {}, may-alias: {0,1,2}]   ;;  %s10004_s2 = inlined_call_operand.vmem [shape: bf16[2,32,32,16], index: 2, kind: input, shape index: {}, may-alias: {0,1,2}]   ;;  %s10005_s3 = inlined_call_operand.vmem [shape: bf16[9,16,4], index: 3, kind: input, shape index: {}]   ;;  %s10006_s4 = inlined_call_operand.vmem [shape: f32[1,4], index: 4, kind: input, shape index: {}]   ;;  %s10007_s5 = inlined_call_operand.vmem [shape: bf16[2,32,32,4], index: 5, kind: output, shape index: {}]  }
   0x1   :  { %s7988_s20 = smov 0   ;;  %s7990_s21 = smov 0  }
   0x2   :  { %s7992_s22 = smov 0  }
   0x3 LB: > { %s24_s23 = sadd.s32 1, %s7944_s20  ;;  %s27_s24 = sadd.s32 1, %s7948_s21  ;;  %s7952_s22 = sphi %s7992_s22, %s15_s22   ;;  %s7948_s21 = sphi %s7990_s21, %s10188_s21   ;;  %s7944_s20 = sphi %s7988_s20, %s10187_s20   ;;  %s7940_s19 = sphi %s7986_s19, %s10186_s19   ;;  %s7936_s18 = sphi %s7984_s18, %s10185_s18  }
   0x4   : > { %p25_p0 = scmp.ge.s32.totalorder %s24_s23, 2  ;;  %p6001_p1 = scmp.ge.s32.totalorder %s7952_s22, 1 }
   0x5   : > { %p273_p2 = scmp.lt.s32.totalorder %s7952_s22, 5 }
   0x6   : > { %s10190_s23 = smov (%p25_p0, %s24_s23), 0  ;;  %s10192_s24 = smov (!%p25_p0, %s27_s24), %s7948_s21 }
   0x7   : > { %p274_p3 = pnand %p6001_p1, %p273_p2  ;;  %p29_p4 = scmp.ge.s32.totalorder %s10192_s24, 2 }
   0x9   : > { %s10194_s24 = smov (%p29_p4, %s10192_s24), 0  ;;  %277 = sbr.rel (%p274_p3) target bundleno = 841 (0x349), region = 40 }
  0x10   : > { %v7840_v0 = vld [vmem:[%s10005_s3 + $0x18] sm:$0xff]   ;;  %s8020_s27 = sshll.u32 %s7936_s18, 4  ;;  %p338_p5 = scmp.lt.s32.totalorder %s7940_s19, 1  ;;  %v8026_v1 = vld [vmem:[%s10005_s3] sm:$0xff]   ;;  %v8033_v2 = vld [vmem:[%s10005_s3 + $0x30] sm:$0xff]   ;;  %vm415_vm0 = vcmask 130048  }
  0x11   : > { %p340_p6 = scmp.lt.s32.totalorder %s8020_s27, 31  ;;  %6820 = vmatprep.subr.bf16.mxu1 %v7840_v0  ;;  %s6007_s30 = sadd.s32 4294967295, %s8020_s27  ;;  %6886 = vmatprep.subr.bf16.mxu0 %v8026_v1  ;;  %v8116_v38 = vld [vmem:[%s10005_s3 + $0x28] sm:$0xff]   ;;  %v8191_v62 = vld [vmem:[%s10005_s3 + $0x20] sm:$0xff]   ;;  %vm5785_vm7 = vcmask 27648  }
  0x12   : > { %6821 = vmatpush3.bf16.msra.mxu1 %v7840_v0  ;;  %s10196_s19 = smov (!%p338_p5, %s7940_s19), 1  ;;  %6887 = vmatpush3.bf16.msra.mxu0 %v8026_v1  ;;  %p350_p7 = scmp.gt.s32.totalorder %s6007_s30, 0 }
  0x13   : > { %s341_s8 = scalar_select %p340_p6, %s8020_s27, 31  ;;  %7414 = vmatprep.subr.bf16.mxu1 %v8026_v1  ;;  %6952 = vmatprep.subr.bf16.mxu0 %v8033_v2 }
  0x14   : > { %s8038_s9 = sshll.u32 %s10196_s19, 7  ;;  %p6008_p8 = scmp.lt.s32.totalorder %s6007_s30, 31 }
  0x15   : > { %s6003_s10 = sshll.u32 %s341_s8, 2  ;;  %p394_p9 = scmp.gt.s32.totalorder %s7936_s18, 0 }
  0x16   : > { %s8042_s11 = sadd.s32 %s8038_s9, %s6003_s10  ;;  %s10198_s30 = smov (!%p350_p7, %s6007_s30), 0 }
  0x17   : > { %s6005_s12 = sshll.u32 %s8042_s11, 2  ;;  %s10200_s30 = smov (!%p6008_p8, %s10198_s30), 31 }
  0x18   : > { %s8050_s15 = scalar_lea.vmem %s10002_s0, %s6005_s12  ;;  %s6013_s17 = sshll.u32 %s10200_s30, 2 }
  0x19   : > { %v7841_v3 = vld [vmem:[%s8050_s15] sm:$0xff]   ;;  %v7842_v4 = vld [vmem:[%s8050_s15 + $0x8] sm:$0xff]   ;;  %v7845_v5 = vld [vmem:[%s8050_s15 + $0x10] sm:$0xff]   ;;  %s395_s16 = scalar_select %p394_p9, 1, 0 }
  0x1a   : > { %675 = vst.msk [vmem:[#allocation2 + $0x10] sm:$0xff] %vm415_vm0, %v7841_v3  ;;  %676 = vst.msk [vmem:[#allocation2 + $0x18] sm:$0xff] %vm415_vm0, %v7842_v4  ;;  %v7846_v6 = vld [vmem:[%s8050_s15 + $0x18] sm:$0xff]   ;;  %s358_s19 = sadd.s32 %s6013_s17, %s8038_s9  ;;  %v7847_v7 = vld [vmem:[%s8050_s15 + $0x20] sm:$0xff]   ;;  %s366_s13 = sadd.s32 16, %s8020_s27 }
  0x1b   : > { %677 = vst.msk [vmem:[#allocation2 + $0x20] sm:$0xff] %vm415_vm0, %v7845_v5  ;;  %s396_s25 = scvt.s32.f32 %s395_s16  ;;  %s6015_s26 = sshll.u32 %s358_s19, 2  ;;  %678 = vst.msk [vmem:[#allocation2 + $0x28] sm:$0xff] %vm415_vm0, %v7846_v6  ;;  %v7848_v8 = vld [vmem:[%s8050_s15 + $0x28] sm:$0xff]   ;;  %v7849_v9 = vld [vmem:[%s8050_s15 + $0x30] sm:$0xff]  }
  0x1c   : > { %s360_s6 = scalar_lea.vmem %s10003_s1, %s6015_s26  ;;  %679 = vst.msk [vmem:[#allocation2 + $0x30] sm:$0xff] %vm415_vm0, %v7847_v7  ;;  %680 = vst.msk [vmem:[#allocation2 + $0x38] sm:$0xff] %vm415_vm0, %v7848_v8  ;;  %v7850_v13 = vld [vmem:[%s8050_s15 + $0x38] sm:$0xff]   ;;  %v7851_v20 = vld [vmem:[%s8050_s15 + $0x40] sm:$0xff]   ;;  %p367_p10 = scmp.lt.s32.totalorder %s366_s13, 31 }
  0x1d   : > { %v6506_v10 = vld [vmem:[%s360_s6] sm:$0xff]   ;;  %v408_v11 = vstv %s396_s25  ;;  %v6521_v12 = vld [vmem:[%s360_s6 + $0x8] sm:$0xff]   ;;  %681 = vst.msk [vmem:[#allocation2 + $0x40] sm:$0xff] %vm415_vm0, %v7849_v9  ;;  %682 = vst.msk [vmem:[#allocation2 + $0x48] sm:$0xff] %vm415_vm0, %v7850_v13  ;;  %p397_p11 = scmp.lt.s32.totalorder %s7936_s18, 1 }
  0x1e   : > { %v6507_v15 = vunpack.c.l.bf16 %v6506_v10  ;;  %v6508_v16 = vunpack.c.h.bf16 %v6506_v10  ;;  %v6511_v17 = vunpack.c.l.bf16 %v6521_v12  ;;  %v6512_v18 = vunpack.c.h.bf16 %v6521_v12  ;;  %v7852_v26 = vld [vmem:[%s8050_s15 + $0x48] sm:$0xff]   ;;  %683 = vst.msk [vmem:[#allocation2 + $0x50] sm:$0xff] %vm415_vm0, %v7851_v20  ;;  %v7853_v27 = vld [vmem:[%s8050_s15 + $0x50] sm:$0xff]   ;;  %v7854_v30 = vld [vmem:[%s8050_s15 + $0x58] sm:$0xff]   ;;  %s10202_s13 = smov (!%p367_p10, %s366_s13), 31 }
  0x1f   : > { %684 = vst.msk [vmem:[#allocation2 + $0x58] sm:$0xff] %vm415_vm0, %v7852_v26  ;;  %685 = vst.msk [vmem:[#allocation2 + $0x60] sm:$0xff] %vm415_vm0, %v7853_v27  ;;  %v7855_v31 = vld [vmem:[%s8050_s15 + $0x60] sm:$0xff]   ;;  %v7856_v34 = vld [vmem:[%s8050_s15 + $0x68] sm:$0xff]   ;;  %s10204_s13 = smov (!%p367_p10, %s10202_s13), 31 }
  0x20   : > { %v409_v21 = vmul.f32 %v6507_v15, %v408_v11  ;;  %v410_v22 = vmul.f32 %v6508_v16, %v408_v11  ;;  %v411_v24 = vmul.f32 %v6511_v17, %v408_v11  ;;  %v412_v25 = vmul.f32 %v6512_v18, %v408_v11  ;;  %686 = vst.msk [vmem:[#allocation2 + $0x68] sm:$0xff] %vm415_vm0, %v7854_v30  ;;  %v7857_v35 = vld [vmem:[%s8050_s15 + $0x70] sm:$0xff]   ;;  %v7858_v36 = vld [vmem:[%s8050_s15 + $0x78] sm:$0xff]   ;;  %v7859_v37 = vld [vmem:[%s8050_s15 + $0x80] sm:$0xff]   ;;  %s6020_s27 = sshll.u32 %s10204_s13, 2 }
  0x21   : > { %v8071_v14 = vld [vmem:[#allocation2 + $0x10] sm:$0xff]  ;;  %v8076_v19 = vld [vmem:[#allocation2 + $0x18] sm:$0xff]  ;;  %687 = vst.msk [vmem:[#allocation2 + $0x70] sm:$0xff] %vm415_vm0, %v7855_v31  ;;  %688 = vst.msk [vmem:[#allocation2 + $0x78] sm:$0xff] %vm415_vm0, %v7856_v34  ;;  %s375_s14 = sadd.s32 %s6020_s27, %s8038_s9 }
  0x22   : > { %6822 = vmatprep.mubr.msk.bf16.mxu1 %vm415_vm0, %v8071_v14  ;;  %v8082_v23 = vld [vmem:[#allocation2 + $0x20] sm:$0xff]  ;;  %v413_v28 = vpack.c.bf16 %v410_v22, %v409_v21  ;;  %v414_v29 = vpack.c.bf16 %v412_v25, %v411_v24  ;;  %v8096_v32 = vld [vmem:[#allocation2 + $0x28] sm:$0xff]  ;;  %689 = vst.msk [vmem:[#allocation2 + $0x80] sm:$0xff] %vm415_vm0, %v7857_v35  ;;  %690 = vst.msk [vmem:[#allocation2 + $0x88] sm:$0xff] %vm415_vm0, %v7858_v36  ;;  %s398_s25 = scalar_select %p397_p11, 1, 0 }
  0x23   : > { %6823 = vmatmul.mubr.msk.bf16.vlgmr.msra.gmra.mrb[0].mxu1 %vm415_vm0, %v8076_v19  ;;  %v8099_v33 = vld [vmem:[#allocation2 + $0x30] sm:$0xff]  ;;  %v8124_v41 = vld [vmem:[#allocation2 + $0x38] sm:$0xff]  ;;  %691 = vst.msk [vmem:[#allocation2 + $0x90] sm:$0xff] %vm415_vm0, %v7859_v37  ;;  %v7860_v42 = vld [vmem:[%s8050_s15 + $0x88] sm:$0xff]  }
  0x24   : > { %6826 = vmatprep.mubr.msk.bf16.mxu1 %vm415_vm0, %v8082_v23  ;;  %7415 = vmatpush3.bf16.msra.mxu1 %v8026_v1  ;;  %416 = vst.msk [vmem:[#allocation2] sm:$0xff] %vm415_vm0, %v413_v28  ;;  %417 = vst.msk [vmem:[#allocation2 + $0x8] sm:$0xff] %vm415_vm0, %v414_v29  ;;  %v8130_v43 = vld [vmem:[#allocation2 + $0x40] sm:$0xff]  ;;  %v7862_v44 = vld [vmem:[%s8050_s15 + $0x90] sm:$0xff]   ;;  %s399_s18 = scvt.s32.f32 %s398_s25 }
  0x25   : > { %692 = vst.msk [vmem:[#allocation2 + $0x98] sm:$0xff] %vm415_vm0, %v7860_v42  ;;  %v7863_v45 = vld [vmem:[%s8050_s15 + $0x98] sm:$0xff]   ;;  %693 = vst.msk [vmem:[#allocation2 + $0xa0] sm:$0xff] %vm415_vm0, %v7862_v44  ;;  %v7864_v46 = vld [vmem:[%s8050_s15 + $0xa0] sm:$0xff]   ;;  %7018 = vmatprep.subr.bf16.mxu1 %v8191_v62 }
  0x26   : > { %694 = vst.msk [vmem:[#allocation2 + $0xa8] sm:$0xff] %vm415_vm0, %v7863_v45  ;;  %v7865_v47 = vld [vmem:[%s8050_s15 + $0xa8] sm:$0xff]   ;;  %695 = vst.msk [vmem:[#allocation2 + $0xb0] sm:$0xff] %vm415_vm0, %v7864_v46  ;;  %v7866_v48 = vld [vmem:[%s8050_s15 + $0xb0] sm:$0xff]   ;;  %v715_v11 = vstv %s399_s18 }
  0x27   : > { %696 = vst.msk [vmem:[#allocation2 + $0xb8] sm:$0xff] %vm415_vm0, %v7865_v47  ;;  %697 = vst.msk [vmem:[#allocation2 + $0xc0] sm:$0xff] %vm415_vm0, %v7866_v48  ;;  %v7867_v49 = vld [vmem:[%s8050_s15 + $0xb8] sm:$0xff]   ;;  %v8154_v50 = vld [vmem:[#allocation2 + $0x48] sm:$0xff] }
  0x28   : > { %v7868_v51 = vld [vmem:[%s8050_s15 + $0xc0] sm:$0xff]   ;;  %v8159_v52 = vld [vmem:[#allocation2 + $0x50] sm:$0xff]  ;;  %698 = vst.msk [vmem:[#allocation2 + $0xc8] sm:$0xff] %vm415_vm0, %v7867_v49  ;;  %v7869_v53 = vld [vmem:[%s8050_s15 + $0xc8] sm:$0xff]  }
  0x29   : > { %10039 = vst [vmem:[#allocation3_spill] sm:$0xff] %v8159_v52  ;;  %699 = vst.msk [vmem:[#allocation2 + $0xd0] sm:$0xff] %vm415_vm0, %v7868_v51  ;;  %v7870_v54 = vld [vmem:[%s8050_s15 + $0xd0] sm:$0xff]   ;;  %v7871_v55 = vld [vmem:[%s8050_s15 + $0xd8] sm:$0xff]  }
  0x2a   : > { %700 = vst.msk [vmem:[#allocation2 + $0xd8] sm:$0xff] %vm415_vm0, %v7869_v53  ;;  %701 = vst.msk [vmem:[#allocation2 + $0xe0] sm:$0xff] %vm415_vm0, %v7870_v54  ;;  %v7872_v56 = vld [vmem:[%s8050_s15 + $0xe0] sm:$0xff]   ;;  %v7873_v57 = vld [vmem:[%s8050_s15 + $0xe8] sm:$0xff]  }
  0x2b   : > { %6827 = vmatmul.mubr.msk.bf16.gmra.mrb[4].mxu1 %vm415_vm0, %v8096_v32  ;;  %v8118_v39 = vld [vmem:[#allocation2] sm:$0xff]  ;;  %v8120_v40 = vld [vmem:[#allocation2 + $0x8] sm:$0xff]  ;;  %702 = vst.msk [vmem:[#allocation2 + $0xe8] sm:$0xff] %vm415_vm0, %v7871_v55  ;;  %703 = vst.msk [vmem:[#allocation2 + $0xf0] sm:$0xff] %vm415_vm0, %v7872_v56 }
  0x2c   : > { %6830 = vmatprep.mubr.msk.bf16.mxu1 %vm415_vm0, %v8099_v33  ;;  %6888 = vmatprep.mubr.msk.bf16.mxu0 %vm415_vm0, %v8118_v39  ;;  %v8178_v58 = vld [vmem:[#allocation2 + $0x58] sm:$0xff]  ;;  %v7874_v59 = vld [vmem:[%s8050_s15 + $0xf0] sm:$0xff]   ;;  %v8183_v60 = vld [vmem:[#allocation2 + $0x60] sm:$0xff]  ;;  %704 = vst.msk [vmem:[#allocation2 + $0xf8] sm:$0xff] %vm415_vm0, %v7873_v57 }
  0x2d   : > { %6889 = vmatmul.mubr.msk.bf16.vlgmr.msra.gmra.mrb[0].mxu0 %vm415_vm0, %v8120_v40  ;;  %10040 = vst [vmem:[#allocation4_spill] sm:$0xff] %v8178_v58  ;;  %10041 = vst [vmem:[#allocation5_spill] sm:$0xff] %v8183_v60  ;;  %v7875_v61 = vld [vmem:[%s8050_s15 + $0xf8] sm:$0xff]   ;;  %v8201_v63 = vld [vmem:[#allocation2 + $0x68] sm:$0xff]  ;;  %s6022_s15 = sshll.u32 %s375_s14, 2 }
  0x2e   : > { %6953 = vmatpush3.bf16.msra.mxu0 %v8033_v2  ;;  %6892 = vmatprep.mubr.msk.bf16.mxu0 %vm415_vm0, %v8071_v14  ;;  %705 = vst.msk [vmem:[#allocation2 + $0x100] sm:$0xff] %vm415_vm0, %v7874_v59  ;;  %706 = vst.msk [vmem:[#allocation2 + $0x108] sm:$0xff] %vm415_vm0, %v7875_v61  ;;  %v8205_v0 = vld [vmem:[#allocation2 + $0x70] sm:$0xff]  ;;  %v8214_v1 = vld [vmem:[#allocation2 + $0x78] sm:$0xff]  ;;  %s377_s19 = scalar_lea.vmem %s10004_s2, %s6022_s15  ;;  %s9219_s15 = scalar_lea.vmem %s10007_s5, %s6005_s12 }
  0x2f   : > { %7216 = vmatprep.subr.bf16.mxu0 %v8116_v38  ;;  %10042 = vst [vmem:[#allocation6_spill] sm:$0xff] %v8201_v63  ;;  %10043 = vst [vmem:[#allocation7_spill] sm:$0xff] %v8205_v0  ;;  %v8218_v2 = vld [vmem:[#allocation2 + $0x80] sm:$0xff]  ;;  %v8231_v3 = vld [vmem:[#allocation2 + $0x88] sm:$0xff] }
  0x30   : > { %10044 = vst [vmem:[#allocation8_spill] sm:$0xff] %v8214_v1  ;;  %10045 = vst [vmem:[#allocation9_spill] sm:$0xff] %v8218_v2  ;;  %v6514_v4 = vld [vmem:[%s377_s19] sm:$0xff]   ;;  %v8235_v5 = vld [vmem:[#allocation2 + $0x90] sm:$0xff] }
  0x31   : > { %10046 = vst [vmem:[#allocation10_spill] sm:$0xff] %v8231_v3  ;;  %10047 = vst [vmem:[#allocation11_spill] sm:$0xff] %v8235_v5  ;;  %v6515_v6 = vunpack.c.l.bf16 %v6514_v4  ;;  %v6516_v7 = vunpack.c.h.bf16 %v6514_v4  ;;  %v6522_v8 = vld [vmem:[%s377_s19 + $0x8] sm:$0xff]   ;;  %v8243_v20 = vld [vmem:[#allocation2 + $0x98] sm:$0xff] }
  0x32   : > { %v6519_v9 = vunpack.c.l.bf16 %v6522_v8  ;;  %v6520_v10 = vunpack.c.h.bf16 %v6522_v8  ;;  %10048 = vst [vmem:[#allocation12_spill] sm:$0xff] %v8243_v20  ;;  %v8247_v21 = vld [vmem:[#allocation2 + $0xa0] sm:$0xff]  ;;  %v8257_v22 = vld [vmem:[#allocation2 + $0xa8] sm:$0xff]  ;;  %v8261_v24 = vld [vmem:[#allocation2 + $0xb0] sm:$0xff] }
  0x33   : > { %6831 = vmatmul.mubr.msk.bf16.gmra.mrb[8].mxu1 %vm415_vm0, %v8124_v41  ;;  %v716_v12 = vmul.f32 %v6515_v6, %v715_v11  ;;  %v717_v13 = vmul.f32 %v6516_v7, %v715_v11  ;;  %10049 = vst [vmem:[#allocation13_spill] sm:$0xff] %v8247_v21  ;;  %10050 = vst [vmem:[#allocation14_spill] sm:$0xff] %v8257_v22  ;;  %v8270_v25 = vld [vmem:[%s10005_s3 + $0x10] sm:$0xff]   ;;  %v8274_v26 = vld [vmem:[#allocation2 + $0xb8] sm:$0xff] }
  0x34   : > { %6834 = vmatprep.mubr.msk.bf16.mxu1 %vm415_vm0, %v8130_v43  ;;  %v718_v15 = vmul.f32 %v6519_v9, %v715_v11  ;;  %v719_v16 = vmul.f32 %v6520_v10, %v715_v11  ;;  %10051 = vst [vmem:[#allocation15_spill] sm:$0xff] %v8261_v24  ;;  %10052 = vst [vmem:[#allocation16_spill] sm:$0xff] %v8274_v26  ;;  %v8279_v27 = vld [vmem:[#allocation2 + $0xc0] sm:$0xff]  ;;  %v8288_v28 = vld [vmem:[#allocation2 + $0xc8] sm:$0xff] }
  0x35   : > { %6893 = vmatmul.mubr.msk.bf16.gmra.mrb[4].mxu0 %vm415_vm0, %v8076_v19  ;;  %v720_v17 = vpack.c.bf16 %v717_v13, %v716_v12  ;;  %10053 = vst [vmem:[#allocation17_spill] sm:$0xff] %v8279_v27  ;;  %10054 = vst [vmem:[#allocation18_spill] sm:$0xff] %v8288_v28  ;;  %v8292_v29 = vld [vmem:[#allocation2 + $0xd0] sm:$0xff]  ;;  %v8300_v30 = vld [vmem:[#allocation2 + $0xd8] sm:$0xff] }
  0x36   : > { %6896 = vmatprep.mubr.msk.bf16.mxu0 %vm415_vm0, %v8082_v23  ;;  %v721_v18 = vpack.c.bf16 %v719_v16, %v718_v15  ;;  %10055 = vst [vmem:[#allocation19_spill] sm:$0xff] %v8292_v29  ;;  %v8304_v31 = vld [vmem:[#allocation2 + $0xe0] sm:$0xff]  ;;  %v8312_v34 = vld [vmem:[#allocation2 + $0xe8] sm:$0xff]  ;;  %v8316_v35 = vld [vmem:[#allocation2 + $0xf0] sm:$0xff] }
  0x37   : > { %723 = vst.msk [vmem:[#allocation2 + $0x110] sm:$0xff] %vm415_vm0, %v720_v17  ;;  %v8324_v36 = vld [vmem:[#allocation2 + $0xf8] sm:$0xff]  ;;  %v8328_v37 = vld [vmem:[#allocation2 + $0x100] sm:$0xff]  ;;  %v7878_v42 = vld [vmem:[%s10005_s3 + $0x8] sm:$0xff]  }
  0x38   : > { %724 = vst.msk [vmem:[#allocation2 + $0x118] sm:$0xff] %vm415_vm0, %v721_v18  ;;  %v8434_v46 = vld [vmem:[%s10005_s3 + $0x40] sm:$0xff]   ;;  %v8439_v47 = vld [vmem:[%s10005_s3 + $0x38] sm:$0xff]  }
  0x3b   : > { %6835 = vmatmul.mubr.msk.bf16.gmra.mrb[12].mxu1 %vm415_vm0, %v8154_v50 }
  0x3c   : > { %6838 = vmatprep.mubr.msk.bf16.mxu1 %vm415_vm0, %v8159_v52 }
  0x3d   : > { %6897 = vmatmul.mubr.msk.bf16.gmra.mrb[8].mxu0 %vm415_vm0, %v8096_v32 }
  0x3e   : > { %6900 = vmatprep.mubr.msk.bf16.mxu0 %vm415_vm0, %v8099_v33  ;;  %v2440_v44 = vld [vmem:[#allocation2 + $0x110] sm:$0xff] }
  0x3f   : > { %v2441_v45 = vld [vmem:[#allocation2 + $0x118] sm:$0xff] }
  0x43   : > { %6839 = vmatmul.mubr.msk.bf16.gmra.mrb[16].mxu1 %vm415_vm0, %v8178_v58 }
  0x44   : > { %6842 = vmatprep.mubr.msk.bf16.mxu1 %vm415_vm0, %v8183_v60 }
  0x45   : > { %6901 = vmatmul.mubr.msk.bf16.gmra.mrb[12].mxu0 %vm415_vm0, %v8124_v41 }
  0x46   : > { %6904 = vmatprep.mubr.msk.bf16.mxu0 %vm415_vm0, %v8130_v43 }
  0x4b   : > { %6843 = vmatmul.mubr.msk.bf16.gmra.mrb[20].mxu1 %vm415_vm0, %v8201_v63 }
  0x4c   : > { %6846 = vmatprep.mubr.msk.bf16.mxu1 %vm415_vm0, %v8205_v0 }
  0x4d   : > { %6905 = vmatmul.mubr.msk.bf16.gmra.mrb[16].mxu0 %vm415_vm0, %v8154_v50 }
  0x4e   : > { %6908 = vmatprep.mubr.msk.bf16.mxu0 %vm415_vm0, %v8159_v52 }
  0x53   : > { %6847 = vmatmul.mubr.msk.bf16.gmra.mrb[24].mxu1 %vm415_vm0, %v8214_v1 }
  0x54   : > { %6850 = vmatprep.mubr.msk.bf16.mxu1 %vm415_vm0, %v8218_v2 }
  0x55   : > { %6909 = vmatmul.mubr.msk.bf16.gmra.mrb[20].mxu0 %vm415_vm0, %v8178_v58 }
  0x56   : > { %6912 = vmatprep.mubr.msk.bf16.mxu0 %vm415_vm0, %v8183_v60 }
  0x5b   : > { %6851 = vmatmul.mubr.msk.bf16.gmra.mrb[28].mxu1 %vm415_vm0, %v8231_v3 }
  0x5c   : > { %6854 = vmatprep.mubr.msk.bf16.mxu1 %vm415_vm0, %v8235_v5 }
  0x5d   : > { %6913 = vmatmul.mubr.msk.bf16.gmra.mrb[24].mxu0 %vm415_vm0, %v8201_v63 }
  0x5e   : > { %6916 = vmatprep.mubr.msk.bf16.mxu0 %vm415_vm0, %v8205_v0 }
  0x63   : > { %6855 = vmatmul.mubr.msk.bf16.gmra.mrb[32].mxu1 %vm415_vm0, %v8243_v20 }
  0x64   : > { %6858 = vmatprep.mubr.msk.bf16.mxu1 %vm415_vm0, %v8247_v21 }
  0x65   : > { %6917 = vmatmul.mubr.msk.bf16.gmra.mrb[28].mxu0 %vm415_vm0, %v8214_v1 }
  0x66   : > { %6954 = vmatprep.mubr.msk.bf16.mxu0 %vm415_vm0, %v8082_v23 }
  0x6b   : > { %6859 = vmatmul.mubr.msk.bf16.gmra.mrb[36].mxu1 %vm415_vm0, %v8257_v22 }
  0x6c   : > { %6862 = vmatprep.mubr.msk.bf16.mxu1 %vm415_vm0, %v8261_v24 }
  0x6d   : > { %6955 = vmatmul.mubr.msk.bf16.vlgmr.msra.gmra.mrb[0].mxu0 %vm415_vm0, %v8096_v32 }
  0x6e   : > { %7217 = vmatpush3.bf16.msra.mxu0 %v8116_v38  ;;  %6958 = vmatprep.mubr.msk.bf16.mxu0 %vm415_vm0, %v8099_v33  ;;  %v8336_v38 = vld [vmem:[#allocation2 + $0x108] sm:$0xff] }
  0x6f   : > { %7282 = vmatprep.subr.bf16.mxu0 %v8270_v25 }
  0x73   : > { %6863 = vmatmul.mubr.msk.bf16.gmra.mrb[40].mxu1 %vm415_vm0, %v8274_v26 }
  0x74   : > { %6866 = vmatprep.mubr.msk.bf16.mxu1 %vm415_vm0, %v8279_v27 }
  0x75   : > { %6959 = vmatmul.mubr.msk.bf16.gmra.mrb[4].mxu0 %vm415_vm0, %v8124_v41 }
  0x76   : > { %6962 = vmatprep.mubr.msk.bf16.mxu0 %vm415_vm0, %v8130_v43 }
  0x7b   : > { %6867 = vmatmul.mubr.msk.bf16.gmra.mrb[44].mxu1 %vm415_vm0, %v8288_v28 }
  0x7c   : > { %6870 = vmatprep.mubr.msk.bf16.mxu1 %vm415_vm0, %v8292_v29 }
  0x7d   : > { %6963 = vmatmul.mubr.msk.bf16.gmra.mrb[8].mxu0 %vm415_vm0, %v8154_v50 }
  0x7e   : > { %6966 = vmatprep.mubr.msk.bf16.mxu0 %vm415_vm0, %v8159_v52 }
  0x83   : > { %6871 = vmatmul.mubr.msk.bf16.gmra.mrb[48].mxu1 %vm415_vm0, %v8300_v30 }
  0x84   : > { %6874 = vmatprep.mubr.msk.bf16.mxu1 %vm415_vm0, %v8304_v31 }
  0x85   : > { %6967 = vmatmul.mubr.msk.bf16.gmra.mrb[12].mxu0 %vm415_vm0, %v8178_v58 }
  0x86   : > { %6970 = vmatprep.mubr.msk.bf16.mxu0 %vm415_vm0, %v8183_v60 }
  0x8b   : > { %6875 = vmatmul.mubr.msk.bf16.gmra.mrb[52].mxu1 %vm415_vm0, %v8312_v34 }
  0x8c   : > { %6878 = vmatprep.mubr.msk.bf16.mxu1 %vm415_vm0, %v8316_v35 }
  0x8d   : > { %6971 = vmatmul.mubr.msk.bf16.gmra.mrb[16].mxu0 %vm415_vm0, %v8201_v63 }
  0x8e   : > { %6974 = vmatprep.mubr.msk.bf16.mxu0 %vm415_vm0, %v8205_v0 }
  0x93   : > { %6879 = vmatmul.mubr.msk.bf16.gmra.mrb[56].mxu1 %vm415_vm0, %v8324_v36 }
  0x94   : > { %6882 = vmatprep.mubr.msk.bf16.mxu1 %vm415_vm0, %v8328_v37 }
  0x95   : > { %6975 = vmatmul.mubr.msk.bf16.gmra.mrb[20].mxu0 %vm415_vm0, %v8214_v1 }
  0x96   : > { %6978 = vmatprep.mubr.msk.bf16.mxu0 %vm415_vm0, %v8218_v2 }
  0x9b   : > { %6883 = vmatmul.mubr.msk.bf16.gmra.mrb[60].mxu1 %vm415_vm0, %v8336_v38 }
  0x9c   : > { %6920 = vmatprep.mubr.msk.bf16.mxu1 %vm415_vm0, %v8218_v2 }
  0x9d   : > { %6979 = vmatmul.mubr.msk.bf16.gmra.mrb[24].mxu0 %vm415_vm0, %v8231_v3 }
  0x9e   : > { %6982 = vmatprep.mubr.msk.bf16.mxu0 %vm415_vm0, %v8235_v5 }
  0xa3   : > { %6921 = vmatmul.mubr.msk.bf16.vlgmr.msra.gmra.mrb[32].mxu1 %vm415_vm0, %v8231_v3 }
  0xa4   : > { %6924 = vmatprep.mubr.msk.bf16.mxu1 %vm415_vm0, %v8235_v5  ;;  %7019 = vmatpush3.bf16.msra.mxu1 %v8191_v62 }
  0xa5   : > { %7084 = vmatprep.subr.bf16.mxu1 %v7878_v42  ;;  %6983 = vmatmul.mubr.msk.bf16.gmra.mrb[28].mxu0 %vm415_vm0, %v8243_v20 }
  0xa6   : > { %6986 = vmatprep.mubr.msk.bf16.mxu0 %vm415_vm0, %v8247_v21 }
  0xab   : > { %6925 = vmatmul.mubr.msk.bf16.gmra.mrb[36].mxu1 %vm415_vm0, %v8243_v20 }
  0xac   : > { %6928 = vmatprep.mubr.msk.bf16.mxu1 %vm415_vm0, %v8247_v21 }
  0xad   : > { %6987 = vmatmul.mubr.msk.bf16.gmra.mrb[32].mxu0 %vm415_vm0, %v8257_v22 }
  0xae   : > { %6990 = vmatprep.mubr.msk.bf16.mxu0 %vm415_vm0, %v8261_v24 }
  0xb3   : > { %6929 = vmatmul.mubr.msk.bf16.gmra.mrb[40].mxu1 %vm415_vm0, %v8257_v22 }
  0xb4   : > { %6932 = vmatprep.mubr.msk.bf16.mxu1 %vm415_vm0, %v8261_v24 }
  0xb5   : > { %6991 = vmatmul.mubr.msk.bf16.gmra.mrb[36].mxu0 %vm415_vm0, %v8274_v26 }
  0xb6   : > { %6994 = vmatprep.mubr.msk.bf16.mxu0 %vm415_vm0, %v8279_v27 }
  0xbb   : > { %6933 = vmatmul.mubr.msk.bf16.gmra.mrb[44].mxu1 %vm415_vm0, %v8274_v26 }
  0xbc   : > { %6936 = vmatprep.mubr.msk.bf16.mxu1 %vm415_vm0, %v8279_v27 }
  0xbd   : > { %6995 = vmatmul.mubr.msk.bf16.gmra.mrb[40].mxu0 %vm415_vm0, %v8288_v28 }
  0xbe   : > { %6998 = vmatprep.mubr.msk.bf16.mxu0 %vm415_vm0, %v8292_v29 }
  0xc3   : > { %6937 = vmatmul.mubr.msk.bf16.gmra.mrb[48].mxu1 %vm415_vm0, %v8288_v28 }
  0xc4   : > { %6940 = vmatprep.mubr.msk.bf16.mxu1 %vm415_vm0, %v8292_v29 }
  0xc5   : > { %6999 = vmatmul.mubr.msk.bf16.gmra.mrb[44].mxu0 %vm415_vm0, %v8300_v30 }
  0xc6   : > { %7002 = vmatprep.mubr.msk.bf16.mxu0 %vm415_vm0, %v8304_v31 }
  0xcb   : > { %6941 = vmatmul.mubr.msk.bf16.gmra.mrb[52].mxu1 %vm415_vm0, %v8300_v30 }
  0xcc   : > { %6944 = vmatprep.mubr.msk.bf16.mxu1 %vm415_vm0, %v8304_v31 }
  0xcd   : > { %7003 = vmatmul.mubr.msk.bf16.gmra.mrb[48].mxu0 %vm415_vm0, %v8312_v34 }
  0xce   : > { %7006 = vmatprep.mubr.msk.bf16.mxu0 %vm415_vm0, %v8316_v35 }
  0xd3   : > { %6945 = vmatmul.mubr.msk.bf16.gmra.mrb[56].mxu1 %vm415_vm0, %v8312_v34 }
  0xd4   : > { %6948 = vmatprep.mubr.msk.bf16.mxu1 %vm415_vm0, %v8316_v35 }
  0xd5   : > { %7007 = vmatmul.mubr.msk.bf16.gmra.mrb[52].mxu0 %vm415_vm0, %v8324_v36 }
  0xd6   : > { %7010 = vmatprep.mubr.msk.bf16.mxu0 %vm415_vm0, %v8328_v37 }
  0xdb   : > { %6949 = vmatmul.mubr.msk.bf16.gmra.mrb[60].mxu1 %vm415_vm0, %v8324_v36 }
  0xdc   : > { %7020 = vmatprep.mubr.msk.bf16.mxu1 %vm415_vm0, %v8071_v14 }
  0xdd   : > { %7011 = vmatmul.mubr.msk.bf16.gmra.mrb[56].mxu0 %vm415_vm0, %v8336_v38 }
  0xde   : > { %7014 = vmatprep.mubr.msk.bf16.mxu0 %vm415_vm0, %v2440_v44 }
  0xe3   : > { %7021 = vmatmul.mubr.msk.bf16.vlgmr.msra.gmra.mrb[64].mxu1 %vm415_vm0, %v8076_v19 }
  0xe4   : > { %7024 = vmatprep.mubr.msk.bf16.mxu1 %vm415_vm0, %v8082_v23  ;;  %7085 = vmatpush3.bf16.msra.mxu1 %v7878_v42 }
  0xe5   : > { %7015 = vmatmul.mubr.msk.bf16.gmra.mrb[60].mxu0 %vm415_vm0, %v2441_v45  ;;  %7150 = vmatprep.subr.bf16.mxu1 %v8439_v47 }
  0xe6   : > { %7218 = vmatprep.mubr.msk.bf16.mxu0 %vm415_vm0, %v8071_v14 }
  0xeb   : > { %7025 = vmatmul.mubr.msk.bf16.gmra.mrb[68].mxu1 %vm415_vm0, %v8096_v32 }
  0xec   : > { %7028 = vmatprep.mubr.msk.bf16.mxu1 %vm415_vm0, %v8099_v33 }
  0xed   : > { %7219 = vmatmul.mubr.msk.bf16.vlgmr.msra.gmra.mrb[64].mxu0 %vm415_vm0, %v8076_v19 }
  0xee   : > { %7283 = vmatpush3.bf16.msra.mxu0 %v8270_v25  ;;  %7222 = vmatprep.mubr.msk.bf16.mxu0 %vm415_vm0, %v8082_v23 }
  0xef   : > { %7348 = vmatprep.subr.bf16.mxu0 %v8434_v46 }
  0xf3   : > { %7029 = vmatmul.mubr.msk.bf16.gmra.mrb[72].mxu1 %vm415_vm0, %v8124_v41 }
  0xf4   : > { %7032 = vmatprep.mubr.msk.bf16.mxu1 %vm415_vm0, %v8130_v43 }
  0xf5   : > { %7223 = vmatmul.mubr.msk.bf16.gmra.mrb[68].mxu0 %vm415_vm0, %v8096_v32 }
  0xf6   : > { %v8447_v48 = vpop.f32.mrb[0].mxu1  ;;  %7226 = vmatprep.mubr.msk.bf16.mxu0 %vm415_vm0, %v8099_v33 }
  0xf7   : > { %v8449_v49 = vpop.f32.mrb[1].mxu1 }
  0xf8   : > { %v8453_v51 = vpop.f32.mrb[2].mxu1 }
  0xf9   : > { %v8457_v53 = vpop.f32.mrb[3].mxu1 }
  0xfb   : > { %7033 = vmatmul.mubr.msk.bf16.gmra.mrb[76].mxu1 %vm415_vm0, %v8154_v50 }
  0xfc   : > { %7036 = vmatprep.mubr.msk.bf16.mxu1 %vm415_vm0, %v8159_v52 }
  0xfd   : > { %7227 = vmatmul.mubr.msk.bf16.gmra.mrb[72].mxu0 %vm415_vm0, %v8124_v41 }
  0xfe   : > { %v8463_v54 = vpop.f32.mrb[4].mxu1  ;;  %7230 = vmatprep.mubr.msk.bf16.mxu0 %vm415_vm0, %v8130_v43 }
  0xff   : > { %v8465_v55 = vpop.f32.mrb[5].mxu1 }
 0x100   : > { %v8469_v56 = vpop.f32.mrb[6].mxu1 }
 0x101   : > { %v8473_v57 = vpop.f32.mrb[7].mxu1 }
 0x103   : > { %7037 = vmatmul.mubr.msk.bf16.gmra.mrb[80].mxu1 %vm415_vm0, %v8178_v58 }
 0x104   : > { %7040 = vmatprep.mubr.msk.bf16.mxu1 %vm415_vm0, %v8183_v60 }
 0x105   : > { %7231 = vmatmul.mubr.msk.bf16.gmra.mrb[76].mxu0 %vm415_vm0, %v8154_v50 }
 0x106   : > { %v8479_v59 = vpop.f32.mrb[8].mxu1  ;;  %7234 = vmatprep.mubr.msk.bf16.mxu0 %vm415_vm0, %v8159_v52 }
 0x107   : > { %v8481_v61 = vpop.f32.mrb[9].mxu1 }
 0x108   : > { %v8485_v62 = vpop.f32.mrb[10].mxu1 }
 0x109   : > { %v8489_v4 = vpop.f32.mrb[11].mxu1 }
 0x10b   : > { %7041 = vmatmul.mubr.msk.bf16.gmra.mrb[84].mxu1 %vm415_vm0, %v8201_v63 }
 0x10c   : > { %7044 = vmatprep.mubr.msk.bf16.mxu1 %vm415_vm0, %v8205_v0 }
 0x10d   : > { %7235 = vmatmul.mubr.msk.bf16.gmra.mrb[80].mxu0 %vm415_vm0, %v8178_v58 }
 0x10e   : > { %v8495_v6 = vpop.f32.mrb[12].mxu1  ;;  %7238 = vmatprep.mubr.msk.bf16.mxu0 %vm415_vm0, %v8183_v60 }
 0x10f   : > { %v8497_v7 = vpop.f32.mrb[13].mxu1 }
 0x110   : > { %v8501_v8 = vpop.f32.mrb[14].mxu1 }
 0x111   : > { %v8505_v9 = vpop.f32.mrb[15].mxu1 }
 0x113   : > { %7045 = vmatmul.mubr.msk.bf16.gmra.mrb[88].mxu1 %vm415_vm0, %v8214_v1 }
 0x114   : > { %7048 = vmatprep.mubr.msk.bf16.mxu1 %vm415_vm0, %v8218_v2 }
 0x115   : > { %7239 = vmatmul.mubr.msk.bf16.gmra.mrb[84].mxu0 %vm415_vm0, %v8201_v63 }
 0x116   : > { %v8511_v10 = vpop.f32.mrb[16].mxu1  ;;  %7242 = vmatprep.mubr.msk.bf16.mxu0 %vm415_vm0, %v8205_v0 }
 0x117   : > { %v8513_v11 = vpop.f32.mrb[17].mxu1 }
 0x118   : > { %v8517_v12 = vpop.f32.mrb[18].mxu1 }
 0x119   : > { %v8521_v13 = vpop.f32.mrb[19].mxu1 }
 0x11b   : > { %7049 = vmatmul.mubr.msk.bf16.gmra.mrb[92].mxu1 %vm415_vm0, %v8231_v3 }
 0x11c   : > { %7052 = vmatprep.mubr.msk.bf16.mxu1 %vm415_vm0, %v8235_v5 }
 0x11d   : > { %7243 = vmatmul.mubr.msk.bf16.gmra.mrb[88].mxu0 %vm415_vm0, %v8214_v1 }
 0x11e   : > { %v8527_v15 = vpop.f32.mrb[20].mxu1  ;;  %7246 = vmatprep.mubr.msk.bf16.mxu0 %vm415_vm0, %v8218_v2 }
 0x11f   : > { %v8529_v16 = vpop.f32.mrb[21].mxu1 }
 0x120   : > { %v8533_v17 = vpop.f32.mrb[22].mxu1 }
 0x121   : > { %v8537_v18 = vpop.f32.mrb[23].mxu1 }
 0x123   : > { %7053 = vmatmul.mubr.msk.bf16.gmra.mrb[96].mxu1 %vm415_vm0, %v8243_v20 }
 0x124   : > { %7056 = vmatprep.mubr.msk.bf16.mxu1 %vm415_vm0, %v8247_v21 }
 0x125   : > { %7247 = vmatmul.mubr.msk.bf16.gmra.mrb[92].mxu0 %vm415_vm0, %v8231_v3 }
 0x126   : > { %v8543_v25 = vpop.f32.mrb[24].mxu1  ;;  %7250 = vmatprep.mubr.msk.bf16.mxu0 %vm415_vm0, %v8235_v5 }
 0x127   : > { %v8545_v42 = vpop.f32.mrb[25].mxu1 }
 0x128   : > { %v8549_v44 = vpop.f32.mrb[26].mxu1 }
 0x129   : > { %v8553_v45 = vpop.f32.mrb[27].mxu1 }
 0x12b   : > { %7057 = vmatmul.mubr.msk.bf16.gmra.mrb[100].mxu1 %vm415_vm0, %v8257_v22 }
 0x12c   : > { %7060 = vmatprep.mubr.msk.bf16.mxu1 %vm415_vm0, %v8261_v24 }
 0x12d   : > { %7251 = vmatmul.mubr.msk.bf16.gmra.mrb[96].mxu0 %vm415_vm0, %v8243_v20 }
 0x12e   : > { %v8559_v2 = vpop.f32.mrb[28].mxu1  ;;  %7254 = vmatprep.mubr.msk.bf16.mxu0 %vm415_vm0, %v8247_v21  ;;  %v725_v21 = vlaneseq }
 0x12f   : > { %v8561_v1 = vpop.f32.mrb[29].mxu1 }
 0x130   : > { %v8565_v3 = vpop.f32.mrb[30].mxu1 }
 0x131   : > { %v8569_v5 = vpop.f32.mrb[31].mxu1 }
 0x133   : > { %7061 = vmatmul.mubr.msk.bf16.gmra.mrb[104].mxu1 %vm415_vm0, %v8274_v26 }
 0x134   : > { %7064 = vmatprep.mubr.msk.bf16.mxu1 %vm415_vm0, %v8279_v27 }
 0x135   : > { %7255 = vmatmul.mubr.msk.bf16.gmra.mrb[100].mxu0 %vm415_vm0, %v8257_v22  ;;  %v8589_v22 = vshrl.u32 %v725_v21, 7 }
 0x136   : > { %7258 = vmatprep.mubr.msk.bf16.mxu0 %vm415_vm0, %v8261_v24 }
 0x137   : > { %vm3028_vm1 = vcmp.lt.s32.totalorder %v8589_v22, 1  ;;  %vm5265_vm5 = vcmp.lt.s32.totalorder %v8589_v22, 7 }
 0x13b   : > { %7065 = vmatmul.mubr.msk.bf16.gmra.mrb[108].mxu1 %vm415_vm0, %v8288_v28 }
 0x13c   : > { %7068 = vmatprep.mubr.msk.bf16.mxu1 %vm415_vm0, %v8292_v29 }
 0x13d   : > { %7259 = vmatmul.mubr.msk.bf16.gmra.mrb[104].mxu0 %vm415_vm0, %v8274_v26 }
 0x13e   : > { %7262 = vmatprep.mubr.msk.bf16.mxu0 %vm415_vm0, %v8279_v27 }
 0x140   : > { %v6956_v20 = vpop.f32.mrb[0].mxu0 }
 0x141   : > { %v7416_v24 = vadd.f32 %v6956_v20, %v8447_v48  ;;  %v2581_v0 = vpop.f32.mrb[1].mxu0 }
 0x142   : > { %v8595_v63 = vadd.f32 %v2581_v0, %v8449_v49  ;;  %v6957_v60 = vpop.f32.mrb[2].mxu0 }
 0x143   : > { %7069 = vmatmul.mubr.msk.bf16.gmra.mrb[112].mxu1 %vm415_vm0, %v8300_v30  ;;  %v7418_v26 = vadd.f32 %v6957_v60, %v8453_v51  ;;  %v2584_v58 = vpop.f32.mrb[3].mxu0  ;;  %v2966_v52 = vrot.slane %v7416_v24, 7 }
 0x144   : > { %7072 = vmatprep.mubr.msk.bf16.mxu1 %vm415_vm0, %v8304_v31  ;;  %v7419_v27 = vadd.f32 %v2584_v58, %v8457_v53  ;;  %v10036_v20 = vrot.slane %v8595_v63, 7 }
 0x145   : > { %v2967_v21 = vrot.slane %v7418_v26, 7  ;;  %7263 = vmatmul.mubr.msk.bf16.gmra.mrb[108].mxu0 %vm415_vm0, %v8288_v28 }
 0x146   : > { %v2965_v48 = vrot.slane %v7419_v27, 7  ;;  %7266 = vmatprep.mubr.msk.bf16.mxu0 %vm415_vm0, %v8292_v29 }
 0x147   : > { %v8607_v0 = vsel %vm3028_vm1, %v2966_v52, %v2967_v21 }
 0x148   : > { %10056 = vst [vmem:[#allocation20_spill] sm:$0xff] %v8607_v0  ;;  %v6960_v60 = vpop.f32.mrb[4].mxu0  ;;  %v8613_v58 = vsel %vm3028_vm1, %v2965_v48, %v2966_v52  ;;  %v8619_v24 = vsel %vm3028_vm1, %v10036_v20, %v2965_v48 }
 0x149   : > { %10057 = vst [vmem:[#allocation21_spill] sm:$0xff] %v8613_v58  ;;  %v7420_v26 = vadd.f32 %v6960_v60, %v8463_v54  ;;  %v2597_v27 = vpop.f32.mrb[5].mxu0 }
 0x14a   : > { %v7421_v49 = vadd.f32 %v2597_v27, %v8465_v55  ;;  %v6961_v51 = vpop.f32.mrb[6].mxu0 }
 0x14b   : > { %7073 = vmatmul.mubr.msk.bf16.gmra.mrb[116].mxu1 %vm415_vm0, %v8312_v34  ;;  %v7422_v53 = vadd.f32 %v6961_v51, %v8469_v56  ;;  %v2600_v0 = vpop.f32.mrb[7].mxu0  ;;  %v2970_v29 = vrot.slane %v7420_v26, 7 }
 0x14c   : > { %7076 = vmatprep.mubr.msk.bf16.mxu1 %vm415_vm0, %v8316_v35  ;;  %v2968_v52 = vrot.slane %v7421_v49, 7  ;;  %v7423_v58 = vadd.f32 %v2600_v0, %v8473_v57 }
 0x14d   : > { %v2971_v28 = vrot.slane %v7422_v53, 7  ;;  %7267 = vmatmul.mubr.msk.bf16.gmra.mrb[112].mxu0 %vm415_vm0, %v8300_v30 }
 0x14e   : > { %v2969_v48 = vrot.slane %v7423_v58, 7  ;;  %7270 = vmatprep.mubr.msk.bf16.mxu0 %vm415_vm0, %v8304_v31  ;;  %v8633_v54 = vsel %vm3028_vm1, %v2967_v21, %v2968_v52 }
 0x14f   : > { %v8637_v55 = vsel %vm3028_vm1, %v2970_v29, %v2971_v28 }
 0x150   : > { %v6964_v56 = vpop.f32.mrb[8].mxu0  ;;  %v8643_v57 = vsel %vm3028_vm1, %v2969_v48, %v2970_v29  ;;  %v8647_v0 = vsel %vm3028_vm1, %v2968_v52, %v2969_v48 }
 0x151   : > { %v7424_v60 = vadd.f32 %v6964_v56, %v8479_v59  ;;  %v2613_v21 = vpop.f32.mrb[9].mxu0 }
 0x152   : > { %v7425_v58 = vadd.f32 %v2613_v21, %v8481_v61  ;;  %v6965_v26 = vpop.f32.mrb[10].mxu0 }
 0x153   : > { %7077 = vmatmul.mubr.msk.bf16.gmra.mrb[120].mxu1 %vm415_vm0, %v8324_v36  ;;  %v7426_v27 = vadd.f32 %v6965_v26, %v8485_v62  ;;  %v2616_v49 = vpop.f32.mrb[11].mxu0  ;;  %v2974_v53 = vrot.slane %v7424_v60, 7 }
 0x154   : > { %7080 = vmatprep.mubr.msk.bf16.mxu1 %vm415_vm0, %v8328_v37  ;;  %v2972_v51 = vrot.slane %v7425_v58, 7  ;;  %v7427_v29 = vadd.f32 %v2616_v49, %v8489_v4 }
 0x155   : > { %v2975_v20 = vrot.slane %v7426_v27, 7  ;;  %7271 = vmatmul.mubr.msk.bf16.gmra.mrb[116].mxu0 %vm415_vm0, %v8312_v34 }
 0x156   : > { %v2973_v52 = vrot.slane %v7427_v29, 7  ;;  %7274 = vmatprep.mubr.msk.bf16.mxu0 %vm415_vm0, %v8316_v35  ;;  %v8661_v59 = vsel %vm3028_vm1, %v2971_v28, %v2972_v51 }
 0x157   : > { %v8665_v61 = vsel %vm3028_vm1, %v2974_v53, %v2975_v20 }
 0x158   : > { %v6968_v62 = vpop.f32.mrb[12].mxu0  ;;  %v8671_v4 = vsel %vm3028_vm1, %v2973_v52, %v2974_v53  ;;  %v8675_v48 = vsel %vm3028_vm1, %v2972_v51, %v2973_v52 }
 0x159   : > { %v7428_v56 = vadd.f32 %v6968_v62, %v8495_v6  ;;  %v2629_v28 = vpop.f32.mrb[13].mxu0 }
 0x15a   : > { %v7429_v60 = vadd.f32 %v2629_v28, %v8497_v7  ;;  %v6969_v21 = vpop.f32.mrb[14].mxu0 }
 0x15b   : > { %7081 = vmatmul.mubr.msk.bf16.gmra.mrb[124].mxu1 %vm415_vm0, %v8336_v38  ;;  %v7430_v58 = vadd.f32 %v6969_v21, %v8501_v8  ;;  %v2632_v26 = vpop.f32.mrb[15].mxu0  ;;  %v2978_v29 = vrot.slane %v7428_v56, 7 }
 0x15c   : > { %7086 = vmatprep.mubr.msk.bf16.mxu1 %vm415_vm0, %v8118_v39  ;;  %v2976_v27 = vrot.slane %v7429_v60, 7  ;;  %v7431_v49 = vadd.f32 %v2632_v26, %v8505_v9 }
 0x15d   : > { %v2979_v53 = vrot.slane %v7430_v58, 7  ;;  %7275 = vmatmul.mubr.msk.bf16.gmra.mrb[120].mxu0 %vm415_vm0, %v8324_v36 }
 0x15e   : > { %v2977_v51 = vrot.slane %v7431_v49, 7  ;;  %7278 = vmatprep.mubr.msk.bf16.mxu0 %vm415_vm0, %v8328_v37  ;;  %v8689_v6 = vsel %vm3028_vm1, %v2975_v20, %v2976_v27 }
 0x15f   : > { %v8693_v7 = vsel %vm3028_vm1, %v2978_v29, %v2979_v53 }
 0x160   : > { %v6972_v8 = vpop.f32.mrb[16].mxu0  ;;  %v8699_v9 = vsel %vm3028_vm1, %v2977_v51, %v2978_v29  ;;  %v8703_v52 = vsel %vm3028_vm1, %v2976_v27, %v2977_v51 }
 0x161   : > { %v7432_v37 = vadd.f32 %v6972_v8, %v8511_v10  ;;  %v2645_v20 = vpop.f32.mrb[17].mxu0 }
 0x162   : > { %v7433_v62 = vadd.f32 %v2645_v20, %v8513_v11  ;;  %v6973_v56 = vpop.f32.mrb[18].mxu0 }
 0x163   : > { %7087 = vmatmul.mubr.msk.bf16.vlgmr.msra.gmra.mrb[64].mxu1 %vm415_vm0, %v8120_v40  ;;  %v7434_v28 = vadd.f32 %v6973_v56, %v8517_v12  ;;  %v2648_v60 = vpop.f32.mrb[19].mxu0  ;;  %v2982_v26 = vrot.slane %v7432_v37, 7 }
 0x164   : > { %7090 = vmatprep.mubr.msk.bf16.mxu1 %vm415_vm0, %v8071_v14  ;;  %7151 = vmatpush3.bf16.msra.mxu1 %v8439_v47  ;;  %v2980_v21 = vrot.slane %v7433_v62, 7  ;;  %v7435_v58 = vadd.f32 %v2648_v60, %v8521_v13 }
 0x165   : > { %v2983_v27 = vrot.slane %v7434_v28, 7  ;;  %7279 = vmatmul.mubr.msk.bf16.gmra.mrb[124].mxu0 %vm415_vm0, %v8336_v38 }
 0x166   : > { %v2981_v10 = vrot.slane %v7435_v58, 7  ;;  %7284 = vmatprep.mubr.msk.bf16.mxu0 %vm415_vm0, %v8118_v39  ;;  %v8718_v47 = vsel %vm3028_vm1, %v2979_v53, %v2980_v21 }
 0x167   : > { %v8722_v11 = vsel %vm3028_vm1, %v2982_v26, %v2983_v27 }
 0x168   : > { %v6976_v12 = vpop.f32.mrb[20].mxu0  ;;  %v8728_v13 = vsel %vm3028_vm1, %v2981_v10, %v2982_v26  ;;  %v8732_v38 = vsel %vm3028_vm1, %v2980_v21, %v2981_v10 }
 0x169   : > { %v7436_v39 = vadd.f32 %v6976_v12, %v8527_v15  ;;  %v2661_v49 = vpop.f32.mrb[21].mxu0 }
 0x16a   : > { %v7437_v29 = vadd.f32 %v2661_v49, %v8529_v16  ;;  %v6977_v53 = vpop.f32.mrb[22].mxu0 }
 0x16b   : > { %7091 = vmatmul.mubr.msk.bf16.gmra.mrb[68].mxu1 %vm415_vm0, %v8076_v19  ;;  %v7438_v51 = vadd.f32 %v6977_v53, %v8533_v17  ;;  %v2664_v8 = vpop.f32.mrb[23].mxu0  ;;  %v2986_v62 = vrot.slane %v7436_v39, 7 }
 0x16c   : > { %7094 = vmatprep.mubr.msk.bf16.mxu1 %vm415_vm0, %v8082_v23  ;;  %v2984_v37 = vrot.slane %v7437_v29, 7  ;;  %v7439_v20 = vadd.f32 %v2664_v8, %v8537_v18 }
 0x16d   : > { %v2987_v56 = vrot.slane %v7438_v51, 7  ;;  %7285 = vmatmul.mubr.msk.bf16.vlgmr.msra.gmra.mrb[64].mxu0 %vm415_vm0, %v8120_v40 }
 0x16e   : > { %v2985_v28 = vrot.slane %v7439_v20, 7  ;;  %7349 = vmatpush3.bf16.msra.mxu0 %v8434_v46  ;;  %7288 = vmatprep.mubr.msk.bf16.mxu0 %vm415_vm0, %v8071_v14  ;;  %v8747_v15 = vsel %vm3028_vm1, %v2983_v27, %v2984_v37 }
 0x16f   : > { %v8751_v16 = vsel %vm3028_vm1, %v2986_v62, %v2987_v56 }
 0x170   : > { %v6980_v17 = vpop.f32.mrb[24].mxu0  ;;  %v8757_v40 = vsel %vm3028_vm1, %v2985_v28, %v2986_v62  ;;  %v8761_v46 = vsel %vm3028_vm1, %v2984_v37, %v2985_v28 }
 0x171   : > { %v7440_v14 = vadd.f32 %v6980_v17, %v8543_v25  ;;  %v2677_v18 = vpop.f32.mrb[25].mxu0 }
 0x172   : > { %v7441_v60 = vadd.f32 %v2677_v18, %v8545_v42  ;;  %v6981_v21 = vpop.f32.mrb[26].mxu0 }
 0x173   : > { %7095 = vmatmul.mubr.msk.bf16.gmra.mrb[72].mxu1 %vm415_vm0, %v8096_v32  ;;  %v7442_v58 = vadd.f32 %v6981_v21, %v8549_v44  ;;  %v2680_v26 = vpop.f32.mrb[27].mxu0  ;;  %v2990_v49 = vrot.slane %v7440_v14, 7 }
 0x174   : > { %7098 = vmatprep.mubr.msk.bf16.mxu1 %vm415_vm0, %v8099_v33  ;;  %v2988_v10 = vrot.slane %v7441_v60, 7  ;;  %v7443_v12 = vadd.f32 %v2680_v26, %v8553_v45 }
 0x175   : > { %v2991_v29 = vrot.slane %v7442_v58, 7  ;;  %7289 = vmatmul.mubr.msk.bf16.gmra.mrb[68].mxu0 %vm415_vm0, %v8076_v19 }
 0x176   : > { %v6922_v27 = vpop.f32.mrb[32].mxu1  ;;  %v2989_v53 = vrot.slane %v7443_v12, 7  ;;  %7292 = vmatprep.mubr.msk.bf16.mxu0 %vm415_vm0, %v8082_v23  ;;  %v8775_v42 = vsel %vm3028_vm1, %v2987_v56, %v2988_v10 }
 0x177   : > { %v2282_v39 = vpop.f32.mrb[33].mxu1  ;;  %v8779_v44 = vsel %vm3028_vm1, %v2990_v49, %v2991_v29 }
 0x178   : > { %v6923_v25 = vpop.f32.mrb[34].mxu1  ;;  %v6984_v45 = vpop.f32.mrb[28].mxu0  ;;  %v8785_v19 = vsel %vm3028_vm1, %v2989_v53, %v2990_v49  ;;  %v8789_v8 = vsel %vm3028_vm1, %v2988_v10, %v2989_v53 }
 0x179   : > { %v2285_v51 = vpop.f32.mrb[35].mxu1  ;;  %v7444_v23 = vadd.f32 %v6984_v45, %v8559_v2  ;;  %v2693_v37 = vpop.f32.mrb[29].mxu0 }
 0x17a   : > { %v7445_v20 = vadd.f32 %v2693_v37, %v8561_v1  ;;  %v6985_v62 = vpop.f32.mrb[30].mxu0 }
 0x17b   : > { %7099 = vmatmul.mubr.msk.bf16.gmra.mrb[76].mxu1 %vm415_vm0, %v8124_v41  ;;  %v7446_v56 = vadd.f32 %v6985_v62, %v8565_v3  ;;  %v2696_v28 = vpop.f32.mrb[31].mxu0  ;;  %v2994_v21 = vrot.slane %v7444_v23, 7 }
 0x17c   : > { %7102 = vmatprep.mubr.msk.bf16.mxu1 %vm415_vm0, %v8130_v43  ;;  %v2992_v14 = vrot.slane %v7445_v20, 7  ;;  %v7447_v18 = vadd.f32 %v2696_v28, %v8569_v5 }
 0x17d   : > { %v2995_v58 = vrot.slane %v7446_v56, 7  ;;  %7293 = vmatmul.mubr.msk.bf16.gmra.mrb[72].mxu0 %vm415_vm0, %v8096_v32 }
 0x17e   : > { %v6926_v17 = vpop.f32.mrb[36].mxu1  ;;  %v2993_v26 = vrot.slane %v7447_v18, 7  ;;  %7296 = vmatprep.mubr.msk.bf16.mxu0 %vm415_vm0, %v8099_v33  ;;  %v8803_v1 = vsel %vm3028_vm1, %v2991_v29, %v2992_v14  ;;  %v10060_v29 = vld [vmem:[#allocation3_spill] sm:$0xff] }
 0x17f   : > { %v2298_v60 = vpop.f32.mrb[37].mxu1  ;;  %v8807_v3 = vsel %vm3028_vm1, %v2994_v21, %v2995_v58 }
 0x180   : > { %v6927_v2 = vpop.f32.mrb[38].mxu1  ;;  %10058 = vst [vmem:[#allocation22_spill] sm:$0xff] %v8807_v3  ;;  %v6988_v5 = vpop.f32.mrb[32].mxu0  ;;  %v8813_v32 = vsel %vm3028_vm1, %v2993_v26, %v2994_v21  ;;  %v8817_v12 = vsel %vm3028_vm1, %v2992_v14, %v2993_v26 }
 0x181   : > { %v2301_v10 = vpop.f32.mrb[39].mxu1  ;;  %10059 = vst [vmem:[#allocation23_spill] sm:$0xff] %v8817_v12  ;;  %v7448_v33 = vadd.f32 %v6988_v5, %v6922_v27  ;;  %v2709_v49 = vpop.f32.mrb[33].mxu0  ;;  %v10063_v5 = vld [vmem:[#allocation4_spill] sm:$0xff] }
 0x182   : > { %v7449_v53 = vadd.f32 %v2709_v49, %v2282_v39  ;;  %v6989_v45 = vpop.f32.mrb[34].mxu0 }
 0x183   : > { %7103 = vmatmul.mubr.msk.bf16.gmra.mrb[80].mxu1 %vm415_vm0, %v8154_v50  ;;  %v7450_v23 = vadd.f32 %v6989_v45, %v6923_v25  ;;  %v2712_v37 = vpop.f32.mrb[35].mxu0  ;;  %v2998_v18 = vrot.slane %v7448_v33, 7 }
 0x184   : > { %7106 = vmatprep.mubr.msk.bf16.mxu1 %vm415_vm0, %v10060_v29  ;;  %v2996_v62 = vrot.slane %v7449_v53, 7  ;;  %v7451_v56 = vadd.f32 %v2712_v37, %v2285_v51 }
 0x185   : > { %v2999_v21 = vrot.slane %v7450_v23, 7  ;;  %7297 = vmatmul.mubr.msk.bf16.gmra.mrb[76].mxu0 %vm415_vm0, %v8124_v41 }
 0x186   : > { %v6930_v20 = vpop.f32.mrb[40].mxu1  ;;  %v2997_v26 = vrot.slane %v7451_v56, 7  ;;  %7300 = vmatprep.mubr.msk.bf16.mxu0 %vm415_vm0, %v8130_v43  ;;  %v8827_v39 = vsel %vm3028_vm1, %v2995_v58, %v2996_v62  ;;  %v10066_v58 = vld [vmem:[#allocation5_spill] sm:$0xff] }
 0x187   : > { %v2314_v28 = vpop.f32.mrb[41].mxu1  ;;  %10061 = vst [vmem:[#allocation3_spill] sm:$0xff] %v8827_v39  ;;  %v8831_v25 = vsel %vm3028_vm1, %v2998_v18, %v2999_v21 }
 0x188   : > { %v6931_v14 = vpop.f32.mrb[42].mxu1  ;;  %10062 = vst [vmem:[#allocation24_spill] sm:$0xff] %v8831_v25  ;;  %v6992_v51 = vpop.f32.mrb[36].mxu0  ;;  %v8837_v41 = vsel %vm3028_vm1, %v2997_v26, %v2998_v18  ;;  %v8841_v33 = vsel %vm3028_vm1, %v2996_v62, %v2997_v26 }
 0x189   : > { %v2317_v27 = vpop.f32.mrb[43].mxu1  ;;  %10064 = vst [vmem:[#allocation4_spill] sm:$0xff] %v8837_v41  ;;  %10065 = vst [vmem:[#allocation25_spill] sm:$0xff] %v8841_v33  ;;  %v7452_v43 = vadd.f32 %v6992_v51, %v6926_v17  ;;  %v2725_v49 = vpop.f32.mrb[37].mxu0  ;;  %v10069_v51 = vld [vmem:[#allocation6_spill] sm:$0xff] }
 0x18a   : > { %v7453_v53 = vadd.f32 %v2725_v49, %v2298_v60  ;;  %v6993_v45 = vpop.f32.mrb[38].mxu0 }
 0x18b   : > { %7107 = vmatmul.mubr.msk.bf16.gmra.mrb[84].mxu1 %vm415_vm0, %v10063_v5  ;;  %v7454_v23 = vadd.f32 %v6993_v45, %v6927_v2  ;;  %v2728_v37 = vpop.f32.mrb[39].mxu0  ;;  %v3002_v3 = vrot.slane %v7452_v43, 7 }
 0x18c   : > { %7110 = vmatprep.mubr.msk.bf16.mxu1 %vm415_vm0, %v10066_v58  ;;  %v3000_v25 = vrot.slane %v7453_v53, 7  ;;  %v7455_v39 = vadd.f32 %v2728_v37, %v2301_v10 }
 0x18d   : > { %v3003_v18 = vrot.slane %v7454_v23, 7  ;;  %7301 = vmatmul.mubr.msk.bf16.gmra.mrb[80].mxu0 %vm415_vm0, %v8154_v50 }
 0x18e   : > { %v6934_v56 = vpop.f32.mrb[44].mxu1  ;;  %v3001_v26 = vrot.slane %v7455_v39, 7  ;;  %7304 = vmatprep.mubr.msk.bf16.mxu0 %vm415_vm0, %v10060_v29  ;;  %v8851_v60 = vsel %vm3028_vm1, %v2999_v21, %v3000_v25  ;;  %v10072_v21 = vld [vmem:[#allocation7_spill] sm:$0xff] }
 0x18f   : > { %v2330_v12 = vpop.f32.mrb[45].mxu1  ;;  %10067 = vst [vmem:[#allocation5_spill] sm:$0xff] %v8851_v60  ;;  %v8855_v2 = vsel %vm3028_vm1, %v3002_v3, %v3003_v18 }
 0x190   : > { %v6935_v62 = vpop.f32.mrb[46].mxu1  ;;  %10068 = vst [vmem:[#allocation26_spill] sm:$0xff] %v8855_v2  ;;  %v6996_v10 = vpop.f32.mrb[40].mxu0  ;;  %v8861_v50 = vsel %vm3028_vm1, %v3001_v26, %v3002_v3  ;;  %v8865_v39 = vsel %vm3028_vm1, %v3000_v25, %v3001_v26 }
 0x191   : > { %v2333_v17 = vpop.f32.mrb[47].mxu1  ;;  %10070 = vst [vmem:[#allocation6_spill] sm:$0xff] %v8861_v50  ;;  %10071 = vst [vmem:[#allocation27_spill] sm:$0xff] %v8865_v39  ;;  %v7456_v29 = vadd.f32 %v6996_v10, %v6930_v20  ;;  %v2741_v43 = vpop.f32.mrb[41].mxu0  ;;  %v10075_v10 = vld [vmem:[#allocation8_spill] sm:$0xff] }
 0x192   : > { %v7457_v49 = vadd.f32 %v2741_v43, %v2314_v28  ;;  %v6997_v53 = vpop.f32.mrb[42].mxu0 }
 0x193   : > { %7111 = vmatmul.mubr.msk.bf16.gmra.mrb[88].mxu1 %vm415_vm0, %v10069_v51  ;;  %v7458_v45 = vadd.f32 %v6997_v53, %v6931_v14  ;;  %v2744_v23 = vpop.f32.mrb[43].mxu0  ;;  %v3006_v41 = vrot.slane %v7456_v29, 7 }
 0x194   : > { %7114 = vmatprep.mubr.msk.bf16.mxu1 %vm415_vm0, %v10072_v21  ;;  %v3004_v2 = vrot.slane %v7457_v49, 7  ;;  %v7459_v60 = vadd.f32 %v2744_v23, %v2317_v27 }
 0x195   : > { %v3007_v3 = vrot.slane %v7458_v45, 7  ;;  %7305 = vmatmul.mubr.msk.bf16.gmra.mrb[84].mxu0 %vm415_vm0, %v10063_v5 }
 0x196   : > { %v6938_v37 = vpop.f32.mrb[48].mxu1  ;;  %v3005_v26 = vrot.slane %v7459_v60, 7  ;;  %7308 = vmatprep.mubr.msk.bf16.mxu0 %vm415_vm0, %v10066_v58  ;;  %v8875_v28 = vsel %vm3028_vm1, %v3003_v18, %v3004_v2  ;;  %v10078_v18 = vld [vmem:[#allocation9_spill] sm:$0xff] }
 0x197   : > { %v2346_v33 = vpop.f32.mrb[49].mxu1  ;;  %10073 = vst [vmem:[#allocation7_spill] sm:$0xff] %v8875_v28  ;;  %v8879_v14 = vsel %vm3028_vm1, %v3006_v41, %v3007_v3 }
 0x198   : > { %v6939_v25 = vpop.f32.mrb[50].mxu1  ;;  %10074 = vst [vmem:[#allocation28_spill] sm:$0xff] %v8879_v14  ;;  %v7000_v27 = vpop.f32.mrb[44].mxu0  ;;  %v8885_v5 = vsel %vm3028_vm1, %v3005_v26, %v3006_v41  ;;  %v8889_v60 = vsel %vm3028_vm1, %v3004_v2, %v3005_v26 }
 0x199   : > { %v2349_v20 = vpop.f32.mrb[51].mxu1  ;;  %10076 = vst [vmem:[#allocation8_spill] sm:$0xff] %v8885_v5  ;;  %10077 = vst [vmem:[#allocation29_spill] sm:$0xff] %v8889_v60  ;;  %v7460_v58 = vadd.f32 %v7000_v27, %v6934_v56  ;;  %v2757_v29 = vpop.f32.mrb[45].mxu0  ;;  %v10081_v27 = vld [vmem:[#allocation10_spill] sm:$0xff] }
 0x19a   : > { %v7461_v43 = vadd.f32 %v2757_v29, %v2330_v12  ;;  %v7001_v49 = vpop.f32.mrb[46].mxu0 }
 0x19b   : > { %7115 = vmatmul.mubr.msk.bf16.gmra.mrb[92].mxu1 %vm415_vm0, %v10075_v10  ;;  %v7462_v53 = vadd.f32 %v7001_v49, %v6935_v62  ;;  %v2760_v45 = vpop.f32.mrb[47].mxu0  ;;  %v3010_v50 = vrot.slane %v7460_v58, 7 }
 0x19c   : > { %7118 = vmatprep.mubr.msk.bf16.mxu1 %vm415_vm0, %v10078_v18  ;;  %v3008_v14 = vrot.slane %v7461_v43, 7  ;;  %v7463_v28 = vadd.f32 %v2760_v45, %v2333_v17 }
 0x19d   : > { %v3011_v41 = vrot.slane %v7462_v53, 7  ;;  %7309 = vmatmul.mubr.msk.bf16.gmra.mrb[88].mxu0 %vm415_vm0, %v10069_v51 }
 0x19e   : > { %v6942_v23 = vpop.f32.mrb[52].mxu1  ;;  %v3009_v26 = vrot.slane %v7463_v28, 7  ;;  %7312 = vmatprep.mubr.msk.bf16.mxu0 %vm415_vm0, %v10072_v21  ;;  %v8899_v12 = vsel %vm3028_vm1, %v3007_v3, %v3008_v14  ;;  %v10084_v3 = vld [vmem:[#allocation11_spill] sm:$0xff] }
 0x19f   : > { %v2362_v39 = vpop.f32.mrb[53].mxu1  ;;  %10079 = vst [vmem:[#allocation9_spill] sm:$0xff] %v8899_v12  ;;  %v8903_v62 = vsel %vm3028_vm1, %v3010_v50, %v3011_v41 }
 0x1a0   : > { %v6943_v2 = vpop.f32.mrb[54].mxu1  ;;  %10080 = vst [vmem:[#allocation30_spill] sm:$0xff] %v8903_v62  ;;  %v7004_v17 = vpop.f32.mrb[48].mxu0  ;;  %v8909_v51 = vsel %vm3028_vm1, %v3009_v26, %v3010_v50  ;;  %v8913_v28 = vsel %vm3028_vm1, %v3008_v14, %v3009_v26 }
 0x1a1   : > { %v2365_v56 = vpop.f32.mrb[55].mxu1  ;;  %10082 = vst [vmem:[#allocation10_spill] sm:$0xff] %v8909_v51  ;;  %10083 = vst [vmem:[#allocation31_spill] sm:$0xff] %v8913_v28  ;;  %v7464_v21 = vadd.f32 %v7004_v17, %v6938_v37  ;;  %v2773_v58 = vpop.f32.mrb[49].mxu0  ;;  %v10087_v17 = vld [vmem:[#allocation12_spill] sm:$0xff] }
 0x1a2   : > { %v7465_v29 = vadd.f32 %v2773_v58, %v2346_v33  ;;  %v7005_v43 = vpop.f32.mrb[50].mxu0 }
 0x1a3   : > { %7119 = vmatmul.mubr.msk.bf16.gmra.mrb[96].mxu1 %vm415_vm0, %v10081_v27  ;;  %v7466_v49 = vadd.f32 %v7005_v43, %v6939_v25  ;;  %v2776_v53 = vpop.f32.mrb[51].mxu0  ;;  %v3014_v5 = vrot.slane %v7464_v21, 7 }
 0x1a4   : > { %7122 = vmatprep.mubr.msk.bf16.mxu1 %vm415_vm0, %v10084_v3  ;;  %v3012_v62 = vrot.slane %v7465_v29, 7  ;;  %v7467_v12 = vadd.f32 %v2776_v53, %v2349_v20 }
 0x1a5   : > { %v3015_v50 = vrot.slane %v7466_v49, 7  ;;  %7313 = vmatmul.mubr.msk.bf16.gmra.mrb[92].mxu0 %vm415_vm0, %v10075_v10 }
 0x1a6   : > { %v6946_v45 = vpop.f32.mrb[56].mxu1  ;;  %v3013_v26 = vrot.slane %v7467_v12, 7  ;;  %7316 = vmatprep.mubr.msk.bf16.mxu0 %vm415_vm0, %v10078_v18  ;;  %v8923_v33 = vsel %vm3028_vm1, %v3011_v41, %v3012_v62  ;;  %v10088_v41 = vld [vmem:[#allocation13_spill] sm:$0xff] }
 0x1a7   : > { %v2378_v60 = vpop.f32.mrb[57].mxu1  ;;  %10085 = vst [vmem:[#allocation11_spill] sm:$0xff] %v8923_v33  ;;  %v8927_v25 = vsel %vm3028_vm1, %v3014_v5, %v3015_v50 }
 0x1a8   : > { %v6947_v14 = vpop.f32.mrb[58].mxu1  ;;  %10086 = vst [vmem:[#allocation32_spill] sm:$0xff] %v8927_v25  ;;  %v7008_v20 = vpop.f32.mrb[52].mxu0  ;;  %v8933_v10 = vsel %vm3028_vm1, %v3013_v26, %v3014_v5  ;;  %v8937_v12 = vsel %vm3028_vm1, %v3012_v62, %v3013_v26 }
 0x1a9   : > { %v2381_v37 = vpop.f32.mrb[59].mxu1  ;;  %v7468_v18 = vadd.f32 %v7008_v20, %v6942_v23  ;;  %v2789_v21 = vpop.f32.mrb[53].mxu0  ;;  %v10091_v20 = vld [vmem:[#allocation14_spill] sm:$0xff] }
 0x1aa   : > { %v7469_v58 = vadd.f32 %v2789_v21, %v2362_v39  ;;  %v7009_v29 = vpop.f32.mrb[54].mxu0 }
 0x1ab   : > { %7123 = vmatmul.mubr.msk.bf16.gmra.mrb[100].mxu1 %vm415_vm0, %v10087_v17  ;;  %v7470_v43 = vadd.f32 %v7009_v29, %v6943_v2  ;;  %v2792_v49 = vpop.f32.mrb[55].mxu0  ;;  %v3018_v51 = vrot.slane %v7468_v18, 7 }
 0x1ac   : > { %7126 = vmatprep.mubr.msk.bf16.mxu1 %vm415_vm0, %v10088_v41  ;;  %v3016_v25 = vrot.slane %v7469_v58, 7  ;;  %v7471_v33 = vadd.f32 %v2792_v49, %v2365_v56 }
 0x1ad   : > { %v3019_v5 = vrot.slane %v7470_v43, 7  ;;  %7317 = vmatmul.mubr.msk.bf16.gmra.mrb[96].mxu0 %vm415_vm0, %v10081_v27 }
 0x1ae   : > { %v6950_v53 = vpop.f32.mrb[60].mxu1  ;;  %v3017_v26 = vrot.slane %v7471_v33, 7  ;;  %7320 = vmatprep.mubr.msk.bf16.mxu0 %vm415_vm0, %v10084_v3  ;;  %v8947_v39 = vsel %vm3028_vm1, %v3015_v50, %v3016_v25  ;;  %v10092_v50 = vld [vmem:[#allocation15_spill] sm:$0xff] }
 0x1af   : > { %v2394_v28 = vpop.f32.mrb[61].mxu1  ;;  %10089 = vst [vmem:[#allocation12_spill] sm:$0xff] %v8947_v39  ;;  %v8951_v2 = vsel %vm3028_vm1, %v3018_v51, %v3019_v5 }
 0x1b0   : > { %v6951_v62 = vpop.f32.mrb[62].mxu1  ;;  %10090 = vst [vmem:[#allocation13_spill] sm:$0xff] %v8951_v2  ;;  %v7012_v56 = vpop.f32.mrb[56].mxu0  ;;  %v8957_v27 = vsel %vm3028_vm1, %v3017_v26, %v3018_v51  ;;  %v8961_v33 = vsel %vm3028_vm1, %v3016_v25, %v3017_v26  ;;  %v10093_v25 = vld [vmem:[#allocation16_spill] sm:$0xff] }
 0x1b1   : > { %v2397_v23 = vpop.f32.mrb[63].mxu1  ;;  %v7472_v3 = vadd.f32 %v7012_v56, %v6946_v45  ;;  %v2805_v18 = vpop.f32.mrb[57].mxu0 }
 0x1b2   : > { %v7473_v21 = vadd.f32 %v2805_v18, %v2378_v60  ;;  %v7013_v58 = vpop.f32.mrb[58].mxu0 }
 0x1b3   : > { %7127 = vmatmul.mubr.msk.bf16.gmra.mrb[104].mxu1 %vm415_vm0, %v10091_v20  ;;  %v7474_v29 = vadd.f32 %v7013_v58, %v6947_v14  ;;  %v2808_v43 = vpop.f32.mrb[59].mxu0  ;;  %v3022_v20 = vrot.slane %v7472_v3, 7 }
 0x1b4   : > { %7130 = vmatprep.mubr.msk.bf16.mxu1 %vm415_vm0, %v10092_v50  ;;  %v3020_v49 = vrot.slane %v7473_v21, 7  ;;  %v7475_v2 = vadd.f32 %v2808_v43, %v2381_v37  ;;  %v8989_v43 = vld [vmem:[#allocation2 + $0xa8] sm:$0xff] }
 0x1b5   : > { %v3023_v39 = vrot.slane %v7474_v29, 7  ;;  %7321 = vmatmul.mubr.msk.bf16.gmra.mrb[100].mxu0 %vm415_vm0, %v10087_v17 }
 0x1b6   : > { %v3021_v51 = vrot.slane %v7475_v2, 7  ;;  %7324 = vmatprep.mubr.msk.bf16.mxu0 %vm415_vm0, %v10088_v41  ;;  %v8971_v45 = vsel %vm3028_vm1, %v3019_v5, %v3020_v49  ;;  %v10094_v5 = vld [vmem:[#allocation17_spill] sm:$0xff] }
 0x1b7   : > { %v8975_v60 = vsel %vm3028_vm1, %v3022_v20, %v3023_v39 }
 0x1b8   : > { %v7016_v14 = vpop.f32.mrb[60].mxu0  ;;  %v8981_v37 = vsel %vm3028_vm1, %v3021_v51, %v3022_v20  ;;  %v8985_v17 = vsel %vm3028_vm1, %v3020_v49, %v3021_v51  ;;  %v8993_v20 = vld [vmem:[#allocation2 + $0xb0] sm:$0xff]  ;;  %v10096_v51 = vld [vmem:[#allocation18_spill] sm:$0xff] }
 0x1b9   : > { %v7476_v41 = vadd.f32 %v7016_v14, %v6950_v53  ;;  %v2821_v26 = vpop.f32.mrb[61].mxu0  ;;  %v10095_v53 = vrot.slane %v8595_v63, 7  ;;  %v10097_v63 = vld [vmem:[#allocation19_spill] sm:$0xff] }
 0x1ba   : > { %v7477_v2 = vadd.f32 %v2821_v26, %v2394_v28  ;;  %v7017_v56 = vpop.f32.mrb[62].mxu0  ;;  %v9035_v26 = vld [vmem:[#allocation2 + $0xc8] sm:$0xff] }
 0x1bb   : > { %7131 = vmatmul.mubr.msk.bf16.gmra.mrb[108].mxu1 %vm415_vm0, %v10093_v25  ;;  %v7478_v3 = vadd.f32 %v7017_v56, %v6951_v62  ;;  %v2824_v18 = vpop.f32.mrb[63].mxu0  ;;  %v3026_v58 = vrot.slane %v7476_v41, 7  ;;  %v9023_v25 = vld [vmem:[#allocation2 + $0xb8] sm:$0xff]  ;;  %v9027_v41 = vld [vmem:[#allocation2 + $0xc0] sm:$0xff]  ;;  %v7891_v56 = vld [vmem:[#allocation2 + $0x28] sm:$0xff] }
 0x1bc   : > { %7134 = vmatprep.mubr.msk.bf16.mxu1 %vm415_vm0, %v10094_v5  ;;  %v3024_v50 = vrot.slane %v7477_v2, 7  ;;  %v7479_v21 = vadd.f32 %v2824_v18, %v2397_v23  ;;  %v9039_v5 = vld [vmem:[#allocation2 + $0xd0] sm:$0xff]  ;;  %v7889_v2 = vld [vmem:[#allocation2 + $0x20] sm:$0xff]  ;;  %v7893_v18 = vld [vmem:[#allocation2 + $0x38] sm:$0xff] }
 0x1bd   : > { %v3027_v29 = vrot.slane %v7478_v3, 7  ;;  %7325 = vmatmul.mubr.msk.bf16.gmra.mrb[104].mxu0 %vm415_vm0, %v8989_v43  ;;  %v7892_v3 = vld [vmem:[#allocation2 + $0x30] sm:$0xff] }
 0x1be   : > { %v3025_v49 = vrot.slane %v7479_v21, 7  ;;  %7328 = vmatprep.mubr.msk.bf16.mxu0 %vm415_vm0, %v8993_v20  ;;  %v8999_v28 = vsel %vm3028_vm1, %v3023_v39, %v3024_v50  ;;  %v7896_v21 = vld [vmem:[#allocation2 + $0x50] sm:$0xff] }
 0x1bf   : > { %v9005_v62 = vsel %vm3028_vm1, %v3027_v29, %v10095_v53  ;;  %v9009_v23 = vsel %vm3028_vm1, %v3026_v58, %v3027_v29  ;;  %v7899_v29 = vld [vmem:[#allocation2 + $0x68] sm:$0xff]  ;;  %v7901_v53 = vld [vmem:[#allocation2 + $0x78] sm:$0xff] }
 0x1c0   : > { %v9015_v14 = vsel %vm3028_vm1, %v3025_v49, %v3026_v58  ;;  %v9019_v39 = vsel %vm3028_vm1, %v3024_v50, %v3025_v49  ;;  %v7894_v50 = vld [vmem:[#allocation2 + $0x40] sm:$0xff]  ;;  %v7900_v49 = vld [vmem:[#allocation2 + $0x70] sm:$0xff] }
 0x1c1   : > { %v7898_v58 = vld [vmem:[#allocation2 + $0x60] sm:$0xff] }
 0x1c3   : > { %7135 = vmatmul.mubr.msk.bf16.gmra.mrb[112].mxu1 %vm415_vm0, %v10096_v51  ;;  %v7902_v51 = vld [vmem:[#allocation2 + $0x80] sm:$0xff] }
 0x1c4   : > { %7138 = vmatprep.mubr.msk.bf16.mxu1 %vm415_vm0, %v10097_v63  ;;  %v7903_v63 = vld [vmem:[#allocation2 + $0x88] sm:$0xff] }
 0x1c5   : > { %7329 = vmatmul.mubr.msk.bf16.gmra.mrb[108].mxu0 %vm415_vm0, %v9023_v25 }
 0x1c6   : > { %7332 = vmatprep.mubr.msk.bf16.mxu0 %vm415_vm0, %v9027_v41 }
 0x1cb   : > { %7139 = vmatmul.mubr.msk.bf16.gmra.mrb[116].mxu1 %vm415_vm0, %v8300_v30  ;;  %v9047_v30 = vld [vmem:[#allocation2 + $0xd8] sm:$0xff] }
 0x1cc   : > { %7142 = vmatprep.mubr.msk.bf16.mxu1 %vm415_vm0, %v8304_v31  ;;  %v9051_v31 = vld [vmem:[#allocation2 + $0xe0] sm:$0xff] }
 0x1cd   : > { %7333 = vmatmul.mubr.msk.bf16.gmra.mrb[112].mxu0 %vm415_vm0, %v9035_v26 }
 0x1ce   : > { %7336 = vmatprep.mubr.msk.bf16.mxu0 %vm415_vm0, %v9039_v5 }
 0x1d3   : > { %7143 = vmatmul.mubr.msk.bf16.gmra.mrb[120].mxu1 %vm415_vm0, %v8312_v34  ;;  %v9058_v34 = vld [vmem:[#allocation2 + $0xe8] sm:$0xff] }
 0x1d4   : > { %7146 = vmatprep.mubr.msk.bf16.mxu1 %vm415_vm0, %v8316_v35 }
 0x1d5   : > { %7337 = vmatmul.mubr.msk.bf16.gmra.mrb[116].mxu0 %vm415_vm0, %v9047_v30 }
 0x1d6   : > { %7340 = vmatprep.mubr.msk.bf16.mxu0 %vm415_vm0, %v9051_v31 }
 0x1db   : > { %7147 = vmatmul.mubr.msk.bf16.gmra.mrb[124].mxu1 %vm415_vm0, %v8324_v36 }
 0x1dc   : > { %7152 = vmatprep.mubr.msk.bf16.mxu1 %vm415_vm0, %v7889_v2 }
 0x1dd   : > { %7341 = vmatmul.mubr.msk.bf16.gmra.mrb[120].mxu0 %vm415_vm0, %v9058_v34 }
 0x1de   : > { %7344 = vmatprep.mubr.msk.bf16.mxu0 %vm415_vm0, %v8316_v35  ;;  %v7895_v35 = vld [vmem:[#allocation2 + $0x48] sm:$0xff] }
 0x1e3   : > { %7153 = vmatmul.mubr.msk.bf16.vlgmr.msra.gmra.mrb[64].mxu1 %vm415_vm0, %v7891_v56 }
 0x1e4   : > { %7156 = vmatprep.mubr.msk.bf16.mxu1 %vm415_vm0, %v7892_v3 }
 0x1e5   : > { %7345 = vmatmul.mubr.msk.bf16.gmra.mrb[124].mxu0 %vm415_vm0, %v8324_v36  ;;  %v7897_v36 = vld [vmem:[#allocation2 + $0x58] sm:$0xff] }
 0x1e6   : > { %7350 = vmatprep.mubr.msk.bf16.mxu0 %vm415_vm0, %v7889_v2  ;;  %v7904_v2 = vld [vmem:[#allocation2 + $0x90] sm:$0xff] }
 0x1eb   : > { %7157 = vmatmul.mubr.msk.bf16.gmra.mrb[68].mxu1 %vm415_vm0, %v7893_v18 }
 0x1ec   : > { %7160 = vmatprep.mubr.msk.bf16.mxu1 %vm415_vm0, %v7894_v50 }
 0x1ed   : > { %7351 = vmatmul.mubr.msk.bf16.vlgmr.msra.gmra.mrb[64].mxu0 %vm415_vm0, %v7891_v56  ;;  %v7905_v56 = vld [vmem:[#allocation2 + $0x98] sm:$0xff] }
 0x1ee   : > { %7354 = vmatprep.mubr.msk.bf16.mxu0 %vm415_vm0, %v7892_v3  ;;  %v7906_v3 = vld [vmem:[#allocation2 + $0xa0] sm:$0xff] }
 0x1f3   : > { %7161 = vmatmul.mubr.msk.bf16.gmra.mrb[72].mxu1 %vm415_vm0, %v7895_v35 }
 0x1f4   : > { %7164 = vmatprep.mubr.msk.bf16.mxu1 %vm415_vm0, %v7896_v21 }
 0x1f5   : > { %7355 = vmatmul.mubr.msk.bf16.gmra.mrb[68].mxu0 %vm415_vm0, %v7893_v18  ;;  %v10098_v18 = vld [vmem:[#allocation21_spill] sm:$0xff] }
 0x1f6   : > { %7358 = vmatprep.mubr.msk.bf16.mxu0 %vm415_vm0, %v7894_v50 }
 0x1fb   : > { %7165 = vmatmul.mubr.msk.bf16.gmra.mrb[76].mxu1 %vm415_vm0, %v7897_v36 }
 0x1fc   : > { %7168 = vmatprep.mubr.msk.bf16.mxu1 %vm415_vm0, %v7898_v58 }
 0x1fd   : > { %7359 = vmatmul.mubr.msk.bf16.gmra.mrb[72].mxu0 %vm415_vm0, %v7895_v35 }
 0x1fe   : > { %7362 = vmatprep.mubr.msk.bf16.mxu0 %vm415_vm0, %v7896_v21 }
 0x203   : > { %7169 = vmatmul.mubr.msk.bf16.gmra.mrb[80].mxu1 %vm415_vm0, %v7899_v29 }
 0x204   : > { %7172 = vmatprep.mubr.msk.bf16.mxu1 %vm415_vm0, %v7900_v49 }
 0x205   : > { %7363 = vmatmul.mubr.msk.bf16.gmra.mrb[76].mxu0 %vm415_vm0, %v7897_v36 }
 0x206   : > { %7366 = vmatprep.mubr.msk.bf16.mxu0 %vm415_vm0, %v7898_v58 }
 0x20b   : > { %7173 = vmatmul.mubr.msk.bf16.gmra.mrb[84].mxu1 %vm415_vm0, %v7901_v53 }
 0x20c   : > { %7176 = vmatprep.mubr.msk.bf16.mxu1 %vm415_vm0, %v7902_v51 }
 0x20d   : > { %7367 = vmatmul.mubr.msk.bf16.gmra.mrb[80].mxu0 %vm415_vm0, %v7899_v29 }
 0x20e   : > { %7370 = vmatprep.mubr.msk.bf16.mxu0 %vm415_vm0, %v7900_v49  ;;  %v10099_v49 = vld [vmem:[#allocation20_spill] sm:$0xff] }
 0x213   : > { %7177 = vmatmul.mubr.msk.bf16.gmra.mrb[88].mxu1 %vm415_vm0, %v7903_v63 }
 0x214   : > { %7180 = vmatprep.mubr.msk.bf16.mxu1 %vm415_vm0, %v7904_v2 }
 0x215   : > { %7371 = vmatmul.mubr.msk.bf16.gmra.mrb[84].mxu0 %vm415_vm0, %v7901_v53 }
 0x216   : > { %7374 = vmatprep.mubr.msk.bf16.mxu0 %vm415_vm0, %v7902_v51 }
 0x21b   : > { %7181 = vmatmul.mubr.msk.bf16.gmra.mrb[92].mxu1 %vm415_vm0, %v7905_v56 }
 0x21c   : > { %7184 = vmatprep.mubr.msk.bf16.mxu1 %vm415_vm0, %v7906_v3 }
 0x21d   : > { %7375 = vmatmul.mubr.msk.bf16.gmra.mrb[88].mxu0 %vm415_vm0, %v7903_v63 }
 0x21e   : > { %7378 = vmatprep.mubr.msk.bf16.mxu0 %vm415_vm0, %v7904_v2  ;;  %v734_v2 = vadd.s32 64, %v8589_v22 }
 0x223   : > { %7185 = vmatmul.mubr.msk.bf16.gmra.mrb[96].mxu1 %vm415_vm0, %v8989_v43 }
 0x224   : > { %7188 = vmatprep.mubr.msk.bf16.mxu1 %vm415_vm0, %v8993_v20 }
 0x225   : > { %7379 = vmatmul.mubr.msk.bf16.gmra.mrb[92].mxu0 %vm415_vm0, %v7905_v56 }
 0x226   : > { %7382 = vmatprep.mubr.msk.bf16.mxu0 %vm415_vm0, %v7906_v3 }
 0x22b   : > { %7189 = vmatmul.mubr.msk.bf16.gmra.mrb[100].mxu1 %vm415_vm0, %v9023_v25 }
 0x22c   : > { %7192 = vmatprep.mubr.msk.bf16.mxu1 %vm415_vm0, %v9027_v41 }
 0x22d   : > { %7383 = vmatmul.mubr.msk.bf16.gmra.mrb[96].mxu0 %vm415_vm0, %v8989_v43  ;;  %v7907_v43 = vld [vmem:[#allocation2 + $0xf0] sm:$0xff] }
 0x22e   : > { %7386 = vmatprep.mubr.msk.bf16.mxu0 %vm415_vm0, %v8993_v20  ;;  %v7908_v20 = vld [vmem:[#allocation2 + $0xf8] sm:$0xff] }
 0x233   : > { %7193 = vmatmul.mubr.msk.bf16.gmra.mrb[104].mxu1 %vm415_vm0, %v9035_v26 }
 0x234   : > { %7196 = vmatprep.mubr.msk.bf16.mxu1 %vm415_vm0, %v9039_v5 }
 0x235   : > { %7387 = vmatmul.mubr.msk.bf16.gmra.mrb[100].mxu0 %vm415_vm0, %v9023_v25  ;;  %v7909_v25 = vld [vmem:[#allocation2 + $0x100] sm:$0xff] }
 0x236   : > { %7390 = vmatprep.mubr.msk.bf16.mxu0 %vm415_vm0, %v9027_v41  ;;  %v7910_v41 = vld [vmem:[#allocation2 + $0x108] sm:$0xff] }
 0x23b   : > { %7197 = vmatmul.mubr.msk.bf16.gmra.mrb[108].mxu1 %vm415_vm0, %v9047_v30 }
 0x23c   : > { %7200 = vmatprep.mubr.msk.bf16.mxu1 %vm415_vm0, %v9051_v31 }
 0x23d   : > { %7391 = vmatmul.mubr.msk.bf16.gmra.mrb[104].mxu0 %vm415_vm0, %v9035_v26  ;;  %v7911_v26 = vld [vmem:[#allocation2 + $0x110] sm:$0xff] }
 0x23e   : > { %7394 = vmatprep.mubr.msk.bf16.mxu0 %vm415_vm0, %v9039_v5  ;;  %v7912_v5 = vld [vmem:[#allocation2 + $0x118] sm:$0xff] }
 0x243   : > { %7201 = vmatmul.mubr.msk.bf16.gmra.mrb[112].mxu1 %vm415_vm0, %v9058_v34 }
 0x244   : > { %7204 = vmatprep.mubr.msk.bf16.mxu1 %vm415_vm0, %v7907_v43 }
 0x245   : > { %7395 = vmatmul.mubr.msk.bf16.gmra.mrb[108].mxu0 %vm415_vm0, %v9047_v30  ;;  %v794_v30 = vand.u32 31, %v8589_v22 }
 0x246   : > { %7398 = vmatprep.mubr.msk.bf16.mxu0 %vm415_vm0, %v9051_v31  ;;  %v730_v31 = vadd.s32 32, %v8589_v22 }
 0x247   : > { %vm2900_vm2 = vcmp.eq.s32.totalorder %v794_v30, 0  ;;  %v738_v30 = vadd.s32 96, %v8589_v22 }
 0x248   : > { %v3093_v35 = vsel %vm2900_vm2, 0.0, %v9005_v62  ;;  %v822_v29 = vand.u32 31, %v730_v31 }
 0x24a   : > { %vm2904_vm3 = vcmp.eq.s32.totalorder %v822_v29, 0  ;;  %v9178_v29 = vadd.s32 128, %v8589_v22 }
 0x24b   : > { %7205 = vmatmul.mubr.msk.bf16.gmra.mrb[116].mxu1 %vm415_vm0, %v7908_v20 }
 0x24c   : > { %7208 = vmatprep.mubr.msk.bf16.mxu1 %vm415_vm0, %v7909_v25 }
 0x24d   : > { %7399 = vmatmul.mubr.msk.bf16.gmra.mrb[112].mxu0 %vm415_vm0, %v9058_v34 }
 0x24e   : > { %7402 = vmatprep.mubr.msk.bf16.mxu0 %vm415_vm0, %v7907_v43  ;;  %v3097_v43 = vsel %vm2904_vm3, 0.0, %v8633_v54 }
 0x253   : > { %7209 = vmatmul.mubr.msk.bf16.gmra.mrb[120].mxu1 %vm415_vm0, %v7910_v41 }
 0x254   : > { %7212 = vmatprep.mubr.msk.bf16.mxu1 %vm415_vm0, %v7911_v26 }
 0x255   : > { %7403 = vmatmul.mubr.msk.bf16.gmra.mrb[116].mxu0 %vm415_vm0, %v7908_v20 }
 0x256   : > { %7406 = vmatprep.mubr.msk.bf16.mxu0 %vm415_vm0, %v7909_v25 }
 0x25b   : > { %7213 = vmatmul.mubr.msk.bf16.gmra.mrb[124].mxu1 %vm415_vm0, %v7912_v5 }
 0x25d   : > { %7407 = vmatmul.mubr.msk.bf16.gmra.mrb[120].mxu0 %vm415_vm0, %v7910_v41  ;;  %v850_v41 = vand.u32 31, %v734_v2 }
 0x25e   : > { %7410 = vmatprep.mubr.msk.bf16.mxu0 %vm415_vm0, %v7911_v26 }
 0x25f   : > { %vm9172_vm4 = vcmp.eq.s32.totalorder %v850_v41, 0 }
 0x265   : > { %7411 = vmatmul.mubr.msk.bf16.gmra.mrb[124].mxu0 %vm415_vm0, %v7912_v5 }
 0x2b6   : > { %v7154_v34 = vpop.f32.mrb[64].mxu1 }
 0x2b7   : > { %v4117_v50 = vadd.f32 %v7154_v34, %v10098_v18  ;;  %v3796_v21 = vpop.f32.mrb[65].mxu1 }
 0x2b8   : > { %v4115_v36 = vadd.f32 %v3796_v21, %v3093_v35  ;;  %v7155_v58 = vpop.f32.mrb[66].mxu1 }
 0x2b9   : > { %v9152_v53 = vadd.f32 %v7155_v58, %v10099_v49  ;;  %v3799_v51 = vpop.f32.mrb[67].mxu1 }
 0x2ba   : > { %v4116_v63 = vadd.f32 %v3799_v51, %v8619_v24 }
 0x2be   : > { %v7158_v56 = vpop.f32.mrb[68].mxu1 }
 0x2bf   : > { %v9157_v3 = vadd.f32 %v7158_v56, %v8643_v57  ;;  %v3812_v62 = vpop.f32.mrb[69].mxu1  ;;  %v729_v57 = vadd.s32 24, %v8589_v22  ;;  %v3101_v56 = vsel %vm9172_vm4, 0.0, %v8661_v59 }
 0x2c0   : > { %v9160_v20 = vadd.f32 %v3812_v62, %v3097_v43  ;;  %v7159_v25 = vpop.f32.mrb[70].mxu1  ;;  %v7352_v31 = vpop.f32.mrb[64].mxu0 }
 0x2c1   : > { %v9163_v26 = vadd.f32 %v7159_v25, %v8637_v55  ;;  %v3815_v5 = vpop.f32.mrb[71].mxu1  ;;  %v9169_v34 = vpop.f32.mrb[65].mxu0  ;;  %v5203_v55 = vrot.slane %v7352_v31, 1  ;;  %v9192_v25 = vld [vmem:[%s10006_s4] ss:$0 sm:$0xff]  ;;  %v815_v41 = vand.u32 31, %v729_v57 }
 0x2c2   : > { %v9166_v24 = vadd.f32 %v3815_v5, %v8647_v0  ;;  %10100 = vst [vmem:[#allocation14_spill] sm:$0xff] %v9169_v34  ;;  %v7353_v18 = vpop.f32.mrb[66].mxu0  ;;  %v878_v0 = vand.u32 31, %v738_v30  ;;  %v10037_v49 = vrot.slane %v9169_v34, 1 }
 0x2c3   : > { %v5204_v35 = vrot.slane %v7353_v18, 1  ;;  %v4821_v21 = vpop.f32.mrb[67].mxu0  ;;  %vm9224_vm8 = vcmp.eq.s32.totalorder %v815_v41, 31 }
 0x2c4   : > { %v5202_v51 = vrot.slane %v4821_v21, 1  ;;  %vm9209_vm6 = vcmp.eq.s32.totalorder %v878_v0, 0 }
 0x2c5   : > { %v5326_v62 = vsel %vm5265_vm5, %v5203_v55, %v5204_v35 }
 0x2c6   : > { %v7162_v58 = vpop.f32.mrb[72].mxu1  ;;  %v5327_v31 = vsel %vm5265_vm5, %v5202_v51, %v5203_v55  ;;  %v5328_v59 = vsel %vm5265_vm5, %v10037_v49, %v5202_v51  ;;  %v906_v55 = vand.u32 31, %v9178_v29 }
 0x2c7   : > { %v9182_v2 = vadd.f32 %v7162_v58, %v8671_v4  ;;  %v3828_v43 = vpop.f32.mrb[73].mxu1  ;;  %v5396_v4 = vadd.f32 %v5326_v62, %v4117_v50  ;;  %v5394_v21 = vadd.f32 %v5328_v59, %v4115_v36  ;;  %v5395_v58 = vadd.f32 %v5327_v31, %v4116_v63 }
 0x2c8   : > { %v9194_v5 = vadd.f32 %v3828_v43, %v3101_v56  ;;  %v7163_v30 = vpop.f32.mrb[74].mxu1  ;;  %v7356_v50 = vpop.f32.mrb[68].mxu0  ;;  %v733_v63 = vadd.s32 56, %v8589_v22  ;;  %vm9267_vm9 = vcmp.eq.s32.totalorder %v906_v55, 0 }
 0x2c9   : > { %v9203_v54 = vadd.f32 %v7163_v30, %v8665_v61  ;;  %v3831_v18 = vpop.f32.mrb[75].mxu1  ;;  %v5467_v56 = vadd.f32 %v9192_v25, %v5396_v4  ;;  %v5465_v61 = vadd.f32 %v9192_v25, %v5394_v21  ;;  %v4834_v36 = vpop.f32.mrb[69].mxu0  ;;  %v9229_v30 = vadd.s32 160, %v8589_v22 }
 0x2ca   : > { %v9206_v57 = vadd.f32 %v3831_v18, %v8675_v48  ;;  %v5466_v48 = vadd.f32 %v9192_v25, %v5395_v58  ;;  %v5205_v29 = vrot.slane %v4834_v36, 1  ;;  %v7357_v62 = vpop.f32.mrb[70].mxu0  ;;  %v5207_v59 = vrot.slane %v7356_v50, 1 }
 0x2cb   : > { %v6443_v0 = vpack.c.bf16 %v5467_v56, %v5467_v56  ;;  %v6441_v4 = vpack.c.bf16 %v5465_v61, %v5465_v61  ;;  %v5208_v18 = vrot.slane %v7357_v62, 1  ;;  %v4837_v21 = vpop.f32.mrb[71].mxu0  ;;  %v3105_v36 = vsel %vm9209_vm6, 0.0, %v8689_v6 }
 0x2cc   : > { %v6442_v31 = vpack.c.bf16 %v5466_v48, %v5466_v48  ;;  %v5325_v41 = vsel %vm5265_vm5, %v5204_v35, %v5205_v29  ;;  %v5206_v56 = vrot.slane %v4837_v21, 1  ;;  %v843_v35 = vand.u32 31, %v733_v63 }
 0x2cd   : > { %5788 = vst.msk [vmem:[%s9219_s15 + $0x8] sm:$0xf] %vm5785_vm7, %v6443_v0  ;;  %5786 = vst.msk [vmem:[%s9219_s15] sm:$0xf] %vm5785_vm7, %v6441_v4  ;;  %v5333_v50 = vsel %vm9224_vm8, 0.0, %v5325_v41  ;;  %v5322_v61 = vsel %vm5265_vm5, %v5207_v59, %v5208_v18 }
 0x2ce   : > { %v7166_v58 = vpop.f32.mrb[76].mxu1  ;;  %5787 = vst.msk [vmem:[%s9219_s15 + $0x4] sm:$0xf] %vm5785_vm7, %v6442_v31  ;;  %v5397_v0 = vadd.f32 %v5333_v50, %v9152_v53  ;;  %v5400_v43 = vadd.f32 %v5322_v61, %v9157_v3  ;;  %v5323_v6 = vsel %vm5265_vm5, %v5206_v56, %v5207_v59  ;;  %v5324_v62 = vsel %vm5265_vm5, %v5205_v29, %v5206_v56 }
 0x2cf   : > { %v9236_v49 = vadd.f32 %v7166_v58, %v8699_v9  ;;  %v3844_v34 = vpop.f32.mrb[77].mxu1  ;;  %v5398_v51 = vadd.f32 %v5324_v62, %v9160_v20  ;;  %v5399_v31 = vadd.f32 %v5323_v6, %v9166_v24  ;;  %v934_v29 = vand.u32 31, %v9229_v30 }
 0x2d0   : > { %v9249_v48 = vadd.f32 %v3844_v34, %v3105_v36  ;;  %v7167_v9 = vpop.f32.mrb[78].mxu1  ;;  %v5468_v53 = vadd.f32 %v9192_v25, %v5397_v0  ;;  %v5471_v3 = vadd.f32 %v9192_v25, %v5400_v43  ;;  %v7360_v21 = vpop.f32.mrb[72].mxu0  ;;  %v9276_v58 = vadd.s32 192, %v8589_v22 }
 0x2d1   : > { %v3847_v4 = vpop.f32.mrb[79].mxu1  ;;  %v9260_v63 = vadd.f32 %v7167_v9, %v8693_v7  ;;  %v5469_v20 = vadd.f32 %v9192_v25, %v5398_v51  ;;  %v5470_v7 = vadd.f32 %v9192_v25, %v5399_v31  ;;  %v4850_v24 = vpop.f32.mrb[73].mxu0  ;;  %vm9278_vm10 = vcmp.eq.s32.totalorder %v843_v35, 31 }
 0x2d2   : > { %v9263_v34 = vadd.f32 %v3847_v4, %v8703_v52  ;;  %v737_v52 = vadd.s32 88, %v8589_v22  ;;  %v6444_v41 = vpack.c.bf16 %v5468_v53, %v5468_v53  ;;  %v6447_v56 = vpack.c.bf16 %v5471_v3, %v5471_v3  ;;  %v7361_v36 = vpop.f32.mrb[74].mxu0 }
 0x2d3   : > { %v5209_v30 = vrot.slane %v4850_v24, 1  ;;  %v6445_v50 = vpack.c.bf16 %v5469_v20, %v5469_v20  ;;  %v6446_v61 = vpack.c.bf16 %v5470_v7, %v5470_v7  ;;  %v5211_v9 = vrot.slane %v7360_v21, 1  ;;  %v4853_v43 = vpop.f32.mrb[75].mxu0 }
 0x2d4   : > { %v5212_v0 = vrot.slane %v7361_v36, 1  ;;  %5789 = vst.msk [vmem:[%s9219_s15 + $0xc] sm:$0xf] %vm5785_vm7, %v6444_v41  ;;  %5792 = vst.msk [vmem:[%s9219_s15 + $0x18] sm:$0xf] %vm5785_vm7, %v6447_v56  ;;  %v5210_v62 = vrot.slane %v4853_v43, 1 }
 0x2d5   : > { %v5321_v35 = vsel %vm5265_vm5, %v5208_v18, %v5209_v30  ;;  %v3109_v51 = vsel %vm9267_vm9, 0.0, %v8718_v47  ;;  %5790 = vst.msk [vmem:[%s9219_s15 + $0x10] sm:$0xf] %vm5785_vm7, %v6445_v50  ;;  %5791 = vst.msk [vmem:[%s9219_s15 + $0x14] sm:$0xf] %vm5785_vm7, %v6446_v61  ;;  %v871_v18 = vand.u32 31, %v737_v52 }
 0x2d6   : > { %v7170_v6 = vpop.f32.mrb[80].mxu1  ;;  %v5337_v53 = vsel %vm9278_vm10, 0.0, %v5321_v35  ;;  %v5318_v3 = vsel %vm5265_vm5, %v5211_v9, %v5212_v0  ;;  %v5319_v47 = vsel %vm5265_vm5, %v5210_v62, %v5211_v9  ;;  %v5320_v7 = vsel %vm5265_vm5, %v5209_v30, %v5210_v62 }
 0x2d7   : > { %v9289_v4 = vadd.f32 %v7170_v6, %v8728_v13  ;;  %v3860_v31 = vpop.f32.mrb[81].mxu1  ;;  %v5401_v20 = vadd.f32 %v5337_v53, %v9163_v26  ;;  %v5404_v59 = vadd.f32 %v5318_v3, %v9182_v2  ;;  %v5402_v41 = vadd.f32 %v5320_v7, %v9194_v5 }
 0x2d8   : > { %v9302_v21 = vadd.f32 %v3860_v31, %v3109_v51  ;;  %v7171_v13 = vpop.f32.mrb[82].mxu1  ;;  %v5403_v56 = vadd.f32 %v5319_v47, %v9206_v57  ;;  %v7364_v36 = vpop.f32.mrb[76].mxu0  ;;  %vm9320_vm11 = vcmp.eq.s32.totalorder %v934_v29, 0  ;;  %v962_v30 = vand.u32 31, %v9276_v58 }
 0x2d9   : > { %v3863_v24 = vpop.f32.mrb[83].mxu1  ;;  %v9313_v52 = vadd.f32 %v7171_v13, %v8722_v11  ;;  %v5472_v26 = vadd.f32 %v9192_v25, %v5401_v20  ;;  %v5475_v2 = vadd.f32 %v9192_v25, %v5404_v59  ;;  %v5473_v5 = vadd.f32 %v9192_v25, %v5402_v41  ;;  %v4866_v57 = vpop.f32.mrb[77].mxu0 }
 0x2da   : > { %v9316_v55 = vadd.f32 %v3863_v24, %v8732_v38  ;;  %v5474_v11 = vadd.f32 %v9192_v25, %v5403_v56  ;;  %v741_v38 = vadd.s32 120, %v8589_v22  ;;  %v9329_v61 = vadd.s32 224, %v8589_v22  ;;  %v7365_v6 = vpop.f32.mrb[78].mxu0 }
 0x2db   : > { %v6448_v9 = vpack.c.bf16 %v5472_v26, %v5472_v26  ;;  %v6451_v43 = vpack.c.bf16 %v5475_v2, %v5475_v2  ;;  %vm9331_vm12 = vcmp.eq.s32.totalorder %v871_v18, 31  ;;  %v5213_v58 = vrot.slane %v4866_v57, 1  ;;  %v4869_v53 = vpop.f32.mrb[79].mxu0 }
 0x2dc   : > { %v6449_v35 = vpack.c.bf16 %v5473_v5, %v5473_v5  ;;  %v6450_v62 = vpack.c.bf16 %v5474_v11, %v5474_v11  ;;  %v5215_v51 = vrot.slane %v7364_v36, 1  ;;  %v5216_v31 = vrot.slane %v7365_v6, 1 }
 0x2dd   : > { %5793 = vst.msk [vmem:[%s9219_s15 + $0x1c] sm:$0xf] %vm5785_vm7, %v6448_v9  ;;  %5796 = vst.msk [vmem:[%s9219_s15 + $0x28] sm:$0xf] %vm5785_vm7, %v6451_v43  ;;  %v5317_v18 = vsel %vm5265_vm5, %v5212_v0, %v5213_v58  ;;  %v5214_v13 = vrot.slane %v4869_v53, 1  ;;  %v3113_v59 = vsel %vm9320_vm11, 0.0, %v8747_v15 }
 0x2de   : > { %v7174_v3 = vpop.f32.mrb[84].mxu1  ;;  %5794 = vst.msk [vmem:[%s9219_s15 + $0x20] sm:$0xf] %vm5785_vm7, %v6449_v35  ;;  %5795 = vst.msk [vmem:[%s9219_s15 + $0x24] sm:$0xf] %vm5785_vm7, %v6450_v62  ;;  %v5341_v7 = vsel %vm9331_vm12, 0.0, %v5317_v18  ;;  %v5314_v24 = vsel %vm5265_vm5, %v5215_v51, %v5216_v31 }
 0x2df   : > { %v9342_v20 = vadd.f32 %v7174_v3, %v8757_v40  ;;  %v3876_v47 = vpop.f32.mrb[85].mxu1  ;;  %v899_v0 = vand.u32 31, %v741_v38  ;;  %v5405_v56 = vadd.f32 %v5341_v7, %v9203_v54  ;;  %v5408_v26 = vadd.f32 %v5314_v24, %v9236_v49 }
 0x2e0   : > { %v9355_v41 = vadd.f32 %v3876_v47, %v3113_v59  ;;  %v7175_v40 = vpop.f32.mrb[86].mxu1  ;;  %v5315_v15 = vsel %vm5265_vm5, %v5214_v13, %v5215_v51  ;;  %v5316_v2 = vsel %vm5265_vm5, %v5213_v58, %v5214_v13  ;;  %v7368_v38 = vpop.f32.mrb[80].mxu0  ;;  %vm9373_vm13 = vcmp.eq.s32.totalorder %v962_v30, 0 }
 0x2e1   : > { %v3879_v36 = vpop.f32.mrb[87].mxu1  ;;  %v5406_v50 = vadd.f32 %v5316_v2, %v9249_v48  ;;  %v5407_v5 = vadd.f32 %v5315_v15, %v9263_v34  ;;  %v9366_v11 = vadd.f32 %v7175_v40, %v8751_v16  ;;  %v5476_v54 = vadd.f32 %v9192_v25, %v5405_v56  ;;  %v4882_v34 = vpop.f32.mrb[81].mxu0 }
 0x2e2   : > { %v9369_v57 = vadd.f32 %v3879_v36, %v8761_v46  ;;  %v5479_v49 = vadd.f32 %v9192_v25, %v5408_v26  ;;  %v990_v43 = vand.u32 31, %v9329_v61  ;;  %v745_v46 = vadd.s32 152, %v8589_v22  ;;  %v7369_v35 = vpop.f32.mrb[82].mxu0 }
 0x2e3   : > { %v5477_v48 = vadd.f32 %v9192_v25, %v5406_v50  ;;  %v5478_v16 = vadd.f32 %v9192_v25, %v5407_v5  ;;  %v9382_v29 = vadd.s32 256, %v8589_v22  ;;  %v6452_v58 = vpack.c.bf16 %v5476_v54, %v5476_v54  ;;  %v4885_v18 = vpop.f32.mrb[83].mxu0 }
 0x2e4   : > { %v6455_v6 = vpack.c.bf16 %v5479_v49, %v5479_v49  ;;  %vm9384_vm14 = vcmp.eq.s32.totalorder %v899_v0, 31  ;;  %v5217_v61 = vrot.slane %v4882_v34, 1  ;;  %v5219_v53 = vrot.slane %v7368_v38, 1 }
 0x2e5   : > { %v6453_v62 = vpack.c.bf16 %v5477_v48, %v5477_v48  ;;  %v6454_v51 = vpack.c.bf16 %v5478_v16, %v5478_v16  ;;  %v5220_v3 = vrot.slane %v7369_v35, 1  ;;  %5797 = vst.msk [vmem:[%s9219_s15 + $0x2c] sm:$0xf] %vm5785_vm7, %v6452_v58  ;;  %v5218_v47 = vrot.slane %v4885_v18, 1 }
 0x2e6   : > { %v7178_v13 = vpop.f32.mrb[88].mxu1  ;;  %5800 = vst.msk [vmem:[%s9219_s15 + $0x38] sm:$0xf] %vm5785_vm7, %v6455_v6  ;;  %v5313_v59 = vsel %vm5265_vm5, %v5216_v31, %v5217_v61  ;;  %v3117_v24 = vsel %vm9373_vm13, 0.0, %v8775_v42  ;;  %v927_v31 = vand.u32 31, %v745_v46  ;;  %vm9426_vm15 = vcmp.eq.s32.totalorder %v990_v43, 0 }
 0x2e7   : > { %v9395_v7 = vadd.f32 %v7178_v13, %v8785_v19  ;;  %v3892_v0 = vpop.f32.mrb[89].mxu1  ;;  %5798 = vst.msk [vmem:[%s9219_s15 + $0x30] sm:$0xf] %vm5785_vm7, %v6453_v62  ;;  %5799 = vst.msk [vmem:[%s9219_s15 + $0x34] sm:$0xf] %vm5785_vm7, %v6454_v51  ;;  %v5345_v40 = vsel %vm9384_vm14, 0.0, %v5313_v59  ;;  %v5310_v56 = vsel %vm5265_vm5, %v5219_v53, %v5220_v3  ;;  %v5311_v42 = vsel %vm5265_vm5, %v5218_v47, %v5219_v53 }
 0x2e8   : > { %v9408_v26 = vadd.f32 %v3892_v0, %v3117_v24  ;;  %v7179_v19 = vpop.f32.mrb[90].mxu1  ;;  %v5409_v15 = vadd.f32 %v5345_v40, %v9260_v63  ;;  %v5412_v2 = vadd.f32 %v5310_v56, %v9289_v4  ;;  %v5312_v36 = vsel %vm5265_vm5, %v5217_v61, %v5218_v47  ;;  %v7372_v9 = vpop.f32.mrb[84].mxu0 }
 0x2e9   : > { %v3895_v50 = vpop.f32.mrb[91].mxu1  ;;  %v5410_v5 = vadd.f32 %v5312_v36, %v9302_v21  ;;  %v5411_v54 = vadd.f32 %v5311_v42, %v9316_v55  ;;  %v9419_v49 = vadd.f32 %v7179_v19, %v8779_v44  ;;  %v1018_v16 = vand.u32 31, %v9382_v29  ;;  %v4898_v55 = vpop.f32.mrb[85].mxu0 }
 0x2ea   : > { %v9422_v38 = vadd.f32 %v3895_v50, %v8789_v8  ;;  %v5480_v63 = vadd.f32 %v9192_v25, %v5409_v15  ;;  %v5483_v4 = vadd.f32 %v9192_v25, %v5412_v2  ;;  %v749_v8 = vadd.s32 184, %v8589_v22  ;;  %v7373_v6 = vpop.f32.mrb[86].mxu0  ;;  %v10123_v50 = vld [vmem:[#allocation22_spill] sm:$0xff] }
 0x2eb   : > { %v5481_v21 = vadd.f32 %v9192_v25, %v5410_v5  ;;  %v5482_v44 = vadd.f32 %v9192_v25, %v5411_v54  ;;  %v9435_v34 = vadd.s32 288, %v8589_v22  ;;  %vm9437_vm0 = vcmp.eq.s32.totalorder %v927_v31, 31  ;;  %v4901_v51 = vpop.f32.mrb[87].mxu0  ;;  %v10124_v54 = vld [vmem:[#allocation23_spill] sm:$0xff] }
 0x2ec   : > { %v6456_v46 = vpack.c.bf16 %v5480_v63, %v5480_v63  ;;  %v6459_v58 = vpack.c.bf16 %v5483_v4, %v5483_v4  ;;  %v5221_v29 = vrot.slane %v4898_v55, 1  ;;  %v5223_v35 = vrot.slane %v7372_v9, 1 }
 0x2ed   : > { %v6457_v30 = vpack.c.bf16 %v5481_v21, %v5481_v21  ;;  %v6458_v61 = vpack.c.bf16 %v5482_v44, %v5482_v44  ;;  %v5224_v62 = vrot.slane %v7373_v6, 1  ;;  %v5222_v13 = vrot.slane %v4901_v51, 1 }
 0x2ee   : > { %v7182_v53 = vpop.f32.mrb[92].mxu1  ;;  %5801 = vst.msk [vmem:[%s9219_s15 + $0x3c] sm:$0xf] %vm5785_vm7, %v6456_v46  ;;  %5804 = vst.msk [vmem:[%s9219_s15 + $0x48] sm:$0xf] %vm5785_vm7, %v6459_v58  ;;  %v5309_v18 = vsel %vm5265_vm5, %v5220_v3, %v5221_v29  ;;  %v3121_v47 = vsel %vm9426_vm15, 0.0, %v8803_v1 }
 0x2ef   : > { %v9448_v59 = vadd.f32 %v7182_v53, %v8813_v32  ;;  %v3908_v24 = vpop.f32.mrb[93].mxu1  ;;  %5802 = vst.msk [vmem:[%s9219_s15 + $0x40] sm:$0xf] %vm5785_vm7, %v6457_v30  ;;  %5803 = vst.msk [vmem:[%s9219_s15 + $0x44] sm:$0xf] %vm5785_vm7, %v6458_v61  ;;  %v5349_v0 = vsel %vm9437_vm0, 0.0, %v5309_v18  ;;  %v5306_v40 = vsel %vm5265_vm5, %v5223_v35, %v5224_v62  ;;  %v5307_v1 = vsel %vm5265_vm5, %v5222_v13, %v5223_v35 }
 0x2f0   : > { %v955_v3 = vand.u32 31, %v749_v8  ;;  %v9461_v56 = vadd.f32 %v3908_v24, %v3121_v47  ;;  %v7183_v32 = vpop.f32.mrb[94].mxu1  ;;  %v5413_v31 = vadd.f32 %v5349_v0, %v9313_v52  ;;  %v5416_v19 = vadd.f32 %v5306_v40, %v9342_v20  ;;  %v7376_v4 = vpop.f32.mrb[88].mxu0  ;;  %v10129_v18 = vld [vmem:[#allocation4_spill] sm:$0xff]  ;;  %v10130_v47 = vld [vmem:[#allocation3_spill] sm:$0xff] }
 0x2f1   : > { %v5308_v15 = vsel %vm5265_vm5, %v5221_v29, %v5222_v13  ;;  %v3911_v2 = vpop.f32.mrb[95].mxu1  ;;  %v5415_v36 = vadd.f32 %v5307_v1, %v9369_v57  ;;  %v9472_v5 = vadd.f32 %v7183_v32, %v10123_v50  ;;  %vm9479_vm1 = vcmp.eq.s32.totalorder %v1018_v16, 0  ;;  %v4914_v21 = vpop.f32.mrb[89].mxu0 }
 0x2f2   : > { %v5414_v42 = vadd.f32 %v5308_v15, %v9355_v41  ;;  %v9475_v63 = vadd.f32 %v3911_v2, %v10124_v54  ;;  %v5484_v52 = vadd.f32 %v9192_v25, %v5413_v31  ;;  %v5487_v20 = vadd.f32 %v9192_v25, %v5416_v19  ;;  %v7377_v58 = vpop.f32.mrb[90].mxu0  ;;  %v10131_v54 = vld [vmem:[#allocation24_spill] sm:$0xff] }
 0x2f3   : > { %v1046_v48 = vand.u32 31, %v9435_v34  ;;  %v5486_v57 = vadd.f32 %v9192_v25, %v5415_v36  ;;  %v753_v44 = vadd.s32 216, %v8589_v22  ;;  %v9488_v55 = vadd.s32 320, %v8589_v22  ;;  %v4917_v61 = vpop.f32.mrb[91].mxu0 }
 0x2f4   : > { %v5485_v41 = vadd.f32 %v9192_v25, %v5414_v42  ;;  %v6460_v8 = vpack.c.bf16 %v5484_v52, %v5484_v52  ;;  %v6463_v46 = vpack.c.bf16 %v5487_v20, %v5487_v20  ;;  %vm9490_vm2 = vcmp.eq.s32.totalorder %v955_v3, 31  ;;  %v10132_v20 = vld [vmem:[#allocation25_spill] sm:$0xff] }
 0x2f5   : > { %v5225_v34 = vrot.slane %v4914_v21, 1  ;;  %v6462_v29 = vpack.c.bf16 %v5486_v57, %v5486_v57  ;;  %v5227_v6 = vrot.slane %v7376_v4, 1  ;;  %v5228_v30 = vrot.slane %v7377_v58, 1 }
 0x2f6   : > { %v6461_v43 = vpack.c.bf16 %v5485_v41, %v5485_v41  ;;  %v7186_v35 = vpop.f32.mrb[96].mxu1  ;;  %5805 = vst.msk [vmem:[%s9219_s15 + $0x4c] sm:$0xf] %vm5785_vm7, %v6460_v8  ;;  %5808 = vst.msk [vmem:[%s9219_s15 + $0x58] sm:$0xf] %vm5785_vm7, %v6463_v46  ;;  %v5226_v53 = vrot.slane %v4917_v61, 1 }
 0x2f7   : > { %v5305_v51 = vsel %vm5265_vm5, %v5224_v62, %v5225_v34  ;;  %v9501_v13 = vadd.f32 %v7186_v35, %v10129_v18  ;;  %v3125_v24 = vsel %vm9479_vm1, 0.0, %v10130_v47  ;;  %v3924_v0 = vpop.f32.mrb[97].mxu1  ;;  %5807 = vst.msk [vmem:[%s9219_s15 + $0x54] sm:$0xf] %vm5785_vm7, %v6462_v29  ;;  %v5302_v3 = vsel %vm5265_vm5, %v5227_v6, %v5228_v30  ;;  %v10137_v18 = vld [vmem:[#allocation6_spill] sm:$0xff] }
 0x2f8   : > { %5806 = vst.msk [vmem:[%s9219_s15 + $0x50] sm:$0xf] %vm5785_vm7, %v6461_v43  ;;  %v5353_v40 = vsel %vm9490_vm2, 0.0, %v5305_v51  ;;  %v983_v62 = vand.u32 31, %v753_v44  ;;  %v9514_v32 = vadd.f32 %v3924_v0, %v3125_v24  ;;  %v7187_v31 = vpop.f32.mrb[98].mxu1  ;;  %v5420_v1 = vadd.f32 %v5302_v3, %v9395_v7  ;;  %v7380_v9 = vpop.f32.mrb[92].mxu0 }
 0x2f9   : > { %v5417_v19 = vadd.f32 %v5353_v40, %v9366_v11  ;;  %v5303_v15 = vsel %vm5265_vm5, %v5226_v53, %v5227_v6  ;;  %v5304_v2 = vsel %vm5265_vm5, %v5225_v34, %v5226_v53  ;;  %v3927_v42 = vpop.f32.mrb[99].mxu1  ;;  %v9525_v52 = vadd.f32 %v7187_v31, %v10131_v54  ;;  %v4930_v21 = vpop.f32.mrb[93].mxu0  ;;  %v10138_v24 = vld [vmem:[#allocation5_spill] sm:$0xff] }
 0x2fa   : > { %v5418_v36 = vadd.f32 %v5304_v2, %v9408_v26  ;;  %v5419_v50 = vadd.f32 %v5303_v15, %v9422_v38  ;;  %v9528_v4 = vadd.f32 %v3927_v42, %v10132_v20  ;;  %v5491_v7 = vadd.f32 %v9192_v25, %v5420_v1  ;;  %v7381_v34 = vpop.f32.mrb[94].mxu0  ;;  %v10139_v20 = vld [vmem:[#allocation26_spill] sm:$0xff] }
 0x2fb   : > { %v5488_v11 = vadd.f32 %v9192_v25, %v5417_v19  ;;  %vm9532_vm3 = vcmp.eq.s32.totalorder %v1046_v48, 0  ;;  %v1074_v57 = vand.u32 31, %v9488_v55  ;;  %v757_v44 = vadd.s32 248, %v8589_v22  ;;  %v4933_v61 = vpop.f32.mrb[95].mxu0 }
 0x2fc   : > { %v5489_v26 = vadd.f32 %v9192_v25, %v5418_v36  ;;  %v5490_v38 = vadd.f32 %v9192_v25, %v5419_v50  ;;  %v9541_v8 = vadd.s32 352, %v8589_v22  ;;  %v6467_v16 = vpack.c.bf16 %v5491_v7, %v5491_v7  ;;  %v10140_v7 = vld [vmem:[#allocation27_spill] sm:$0xff] }
 0x2fd   : > { %v6464_v46 = vpack.c.bf16 %v5488_v11, %v5488_v11  ;;  %vm9543_vm4 = vcmp.eq.s32.totalorder %v983_v62, 31  ;;  %v5229_v55 = vrot.slane %v4930_v21, 1  ;;  %v5231_v29 = vrot.slane %v7380_v9, 1 }
 0x2fe   : > { %v6465_v58 = vpack.c.bf16 %v5489_v26, %v5489_v26  ;;  %v6466_v43 = vpack.c.bf16 %v5490_v38, %v5490_v38  ;;  %v5232_v6 = vrot.slane %v7381_v34, 1  ;;  %v7190_v35 = vpop.f32.mrb[100].mxu1  ;;  %5812 = vst.msk [vmem:[%s9219_s15 + $0x68] sm:$0xf] %vm5785_vm7, %v6467_v16  ;;  %v5230_v53 = vrot.slane %v4933_v61, 1 }
 0x2ff   : > { %5809 = vst.msk [vmem:[%s9219_s15 + $0x5c] sm:$0xf] %vm5785_vm7, %v6464_v46  ;;  %v5301_v51 = vsel %vm5265_vm5, %v5228_v30, %v5229_v55  ;;  %v9554_v47 = vadd.f32 %v7190_v35, %v10137_v18  ;;  %v3129_v0 = vsel %vm9532_vm3, 0.0, %v10138_v24  ;;  %v3940_v40 = vpop.f32.mrb[101].mxu1  ;;  %v1011_v30 = vand.u32 31, %v757_v44  ;;  %v10145_v18 = vld [vmem:[#allocation8_spill] sm:$0xff] }
 0x300   : > { %5810 = vst.msk [vmem:[%s9219_s15 + $0x60] sm:$0xf] %vm5785_vm7, %v6465_v58  ;;  %5811 = vst.msk [vmem:[%s9219_s15 + $0x64] sm:$0xf] %vm5785_vm7, %v6466_v43  ;;  %v5357_v3 = vsel %vm9543_vm4, 0.0, %v5301_v51  ;;  %v5298_v62 = vsel %vm5265_vm5, %v5231_v29, %v5232_v6  ;;  %v9567_v31 = vadd.f32 %v3940_v40, %v3129_v0  ;;  %v7191_v19 = vpop.f32.mrb[102].mxu1  ;;  %v5299_v2 = vsel %vm5265_vm5, %v5230_v53, %v5231_v29 }
 0x301   : > { %v5421_v1 = vadd.f32 %v5357_v3, %v9419_v49  ;;  %v5424_v15 = vadd.f32 %v5298_v62, %v9448_v59  ;;  %v5300_v42 = vsel %vm5265_vm5, %v5229_v55, %v5230_v53  ;;  %v3943_v36 = vpop.f32.mrb[103].mxu1  ;;  %v5423_v54 = vadd.f32 %v5299_v2, %v9475_v63  ;;  %v7384_v41 = vpop.f32.mrb[96].mxu0  ;;  %v10146_v0 = vld [vmem:[#allocation7_spill] sm:$0xff] }
 0x302   : > { %v5422_v50 = vadd.f32 %v5300_v42, %v9461_v56  ;;  %v9578_v11 = vadd.f32 %v7191_v19, %v10139_v20  ;;  %v9581_v9 = vadd.f32 %v3943_v36, %v10140_v7  ;;  %vm9585_vm6 = vcmp.eq.s32.totalorder %v1074_v57, 0  ;;  %v4946_v21 = vpop.f32.mrb[97].mxu0  ;;  %v10147_v7 = vld [vmem:[#allocation28_spill] sm:$0xff] }
 0x303   : > { %v5492_v49 = vadd.f32 %v9192_v25, %v5421_v1  ;;  %v5495_v59 = vadd.f32 %v9192_v25, %v5424_v15  ;;  %v1102_v38 = vand.u32 31, %v9541_v8  ;;  %v5494_v63 = vadd.f32 %v9192_v25, %v5423_v54  ;;  %v7385_v55 = vpop.f32.mrb[98].mxu0 }
 0x304   : > { %v5493_v56 = vadd.f32 %v9192_v25, %v5422_v50  ;;  %v761_v44 = vadd.s32 280, %v8589_v22  ;;  %v9594_v46 = vadd.s32 384, %v8589_v22  ;;  %vm9596_vm8 = vcmp.eq.s32.totalorder %v1011_v30, 31  ;;  %v4949_v61 = vpop.f32.mrb[99].mxu0 }
 0x305   : > { %v6468_v16 = vpack.c.bf16 %v5492_v49, %v5492_v49  ;;  %v6471_v48 = vpack.c.bf16 %v5495_v59, %v5495_v59  ;;  %v5233_v8 = vrot.slane %v4946_v21, 1  ;;  %v6470_v58 = vpack.c.bf16 %v5494_v63, %v5494_v63  ;;  %v10148_v59 = vld [vmem:[#allocation29_spill] sm:$0xff] }
 0x306   : > { %v6469_v34 = vpack.c.bf16 %v5493_v56, %v5493_v56  ;;  %v5235_v43 = vrot.slane %v7384_v41, 1  ;;  %v5236_v29 = vrot.slane %v7385_v55, 1  ;;  %v7194_v35 = vpop.f32.mrb[104].mxu1  ;;  %v5234_v53 = vrot.slane %v4949_v61, 1 }
 0x307   : > { %5813 = vst.msk [vmem:[%s9219_s15 + $0x6c] sm:$0xf] %vm5785_vm7, %v6468_v16  ;;  %5816 = vst.msk [vmem:[%s9219_s15 + $0x78] sm:$0xf] %vm5785_vm7, %v6471_v48  ;;  %v5297_v51 = vsel %vm5265_vm5, %v5232_v6, %v5233_v8  ;;  %v9607_v24 = vadd.f32 %v7194_v35, %v10145_v18  ;;  %v3133_v40 = vsel %vm9585_vm6, 0.0, %v10146_v0  ;;  %v3956_v3 = vpop.f32.mrb[105].mxu1 }
 0x308   : > { %5814 = vst.msk [vmem:[%s9219_s15 + $0x70] sm:$0xf] %vm5785_vm7, %v6469_v34  ;;  %5815 = vst.msk [vmem:[%s9219_s15 + $0x74] sm:$0xf] %vm5785_vm7, %v6470_v58  ;;  %v5361_v62 = vsel %vm9596_vm8, 0.0, %v5297_v51  ;;  %v5294_v30 = vsel %vm5265_vm5, %v5235_v43, %v5236_v29  ;;  %v1039_v6 = vand.u32 31, %v761_v44  ;;  %v9620_v19 = vadd.f32 %v3956_v3, %v3133_v40 }
 0x309   : > { %v7195_v1 = vpop.f32.mrb[106].mxu1  ;;  %v5425_v15 = vadd.f32 %v5361_v62, %v9472_v5  ;;  %v5428_v2 = vadd.f32 %v5294_v30, %v9501_v13  ;;  %v5295_v42 = vsel %vm5265_vm5, %v5234_v53, %v5235_v43  ;;  %v5296_v36 = vsel %vm5265_vm5, %v5233_v8, %v5234_v53  ;;  %v7388_v26 = vpop.f32.mrb[100].mxu0  ;;  %v10153_v18 = vld [vmem:[#allocation10_spill] sm:$0xff]  ;;  %v10154_v40 = vld [vmem:[#allocation9_spill] sm:$0xff] }
 0x30a   : > { %v3959_v50 = vpop.f32.mrb[107].mxu1  ;;  %v5426_v54 = vadd.f32 %v5296_v36, %v9514_v32  ;;  %v5427_v20 = vadd.f32 %v5295_v42, %v9528_v4  ;;  %v9631_v49 = vadd.f32 %v7195_v1, %v10147_v7  ;;  %vm9638_vm9 = vcmp.eq.s32.totalorder %v1102_v38, 0  ;;  %v4962_v21 = vpop.f32.mrb[101].mxu0 }
 0x30b   : > { %v9634_v41 = vadd.f32 %v3959_v50, %v10148_v59  ;;  %v5496_v5 = vadd.f32 %v9192_v25, %v5425_v15  ;;  %v5499_v13 = vadd.f32 %v9192_v25, %v5428_v2  ;;  %v1130_v63 = vand.u32 31, %v9594_v46  ;;  %v7389_v8 = vpop.f32.mrb[102].mxu0  ;;  %v10155_v59 = vld [vmem:[#allocation30_spill] sm:$0xff] }
 0x30c   : > { %v5497_v32 = vadd.f32 %v9192_v25, %v5426_v54  ;;  %v5498_v4 = vadd.f32 %v9192_v25, %v5427_v20  ;;  %v765_v44 = vadd.s32 312, %v8589_v22  ;;  %v9647_v16 = vadd.s32 416, %v8589_v22  ;;  %v4965_v61 = vpop.f32.mrb[103].mxu0 }
 0x30d   : > { %v6472_v48 = vpack.c.bf16 %v5496_v5, %v5496_v5  ;;  %v6475_v57 = vpack.c.bf16 %v5499_v13, %v5499_v13  ;;  %vm9649_vm10 = vcmp.eq.s32.totalorder %v1039_v6, 31  ;;  %v5237_v46 = vrot.slane %v4962_v21, 1  ;;  %v10156_v13 = vld [vmem:[#allocation31_spill] sm:$0xff] }
 0x30e   : > { %v6473_v55 = vpack.c.bf16 %v5497_v32, %v5497_v32  ;;  %v6474_v34 = vpack.c.bf16 %v5498_v4, %v5498_v4  ;;  %v5239_v58 = vrot.slane %v7388_v26, 1  ;;  %v5240_v43 = vrot.slane %v7389_v8, 1  ;;  %v7198_v35 = vpop.f32.mrb[108].mxu1 }
 0x30f   : > { %5817 = vst.msk [vmem:[%s9219_s15 + $0x7c] sm:$0xf] %vm5785_vm7, %v6472_v48  ;;  %5820 = vst.msk [vmem:[%s9219_s15 + $0x88] sm:$0xf] %vm5785_vm7, %v6475_v57  ;;  %v5293_v51 = vsel %vm5265_vm5, %v5236_v29, %v5237_v46  ;;  %v5238_v53 = vrot.slane %v4965_v61, 1  ;;  %v9660_v0 = vadd.f32 %v7198_v35, %v10153_v18  ;;  %v3137_v3 = vsel %vm9638_vm9, 0.0, %v10154_v40 }
 0x310   : > { %v3972_v62 = vpop.f32.mrb[109].mxu1  ;;  %5818 = vst.msk [vmem:[%s9219_s15 + $0x80] sm:$0xf] %vm5785_vm7, %v6473_v55  ;;  %5819 = vst.msk [vmem:[%s9219_s15 + $0x84] sm:$0xf] %vm5785_vm7, %v6474_v34  ;;  %v5365_v30 = vsel %vm9649_vm10, 0.0, %v5293_v51  ;;  %v5290_v6 = vsel %vm5265_vm5, %v5239_v58, %v5240_v43 }
 0x311   : > { %v1067_v29 = vand.u32 31, %v765_v44  ;;  %v9673_v1 = vadd.f32 %v3972_v62, %v3137_v3  ;;  %v7199_v15 = vpop.f32.mrb[110].mxu1  ;;  %v5429_v2 = vadd.f32 %v5365_v30, %v9525_v52  ;;  %v5432_v42 = vadd.f32 %v5290_v6, %v9554_v47  ;;  %v7392_v56 = vpop.f32.mrb[104].mxu0  ;;  %v10161_v40 = vld [vmem:[#allocation11_spill] sm:$0xff] }
 0x312   : > { %v5291_v36 = vsel %vm5265_vm5, %v5238_v53, %v5239_v58  ;;  %v5292_v50 = vsel %vm5265_vm5, %v5237_v46, %v5238_v53  ;;  %v3975_v54 = vpop.f32.mrb[111].mxu1  ;;  %v9684_v5 = vadd.f32 %v7199_v15, %v10155_v59  ;;  %vm9691_vm11 = vcmp.eq.s32.totalorder %v1130_v63, 0  ;;  %v4978_v21 = vpop.f32.mrb[105].mxu0 }
 0x313   : > { %v5430_v20 = vadd.f32 %v5292_v50, %v9567_v31  ;;  %v5431_v7 = vadd.f32 %v5291_v36, %v9581_v9  ;;  %v9687_v26 = vadd.f32 %v3975_v54, %v10156_v13  ;;  %v5500_v52 = vadd.f32 %v9192_v25, %v5429_v2  ;;  %v7393_v46 = vpop.f32.mrb[106].mxu0 }
 0x314   : > { %v5503_v47 = vadd.f32 %v9192_v25, %v5432_v42  ;;  %v1158_v4 = vand.u32 31, %v9647_v16  ;;  %v769_v44 = vadd.s32 344, %v8589_v22  ;;  %v9700_v48 = vadd.s32 448, %v8589_v22  ;;  %v4981_v61 = vpop.f32.mrb[107].mxu0 }
 0x315   : > { %v5501_v31 = vadd.f32 %v9192_v25, %v5430_v20  ;;  %v5502_v9 = vadd.f32 %v9192_v25, %v5431_v7  ;;  %v6476_v57 = vpack.c.bf16 %v5500_v52, %v5500_v52  ;;  %vm9702_vm12 = vcmp.eq.s32.totalorder %v1067_v29, 31  ;;  %v10162_v7 = vld [vmem:[#allocation32_spill] sm:$0xff] }
 0x316   : > { %v6479_v38 = vpack.c.bf16 %v5503_v47, %v5503_v47  ;;  %v5241_v16 = vrot.slane %v4978_v21, 1  ;;  %v5243_v34 = vrot.slane %v7392_v56, 1  ;;  %v5244_v58 = vrot.slane %v7393_v46, 1  ;;  %v7202_v35 = vpop.f32.mrb[112].mxu1 }
 0x317   : > { %v6477_v8 = vpack.c.bf16 %v5501_v31, %v5501_v31  ;;  %v6478_v55 = vpack.c.bf16 %v5502_v9, %v5502_v9  ;;  %5821 = vst.msk [vmem:[%s9219_s15 + $0x8c] sm:$0xf] %vm5785_vm7, %v6476_v57  ;;  %v5242_v53 = vrot.slane %v4981_v61, 1  ;;  %v9713_v18 = vadd.f32 %v7202_v35, %v8933_v10  ;;  %v3988_v62 = vpop.f32.mrb[113].mxu1  ;;  %v10167_v35 = vld [vmem:[#allocation12_spill] sm:$0xff] }
 0x318   : > { %5824 = vst.msk [vmem:[%s9219_s15 + $0x98] sm:$0xf] %vm5785_vm7, %v6479_v38  ;;  %v5289_v51 = vsel %vm5265_vm5, %v5240_v43, %v5241_v16  ;;  %v3141_v3 = vsel %vm9691_vm11, 0.0, %v10161_v40  ;;  %v5286_v6 = vsel %vm5265_vm5, %v5243_v34, %v5244_v58  ;;  %v1095_v43 = vand.u32 31, %v769_v44  ;;  %v7203_v10 = vpop.f32.mrb[114].mxu1  ;;  %v7396_v52 = vpop.f32.mrb[108].mxu0 }
 0x319   : > { %5822 = vst.msk [vmem:[%s9219_s15 + $0x90] sm:$0xf] %vm5785_vm7, %v6477_v8  ;;  %5823 = vst.msk [vmem:[%s9219_s15 + $0x94] sm:$0xf] %vm5785_vm7, %v6478_v55  ;;  %v5369_v30 = vsel %vm9702_vm12, 0.0, %v5289_v51  ;;  %v9726_v29 = vadd.f32 %v3988_v62, %v3141_v3  ;;  %v5436_v2 = vadd.f32 %v5286_v6, %v9607_v24  ;;  %v5287_v42 = vsel %vm5265_vm5, %v5242_v53, %v5243_v34  ;;  %v3991_v50 = vpop.f32.mrb[115].mxu1 }
 0x31a   : > { %v5433_v15 = vadd.f32 %v5369_v30, %v9578_v11  ;;  %v5288_v36 = vsel %vm5265_vm5, %v5241_v16, %v5242_v53  ;;  %v5435_v20 = vadd.f32 %v5287_v42, %v9634_v41  ;;  %v9737_v59 = vadd.f32 %v7203_v10, %v10162_v7  ;;  %v4994_v32 = vpop.f32.mrb[109].mxu0 }
 0x31b   : > { %v5434_v54 = vadd.f32 %v5288_v36, %v9620_v19  ;;  %v9740_v13 = vadd.f32 %v3991_v50, %v8937_v12  ;;  %v5507_v24 = vadd.f32 %v9192_v25, %v5436_v2  ;;  %vm9744_vm13 = vcmp.eq.s32.totalorder %v1158_v4, 0  ;;  %v10168_v36 = vld [vmem:[#allocation13_spill] sm:$0xff] }
 0x31c   : > { %v5504_v11 = vadd.f32 %v9192_v25, %v5433_v15  ;;  %v1186_v56 = vand.u32 31, %v9700_v48  ;;  %v5506_v41 = vadd.f32 %v9192_v25, %v5435_v20  ;;  %v773_v12 = vadd.s32 376, %v8589_v22  ;;  %v7397_v48 = vpop.f32.mrb[110].mxu0 }
 0x31d   : > { %v5505_v19 = vadd.f32 %v9192_v25, %v5434_v54  ;;  %v9753_v31 = vadd.s32 480, %v8589_v22  ;;  %v6483_v21 = vpack.c.bf16 %v5507_v24, %v5507_v24  ;;  %vm9755_vm14 = vcmp.eq.s32.totalorder %v1095_v43, 31  ;;  %v4997_v46 = vpop.f32.mrb[111].mxu0 }
 0x31e   : > { %v6480_v9 = vpack.c.bf16 %v5504_v11, %v5504_v11  ;;  %v5245_v44 = vrot.slane %v4994_v32, 1  ;;  %v6482_v38 = vpack.c.bf16 %v5506_v41, %v5506_v41  ;;  %v5247_v63 = vrot.slane %v7396_v52, 1  ;;  %v7206_v8 = vpop.f32.mrb[116].mxu1 }
 0x31f   : > { %v6481_v57 = vpack.c.bf16 %v5505_v19, %v5505_v19  ;;  %v5248_v16 = vrot.slane %v7397_v48, 1  ;;  %5828 = vst.msk [vmem:[%s9219_s15 + $0xa8] sm:$0xf] %vm5785_vm7, %v6483_v21  ;;  %v5246_v34 = vrot.slane %v4997_v46, 1  ;;  %v9766_v61 = vadd.f32 %v7206_v8, %v8957_v27  ;;  %v4004_v53 = vpop.f32.mrb[117].mxu1 }
 0x320   : > { %5825 = vst.msk [vmem:[%s9219_s15 + $0x9c] sm:$0xf] %vm5785_vm7, %v6480_v9  ;;  %v5285_v55 = vsel %vm5265_vm5, %v5244_v58, %v5245_v44  ;;  %v3145_v51 = vsel %vm9744_vm13, 0.0, %v10167_v35  ;;  %5827 = vst.msk [vmem:[%s9219_s15 + $0xa4] sm:$0xf] %vm5785_vm7, %v6482_v38  ;;  %v1123_v58 = vand.u32 31, %v773_v12 }
 0x321   : > { %5826 = vst.msk [vmem:[%s9219_s15 + $0xa0] sm:$0xf] %vm5785_vm7, %v6481_v57  ;;  %v5373_v40 = vsel %vm9755_vm14, 0.0, %v5285_v55  ;;  %v5282_v3 = vsel %vm5265_vm5, %v5247_v63, %v5248_v16  ;;  %v9779_v62 = vadd.f32 %v4004_v53, %v3145_v51  ;;  %v7207_v27 = vpop.f32.mrb[118].mxu1  ;;  %v5283_v43 = vsel %vm5265_vm5, %v5246_v34, %v5247_v63  ;;  %v7400_v20 = vpop.f32.mrb[112].mxu0 }
 0x322   : > { %v5437_v30 = vadd.f32 %v5373_v40, %v9631_v49  ;;  %v5440_v6 = vadd.f32 %v5282_v3, %v9660_v0  ;;  %v5284_v10 = vsel %vm5265_vm5, %v5245_v44, %v5246_v34  ;;  %v4007_v15 = vpop.f32.mrb[119].mxu1  ;;  %v5439_v42 = vadd.f32 %v5283_v43, %v9687_v26  ;;  %v5010_v26 = vpop.f32.mrb[113].mxu0 }
 0x323   : > { %v5438_v2 = vadd.f32 %v5284_v10, %v9673_v1  ;;  %v9790_v50 = vadd.f32 %v7207_v27, %v10168_v36  ;;  %v9793_v54 = vadd.f32 %v4007_v15, %v8961_v33  ;;  %vm9797_vm15 = vcmp.eq.s32.totalorder %v1186_v56, 0  ;;  %v7401_v41 = vpop.f32.mrb[114].mxu0 }
 0x324   : > { %v5508_v49 = vadd.f32 %v9192_v25, %v5437_v30  ;;  %v5511_v0 = vadd.f32 %v9192_v25, %v5440_v6  ;;  %v5510_v1 = vadd.f32 %v9192_v25, %v5439_v42  ;;  %v777_v24 = vadd.s32 408, %v8589_v22  ;;  %v5013_v21 = vpop.f32.mrb[115].mxu0 }
 0x325   : > { %v5509_v11 = vadd.f32 %v9192_v25, %v5438_v2  ;;  %v1214_v33 = vand.u32 31, %v9753_v31  ;;  %vm9805_vm0 = vcmp.eq.s32.totalorder %v1123_v58, 31  ;;  %v5249_v56 = vrot.slane %v5010_v26, 1 }
 0x326   : > { %v6484_v52 = vpack.c.bf16 %v5508_v49, %v5508_v49  ;;  %v6487_v47 = vpack.c.bf16 %v5511_v0, %v5511_v0  ;;  %v6486_v12 = vpack.c.bf16 %v5510_v1, %v5510_v1  ;;  %v5251_v9 = vrot.slane %v7400_v20, 1  ;;  %v7210_v4 = vpop.f32.mrb[120].mxu1 }
 0x327   : > { %v6485_v32 = vpack.c.bf16 %v5509_v11, %v5509_v11  ;;  %v5252_v25 = vrot.slane %v7401_v41, 1  ;;  %v5281_v31 = vsel %vm5265_vm5, %v5248_v16, %v5249_v56  ;;  %v5250_v44 = vrot.slane %v5013_v21, 1  ;;  %v4020_v38 = vpop.f32.mrb[121].mxu1 }
 0x328   : > { %5829 = vst.msk [vmem:[%s9219_s15 + $0xac] sm:$0xf] %vm5785_vm7, %v6484_v52  ;;  %5832 = vst.msk [vmem:[%s9219_s15 + $0xb8] sm:$0xf] %vm5785_vm7, %v6487_v47  ;;  %v9816_v48 = vadd.f32 %v7210_v4, %v8981_v37  ;;  %v3149_v57 = vsel %vm9797_vm15, 0.0, %v8971_v45  ;;  %v5377_v63 = vsel %vm9805_vm0, 0.0, %v5281_v31 }
 0x329   : > { %5830 = vst.msk [vmem:[%s9219_s15 + $0xb0] sm:$0xf] %vm5785_vm7, %v6485_v32  ;;  %5831 = vst.msk [vmem:[%s9219_s15 + $0xb4] sm:$0xf] %vm5785_vm7, %v6486_v12  ;;  %v5278_v46 = vsel %vm5265_vm5, %v5251_v9, %v5252_v25  ;;  %v1151_v16 = vand.u32 31, %v777_v24  ;;  %v9829_v8 = vadd.f32 %v4020_v38, %v3149_v57  ;;  %v7211_v37 = vpop.f32.mrb[122].mxu1  ;;  %v5441_v55 = vadd.f32 %v5377_v63, %v9684_v5 }
 0x32a   : > { %v5444_v34 = vadd.f32 %v5278_v46, %v9713_v18  ;;  %v5279_v45 = vsel %vm5265_vm5, %v5250_v44, %v5251_v9  ;;  %v5280_v35 = vsel %vm5265_vm5, %v5249_v56, %v5250_v44  ;;  %v4023_v51 = vpop.f32.mrb[123].mxu1  ;;  %v9840_v3 = vadd.f32 %v7211_v37, %v8975_v60  ;;  %v9848_v5 = vld [vmem:[%s10006_s4] ss:$0 sm:$0xff]  ;;  %v7404_v30 = vpop.f32.mrb[116].mxu0 }
 0x32b   : > { %v5442_v53 = vadd.f32 %v5280_v35, %v9726_v29  ;;  %v5443_v40 = vadd.f32 %v5279_v45, %v9740_v13  ;;  %v9843_v58 = vadd.f32 %v4023_v51, %v8985_v17  ;;  %v5512_v18 = vadd.f32 %v9848_v5, %v5441_v55  ;;  %v5026_v60 = vpop.f32.mrb[117].mxu0 }
 0x32c   : > { %v5515_v27 = vadd.f32 %v9848_v5, %v5444_v34  ;;  %v781_v17 = vadd.s32 440, %v8589_v22  ;;  %vm9855_vm1 = vcmp.eq.s32.totalorder %v1214_v33, 0  ;;  %vm9859_vm2 = vcmp.eq.s32.totalorder %v1151_v16, 31  ;;  %v7405_v42 = vpop.f32.mrb[118].mxu0 }
 0x32d   : > { %v5513_v29 = vadd.f32 %v9848_v5, %v5442_v53  ;;  %v5514_v13 = vadd.f32 %v9848_v5, %v5443_v40  ;;  %v6488_v43 = vpack.c.bf16 %v5512_v18, %v5512_v18  ;;  %v5253_v2 = vrot.slane %v5026_v60, 1  ;;  %v5029_v7 = vpop.f32.mrb[119].mxu0 }
 0x32e   : > { %v6491_v10 = vpack.c.bf16 %v5515_v27, %v5515_v27  ;;  %v5255_v0 = vrot.slane %v7404_v30, 1  ;;  %v5256_v20 = vrot.slane %v7405_v42, 1  ;;  %v7214_v11 = vpop.f32.mrb[124].mxu1  ;;  %v5254_v26 = vrot.slane %v5029_v7, 1 }
 0x32f   : > { %v6489_v36 = vpack.c.bf16 %v5513_v29, %v5513_v29  ;;  %v6490_v49 = vpack.c.bf16 %v5514_v13, %v5514_v13  ;;  %5833 = vst.msk [vmem:[%s9219_s15 + $0xbc] sm:$0xf] %vm5785_vm7, %v6488_v43  ;;  %v5277_v1 = vsel %vm5265_vm5, %v5252_v25, %v5253_v2  ;;  %v9870_v24 = vadd.f32 %v7214_v11, %v9015_v14  ;;  %v4036_v52 = vpop.f32.mrb[125].mxu1 }
 0x330   : > { %5836 = vst.msk [vmem:[%s9219_s15 + $0xc8] sm:$0xf] %vm5785_vm7, %v6491_v10  ;;  %v3153_v33 = vsel %vm9855_vm1, 0.0, %v8999_v28  ;;  %v5381_v47 = vsel %vm9859_vm2, 0.0, %v5277_v1  ;;  %v5274_v19 = vsel %vm5265_vm5, %v5255_v0, %v5256_v20  ;;  %v1179_v56 = vand.u32 31, %v781_v17  ;;  %v7215_v14 = vpop.f32.mrb[126].mxu1 }
 0x331   : > { %5834 = vst.msk [vmem:[%s9219_s15 + $0xc0] sm:$0xf] %vm5785_vm7, %v6489_v36  ;;  %5835 = vst.msk [vmem:[%s9219_s15 + $0xc4] sm:$0xf] %vm5785_vm7, %v6490_v49  ;;  %v9883_v41 = vadd.f32 %v4036_v52, %v3153_v33  ;;  %v5445_v32 = vadd.f32 %v5381_v47, %v9737_v59  ;;  %v5448_v12 = vadd.f32 %v5274_v19, %v9766_v61  ;;  %v4039_v25 = vpop.f32.mrb[127].mxu1  ;;  %v7408_v57 = vpop.f32.mrb[120].mxu0 }
 0x332   : > { %v5275_v28 = vsel %vm5265_vm5, %v5254_v26, %v5255_v0  ;;  %v5276_v9 = vsel %vm5265_vm5, %v5253_v2, %v5254_v26  ;;  %v9894_v31 = vadd.f32 %v7215_v14, %v9009_v23  ;;  %v9897_v44 = vadd.f32 %v4039_v25, %v9019_v39 }
 0x333   : > { %v5446_v21 = vadd.f32 %v5276_v9, %v9779_v62  ;;  %v5447_v4 = vadd.f32 %v5275_v28, %v9793_v54  ;;  %v5516_v59 = vadd.f32 %v9848_v5, %v5445_v32  ;;  %v5519_v61 = vadd.f32 %v9848_v5, %v5448_v12  ;;  %v5042_v62 = vpop.f32.mrb[121].mxu0  ;;  %v10183_v12 = vld [vmem:[#allocation14_spill] sm:$0xff] }
 0x334   : > { %v785_v54 = vadd.s32 472, %v8589_v22  ;;  %v789_v23 = vadd.s32 504, %v8589_v22  ;;  %vm9905_vm3 = vcmp.eq.s32.totalorder %v1179_v56, 31  ;;  %v5257_v37 = vrot.slane %v5042_v62, 1  ;;  %v7409_v55 = vpop.f32.mrb[122].mxu0 }
 0x335   : > { %v5517_v38 = vadd.f32 %v9848_v5, %v5446_v21  ;;  %v5518_v63 = vadd.f32 %v9848_v5, %v5447_v4  ;;  %v6492_v39 = vpack.c.bf16 %v5516_v59, %v5516_v59  ;;  %v6495_v46 = vpack.c.bf16 %v5519_v61, %v5519_v61  ;;  %v5045_v53 = vpop.f32.mrb[123].mxu0 }
 0x336   : > { %v5259_v35 = vrot.slane %v7408_v57, 1  ;;  %v5260_v51 = vrot.slane %v7409_v55, 1  ;;  %v5273_v40 = vsel %vm5265_vm5, %v5256_v20, %v5257_v37  ;;  %v5258_v18 = vrot.slane %v5045_v53, 1 }
 0x337   : > { %v6493_v34 = vpack.c.bf16 %v5517_v38, %v5517_v38  ;;  %v6494_v45 = vpack.c.bf16 %v5518_v63, %v5518_v63  ;;  %5837 = vst.msk [vmem:[%s9219_s15 + $0xcc] sm:$0xf] %vm5785_vm7, %v6492_v39  ;;  %5840 = vst.msk [vmem:[%s9219_s15 + $0xd8] sm:$0xf] %vm5785_vm7, %v6495_v46  ;;  %v5385_v27 = vsel %vm9905_vm3, 0.0, %v5273_v40  ;;  %v1207_v29 = vand.u32 31, %v785_v54 }
 0x338   : > { %v5270_v30 = vsel %vm5265_vm5, %v5259_v35, %v5260_v51  ;;  %v1235_v13 = vand.u32 31, %v789_v23  ;;  %v5449_v60 = vadd.f32 %v5385_v27, %v9790_v50  ;;  %v5271_v6 = vsel %vm5265_vm5, %v5258_v18, %v5259_v35  ;;  %v7412_v36 = vpop.f32.mrb[124].mxu0 }
 0x339   : > { %5838 = vst.msk [vmem:[%s9219_s15 + $0xd0] sm:$0xf] %vm5785_vm7, %v6493_v34  ;;  %5839 = vst.msk [vmem:[%s9219_s15 + $0xd4] sm:$0xf] %vm5785_vm7, %v6494_v45  ;;  %v5452_v17 = vadd.f32 %v5270_v30, %v9816_v48  ;;  %v5272_v43 = vsel %vm5265_vm5, %v5257_v37, %v5258_v18  ;;  %v5451_v15 = vadd.f32 %v5271_v6, %v9843_v58  ;;  %v5058_v49 = vpop.f32.mrb[125].mxu0  ;;  %vm9935_vm4 = vcmp.eq.s32.totalorder %v1207_v29, 31 }
 0x33a   : > { %v5450_v10 = vadd.f32 %v5272_v43, %v9829_v8  ;;  %v5520_v2 = vadd.f32 %v9848_v5, %v5449_v60  ;;  %v5261_v20 = vrot.slane %v5058_v49, 1  ;;  %v7413_v7 = vpop.f32.mrb[126].mxu0  ;;  %vm9939_vm6 = vcmp.eq.s32.totalorder %v1235_v13, 31 }
 0x33b   : > { %v5523_v42 = vadd.f32 %v9848_v5, %v5452_v17  ;;  %v5522_v48 = vadd.f32 %v9848_v5, %v5451_v15  ;;  %v5263_v33 = vrot.slane %v7412_v36, 1  ;;  %v5264_v52 = vrot.slane %v7413_v7, 1  ;;  %v5061_v47 = vpop.f32.mrb[127].mxu0 }
 0x33c   : > { %v5521_v50 = vadd.f32 %v9848_v5, %v5450_v10  ;;  %v6496_v8 = vpack.c.bf16 %v5520_v2, %v5520_v2  ;;  %v5269_v19 = vsel %vm5265_vm5, %v5260_v51, %v5261_v20  ;;  %v5262_v56 = vrot.slane %v5061_v47, 1 }
 0x33d   : > { %v6499_v58 = vpack.c.bf16 %v5523_v42, %v5523_v42  ;;  %v6498_v26 = vpack.c.bf16 %v5522_v48, %v5522_v48  ;;  %v5389_v14 = vsel %vm9935_vm4, 0.0, %v5269_v19  ;;  %v5266_v32 = vsel %vm5265_vm5, %v5263_v33, %v5264_v52 }
 0x33e   : > { %v6497_v1 = vpack.c.bf16 %v5521_v50, %v5521_v50  ;;  %5841 = vst.msk [vmem:[%s9219_s15 + $0xdc] sm:$0xf] %vm5785_vm7, %v6496_v8  ;;  %v10184_v28 = vrot.slane %v10183_v12, 1  ;;  %v5453_v25 = vadd.f32 %v5389_v14, %v9840_v3  ;;  %v5456_v4 = vadd.f32 %v5266_v32, %v9870_v24 }
 0x33f   : > { %5844 = vst.msk [vmem:[%s9219_s15 + $0xe8] sm:$0xf] %vm5785_vm7, %v6499_v58  ;;  %5843 = vst.msk [vmem:[%s9219_s15 + $0xe4] sm:$0xf] %vm5785_vm7, %v6498_v26  ;;  %v5267_v59 = vsel %vm5265_vm5, %v5262_v56, %v5263_v33  ;;  %v5268_v57 = vsel %vm5265_vm5, %v5261_v20, %v5262_v56 }
 0x340   : > { %5842 = vst.msk [vmem:[%s9219_s15 + $0xe0] sm:$0xf] %vm5785_vm7, %v6497_v1  ;;  %v5329_v9 = vsel %vm5265_vm5, %v5264_v52, %v10184_v28  ;;  %v5455_v38 = vadd.f32 %v5267_v59, %v9897_v44  ;;  %v5524_v3 = vadd.f32 %v9848_v5, %v5453_v25  ;;  %v5527_v63 = vadd.f32 %v9848_v5, %v5456_v4 }
 0x341   : > { %v5393_v21 = vsel %vm9939_vm6, 0.0, %v5329_v9  ;;  %v5454_v24 = vadd.f32 %v5268_v57, %v9883_v41 }
 0x342   : > { %v5457_v61 = vadd.f32 %v5393_v21, %v9894_v31  ;;  %v5526_v54 = vadd.f32 %v9848_v5, %v5455_v38  ;;  %v6500_v23 = vpack.c.bf16 %v5524_v3, %v5524_v3  ;;  %v6503_v31 = vpack.c.bf16 %v5527_v63, %v5527_v63 }
 0x343   : > { %v5525_v22 = vadd.f32 %v9848_v5, %v5454_v24 }
 0x344   : > { %v5528_v62 = vadd.f32 %v9848_v5, %v5457_v61  ;;  %v6502_v46 = vpack.c.bf16 %v5526_v54, %v5526_v54  ;;  %5845 = vst.msk [vmem:[%s9219_s15 + $0xec] sm:$0xf] %vm5785_vm7, %v6500_v23  ;;  %5848 = vst.msk [vmem:[%s9219_s15 + $0xf8] sm:$0xf] %vm5785_vm7, %v6503_v31 }
 0x345   : > { %v6501_v44 = vpack.c.bf16 %v5525_v22, %v5525_v22 }
 0x346   : > { %v6504_v39 = vpack.c.bf16 %v5528_v62, %v5528_v62  ;;  %5847 = vst.msk [vmem:[%s9219_s15 + $0xf4] sm:$0xf] %vm5785_vm7, %v6502_v46 }
 0x347   : > { %5846 = vst.msk [vmem:[%s9219_s15 + $0xf0] sm:$0xf] %vm5785_vm7, %v6501_v44 }
 0x348   : > { %5849 = vst.msk [vmem:[%s9219_s15 + $0xfc] sm:$0xf] %vm5785_vm7, %v6504_v39 }
 0x349 PF: > { %s15_s22 = sadd.s32 1, %s7952_s22   ;;  %s10185_s18 = smov %s7944_s20 }
 0x34a   : > { %p12_p12 = scmp.ge.s32.totalorder %s15_s22, 6   ;;  %s10186_s19 = smov %s7948_s21 }
 0x34b   : > { %s10187_s20 = smov %s10190_s23  ;;  %s10188_s21 = smov %s10194_s24 }
 0x34c   :  { %14 = sbr.rel (!%p12_p12) target bundleno = 3 (0x3), region = 87 }

</bundles_post_ra>
